<compile_context>
chip_gen: v5e
topology: v5e:2x2
jax: 0.10.0
libtpu: 0.0.40
codegen_flags: <defaults>
</compile_context>

<pallas_src>
import functools

import jax
import jax.numpy as jnp
from jax.experimental import pallas as pl
from jax.experimental.pallas import tpu as pltpu


VMEM_LIMIT_BYTES = 64 * 1024 * 1024   # explicit scoped-VMEM cap (<= physical on all gens)


def _cparams(*dim_sem):
    return pltpu.CompilerParams(dimension_semantics=dim_sem,
                                vmem_limit_bytes=VMEM_LIMIT_BYTES)


def _round_up(x, m):
    return ((x + m - 1) // m) * m


# ----------------------------------------------------------------------------
# Pallas kernels
# ----------------------------------------------------------------------------

def _gemm_bias_act_kernel(x_ref, w_ref, b_ref, o_ref, acc_ref, *, act):
    """(TM,TK)x(TK,TN) tile: bf16 MXU operands, fp32 accumulation across the K
    grid axis, folded-BN bias + optional SiLU epilogue on the last K step."""
    @pl.when(pl.program_id(2) == 0)
    def _():
        acc_ref[...] = jnp.zeros_like(acc_ref)

    acc_ref[...] += jnp.dot(x_ref[...].astype(jnp.bfloat16),
                            w_ref[...].astype(jnp.bfloat16),
                            preferred_element_type=jnp.float32)

    @pl.when(pl.program_id(2) == pl.num_programs(2) - 1)
    def _():
        r = acc_ref[...] + b_ref[...]                 # (TM,TN) + (1,TN)
        if act == "silu":
            r = r * jax.nn.sigmoid(r)                 # f32 epilogue (v5e-safe)
        o_ref[...] = r.astype(o_ref.dtype)


def _dwconv_bn_silu_pool_kernel(xp_ref, w_ref, b_ref, o_ref, pool_ref, *, k):
    """Depthwise kxk conv (taps formed in-kernel from the padded image) +
    folded-BN bias + SiLU, plus a fused per-image global average pool
    (the SE squeeze) as a second output.  One image per grid step."""
    Hf, Wf, C = o_ref.shape[1], o_ref.shape[2], o_ref.shape[3]
    x = xp_ref[...]                                    # (1, Hp, Wp, C)
    w = w_ref[...].reshape(k * k, 1, 1, C)             # hoisted tap broadcasts
    # init from tap 0 (saves one full (Hf,Wf,C) VALU pass)
    acc = x[0, 0:Hf, 0:Wf, :].astype(jnp.float32) * w[0]
    for dy in range(k):                                # static, unrolled taps
        for dx in range(k):
            if dy == 0 and dx == 0:
                continue
            acc = acc + (x[0, dy:dy + Hf, dx:dx + Wf, :].astype(jnp.float32)
                         * w[dy * k + dx])
    acc = acc + b_ref[...]                             # (Hf,Wf,C) + (1,C)
    acc = acc * jax.nn.sigmoid(acc)                    # SiLU
    o_ref[...] = acc[None].astype(o_ref.dtype)
    pool_ref[...] = jnp.mean(acc, axis=(0, 1), keepdims=True)   # (1,1,C) fp32


def _se_scale_proj_kernel(x_ref, pooled_ref, w1_ref, b1_ref, w2_ref, b2_ref,
                          wp_ref, bp_ref, *rest, has_res):
    """Fused: SE excitation (tiny FCs on the precomputed squeeze) -> channel
    scale -> project 1x1 conv + folded BN -> optional residual add."""
    if has_res:
        res_ref, o_ref = rest
    else:
        (o_ref,) = rest
    pooled = pooled_ref[0]                             # (1, Cmid)
    h = jnp.dot(pooled, w1_ref[...], preferred_element_type=jnp.float32) + b1_ref[...]
    h = h * jax.nn.sigmoid(h)                          # SiLU
    s = jax.nn.sigmoid(jnp.dot(h, w2_ref[...],
                               preferred_element_type=jnp.float32) + b2_ref[...])
    xs = x_ref[0].astype(jnp.float32) * s              # (THW, Cmid) scaled
    acc = jnp.dot(xs.astype(jnp.bfloat16), wp_ref[...].astype(jnp.bfloat16),
                  preferred_element_type=jnp.float32) + bp_ref[...]
    if has_res:
        acc = acc + res_ref[0].astype(jnp.float32)     # fused residual add
    o_ref[...] = acc[None].astype(o_ref.dtype)


def _two_head_kernel(x_ref, w_ref, b_ref, o_ref):
    """adaptive_avg_pool2d((1,1)) + flatten + dropout(eval=id) + both Linear
    heads fused into one lane-dense (N padded to 128) GEMM."""
    x = x_ref[...].astype(jnp.float32)                 # (B, HW, F)
    pooled = jnp.mean(x, axis=1)                       # (B, F)  == pool+flatten
    y = jnp.dot(pooled.astype(jnp.bfloat16), w_ref[...].astype(jnp.bfloat16),
                preferred_element_type=jnp.float32) + b_ref[...]
    o_ref[...] = y.astype(o_ref.dtype)


# ----------------------------------------------------------------------------
# Pallas-call wrappers
# ----------------------------------------------------------------------------

def pallas_gemm_bias_act(x, w, b, act):
    """x: (M, K) @ w: (K, N) + b: (N,) [+ SiLU].  MXU-sized tiles; ragged M/N
    tails handled by masked partial stores (no pad / slice copies in HBM)."""
    M, K = x.shape
    N = w.shape[1]
    TM = M if M <= 256 else 256
    TN = N if N <= 256 else 256
    # Whole K per step at these sizes; split only when large AND it divides
    # cleanly (a ragged K tail is not safe to accumulate).
    TK = K if K <= 1024 else (512 if K % 512 == 0 else K)
    grid = (pl.cdiv(M, TM), pl.cdiv(N, TN), pl.cdiv(K, TK))
    return pl.pallas_call(
        functools.partial(_gemm_bias_act_kernel, act=act),
        out_shape=jax.ShapeDtypeStruct((M, N), x.dtype),
        grid=grid,
        in_specs=[
            pl.BlockSpec((TM, TK), lambda i, j, k: (i, k)),
            pl.BlockSpec((TK, TN), lambda i, j, k: (k, j)),
            pl.BlockSpec((1, TN), lambda i, j, k: (0, j)),
        ],
        out_specs=pl.BlockSpec((TM, TN), lambda i, j, k: (i, j)),
        scratch_shapes=[pltpu.VMEM((TM, TN), jnp.float32)],
        compiler_params=_cparams("parallel", "parallel", "arbitrary"),
    )(x, w, b.reshape(1, N))


def _fold_bn(gamma, beta, mean, var, eps=1e-5):
    scale = gamma / jnp.sqrt(var + eps)
    bias = beta - mean * scale
    return scale, bias


def conv1x1_bn_act(x, w, bn, act):
    """1x1 conv + folded BN + optional SiLU via the tiled Pallas GEMM."""
    B, H, W, C = x.shape
    scale, bias = _fold_bn(*bn)
    wf = w * scale[None, :]
    y = pallas_gemm_bias_act(x.reshape(B * H * W, C), wf, bias, act)
    return y.reshape(B, H, W, -1)


def _im2col(x, k, stride, pad):
    """x: (B,H,W,C) -> (B*Ho*Wo, k*k*C) with (dy, dx, c) ordering (glue)."""
    B, H, W, C = x.shape
    xp = jnp.pad(x, ((0, 0), (pad, pad), (pad, pad), (0, 0)))
    Ho = (H + 2 * pad - k) // stride + 1
    Wo = (W + 2 * pad - k) // stride + 1
    cols = []
    for dy in range(k):
        for dx in range(k):
            cols.append(xp[:, dy:dy + (Ho - 1) * stride + 1:stride,
                           dx:dx + (Wo - 1) * stride + 1:stride, :])
    col = jnp.concatenate(cols, axis=-1)               # (B, Ho, Wo, k*k*C)
    return col.reshape(B * Ho * Wo, k * k * C), (B, Ho, Wo)


def conv_kxk_bn_silu(x, w, bn, k, stride):
    """Regular kxk conv (XLA im2col) + folded BN + SiLU (Pallas GEMM)."""
    scale, bias = _fold_bn(*bn)
    wf = w * scale[None, :]                            # (k*k*Cin, Cout)
    col, (B, Ho, Wo) = _im2col(x, k, stride, pad=k // 2)
    y = pallas_gemm_bias_act(col, wf, bias, act="silu")
    return y.reshape(B, Ho, Wo, -1)


def pallas_dwconv_bn_silu_pool(x, w, bn, stride):
    """Depthwise kxk conv + folded BN + SiLU.  Returns (y, pooled) where
    pooled (B,1,C) is the SE squeeze of y.  No tap stack in HBM."""
    k = w.shape[0]
    B, H, W, C = x.shape
    pad = k // 2
    xp = jnp.pad(x, ((0, 0), (pad, pad), (pad, pad), (0, 0)))
    Hp, Wp = H + 2 * pad, W + 2 * pad
    Hf, Wf = Hp - k + 1, Wp - k + 1                    # stride-1 output extent
    scale, bias = _fold_bn(*bn)
    wf = w.reshape(k * k, C) * scale[None, :]
    y_full, pooled = pl.pallas_call(
        functools.partial(_dwconv_bn_silu_pool_kernel, k=k),
        out_shape=(jax.ShapeDtypeStruct((B, Hf, Wf, C), x.dtype),
                   jax.ShapeDtypeStruct((B, 1, C), jnp.float32)),
        grid=(B,),
        in_specs=[
            pl.BlockSpec((1, Hp, Wp, C), lambda b: (b, 0, 0, 0)),
            pl.BlockSpec((k * k, C), lambda b: (0, 0)),
            pl.BlockSpec((1, C), lambda b: (0, 0)),
        ],
        out_specs=(pl.BlockSpec((1, Hf, Wf, C), lambda b: (b, 0, 0, 0)),
                   pl.BlockSpec((1, 1, C), lambda b: (b, 0, 0))),
        compiler_params=_cparams("parallel"),
    )(xp, wf, bias.reshape(1, C))
    if stride == 1:
        return y_full, pooled
    # TODO(synk): stride>1 path computes stride-1 taps in-kernel and subsamples
    # in XLA (avoids in-kernel strided loads); the SE squeeze is recomputed on
    # the subsampled output to keep exact SE semantics.
    y = y_full[:, ::stride, ::stride, :]
    pooled = jnp.mean(y.astype(jnp.float32), axis=(1, 2)).reshape(B, 1, C)
    return y, pooled


def pallas_se_scale_project(x, pooled, se, proj_w, proj_bn, residual=None):
    """Fused SE excitation + scale + project 1x1 conv (+BN) [+ residual]."""
    w1, b1, w2, b2 = se
    B, H, W, Cmid = x.shape
    HW = H * W
    Csq = w1.shape[1]
    scale, bias = _fold_bn(*proj_bn)
    wp = proj_w * scale[None, :]
    Cout = wp.shape[1]
    THW = HW if HW <= 512 else 512                     # row-tile the spatial axis
    has_res = residual is not None
    args = [x.reshape(B, HW, Cmid), pooled, w1, b1.reshape(1, Csq),
            w2, b2.reshape(1, Cmid), wp, bias.reshape(1, Cout)]
    in_specs = [
        pl.BlockSpec((1, THW, Cmid), lambda b, t: (b, t, 0)),
        pl.BlockSpec((1, 1, Cmid), lambda b, t: (b, 0, 0)),
        pl.BlockSpec((Cmid, Csq), lambda b, t: (0, 0)),
        pl.BlockSpec((1, Csq), lambda b, t: (0, 0)),
        pl.BlockSpec((Csq, Cmid), lambda b, t: (0, 0)),
        pl.BlockSpec((1, Cmid), lambda b, t: (0, 0)),
        pl.BlockSpec((Cmid, Cout), lambda b, t: (0, 0)),
        pl.BlockSpec((1, Cout), lambda b, t: (0, 0)),
    ]
    if has_res:
        args.append(residual.reshape(B, HW, Cout))
        in_specs.append(pl.BlockSpec((1, THW, Cout), lambda b, t: (b, t, 0)))
    out = pl.pallas_call(
        functools.partial(_se_scale_proj_kernel, has_res=has_res),
        out_shape=jax.ShapeDtypeStruct((B, HW, Cout), x.dtype),
        grid=(B, pl.cdiv(HW, THW)),
        in_specs=in_specs,
        out_specs=pl.BlockSpec((1, THW, Cout), lambda b, t: (b, t, 0)),
        compiler_params=_cparams("parallel", "parallel"),
    )(*args)
    return out.reshape(B, H, W, Cout)


def pallas_two_heads(x, w1, b1, w2, b2):
    """Avg-pool + flatten + dropout(id) + two Linear heads as one 128-lane GEMM."""
    B, H, W, F = x.shape
    HW = H * W
    N1, N2 = w1.shape[1], w2.shape[1]
    N = N1 + N2
    NP = _round_up(max(N, 128), 128)                   # lane-dense output
    w_cat = jnp.pad(jnp.concatenate([w1, w2], axis=1), ((0, 0), (0, NP - N)))
    b_cat = jnp.pad(jnp.concatenate([b1, b2], axis=0), (0, NP - N)).reshape(1, NP)
    y = pl.pallas_call(
        _two_head_kernel,
        out_shape=jax.ShapeDtypeStruct((B, NP), x.dtype),
        grid=(1,),
        in_specs=[
            pl.BlockSpec((B, HW, F), lambda i: (0, 0, 0)),
            pl.BlockSpec((F, NP), lambda i: (0, 0)),
            pl.BlockSpec((1, NP), lambda i: (0, 0)),
        ],
        out_specs=pl.BlockSpec((B, NP), lambda i: (0, 0)),
        compiler_params=_cparams("arbitrary"),
    )(x.reshape(B, HW, F), w_cat, b_cat)
    return y[:, :N1], y[:, N1:N]


# ----------------------------------------------------------------------------
# Model definition (EfficientNet-B4-style features, scaled down) + params
# ----------------------------------------------------------------------------

STEM_C = 16
# (expand_ratio, kernel, stride, c_in, c_out) -- MBConv blocks
BLOCKS = [
    (1, 3, 1, 16, 16),
    (4, 3, 2, 16, 24),
    (4, 3, 1, 24, 24),
]
HEAD_C = 64            # "self.size" (real EfficientNet-B4: 1792)
NUM_CLASSES_1 = 10
NUM_CLASSES_2 = 7
DROPOUT_1 = 0.3        # kept for signature parity; identity at inference
DROPOUT_2 = 0.3


def _bn_params(key, c):
    k1, k2, k3, k4 = jax.random.split(key, 4)
    gamma = 1.0 + 0.1 * jax.random.normal(k1, (c,), jnp.float32)
    beta = 0.1 * jax.random.normal(k2, (c,), jnp.float32)
    mean = 0.1 * jax.random.normal(k3, (c,), jnp.float32)
    var = jax.random.uniform(k4, (c,), jnp.float32, 0.5, 1.5)
    return gamma, beta, mean, var


def build_params(key):
    params = {}
    keys = iter(jax.random.split(key, 64))
    nrm = lambda k, s: 0.1 * jax.random.normal(k, s, jnp.float32)

    params["stem_w"] = nrm(next(keys), (3 * 3 * 3, STEM_C))
    params["stem_bn"] = _bn_params(next(keys), STEM_C)

    params["blocks"] = []
    for (exp, k, stride, c_in, c_out) in BLOCKS:
        p = {}
        c_mid = c_in * exp
        if exp != 1:
            p["expand_w"] = nrm(next(keys), (c_in, c_mid))
            p["expand_bn"] = _bn_params(next(keys), c_mid)
        p["dw_w"] = nrm(next(keys), (k, k, c_mid))
        p["dw_bn"] = _bn_params(next(keys), c_mid)
        c_sq = max(1, c_in // 4)
        p["se"] = (nrm(next(keys), (c_mid, c_sq)), nrm(next(keys), (c_sq,)),
                   nrm(next(keys), (c_sq, c_mid)), nrm(next(keys), (c_mid,)))
        p["proj_w"] = nrm(next(keys), (c_mid, c_out))
        p["proj_bn"] = _bn_params(next(keys), c_out)
        params["blocks"].append(p)

    params["headconv_w"] = nrm(next(keys), (BLOCKS[-1][4], HEAD_C))
    params["headconv_bn"] = _bn_params(next(keys), HEAD_C)

    params["cls1_w"] = nrm(next(keys), (HEAD_C, NUM_CLASSES_1))
    params["cls1_b"] = nrm(next(keys), (NUM_CLASSES_1,))
    params["cls2_w"] = nrm(next(keys), (HEAD_C, NUM_CLASSES_2))
    params["cls2_b"] = nrm(next(keys), (NUM_CLASSES_2,))
    return params


def mbconv(x, p, cfg):
    exp, k, stride, c_in, c_out = cfg
    inp = x
    if exp != 1:
        x = conv1x1_bn_act(x, p["expand_w"], p["expand_bn"], act="silu")
    y, pooled = pallas_dwconv_bn_silu_pool(x, p["dw_w"], p["dw_bn"], stride=stride)
    use_res = (stride == 1 and c_in == c_out)
    return pallas_se_scale_project(y, pooled, p["se"], p["proj_w"], p["proj_bn"],
                                   residual=inp if use_res else None)


def two_headed_efficientnet_forward(params, x_nchw):
    """Matches TwoHeadedEfficientnetB4Model.forward: returns (y_1, y_2)."""
    x = jnp.transpose(x_nchw, (0, 2, 3, 1))            # NCHW -> NHWC
    # self.model(x): features backbone
    x = conv_kxk_bn_silu(x, params["stem_w"], params["stem_bn"], k=3, stride=2)
    for p, cfg in zip(params["blocks"], BLOCKS):
        x = mbconv(x, p, cfg)
    x = conv1x1_bn_act(x, params["headconv_w"], params["headconv_bn"], act="silu")
    # adaptive_avg_pool2d((1,1)) + flatten + dropout(eval) + two Linear heads
    y1, y2 = pallas_two_heads(x, params["cls1_w"], params["cls1_b"],
                              params["cls2_w"], params["cls2_b"])
    return y1, y2


if __name__ == "__main__":
    key = jax.random.PRNGKey(0)
    k_in, k_par = jax.random.split(key)
    x = jax.random.normal(k_in, (2, 3, 16, 16), jnp.float32)   # NCHW like PyTorch
    params = build_params(k_par)

    fwd = jax.jit(two_headed_efficientnet_forward)
    y1, y2 = fwd(params, x)
    jax.block_until_ready((y1, y2))

    assert y1.shape == (2, NUM_CLASSES_1) and y2.shape == (2, NUM_CLASSES_2)
    assert bool(jnp.isfinite(y1).all()) and bool(jnp.isfinite(y2).all())
    print("KERNEL_OK")
</pallas_src>

<mosaic_0001>
module attributes {stable_mosaic.version = 11 : i64} {
  func.func @_gemm_bias_act_kernel(%arg0: i32, %arg1: i32, %arg2: i32, %arg3: memref<128x27xf32, #tpu.memory_space<vmem>>, %arg4: memref<27x16xf32, #tpu.memory_space<vmem>>, %arg5: memref<1x16xf32, #tpu.memory_space<vmem>>, %arg6: memref<128x16xf32, #tpu.memory_space<vmem>>, %arg7: memref<128x16xf32, #tpu.memory_space<vmem>>) attributes {dimension_semantics = [#tpu.dimension_semantics<parallel>, #tpu.dimension_semantics<parallel>, #tpu.dimension_semantics<arbitrary>], iteration_bounds = array<i64: 1, 1, 1>, scalar_prefetch = 0 : i64, scratch_operands = 1 : i64, tpu.core_type = #tpu.core_type<tc>, window_params = [{transform_indices = @transform_0, window_bounds = array<i64: 128, 27>}, {transform_indices = @transform_1, window_bounds = array<i64: 27, 16>}, {transform_indices = @transform_2, window_bounds = array<i64: 1, 16>}, {transform_indices = @transform_3, window_bounds = array<i64: 128, 16>}]} {
    %c0_i32 = arith.constant 0 : i32
    %0 = arith.cmpi eq, %arg2, %c0_i32 : i32
    %1 = arith.extui %0 : i1 to i32
    %c0_i32_0 = arith.constant 0 : i32
    %2 = arith.cmpi ne, %1, %c0_i32_0 : i32
    scf.if %2 {
      %cst_10 = arith.constant 0.000000e+00 : f32
      %14 = vector.broadcast %cst_10 : f32 to vector<128x16xf32>
      %c0_11 = arith.constant 0 : index
      %c0_12 = arith.constant 0 : index
      %15 = vector.load %arg7[%c0_11, %c0_12] : memref<128x16xf32, #tpu.memory_space<vmem>>, vector<128x16xf32>
      tpu.vector_store %arg7[%c0_11, %c0_12], %14 {strides = array<i32>} : memref<128x16xf32, #tpu.memory_space<vmem>>, vector<128x16xf32>,
    } else {
    }
    %c0 = arith.constant 0 : index
    %c0_1 = arith.constant 0 : index
    %3 = vector.load %arg7[%c0, %c0_1] : memref<128x16xf32, #tpu.memory_space<vmem>>, vector<128x16xf32>
    %c0_2 = arith.constant 0 : index
    %c0_3 = arith.constant 0 : index
    %4 = vector.load %arg3[%c0_2, %c0_3] : memref<128x27xf32, #tpu.memory_space<vmem>>, vector<128x27xf32>
    %5 = arith.truncf %4 : vector<128x27xf32> to vector<128x27xbf16>
    %c0_4 = arith.constant 0 : index
    %c0_5 = arith.constant 0 : index
    %6 = vector.load %arg4[%c0_4, %c0_5] : memref<27x16xf32, #tpu.memory_space<vmem>>, vector<27x16xf32>
    %7 = arith.truncf %6 : vector<27x16xf32> to vector<27x16xbf16>
    %cst = arith.constant dense<0.000000e+00> : vector<128x16xf32>
    %8 = tpu.matmul %5, %7, %cst {dimension_numbers = #tpu.dot_dimension_numbers<[1], [0], [0], [1], [0, 0, 1, 1], [], []>} : vector<128x27xbf16>, vector<27x16xbf16>, vector<128x16xf32> -> vector<128x16xf32>
    %9 = arith.addf %3, %8 : vector<128x16xf32>
    %c0_6 = arith.constant 0 : index
    %c0_7 = arith.constant 0 : index
    %10 = vector.load %arg7[%c0_6, %c0_7] : memref<128x16xf32, #tpu.memory_space<vmem>>, vector<128x16xf32>
    tpu.vector_store %arg7[%c0_6, %c0_7], %9 {strides = array<i32>} : memref<128x16xf32, #tpu.memory_space<vmem>>, vector<128x16xf32>,
    %c0_i32_8 = arith.constant 0 : i32
    %11 = arith.cmpi eq, %arg2, %c0_i32_8 : i32
    %12 = arith.extui %11 : i1 to i32
    %c0_i32_9 = arith.constant 0 : i32
    %13 = arith.cmpi ne, %12, %c0_i32_9 : i32
    scf.if %13 {
      %c0_10 = arith.constant 0 : index
      %c0_11 = arith.constant 0 : index
      %14 = vector.load %arg7[%c0_10, %c0_11] : memref<128x16xf32, #tpu.memory_space<vmem>>, vector<128x16xf32>
      %c0_12 = arith.constant 0 : index
      %c0_13 = arith.constant 0 : index
      %15 = vector.load %arg5[%c0_12, %c0_13] : memref<1x16xf32, #tpu.memory_space<vmem>>, vector<1x16xf32>
      %16 = vector.broadcast %15 : vector<1x16xf32> to vector<128x16xf32>
      %17 = arith.addf %14, %16 : vector<128x16xf32>
      %18 = arith.negf %17 : vector<128x16xf32>
      %19 = math.exp %18 : vector<128x16xf32>
      %cst_14 = arith.constant 1.000000e+00 : f32
      %20 = vector.broadcast %cst_14 : f32 to vector<128x16xf32>
      %21 = arith.addf %20, %19 : vector<128x16xf32>
      %22 = arith.divf %20, %21 : vector<128x16xf32>
      %23 = arith.mulf %17, %22 : vector<128x16xf32>
      %c0_15 = arith.constant 0 : index
      %c0_16 = arith.constant 0 : index
      %24 = vector.load %arg6[%c0_15, %c0_16] : memref<128x16xf32, #tpu.memory_space<vmem>>, vector<128x16xf32>
      tpu.vector_store %arg6[%c0_15, %c0_16], %23 {strides = array<i32>} : memref<128x16xf32, #tpu.memory_space<vmem>>, vector<128x16xf32>,
    } else {
    }
    return
  }
  func.func @transform_0(%arg0: i32, %arg1: i32, %arg2: i32) -> (i32, i32) {
    %c0_i32 = arith.constant 0 : i32
    return %arg0, %arg2 : i32, i32
  }
  func.func @transform_1(%arg0: i32, %arg1: i32, %arg2: i32) -> (i32, i32) {
    %c0_i32 = arith.constant 0 : i32
    return %arg2, %arg1 : i32, i32
  }
  func.func @transform_2(%arg0: i32, %arg1: i32, %arg2: i32) -> (i32, i32) {
    %c0_i32 = arith.constant 0 : i32
    %c0_i32_0 = arith.constant 0 : i32
    return %c0_i32, %arg1 : i32, i32
  }
  func.func @transform_3(%arg0: i32, %arg1: i32, %arg2: i32) -> (i32, i32) {
    %c0_i32 = arith.constant 0 : i32
    return %arg0, %arg1 : i32, i32
  }
}

module attributes {stable_mosaic.version = 11 : i64} {
  func.func @_dwconv_bn_silu_pool_kernel(%arg0: i32, %arg1: memref<1x10x10x16xf32, #tpu.memory_space<vmem>>, %arg2: memref<9x16xf32, #tpu.memory_space<vmem>>, %arg3: memref<1x16xf32, #tpu.memory_space<vmem>>, %arg4: memref<1x8x8x16xf32, #tpu.memory_space<vmem>>, %arg5: memref<1x1x16xf32, #tpu.memory_space<vmem>>) attributes {dimension_semantics = [#tpu.dimension_semantics<parallel>], iteration_bounds = array<i64: 2>, scalar_prefetch = 0 : i64, scratch_operands = 0 : i64, tpu.core_type = #tpu.core_type<tc>, window_params = [{transform_indices = @transform_0, window_bounds = array<i64: 1, 10, 10, 16>}, {pipeline_mode = #tpu.pipeline_mode<synchronous>, transform_indices = @transform_1, window_bounds = array<i64: 9, 16>}, {pipeline_mode = #tpu.pipeline_mode<synchronous>, transform_indices = @transform_2, window_bounds = array<i64: 1, 16>}, {transform_indices = @transform_3, window_bounds = array<i64: 1, 8, 8, 16>}, {transform_indices = @transform_4, window_bounds = array<i64: 1, 1, 16>}]} {
    %c0 = arith.constant 0 : index
    %c0_0 = arith.constant 0 : index
    %c0_1 = arith.constant 0 : index
    %c0_2 = arith.constant 0 : index
    %0 = vector.load %arg1[%c0, %c0_0, %c0_1, %c0_2] : memref<1x10x10x16xf32, #tpu.memory_space<vmem>>, vector<1x10x10x16xf32>
    %c0_3 = arith.constant 0 : index
    %c0_4 = arith.constant 0 : index
    %1 = vector.load %arg2[%c0_3, %c0_4] : memref<9x16xf32, #tpu.memory_space<vmem>>, vector<9x16xf32>
    %2 = vector.shape_cast %1 : vector<9x16xf32> to vector<9x1x1x16xf32>
    %3 = vector.extract_strided_slice %0 {offsets = [0, 0, 0, 0], sizes = [1, 8, 8, 16], strides = [1, 1, 1, 1]} : vector<1x10x10x16xf32> to vector<1x8x8x16xf32>
    %4 = vector.shape_cast %3 : vector<1x8x8x16xf32> to vector<8x8x16xf32>
    %5 = vector.extract_strided_slice %2 {offsets = [0, 0, 0, 0], sizes = [1, 1, 1, 16], strides = [1, 1, 1, 1]} : vector<9x1x1x16xf32> to vector<1x1x1x16xf32>
    %6 = vector.shape_cast %5 : vector<1x1x1x16xf32> to vector<1x1x16xf32>
    %7 = vector.broadcast %6 : vector<1x1x16xf32> to vector<8x8x16xf32>
    %8 = arith.mulf %4, %7 : vector<8x8x16xf32>
    %9 = vector.extract_strided_slice %0 {offsets = [0, 0, 1, 0], sizes = [1, 8, 8, 16], strides = [1, 1, 1, 1]} : vector<1x10x10x16xf32> to vector<1x8x8x16xf32>
    %10 = vector.shape_cast %9 : vector<1x8x8x16xf32> to vector<8x8x16xf32>
    %11 = vector.extract_strided_slice %2 {offsets = [1, 0, 0, 0], sizes = [1, 1, 1, 16], strides = [1, 1, 1, 1]} : vector<9x1x1x16xf32> to vector<1x1x1x16xf32>
    %12 = vector.shape_cast %11 : vector<1x1x1x16xf32> to vector<1x1x16xf32>
    %13 = vector.broadcast %12 : vector<1x1x16xf32> to vector<8x8x16xf32>
    %14 = arith.mulf %10, %13 : vector<8x8x16xf32>
    %15 = arith.addf %8, %14 : vector<8x8x16xf32>
    %16 = vector.extract_strided_slice %0 {offsets = [0, 0, 2, 0], sizes = [1, 8, 8, 16], strides = [1, 1, 1, 1]} : vector<1x10x10x16xf32> to vector<1x8x8x16xf32>
    %17 = vector.shape_cast %16 : vector<1x8x8x16xf32> to vector<8x8x16xf32>
    %18 = vector.extract_strided_slice %2 {offsets = [2, 0, 0, 0], sizes = [1, 1, 1, 16], strides = [1, 1, 1, 1]} : vector<9x1x1x16xf32> to vector<1x1x1x16xf32>
    %19 = vector.shape_cast %18 : vector<1x1x1x16xf32> to vector<1x1x16xf32>
    %20 = vector.broadcast %19 : vector<1x1x16xf32> to vector<8x8x16xf32>
    %21 = arith.mulf %17, %20 : vector<8x8x16xf32>
    %22 = arith.addf %15, %21 : vector<8x8x16xf32>
    %23 = vector.extract_strided_slice %0 {offsets = [0, 1, 0, 0], sizes = [1, 8, 8, 16], strides = [1, 1, 1, 1]} : vector<1x10x10x16xf32> to vector<1x8x8x16xf32>
    %24 = vector.shape_cast %23 : vector<1x8x8x16xf32> to vector<8x8x16xf32>
    %25 = vector.extract_strided_slice %2 {offsets = [3, 0, 0, 0], sizes = [1, 1, 1, 16], strides = [1, 1, 1, 1]} : vector<9x1x1x16xf32> to vector<1x1x1x16xf32>
    %26 = vector.shape_cast %25 : vector<1x1x1x16xf32> to vector<1x1x16xf32>
    %27 = vector.broadcast %26 : vector<1x1x16xf32> to vector<8x8x16xf32>
    %28 = arith.mulf %24, %27 : vector<8x8x16xf32>
    %29 = arith.addf %22, %28 : vector<8x8x16xf32>
    %30 = vector.extract_strided_slice %0 {offsets = [0, 1, 1, 0], sizes = [1, 8, 8, 16], strides = [1, 1, 1, 1]} : vector<1x10x10x16xf32> to vector<1x8x8x16xf32>
    %31 = vector.shape_cast %30 : vector<1x8x8x16xf32> to vector<8x8x16xf32>
    %32 = vector.extract_strided_slice %2 {offsets = [4, 0, 0, 0], sizes = [1, 1, 1, 16], strides = [1, 1, 1, 1]} : vector<9x1x1x16xf32> to vector<1x1x1x16xf32>
    %33 = vector.shape_cast %32 : vector<1x1x1x16xf32> to vector<1x1x16xf32>
    %34 = vector.broadcast %33 : vector<1x1x16xf32> to vector<8x8x16xf32>
    %35 = arith.mulf %31, %34 : vector<8x8x16xf32>
    %36 = arith.addf %29, %35 : vector<8x8x16xf32>
    %37 = vector.extract_strided_slice %0 {offsets = [0, 1, 2, 0], sizes = [1, 8, 8, 16], strides = [1, 1, 1, 1]} : vector<1x10x10x16xf32> to vector<1x8x8x16xf32>
    %38 = vector.shape_cast %37 : vector<1x8x8x16xf32> to vector<8x8x16xf32>
    %39 = vector.extract_strided_slice %2 {offsets = [5, 0, 0, 0], sizes = [1, 1, 1, 16], strides = [1, 1, 1, 1]} : vector<9x1x1x16xf32> to vector<1x1x1x16xf32>
    %40 = vector.shape_cast %39 : vector<1x1x1x16xf32> to vector<1x1x16xf32>
    %41 = vector.broadcast %40 : vector<1x1x16xf32> to vector<8x8x16xf32>
    %42 = arith.mulf %38, %41 : vector<8x8x16xf32>
    %43 = arith.addf %36, %42 : vector<8x8x16xf32>
    %44 = vector.extract_strided_slice %0 {offsets = [0, 2, 0, 0], sizes = [1, 8, 8, 16], strides = [1, 1, 1, 1]} : vector<1x10x10x16xf32> to vector<1x8x8x16xf32>
    %45 = vector.shape_cast %44 : vector<1x8x8x16xf32> to vector<8x8x16xf32>
    %46 = vector.extract_strided_slice %2 {offsets = [6, 0, 0, 0], sizes = [1, 1, 1, 16], strides = [1, 1, 1, 1]} : vector<9x1x1x16xf32> to vector<1x1x1x16xf32>
    %47 = vector.shape_cast %46 : vector<1x1x1x16xf32> to vector<1x1x16xf32>
    %48 = vector.broadcast %47 : vector<1x1x16xf32> to vector<8x8x16xf32>
    %49 = arith.mulf %45, %48 : vector<8x8x16xf32>
    %50 = arith.addf %43, %49 : vector<8x8x16xf32>
    %51 = vector.extract_strided_slice %0 {offsets = [0, 2, 1, 0], sizes = [1, 8, 8, 16], strides = [1, 1, 1, 1]} : vector<1x10x10x16xf32> to vector<1x8x8x16xf32>
    %52 = vector.shape_cast %51 : vector<1x8x8x16xf32> to vector<8x8x16xf32>
    %53 = vector.extract_strided_slice %2 {offsets = [7, 0, 0, 0], sizes = [1, 1, 1, 16], strides = [1, 1, 1, 1]} : vector<9x1x1x16xf32> to vector<1x1x1x16xf32>
    %54 = vector.shape_cast %53 : vector<1x1x1x16xf32> to vector<1x1x16xf32>
    %55 = vector.broadcast %54 : vector<1x1x16xf32> to vector<8x8x16xf32>
    %56 = arith.mulf %52, %55 : vector<8x8x16xf32>
    %57 = arith.addf %50, %56 : vector<8x8x16xf32>
    %58 = vector.extract_strided_slice %0 {offsets = [0, 2, 2, 0], sizes = [1, 8, 8, 16], strides = [1, 1, 1, 1]} : vector<1x10x10x16xf32> to vector<1x8x8x16xf32>
    %59 = vector.shape_cast %58 : vector<1x8x8x16xf32> to vector<8x8x16xf32>
    %60 = vector.extract_strided_slice %2 {offsets = [8, 0, 0, 0], sizes = [1, 1, 1, 16], strides = [1, 1, 1, 1]} : vector<9x1x1x16xf32> to vector<1x1x1x16xf32>
    %61 = vector.shape_cast %60 : vector<1x1x1x16xf32> to vector<1x1x16xf32>
    %62 = vector.broadcast %61 : vector<1x1x16xf32> to vector<8x8x16xf32>
    %63 = arith.mulf %59, %62 : vector<8x8x16xf32>
    %64 = arith.addf %57, %63 : vector<8x8x16xf32>
    %c0_5 = arith.constant 0 : index
    %c0_6 = arith.constant 0 : index
    %65 = vector.load %arg3[%c0_5, %c0_6] : memref<1x16xf32, #tpu.memory_space<vmem>>, vector<1x16xf32>
    %66 = vector.shape_cast %65 : vector<1x16xf32> to vector<1x1x16xf32>
    %67 = vector.broadcast %66 : vector<1x1x16xf32> to vector<8x8x16xf32>
    %68 = arith.addf %64, %67 : vector<8x8x16xf32>
    %69 = arith.negf %68 : vector<8x8x16xf32>
    %70 = math.exp %69 : vector<8x8x16xf32>
    %cst = arith.constant 1.000000e+00 : f32
    %71 = vector.broadcast %cst : f32 to vector<8x8x16xf32>
    %72 = arith.addf %71, %70 : vector<8x8x16xf32>
    %73 = arith.divf %71, %72 : vector<8x8x16xf32>
    %74 = arith.mulf %68, %73 : vector<8x8x16xf32>
    %75 = vector.shape_cast %74 : vector<8x8x16xf32> to vector<1x8x8x16xf32>
    %c0_7 = arith.constant 0 : index
    %c0_8 = arith.constant 0 : index
    %c0_9 = arith.constant 0 : index
    %c0_10 = arith.constant 0 : index
    %76 = vector.load %arg4[%c0_7, %c0_8, %c0_9, %c0_10] : memref<1x8x8x16xf32, #tpu.memory_space<vmem>>, vector<1x8x8x16xf32>
    tpu.vector_store %arg4[%c0_7, %c0_8, %c0_9, %c0_10], %75 {strides = array<i32>} : memref<1x8x8x16xf32, #tpu.memory_space<vmem>>, vector<1x8x8x16xf32>,
    %cst_11 = arith.constant dense<0.000000e+00> : vector<16xf32>
    %77 = vector.multi_reduction <add>, %74, %cst_11 [0, 1] : vector<8x8x16xf32> to vector<16xf32>
    %78 = vector.shape_cast %77 : vector<16xf32> to vector<1x1x16xf32>
    %cst_12 = arith.constant 6.400000e+01 : f32
    %79 = vector.broadcast %cst_12 : f32 to vector<1x1x16xf32>
    %80 = arith.divf %78, %79 : vector<1x1x16xf32>
    %c0_13 = arith.constant 0 : index
    %c0_14 = arith.constant 0 : index
    %c0_15 = arith.constant 0 : index
    %81 = vector.load %arg5[%c0_13, %c0_14, %c0_15] : memref<1x1x16xf32, #tpu.memory_space<vmem>>, vector<1x1x16xf32>
    tpu.vector_store %arg5[%c0_13, %c0_14, %c0_15], %80 {strides = array<i32>} : memref<1x1x16xf32, #tpu.memory_space<vmem>>, vector<1x1x16xf32>,
    return
  }
  func.func @transform_0(%arg0: i32) -> (i32, i32, i32, i32) {
    %c0_i32 = arith.constant 0 : i32
    %c0_i32_0 = arith.constant 0 : i32
    %c0_i32_1 = arith.constant 0 : i32
    %c0_i32_2 = arith.constant 0 : i32
    return %arg0, %c0_i32, %c0_i32_0, %c0_i32_1 : i32, i32, i32, i32
  }
  func.func @transform_1(%arg0: i32) -> (i32, i32) {
    %c0_i32 = arith.constant 0 : i32
    %c0_i32_0 = arith.constant 0 : i32
    %c0_i32_1 = arith.constant 0 : i32
    return %c0_i32, %c0_i32_0 : i32, i32
  }
  func.func @transform_2(%arg0: i32) -> (i32, i32) {
    %c0_i32 = arith.constant 0 : i32
    %c0_i32_0 = arith.constant 0 : i32
    %c0_i32_1 = arith.constant 0 : i32
    return %c0_i32, %c0_i32_0 : i32, i32
  }
  func.func @transform_3(%arg0: i32) -> (i32, i32, i32, i32) {
    %c0_i32 = arith.constant 0 : i32
    %c0_i32_0 = arith.constant 0 : i32
    %c0_i32_1 = arith.constant 0 : i32
    %c0_i32_2 = arith.constant 0 : i32
    return %arg0, %c0_i32, %c0_i32_0, %c0_i32_1 : i32, i32, i32, i32
  }
  func.func @transform_4(%arg0: i32) -> (i32, i32, i32) {
    %c0_i32 = arith.constant 0 : i32
    %c0_i32_0 = arith.constant 0 : i32
    %c0_i32_1 = arith.constant 0 : i32
    return %arg0, %c0_i32, %c0_i32_0 : i32, i32, i32
  }
}

module attributes {stable_mosaic.version = 11 : i64} {
  func.func @_se_scale_proj_kernel(%arg0: i32, %arg1: i32, %arg2: memref<1x64x16xf32, #tpu.memory_space<vmem>>, %arg3: memref<1x1x16xf32, #tpu.memory_space<vmem>>, %arg4: memref<16x4xf32, #tpu.memory_space<vmem>>, %arg5: memref<1x4xf32, #tpu.memory_space<vmem>>, %arg6: memref<4x16xf32, #tpu.memory_space<vmem>>, %arg7: memref<1x16xf32, #tpu.memory_space<vmem>>, %arg8: memref<16x16xf32, #tpu.memory_space<vmem>>, %arg9: memref<1x16xf32, #tpu.memory_space<vmem>>, %arg10: memref<1x64x16xf32, #tpu.memory_space<vmem>>, %arg11: memref<1x64x16xf32, #tpu.memory_space<vmem>>) attributes {dimension_semantics = [#tpu.dimension_semantics<parallel>, #tpu.dimension_semantics<parallel>], iteration_bounds = array<i64: 2, 1>, scalar_prefetch = 0 : i64, scratch_operands = 0 : i64, tpu.core_type = #tpu.core_type<tc>, window_params = [{transform_indices = @transform_0, window_bounds = array<i64: 1, 64, 16>}, {transform_indices = @transform_1, window_bounds = array<i64: 1, 1, 16>}, {pipeline_mode = #tpu.pipeline_mode<synchronous>, transform_indices = @transform_2, window_bounds = array<i64: 16, 4>}, {pipeline_mode = #tpu.pipeline_mode<synchronous>, transform_indices = @transform_3, window_bounds = array<i64: 1, 4>}, {pipeline_mode = #tpu.pipeline_mode<synchronous>, transform_indices = @transform_4, window_bounds = array<i64: 4, 16>}, {pipeline_mode = #tpu.pipeline_mode<synchronous>, transform_indices = @transform_5, window_bounds = array<i64: 1, 16>}, {pipeline_mode = #tpu.pipeline_mode<synchronous>, transform_indices = @transform_6, window_bounds = array<i64: 16, 16>}, {pipeline_mode = #tpu.pipeline_mode<synchronous>, transform_indices = @transform_7, window_bounds = array<i64: 1, 16>}, {transform_indices = @transform_8, window_bounds = array<i64: 1, 64, 16>}, {transform_indices = @transform_9, window_bounds = array<i64: 1, 64, 16>}]} {
    %c0 = arith.constant 0 : index
    %c0_0 = arith.constant 0 : index
    %c0_1 = arith.constant 0 : index
    %0 = vector.load %arg3[%c0, %c0_0, %c0_1] : memref<1x1x16xf32, #tpu.memory_space<vmem>>, vector<1x1x16xf32>
    %1 = vector.shape_cast %0 : vector<1x1x16xf32> to vector<1x16xf32>
    %c0_2 = arith.constant 0 : index
    %c0_3 = arith.constant 0 : index
    %2 = vector.load %arg4[%c0_2, %c0_3] : memref<16x4xf32, #tpu.memory_space<vmem>>, vector<16x4xf32>
    %cst = arith.constant dense<0.000000e+00> : vector<1x4xf32>
    %3 = tpu.matmul %1, %2, %cst {dimension_numbers = #tpu.dot_dimension_numbers<[1], [0], [0], [1], [0, 0, 1, 1], [], []>} : vector<1x16xf32>, vector<16x4xf32>, vector<1x4xf32> -> vector<1x4xf32>
    %c0_4 = arith.constant 0 : index
    %c0_5 = arith.constant 0 : index
    %4 = vector.load %arg5[%c0_4, %c0_5] : memref<1x4xf32, #tpu.memory_space<vmem>>, vector<1x4xf32>
    %5 = arith.addf %3, %4 : vector<1x4xf32>
    %6 = arith.negf %5 : vector<1x4xf32>
    %7 = math.exp %6 : vector<1x4xf32>
    %cst_6 = arith.constant 1.000000e+00 : f32
    %8 = vector.broadcast %cst_6 : f32 to vector<1x4xf32>
    %9 = arith.addf %8, %7 : vector<1x4xf32>
    %10 = arith.divf %8, %9 : vector<1x4xf32>
    %11 = arith.mulf %5, %10 : vector<1x4xf32>
    %c0_7 = arith.constant 0 : index
    %c0_8 = arith.constant 0 : index
    %12 = vector.load %arg6[%c0_7, %c0_8] : memref<4x16xf32, #tpu.memory_space<vmem>>, vector<4x16xf32>
    %cst_9 = arith.constant dense<0.000000e+00> : vector<1x16xf32>
    %13 = tpu.matmul %11, %12, %cst_9 {dimension_numbers = #tpu.dot_dimension_numbers<[1], [0], [0], [1], [0, 0, 1, 1], [], []>} : vector<1x4xf32>, vector<4x16xf32>, vector<1x16xf32> -> vector<1x16xf32>
    %c0_10 = arith.constant 0 : index
    %c0_11 = arith.constant 0 : index
    %14 = vector.load %arg7[%c0_10, %c0_11] : memref<1x16xf32, #tpu.memory_space<vmem>>, vector<1x16xf32>
    %15 = arith.addf %13, %14 : vector<1x16xf32>
    %16 = arith.negf %15 : vector<1x16xf32>
    %17 = math.exp %16 : vector<1x16xf32>
    %cst_12 = arith.constant 1.000000e+00 : f32
    %18 = vector.broadcast %cst_12 : f32 to vector<1x16xf32>
    %19 = arith.addf %18, %17 : vector<1x16xf32>
    %20 = arith.divf %18, %19 : vector<1x16xf32>
    %c0_13 = arith.constant 0 : index
    %c0_14 = arith.constant 0 : index
    %c0_15 = arith.constant 0 : index
    %21 = vector.load %arg2[%c0_13, %c0_14, %c0_15] : memref<1x64x16xf32, #tpu.memory_space<vmem>>, vector<1x64x16xf32>
    %22 = vector.shape_cast %21 : vector<1x64x16xf32> to vector<64x16xf32>
    %23 = vector.broadcast %20 : vector<1x16xf32> to vector<64x16xf32>
    %24 = arith.mulf %22, %23 : vector<64x16xf32>
    %25 = arith.truncf %24 : vector<64x16xf32> to vector<64x16xbf16>
    %c0_16 = arith.constant 0 : index
    %c0_17 = arith.constant 0 : index
    %26 = vector.load %arg8[%c0_16, %c0_17] : memref<16x16xf32, #tpu.memory_space<vmem>>, vector<16x16xf32>
    %27 = arith.truncf %26 : vector<16x16xf32> to vector<16x16xbf16>
    %cst_18 = arith.constant dense<0.000000e+00> : vector<64x16xf32>
    %28 = tpu.matmul %25, %27, %cst_18 {dimension_numbers = #tpu.dot_dimension_numbers<[1], [0], [0], [1], [0, 0, 1, 1], [], []>} : vector<64x16xbf16>, vector<16x16xbf16>, vector<64x16xf32> -> vector<64x16xf32>
    %c0_19 = arith.constant 0 : index
    %c0_20 = arith.constant 0 : index
    %29 = vector.load %arg9[%c0_19, %c0_20] : memref<1x16xf32, #tpu.memory_space<vmem>>, vector<1x16xf32>
    %30 = vector.broadcast %29 : vector<1x16xf32> to vector<64x16xf32>
    %31 = arith.addf %28, %30 : vector<64x16xf32>
    %c0_21 = arith.constant 0 : index
    %c0_22 = arith.constant 0 : index
    %c0_23 = arith.constant 0 : index
    %32 = vector.load %arg10[%c0_21, %c0_22, %c0_23] : memref<1x64x16xf32, #tpu.memory_space<vmem>>, vector<1x64x16xf32>
    %33 = vector.shape_cast %32 : vector<1x64x16xf32> to vector<64x16xf32>
    %34 = arith.addf %31, %33 : vector<64x16xf32>
    %35 = vector.shape_cast %34 : vector<64x16xf32> to vector<1x64x16xf32>
    %c0_24 = arith.constant 0 : index
    %c0_25 = arith.constant 0 : index
    %c0_26 = arith.constant 0 : index
    %36 = vector.load %arg11[%c0_24, %c0_25, %c0_26] : memref<1x64x16xf32, #tpu.memory_space<vmem>>, vector<1x64x16xf32>
    tpu.vector_store %arg11[%c0_24, %c0_25, %c0_26], %35 {strides = array<i32>} : memref<1x64x16xf32, #tpu.memory_space<vmem>>, vector<1x64x16xf32>,
    return
  }
  func.func @transform_0(%arg0: i32, %arg1: i32) -> (i32, i32, i32) {
    %c0_i32 = arith.constant 0 : i32
    %c0_i32_0 = arith.constant 0 : i32
    return %arg0, %arg1, %c0_i32 : i32, i32, i32
  }
  func.func @transform_1(%arg0: i32, %arg1: i32) -> (i32, i32, i32) {
    %c0_i32 = arith.constant 0 : i32
    %c0_i32_0 = arith.constant 0 : i32
    %c0_i32_1 = arith.constant 0 : i32
    return %arg0, %c0_i32, %c0_i32_0 : i32, i32, i32
  }
  func.func @transform_2(%arg0: i32, %arg1: i32) -> (i32, i32) {
    %c0_i32 = arith.constant 0 : i32
    %c0_i32_0 = arith.constant 0 : i32
    %c0_i32_1 = arith.constant 0 : i32
    return %c0_i32, %c0_i32_0 : i32, i32
  }
  func.func @transform_3(%arg0: i32, %arg1: i32) -> (i32, i32) {
    %c0_i32 = arith.constant 0 : i32
    %c0_i32_0 = arith.constant 0 : i32
    %c0_i32_1 = arith.constant 0 : i32
    return %c0_i32, %c0_i32_0 : i32, i32
  }
  func.func @transform_4(%arg0: i32, %arg1: i32) -> (i32, i32) {
    %c0_i32 = arith.constant 0 : i32
    %c0_i32_0 = arith.constant 0 : i32
    %c0_i32_1 = arith.constant 0 : i32
    return %c0_i32, %c0_i32_0 : i32, i32
  }
  func.func @transform_5(%arg0: i32, %arg1: i32) -> (i32, i32) {
    %c0_i32 = arith.constant 0 : i32
    %c0_i32_0 = arith.constant 0 : i32
    %c0_i32_1 = arith.constant 0 : i32
    return %c0_i32, %c0_i32_0 : i32, i32
  }
  func.func @transform_6(%arg0: i32, %arg1: i32) -> (i32, i32) {
    %c0_i32 = arith.constant 0 : i32
    %c0_i32_0 = arith.constant 0 : i32
    %c0_i32_1 = arith.constant 0 : i32
    return %c0_i32, %c0_i32_0 : i32, i32
  }
  func.func @transform_7(%arg0: i32, %arg1: i32) -> (i32, i32) {
    %c0_i32 = arith.constant 0 : i32
    %c0_i32_0 = arith.constant 0 : i32
    %c0_i32_1 = arith.constant 0 : i32
    return %c0_i32, %c0_i32_0 : i32, i32
  }
  func.func @transform_8(%arg0: i32, %arg1: i32) -> (i32, i32, i32) {
    %c0_i32 = arith.constant 0 : i32
    %c0_i32_0 = arith.constant 0 : i32
    return %arg0, %arg1, %c0_i32 : i32, i32, i32
  }
  func.func @transform_9(%arg0: i32, %arg1: i32) -> (i32, i32, i32) {
    %c0_i32 = arith.constant 0 : i32
    %c0_i32_0 = arith.constant 0 : i32
    return %arg0, %arg1, %c0_i32 : i32, i32, i32
  }
}

module attributes {stable_mosaic.version = 11 : i64} {
  func.func @_gemm_bias_act_kernel(%arg0: i32, %arg1: i32, %arg2: i32, %arg3: memref<128x16xf32, #tpu.memory_space<vmem>>, %arg4: memref<16x64xf32, #tpu.memory_space<vmem>>, %arg5: memref<1x64xf32, #tpu.memory_space<vmem>>, %arg6: memref<128x64xf32, #tpu.memory_space<vmem>>, %arg7: memref<128x64xf32, #tpu.memory_space<vmem>>) attributes {dimension_semantics = [#tpu.dimension_semantics<parallel>, #tpu.dimension_semantics<parallel>, #tpu.dimension_semantics<arbitrary>], iteration_bounds = array<i64: 1, 1, 1>, scalar_prefetch = 0 : i64, scratch_operands = 1 : i64, tpu.core_type = #tpu.core_type<tc>, window_params = [{transform_indices = @transform_0, window_bounds = array<i64: 128, 16>}, {transform_indices = @transform_1, window_bounds = array<i64: 16, 64>}, {transform_indices = @transform_2, window_bounds = array<i64: 1, 64>}, {transform_indices = @transform_3, window_bounds = array<i64: 128, 64>}]} {
    %c0_i32 = arith.constant 0 : i32
    %0 = arith.cmpi eq, %arg2, %c0_i32 : i32
    %1 = arith.extui %0 : i1 to i32
    %c0_i32_0 = arith.constant 0 : i32
    %2 = arith.cmpi ne, %1, %c0_i32_0 : i32
    scf.if %2 {
      %cst_10 = arith.constant 0.000000e+00 : f32
      %14 = vector.broadcast %cst_10 : f32 to vector<128x64xf32>
      %c0_11 = arith.constant 0 : index
      %c0_12 = arith.constant 0 : index
      %15 = vector.load %arg7[%c0_11, %c0_12] : memref<128x64xf32, #tpu.memory_space<vmem>>, vector<128x64xf32>
      tpu.vector_store %arg7[%c0_11, %c0_12], %14 {strides = array<i32>} : memref<128x64xf32, #tpu.memory_space<vmem>>, vector<128x64xf32>,
    } else {
    }
    %c0 = arith.constant 0 : index
    %c0_1 = arith.constant 0 : index
    %3 = vector.load %arg7[%c0, %c0_1] : memref<128x64xf32, #tpu.memory_space<vmem>>, vector<128x64xf32>
    %c0_2 = arith.constant 0 : index
    %c0_3 = arith.constant 0 : index
    %4 = vector.load %arg3[%c0_2, %c0_3] : memref<128x16xf32, #tpu.memory_space<vmem>>, vector<128x16xf32>
    %5 = arith.truncf %4 : vector<128x16xf32> to vector<128x16xbf16>
    %c0_4 = arith.constant 0 : index
    %c0_5 = arith.constant 0 : index
    %6 = vector.load %arg4[%c0_4, %c0_5] : memref<16x64xf32, #tpu.memory_space<vmem>>, vector<16x64xf32>
    %7 = arith.truncf %6 : vector<16x64xf32> to vector<16x64xbf16>
    %cst = arith.constant dense<0.000000e+00> : vector<128x64xf32>
    %8 = tpu.matmul %5, %7, %cst {dimension_numbers = #tpu.dot_dimension_numbers<[1], [0], [0], [1], [0, 0, 1, 1], [], []>} : vector<128x16xbf16>, vector<16x64xbf16>, vector<128x64xf32> -> vector<128x64xf32>
    %9 = arith.addf %3, %8 : vector<128x64xf32>
    %c0_6 = arith.constant 0 : index
    %c0_7 = arith.constant 0 : index
    %10 = vector.load %arg7[%c0_6, %c0_7] : memref<128x64xf32, #tpu.memory_space<vmem>>, vector<128x64xf32>
    tpu.vector_store %arg7[%c0_6, %c0_7], %9 {strides = array<i32>} : memref<128x64xf32, #tpu.memory_space<vmem>>, vector<128x64xf32>,
    %c0_i32_8 = arith.constant 0 : i32
    %11 = arith.cmpi eq, %arg2, %c0_i32_8 : i32
    %12 = arith.extui %11 : i1 to i32
    %c0_i32_9 = arith.constant 0 : i32
    %13 = arith.cmpi ne, %12, %c0_i32_9 : i32
    scf.if %13 {
      %c0_10 = arith.constant 0 : index
      %c0_11 = arith.constant 0 : index
      %14 = vector.load %arg7[%c0_10, %c0_11] : memref<128x64xf32, #tpu.memory_space<vmem>>, vector<128x64xf32>
      %c0_12 = arith.constant 0 : index
      %c0_13 = arith.constant 0 : index
      %15 = vector.load %arg5[%c0_12, %c0_13] : memref<1x64xf32, #tpu.memory_space<vmem>>, vector<1x64xf32>
      %16 = vector.broadcast %15 : vector<1x64xf32> to vector<128x64xf32>
      %17 = arith.addf %14, %16 : vector<128x64xf32>
      %18 = arith.negf %17 : vector<128x64xf32>
      %19 = math.exp %18 : vector<128x64xf32>
      %cst_14 = arith.constant 1.000000e+00 : f32
      %20 = vector.broadcast %cst_14 : f32 to vector<128x64xf32>
      %21 = arith.addf %20, %19 : vector<128x64xf32>
      %22 = arith.divf %20, %21 : vector<128x64xf32>
      %23 = arith.mulf %17, %22 : vector<128x64xf32>
      %c0_15 = arith.constant 0 : index
      %c0_16 = arith.constant 0 : index
      %24 = vector.load %arg6[%c0_15, %c0_16] : memref<128x64xf32, #tpu.memory_space<vmem>>, vector<128x64xf32>
      tpu.vector_store %arg6[%c0_15, %c0_16], %23 {strides = array<i32>} : memref<128x64xf32, #tpu.memory_space<vmem>>, vector<128x64xf32>,
    } else {
    }
    return
  }
  func.func @transform_0(%arg0: i32, %arg1: i32, %arg2: i32) -> (i32, i32) {
    %c0_i32 = arith.constant 0 : i32
    return %arg0, %arg2 : i32, i32
  }
  func.func @transform_1(%arg0: i32, %arg1: i32, %arg2: i32) -> (i32, i32) {
    %c0_i32 = arith.constant 0 : i32
    return %arg2, %arg1 : i32, i32
  }
  func.func @transform_2(%arg0: i32, %arg1: i32, %arg2: i32) -> (i32, i32) {
    %c0_i32 = arith.constant 0 : i32
    %c0_i32_0 = arith.constant 0 : i32
    return %c0_i32, %arg1 : i32, i32
  }
  func.func @transform_3(%arg0: i32, %arg1: i32, %arg2: i32) -> (i32, i32) {
    %c0_i32 = arith.constant 0 : i32
    return %arg0, %arg1 : i32, i32
  }
}

module attributes {stable_mosaic.version = 11 : i64} {
  func.func @_dwconv_bn_silu_pool_kernel(%arg0: i32, %arg1: memref<1x10x10x64xf32, #tpu.memory_space<vmem>>, %arg2: memref<9x64xf32, #tpu.memory_space<vmem>>, %arg3: memref<1x64xf32, #tpu.memory_space<vmem>>, %arg4: memref<1x8x8x64xf32, #tpu.memory_space<vmem>>, %arg5: memref<1x1x64xf32, #tpu.memory_space<vmem>>) attributes {dimension_semantics = [#tpu.dimension_semantics<parallel>], iteration_bounds = array<i64: 2>, scalar_prefetch = 0 : i64, scratch_operands = 0 : i64, tpu.core_type = #tpu.core_type<tc>, window_params = [{transform_indices = @transform_0, window_bounds = array<i64: 1, 10, 10, 64>}, {pipeline_mode = #tpu.pipeline_mode<synchronous>, transform_indices = @transform_1, window_bounds = array<i64: 9, 64>}, {pipeline_mode = #tpu.pipeline_mode<synchronous>, transform_indices = @transform_2, window_bounds = array<i64: 1, 64>}, {transform_indices = @transform_3, window_bounds = array<i64: 1, 8, 8, 64>}, {transform_indices = @transform_4, window_bounds = array<i64: 1, 1, 64>}]} {
    %c0 = arith.constant 0 : index
    %c0_0 = arith.constant 0 : index
    %c0_1 = arith.constant 0 : index
    %c0_2 = arith.constant 0 : index
    %0 = vector.load %arg1[%c0, %c0_0, %c0_1, %c0_2] : memref<1x10x10x64xf32, #tpu.memory_space<vmem>>, vector<1x10x10x64xf32>
    %c0_3 = arith.constant 0 : index
    %c0_4 = arith.constant 0 : index
    %1 = vector.load %arg2[%c0_3, %c0_4] : memref<9x64xf32, #tpu.memory_space<vmem>>, vector<9x64xf32>
    %2 = vector.shape_cast %1 : vector<9x64xf32> to vector<9x1x1x64xf32>
    %3 = vector.extract_strided_slice %0 {offsets = [0, 0, 0, 0], sizes = [1, 8, 8, 64], strides = [1, 1, 1, 1]} : vector<1x10x10x64xf32> to vector<1x8x8x64xf32>
    %4 = vector.shape_cast %3 : vector<1x8x8x64xf32> to vector<8x8x64xf32>
    %5 = vector.extract_strided_slice %2 {offsets = [0, 0, 0, 0], sizes = [1, 1, 1, 64], strides = [1, 1, 1, 1]} : vector<9x1x1x64xf32> to vector<1x1x1x64xf32>
    %6 = vector.shape_cast %5 : vector<1x1x1x64xf32> to vector<1x1x64xf32>
    %7 = vector.broadcast %6 : vector<1x1x64xf32> to vector<8x8x64xf32>
    %8 = arith.mulf %4, %7 : vector<8x8x64xf32>
    %9 = vector.extract_strided_slice %0 {offsets = [0, 0, 1, 0], sizes = [1, 8, 8, 64], strides = [1, 1, 1, 1]} : vector<1x10x10x64xf32> to vector<1x8x8x64xf32>
    %10 = vector.shape_cast %9 : vector<1x8x8x64xf32> to vector<8x8x64xf32>
    %11 = vector.extract_strided_slice %2 {offsets = [1, 0, 0, 0], sizes = [1, 1, 1, 64], strides = [1, 1, 1, 1]} : vector<9x1x1x64xf32> to vector<1x1x1x64xf32>
    %12 = vector.shape_cast %11 : vector<1x1x1x64xf32> to vector<1x1x64xf32>
    %13 = vector.broadcast %12 : vector<1x1x64xf32> to vector<8x8x64xf32>
    %14 = arith.mulf %10, %13 : vector<8x8x64xf32>
    %15 = arith.addf %8, %14 : vector<8x8x64xf32>
    %16 = vector.extract_strided_slice %0 {offsets = [0, 0, 2, 0], sizes = [1, 8, 8, 64], strides = [1, 1, 1, 1]} : vector<1x10x10x64xf32> to vector<1x8x8x64xf32>
    %17 = vector.shape_cast %16 : vector<1x8x8x64xf32> to vector<8x8x64xf32>
    %18 = vector.extract_strided_slice %2 {offsets = [2, 0, 0, 0], sizes = [1, 1, 1, 64], strides = [1, 1, 1, 1]} : vector<9x1x1x64xf32> to vector<1x1x1x64xf32>
    %19 = vector.shape_cast %18 : vector<1x1x1x64xf32> to vector<1x1x64xf32>
    %20 = vector.broadcast %19 : vector<1x1x64xf32> to vector<8x8x64xf32>
    %21 = arith.mulf %17, %20 : vector<8x8x64xf32>
    %22 = arith.addf %15, %21 : vector<8x8x64xf32>
    %23 = vector.extract_strided_slice %0 {offsets = [0, 1, 0, 0], sizes = [1, 8, 8, 64], strides = [1, 1, 1, 1]} : vector<1x10x10x64xf32> to vector<1x8x8x64xf32>
    %24 = vector.shape_cast %23 : vector<1x8x8x64xf32> to vector<8x8x64xf32>
    %25 = vector.extract_strided_slice %2 {offsets = [3, 0, 0, 0], sizes = [1, 1, 1, 64], strides = [1, 1, 1, 1]} : vector<9x1x1x64xf32> to vector<1x1x1x64xf32>
    %26 = vector.shape_cast %25 : vector<1x1x1x64xf32> to vector<1x1x64xf32>
    %27 = vector.broadcast %26 : vector<1x1x64xf32> to vector<8x8x64xf32>
    %28 = arith.mulf %24, %27 : vector<8x8x64xf32>
    %29 = arith.addf %22, %28 : vector<8x8x64xf32>
    %30 = vector.extract_strided_slice %0 {offsets = [0, 1, 1, 0], sizes = [1, 8, 8, 64], strides = [1, 1, 1, 1]} : vector<1x10x10x64xf32> to vector<1x8x8x64xf32>
    %31 = vector.shape_cast %30 : vector<1x8x8x64xf32> to vector<8x8x64xf32>
    %32 = vector.extract_strided_slice %2 {offsets = [4, 0, 0, 0], sizes = [1, 1, 1, 64], strides = [1, 1, 1, 1]} : vector<9x1x1x64xf32> to vector<1x1x1x64xf32>
    %33 = vector.shape_cast %32 : vector<1x1x1x64xf32> to vector<1x1x64xf32>
    %34 = vector.broadcast %33 : vector<1x1x64xf32> to vector<8x8x64xf32>
    %35 = arith.mulf %31, %34 : vector<8x8x64xf32>
    %36 = arith.addf %29, %35 : vector<8x8x64xf32>
    %37 = vector.extract_strided_slice %0 {offsets = [0, 1, 2, 0], sizes = [1, 8, 8, 64], strides = [1, 1, 1, 1]} : vector<1x10x10x64xf32> to vector<1x8x8x64xf32>
    %38 = vector.shape_cast %37 : vector<1x8x8x64xf32> to vector<8x8x64xf32>
    %39 = vector.extract_strided_slice %2 {offsets = [5, 0, 0, 0], sizes = [1, 1, 1, 64], strides = [1, 1, 1, 1]} : vector<9x1x1x64xf32> to vector<1x1x1x64xf32>
    %40 = vector.shape_cast %39 : vector<1x1x1x64xf32> to vector<1x1x64xf32>
    %41 = vector.broadcast %40 : vector<1x1x64xf32> to vector<8x8x64xf32>
    %42 = arith.mulf %38, %41 : vector<8x8x64xf32>
    %43 = arith.addf %36, %42 : vector<8x8x64xf32>
    %44 = vector.extract_strided_slice %0 {offsets = [0, 2, 0, 0], sizes = [1, 8, 8, 64], strides = [1, 1, 1, 1]} : vector<1x10x10x64xf32> to vector<1x8x8x64xf32>
    %45 = vector.shape_cast %44 : vector<1x8x8x64xf32> to vector<8x8x64xf32>
    %46 = vector.extract_strided_slice %2 {offsets = [6, 0, 0, 0], sizes = [1, 1, 1, 64], strides = [1, 1, 1, 1]} : vector<9x1x1x64xf32> to vector<1x1x1x64xf32>
    %47 = vector.shape_cast %46 : vector<1x1x1x64xf32> to vector<1x1x64xf32>
    %48 = vector.broadcast %47 : vector<1x1x64xf32> to vector<8x8x64xf32>
    %49 = arith.mulf %45, %48 : vector<8x8x64xf32>
    %50 = arith.addf %43, %49 : vector<8x8x64xf32>
    %51 = vector.extract_strided_slice %0 {offsets = [0, 2, 1, 0], sizes = [1, 8, 8, 64], strides = [1, 1, 1, 1]} : vector<1x10x10x64xf32> to vector<1x8x8x64xf32>
    %52 = vector.shape_cast %51 : vector<1x8x8x64xf32> to vector<8x8x64xf32>
    %53 = vector.extract_strided_slice %2 {offsets = [7, 0, 0, 0], sizes = [1, 1, 1, 64], strides = [1, 1, 1, 1]} : vector<9x1x1x64xf32> to vector<1x1x1x64xf32>
    %54 = vector.shape_cast %53 : vector<1x1x1x64xf32> to vector<1x1x64xf32>
    %55 = vector.broadcast %54 : vector<1x1x64xf32> to vector<8x8x64xf32>
    %56 = arith.mulf %52, %55 : vector<8x8x64xf32>
    %57 = arith.addf %50, %56 : vector<8x8x64xf32>
    %58 = vector.extract_strided_slice %0 {offsets = [0, 2, 2, 0], sizes = [1, 8, 8, 64], strides = [1, 1, 1, 1]} : vector<1x10x10x64xf32> to vector<1x8x8x64xf32>
    %59 = vector.shape_cast %58 : vector<1x8x8x64xf32> to vector<8x8x64xf32>
    %60 = vector.extract_strided_slice %2 {offsets = [8, 0, 0, 0], sizes = [1, 1, 1, 64], strides = [1, 1, 1, 1]} : vector<9x1x1x64xf32> to vector<1x1x1x64xf32>
    %61 = vector.shape_cast %60 : vector<1x1x1x64xf32> to vector<1x1x64xf32>
    %62 = vector.broadcast %61 : vector<1x1x64xf32> to vector<8x8x64xf32>
    %63 = arith.mulf %59, %62 : vector<8x8x64xf32>
    %64 = arith.addf %57, %63 : vector<8x8x64xf32>
    %c0_5 = arith.constant 0 : index
    %c0_6 = arith.constant 0 : index
    %65 = vector.load %arg3[%c0_5, %c0_6] : memref<1x64xf32, #tpu.memory_space<vmem>>, vector<1x64xf32>
    %66 = vector.shape_cast %65 : vector<1x64xf32> to vector<1x1x64xf32>
    %67 = vector.broadcast %66 : vector<1x1x64xf32> to vector<8x8x64xf32>
    %68 = arith.addf %64, %67 : vector<8x8x64xf32>
    %69 = arith.negf %68 : vector<8x8x64xf32>
    %70 = math.exp %69 : vector<8x8x64xf32>
    %cst = arith.constant 1.000000e+00 : f32
    %71 = vector.broadcast %cst : f32 to vector<8x8x64xf32>
    %72 = arith.addf %71, %70 : vector<8x8x64xf32>
    %73 = arith.divf %71, %72 : vector<8x8x64xf32>
    %74 = arith.mulf %68, %73 : vector<8x8x64xf32>
    %75 = vector.shape_cast %74 : vector<8x8x64xf32> to vector<1x8x8x64xf32>
    %c0_7 = arith.constant 0 : index
    %c0_8 = arith.constant 0 : index
    %c0_9 = arith.constant 0 : index
    %c0_10 = arith.constant 0 : index
    %76 = vector.load %arg4[%c0_7, %c0_8, %c0_9, %c0_10] : memref<1x8x8x64xf32, #tpu.memory_space<vmem>>, vector<1x8x8x64xf32>
    tpu.vector_store %arg4[%c0_7, %c0_8, %c0_9, %c0_10], %75 {strides = array<i32>} : memref<1x8x8x64xf32, #tpu.memory_space<vmem>>, vector<1x8x8x64xf32>,
    %cst_11 = arith.constant dense<0.000000e+00> : vector<64xf32>
    %77 = vector.multi_reduction <add>, %74, %cst_11 [0, 1] : vector<8x8x64xf32> to vector<64xf32>
    %78 = vector.shape_cast %77 : vector<64xf32> to vector<1x1x64xf32>
    %cst_12 = arith.constant 6.400000e+01 : f32
    %79 = vector.broadcast %cst_12 : f32 to vector<1x1x64xf32>
    %80 = arith.divf %78, %79 : vector<1x1x64xf32>
    %c0_13 = arith.constant 0 : index
    %c0_14 = arith.constant 0 : index
    %c0_15 = arith.constant 0 : index
    %81 = vector.load %arg5[%c0_13, %c0_14, %c0_15] : memref<1x1x64xf32, #tpu.memory_space<vmem>>, vector<1x1x64xf32>
    tpu.vector_store %arg5[%c0_13, %c0_14, %c0_15], %80 {strides = array<i32>} : memref<1x1x64xf32, #tpu.memory_space<vmem>>, vector<1x1x64xf32>,
    return
  }
  func.func @transform_0(%arg0: i32) -> (i32, i32, i32, i32) {
    %c0_i32 = arith.constant 0 : i32
    %c0_i32_0 = arith.constant 0 : i32
    %c0_i32_1 = arith.constant 0 : i32
    %c0_i32_2 = arith.constant 0 : i32
    return %arg0, %c0_i32, %c0_i32_0, %c0_i32_1 : i32, i32, i32, i32
  }
  func.func @transform_1(%arg0: i32) -> (i32, i32) {
    %c0_i32 = arith.constant 0 : i32
    %c0_i32_0 = arith.constant 0 : i32
    %c0_i32_1 = arith.constant 0 : i32
    return %c0_i32, %c0_i32_0 : i32, i32
  }
  func.func @transform_2(%arg0: i32) -> (i32, i32) {
    %c0_i32 = arith.constant 0 : i32
    %c0_i32_0 = arith.constant 0 : i32
    %c0_i32_1 = arith.constant 0 : i32
    return %c0_i32, %c0_i32_0 : i32, i32
  }
  func.func @transform_3(%arg0: i32) -> (i32, i32, i32, i32) {
    %c0_i32 = arith.constant 0 : i32
    %c0_i32_0 = arith.constant 0 : i32
    %c0_i32_1 = arith.constant 0 : i32
    %c0_i32_2 = arith.constant 0 : i32
    return %arg0, %c0_i32, %c0_i32_0, %c0_i32_1 : i32, i32, i32, i32
  }
  func.func @transform_4(%arg0: i32) -> (i32, i32, i32) {
    %c0_i32 = arith.constant 0 : i32
    %c0_i32_0 = arith.constant 0 : i32
    %c0_i32_1 = arith.constant 0 : i32
    return %arg0, %c0_i32, %c0_i32_0 : i32, i32, i32
  }
}

module attributes {stable_mosaic.version = 11 : i64} {
  func.func @_se_scale_proj_kernel(%arg0: i32, %arg1: i32, %arg2: memref<1x16x64xf32, #tpu.memory_space<vmem>>, %arg3: memref<1x1x64xf32, #tpu.memory_space<vmem>>, %arg4: memref<64x4xf32, #tpu.memory_space<vmem>>, %arg5: memref<1x4xf32, #tpu.memory_space<vmem>>, %arg6: memref<4x64xf32, #tpu.memory_space<vmem>>, %arg7: memref<1x64xf32, #tpu.memory_space<vmem>>, %arg8: memref<64x24xf32, #tpu.memory_space<vmem>>, %arg9: memref<1x24xf32, #tpu.memory_space<vmem>>, %arg10: memref<1x16x24xf32, #tpu.memory_space<vmem>>) attributes {dimension_semantics = [#tpu.dimension_semantics<parallel>, #tpu.dimension_semantics<parallel>], iteration_bounds = array<i64: 2, 1>, scalar_prefetch = 0 : i64, scratch_operands = 0 : i64, tpu.core_type = #tpu.core_type<tc>, window_params = [{transform_indices = @transform_0, window_bounds = array<i64: 1, 16, 64>}, {transform_indices = @transform_1, window_bounds = array<i64: 1, 1, 64>}, {pipeline_mode = #tpu.pipeline_mode<synchronous>, transform_indices = @transform_2, window_bounds = array<i64: 64, 4>}, {pipeline_mode = #tpu.pipeline_mode<synchronous>, transform_indices = @transform_3, window_bounds = array<i64: 1, 4>}, {pipeline_mode = #tpu.pipeline_mode<synchronous>, transform_indices = @transform_4, window_bounds = array<i64: 4, 64>}, {pipeline_mode = #tpu.pipeline_mode<synchronous>, transform_indices = @transform_5, window_bounds = array<i64: 1, 64>}, {pipeline_mode = #tpu.pipeline_mode<synchronous>, transform_indices = @transform_6, window_bounds = array<i64: 64, 24>}, {pipeline_mode = #tpu.pipeline_mode<synchronous>, transform_indices = @transform_7, window_bounds = array<i64: 1, 24>}, {transform_indices = @transform_8, window_bounds = array<i64: 1, 16, 24>}]} {
    %c0 = arith.constant 0 : index
    %c0_0 = arith.constant 0 : index
    %c0_1 = arith.constant 0 : index
    %0 = vector.load %arg3[%c0, %c0_0, %c0_1] : memref<1x1x64xf32, #tpu.memory_space<vmem>>, vector<1x1x64xf32>
    %1 = vector.shape_cast %0 : vector<1x1x64xf32> to vector<1x64xf32>
    %c0_2 = arith.constant 0 : index
    %c0_3 = arith.constant 0 : index
    %2 = vector.load %arg4[%c0_2, %c0_3] : memref<64x4xf32, #tpu.memory_space<vmem>>, vector<64x4xf32>
    %cst = arith.constant dense<0.000000e+00> : vector<1x4xf32>
    %3 = tpu.matmul %1, %2, %cst {dimension_numbers = #tpu.dot_dimension_numbers<[1], [0], [0], [1], [0, 0, 1, 1], [], []>} : vector<1x64xf32>, vector<64x4xf32>, vector<1x4xf32> -> vector<1x4xf32>
    %c0_4 = arith.constant 0 : index
    %c0_5 = arith.constant 0 : index
    %4 = vector.load %arg5[%c0_4, %c0_5] : memref<1x4xf32, #tpu.memory_space<vmem>>, vector<1x4xf32>
    %5 = arith.addf %3, %4 : vector<1x4xf32>
    %6 = arith.negf %5 : vector<1x4xf32>
    %7 = math.exp %6 : vector<1x4xf32>
    %cst_6 = arith.constant 1.000000e+00 : f32
    %8 = vector.broadcast %cst_6 : f32 to vector<1x4xf32>
    %9 = arith.addf %8, %7 : vector<1x4xf32>
    %10 = arith.divf %8, %9 : vector<1x4xf32>
    %11 = arith.mulf %5, %10 : vector<1x4xf32>
    %c0_7 = arith.constant 0 : index
    %c0_8 = arith.constant 0 : index
    %12 = vector.load %arg6[%c0_7, %c0_8] : memref<4x64xf32, #tpu.memory_space<vmem>>, vector<4x64xf32>
    %cst_9 = arith.constant dense<0.000000e+00> : vector<1x64xf32>
    %13 = tpu.matmul %11, %12, %cst_9 {dimension_numbers = #tpu.dot_dimension_numbers<[1], [0], [0], [1], [0, 0, 1, 1], [], []>} : vector<1x4xf32>, vector<4x64xf32>, vector<1x64xf32> -> vector<1x64xf32>
    %c0_10 = arith.constant 0 : index
    %c0_11 = arith.constant 0 : index
    %14 = vector.load %arg7[%c0_10, %c0_11] : memref<1x64xf32, #tpu.memory_space<vmem>>, vector<1x64xf32>
    %15 = arith.addf %13, %14 : vector<1x64xf32>
    %16 = arith.negf %15 : vector<1x64xf32>
    %17 = math.exp %16 : vector<1x64xf32>
    %cst_12 = arith.constant 1.000000e+00 : f32
    %18 = vector.broadcast %cst_12 : f32 to vector<1x64xf32>
    %19 = arith.addf %18, %17 : vector<1x64xf32>
    %20 = arith.divf %18, %19 : vector<1x64xf32>
    %c0_13 = arith.constant 0 : index
    %c0_14 = arith.constant 0 : index
    %c0_15 = arith.constant 0 : index
    %21 = vector.load %arg2[%c0_13, %c0_14, %c0_15] : memref<1x16x64xf32, #tpu.memory_space<vmem>>, vector<1x16x64xf32>
    %22 = vector.shape_cast %21 : vector<1x16x64xf32> to vector<16x64xf32>
    %23 = vector.broadcast %20 : vector<1x64xf32> to vector<16x64xf32>
    %24 = arith.mulf %22, %23 : vector<16x64xf32>
    %25 = arith.truncf %24 : vector<16x64xf32> to vector<16x64xbf16>
    %c0_16 = arith.constant 0 : index
    %c0_17 = arith.constant 0 : index
    %26 = vector.load %arg8[%c0_16, %c0_17] : memref<64x24xf32, #tpu.memory_space<vmem>>, vector<64x24xf32>
    %27 = arith.truncf %26 : vector<64x24xf32> to vector<64x24xbf16>
    %cst_18 = arith.constant dense<0.000000e+00> : vector<16x24xf32>
    %28 = tpu.matmul %25, %27, %cst_18 {dimension_numbers = #tpu.dot_dimension_numbers<[1], [0], [0], [1], [0, 0, 1, 1], [], []>} : vector<16x64xbf16>, vector<64x24xbf16>, vector<16x24xf32> -> vector<16x24xf32>
    %c0_19 = arith.constant 0 : index
    %c0_20 = arith.constant 0 : index
    %29 = vector.load %arg9[%c0_19, %c0_20] : memref<1x24xf32, #tpu.memory_space<vmem>>, vector<1x24xf32>
    %30 = vector.broadcast %29 : vector<1x24xf32> to vector<16x24xf32>
    %31 = arith.addf %28, %30 : vector<16x24xf32>
    %32 = vector.shape_cast %31 : vector<16x24xf32> to vector<1x16x24xf32>
    %c0_21 = arith.constant 0 : index
    %c0_22 = arith.constant 0 : index
    %c0_23 = arith.constant 0 : index
    %33 = vector.load %arg10[%c0_21, %c0_22, %c0_23] : memref<1x16x24xf32, #tpu.memory_space<vmem>>, vector<1x16x24xf32>
    tpu.vector_store %arg10[%c0_21, %c0_22, %c0_23], %32 {strides = array<i32>} : memref<1x16x24xf32, #tpu.memory_space<vmem>>, vector<1x16x24xf32>,
    return
  }
  func.func @transform_0(%arg0: i32, %arg1: i32) -> (i32, i32, i32) {
    %c0_i32 = arith.constant 0 : i32
    %c0_i32_0 = arith.constant 0 : i32
    return %arg0, %arg1, %c0_i32 : i32, i32, i32
  }
  func.func @transform_1(%arg0: i32, %arg1: i32) -> (i32, i32, i32) {
    %c0_i32 = arith.constant 0 : i32
    %c0_i32_0 = arith.constant 0 : i32
    %c0_i32_1 = arith.constant 0 : i32
    return %arg0, %c0_i32, %c0_i32_0 : i32, i32, i32
  }
  func.func @transform_2(%arg0: i32, %arg1: i32) -> (i32, i32) {
    %c0_i32 = arith.constant 0 : i32
    %c0_i32_0 = arith.constant 0 : i32
    %c0_i32_1 = arith.constant 0 : i32
    return %c0_i32, %c0_i32_0 : i32, i32
  }
  func.func @transform_3(%arg0: i32, %arg1: i32) -> (i32, i32) {
    %c0_i32 = arith.constant 0 : i32
    %c0_i32_0 = arith.constant 0 : i32
    %c0_i32_1 = arith.constant 0 : i32
    return %c0_i32, %c0_i32_0 : i32, i32
  }
  func.func @transform_4(%arg0: i32, %arg1: i32) -> (i32, i32) {
    %c0_i32 = arith.constant 0 : i32
    %c0_i32_0 = arith.constant 0 : i32
    %c0_i32_1 = arith.constant 0 : i32
    return %c0_i32, %c0_i32_0 : i32, i32
  }
  func.func @transform_5(%arg0: i32, %arg1: i32) -> (i32, i32) {
    %c0_i32 = arith.constant 0 : i32
    %c0_i32_0 = arith.constant 0 : i32
    %c0_i32_1 = arith.constant 0 : i32
    return %c0_i32, %c0_i32_0 : i32, i32
  }
  func.func @transform_6(%arg0: i32, %arg1: i32) -> (i32, i32) {
    %c0_i32 = arith.constant 0 : i32
    %c0_i32_0 = arith.constant 0 : i32
    %c0_i32_1 = arith.constant 0 : i32
    return %c0_i32, %c0_i32_0 : i32, i32
  }
  func.func @transform_7(%arg0: i32, %arg1: i32) -> (i32, i32) {
    %c0_i32 = arith.constant 0 : i32
    %c0_i32_0 = arith.constant 0 : i32
    %c0_i32_1 = arith.constant 0 : i32
    return %c0_i32, %c0_i32_0 : i32, i32
  }
  func.func @transform_8(%arg0: i32, %arg1: i32) -> (i32, i32, i32) {
    %c0_i32 = arith.constant 0 : i32
    %c0_i32_0 = arith.constant 0 : i32
    return %arg0, %arg1, %c0_i32 : i32, i32, i32
  }
}

module attributes {stable_mosaic.version = 11 : i64} {
  func.func @_gemm_bias_act_kernel(%arg0: i32, %arg1: i32, %arg2: i32, %arg3: memref<32x24xf32, #tpu.memory_space<vmem>>, %arg4: memref<24x96xf32, #tpu.memory_space<vmem>>, %arg5: memref<1x96xf32, #tpu.memory_space<vmem>>, %arg6: memref<32x96xf32, #tpu.memory_space<vmem>>, %arg7: memref<32x96xf32, #tpu.memory_space<vmem>>) attributes {dimension_semantics = [#tpu.dimension_semantics<parallel>, #tpu.dimension_semantics<parallel>, #tpu.dimension_semantics<arbitrary>], iteration_bounds = array<i64: 1, 1, 1>, scalar_prefetch = 0 : i64, scratch_operands = 1 : i64, tpu.core_type = #tpu.core_type<tc>, window_params = [{transform_indices = @transform_0, window_bounds = array<i64: 32, 24>}, {transform_indices = @transform_1, window_bounds = array<i64: 24, 96>}, {transform_indices = @transform_2, window_bounds = array<i64: 1, 96>}, {transform_indices = @transform_3, window_bounds = array<i64: 32, 96>}]} {
    %c0_i32 = arith.constant 0 : i32
    %0 = arith.cmpi eq, %arg2, %c0_i32 : i32
    %1 = arith.extui %0 : i1 to i32
    %c0_i32_0 = arith.constant 0 : i32
    %2 = arith.cmpi ne, %1, %c0_i32_0 : i32
    scf.if %2 {
      %cst_10 = arith.constant 0.000000e+00 : f32
      %14 = vector.broadcast %cst_10 : f32 to vector<32x96xf32>
      %c0_11 = arith.constant 0 : index
      %c0_12 = arith.constant 0 : index
      %15 = vector.load %arg7[%c0_11, %c0_12] : memref<32x96xf32, #tpu.memory_space<vmem>>, vector<32x96xf32>
      tpu.vector_store %arg7[%c0_11, %c0_12], %14 {strides = array<i32>} : memref<32x96xf32, #tpu.memory_space<vmem>>, vector<32x96xf32>,
    } else {
    }
    %c0 = arith.constant 0 : index
    %c0_1 = arith.constant 0 : index
    %3 = vector.load %arg7[%c0, %c0_1] : memref<32x96xf32, #tpu.memory_space<vmem>>, vector<32x96xf32>
    %c0_2 = arith.constant 0 : index
    %c0_3 = arith.constant 0 : index
    %4 = vector.load %arg3[%c0_2, %c0_3] : memref<32x24xf32, #tpu.memory_space<vmem>>, vector<32x24xf32>
    %5 = arith.truncf %4 : vector<32x24xf32> to vector<32x24xbf16>
    %c0_4 = arith.constant 0 : index
    %c0_5 = arith.constant 0 : index
    %6 = vector.load %arg4[%c0_4, %c0_5] : memref<24x96xf32, #tpu.memory_space<vmem>>, vector<24x96xf32>
    %7 = arith.truncf %6 : vector<24x96xf32> to vector<24x96xbf16>
    %cst = arith.constant dense<0.000000e+00> : vector<32x96xf32>
    %8 = tpu.matmul %5, %7, %cst {dimension_numbers = #tpu.dot_dimension_numbers<[1], [0], [0], [1], [0, 0, 1, 1], [], []>} : vector<32x24xbf16>, vector<24x96xbf16>, vector<32x96xf32> -> vector<32x96xf32>
    %9 = arith.addf %3, %8 : vector<32x96xf32>
    %c0_6 = arith.constant 0 : index
    %c0_7 = arith.constant 0 : index
    %10 = vector.load %arg7[%c0_6, %c0_7] : memref<32x96xf32, #tpu.memory_space<vmem>>, vector<32x96xf32>
    tpu.vector_store %arg7[%c0_6, %c0_7], %9 {strides = array<i32>} : memref<32x96xf32, #tpu.memory_space<vmem>>, vector<32x96xf32>,
    %c0_i32_8 = arith.constant 0 : i32
    %11 = arith.cmpi eq, %arg2, %c0_i32_8 : i32
    %12 = arith.extui %11 : i1 to i32
    %c0_i32_9 = arith.constant 0 : i32
    %13 = arith.cmpi ne, %12, %c0_i32_9 : i32
    scf.if %13 {
      %c0_10 = arith.constant 0 : index
      %c0_11 = arith.constant 0 : index
      %14 = vector.load %arg7[%c0_10, %c0_11] : memref<32x96xf32, #tpu.memory_space<vmem>>, vector<32x96xf32>
      %c0_12 = arith.constant 0 : index
      %c0_13 = arith.constant 0 : index
      %15 = vector.load %arg5[%c0_12, %c0_13] : memref<1x96xf32, #tpu.memory_space<vmem>>, vector<1x96xf32>
      %16 = vector.broadcast %15 : vector<1x96xf32> to vector<32x96xf32>
      %17 = arith.addf %14, %16 : vector<32x96xf32>
      %18 = arith.negf %17 : vector<32x96xf32>
      %19 = math.exp %18 : vector<32x96xf32>
      %cst_14 = arith.constant 1.000000e+00 : f32
      %20 = vector.broadcast %cst_14 : f32 to vector<32x96xf32>
      %21 = arith.addf %20, %19 : vector<32x96xf32>
      %22 = arith.divf %20, %21 : vector<32x96xf32>
      %23 = arith.mulf %17, %22 : vector<32x96xf32>
      %c0_15 = arith.constant 0 : index
      %c0_16 = arith.constant 0 : index
      %24 = vector.load %arg6[%c0_15, %c0_16] : memref<32x96xf32, #tpu.memory_space<vmem>>, vector<32x96xf32>
      tpu.vector_store %arg6[%c0_15, %c0_16], %23 {strides = array<i32>} : memref<32x96xf32, #tpu.memory_space<vmem>>, vector<32x96xf32>,
    } else {
    }
    return
  }
  func.func @transform_0(%arg0: i32, %arg1: i32, %arg2: i32) -> (i32, i32) {
    %c0_i32 = arith.constant 0 : i32
    return %arg0, %arg2 : i32, i32
  }
  func.func @transform_1(%arg0: i32, %arg1: i32, %arg2: i32) -> (i32, i32) {
    %c0_i32 = arith.constant 0 : i32
    return %arg2, %arg1 : i32, i32
  }
  func.func @transform_2(%arg0: i32, %arg1: i32, %arg2: i32) -> (i32, i32) {
    %c0_i32 = arith.constant 0 : i32
    %c0_i32_0 = arith.constant 0 : i32
    return %c0_i32, %arg1 : i32, i32
  }
  func.func @transform_3(%arg0: i32, %arg1: i32, %arg2: i32) -> (i32, i32) {
    %c0_i32 = arith.constant 0 : i32
    return %arg0, %arg1 : i32, i32
  }
}

module attributes {stable_mosaic.version = 11 : i64} {
  func.func @_dwconv_bn_silu_pool_kernel(%arg0: i32, %arg1: memref<1x6x6x96xf32, #tpu.memory_space<vmem>>, %arg2: memref<9x96xf32, #tpu.memory_space<vmem>>, %arg3: memref<1x96xf32, #tpu.memory_space<vmem>>, %arg4: memref<1x4x4x96xf32, #tpu.memory_space<vmem>>, %arg5: memref<1x1x96xf32, #tpu.memory_space<vmem>>) attributes {dimension_semantics = [#tpu.dimension_semantics<parallel>], iteration_bounds = array<i64: 2>, scalar_prefetch = 0 : i64, scratch_operands = 0 : i64, tpu.core_type = #tpu.core_type<tc>, window_params = [{transform_indices = @transform_0, window_bounds = array<i64: 1, 6, 6, 96>}, {pipeline_mode = #tpu.pipeline_mode<synchronous>, transform_indices = @transform_1, window_bounds = array<i64: 9, 96>}, {pipeline_mode = #tpu.pipeline_mode<synchronous>, transform_indices = @transform_2, window_bounds = array<i64: 1, 96>}, {transform_indices = @transform_3, window_bounds = array<i64: 1, 4, 4, 96>}, {transform_indices = @transform_4, window_bounds = array<i64: 1, 1, 96>}]} {
    %c0 = arith.constant 0 : index
    %c0_0 = arith.constant 0 : index
    %c0_1 = arith.constant 0 : index
    %c0_2 = arith.constant 0 : index
    %0 = vector.load %arg1[%c0, %c0_0, %c0_1, %c0_2] : memref<1x6x6x96xf32, #tpu.memory_space<vmem>>, vector<1x6x6x96xf32>
    %c0_3 = arith.constant 0 : index
    %c0_4 = arith.constant 0 : index
    %1 = vector.load %arg2[%c0_3, %c0_4] : memref<9x96xf32, #tpu.memory_space<vmem>>, vector<9x96xf32>
    %2 = vector.shape_cast %1 : vector<9x96xf32> to vector<9x1x1x96xf32>
    %3 = vector.extract_strided_slice %0 {offsets = [0, 0, 0, 0], sizes = [1, 4, 4, 96], strides = [1, 1, 1, 1]} : vector<1x6x6x96xf32> to vector<1x4x4x96xf32>
    %4 = vector.shape_cast %3 : vector<1x4x4x96xf32> to vector<4x4x96xf32>
    %5 = vector.extract_strided_slice %2 {offsets = [0, 0, 0, 0], sizes = [1, 1, 1, 96], strides = [1, 1, 1, 1]} : vector<9x1x1x96xf32> to vector<1x1x1x96xf32>
    %6 = vector.shape_cast %5 : vector<1x1x1x96xf32> to vector<1x1x96xf32>
    %7 = vector.broadcast %6 : vector<1x1x96xf32> to vector<4x4x96xf32>
    %8 = arith.mulf %4, %7 : vector<4x4x96xf32>
    %9 = vector.extract_strided_slice %0 {offsets = [0, 0, 1, 0], sizes = [1, 4, 4, 96], strides = [1, 1, 1, 1]} : vector<1x6x6x96xf32> to vector<1x4x4x96xf32>
    %10 = vector.shape_cast %9 : vector<1x4x4x96xf32> to vector<4x4x96xf32>
    %11 = vector.extract_strided_slice %2 {offsets = [1, 0, 0, 0], sizes = [1, 1, 1, 96], strides = [1, 1, 1, 1]} : vector<9x1x1x96xf32> to vector<1x1x1x96xf32>
    %12 = vector.shape_cast %11 : vector<1x1x1x96xf32> to vector<1x1x96xf32>
    %13 = vector.broadcast %12 : vector<1x1x96xf32> to vector<4x4x96xf32>
    %14 = arith.mulf %10, %13 : vector<4x4x96xf32>
    %15 = arith.addf %8, %14 : vector<4x4x96xf32>
    %16 = vector.extract_strided_slice %0 {offsets = [0, 0, 2, 0], sizes = [1, 4, 4, 96], strides = [1, 1, 1, 1]} : vector<1x6x6x96xf32> to vector<1x4x4x96xf32>
    %17 = vector.shape_cast %16 : vector<1x4x4x96xf32> to vector<4x4x96xf32>
    %18 = vector.extract_strided_slice %2 {offsets = [2, 0, 0, 0], sizes = [1, 1, 1, 96], strides = [1, 1, 1, 1]} : vector<9x1x1x96xf32> to vector<1x1x1x96xf32>
    %19 = vector.shape_cast %18 : vector<1x1x1x96xf32> to vector<1x1x96xf32>
    %20 = vector.broadcast %19 : vector<1x1x96xf32> to vector<4x4x96xf32>
    %21 = arith.mulf %17, %20 : vector<4x4x96xf32>
    %22 = arith.addf %15, %21 : vector<4x4x96xf32>
    %23 = vector.extract_strided_slice %0 {offsets = [0, 1, 0, 0], sizes = [1, 4, 4, 96], strides = [1, 1, 1, 1]} : vector<1x6x6x96xf32> to vector<1x4x4x96xf32>
    %24 = vector.shape_cast %23 : vector<1x4x4x96xf32> to vector<4x4x96xf32>
    %25 = vector.extract_strided_slice %2 {offsets = [3, 0, 0, 0], sizes = [1, 1, 1, 96], strides = [1, 1, 1, 1]} : vector<9x1x1x96xf32> to vector<1x1x1x96xf32>
    %26 = vector.shape_cast %25 : vector<1x1x1x96xf32> to vector<1x1x96xf32>
    %27 = vector.broadcast %26 : vector<1x1x96xf32> to vector<4x4x96xf32>
    %28 = arith.mulf %24, %27 : vector<4x4x96xf32>
    %29 = arith.addf %22, %28 : vector<4x4x96xf32>
    %30 = vector.extract_strided_slice %0 {offsets = [0, 1, 1, 0], sizes = [1, 4, 4, 96], strides = [1, 1, 1, 1]} : vector<1x6x6x96xf32> to vector<1x4x4x96xf32>
    %31 = vector.shape_cast %30 : vector<1x4x4x96xf32> to vector<4x4x96xf32>
    %32 = vector.extract_strided_slice %2 {offsets = [4, 0, 0, 0], sizes = [1, 1, 1, 96], strides = [1, 1, 1, 1]} : vector<9x1x1x96xf32> to vector<1x1x1x96xf32>
    %33 = vector.shape_cast %32 : vector<1x1x1x96xf32> to vector<1x1x96xf32>
    %34 = vector.broadcast %33 : vector<1x1x96xf32> to vector<4x4x96xf32>
    %35 = arith.mulf %31, %34 : vector<4x4x96xf32>
    %36 = arith.addf %29, %35 : vector<4x4x96xf32>
    %37 = vector.extract_strided_slice %0 {offsets = [0, 1, 2, 0], sizes = [1, 4, 4, 96], strides = [1, 1, 1, 1]} : vector<1x6x6x96xf32> to vector<1x4x4x96xf32>
    %38 = vector.shape_cast %37 : vector<1x4x4x96xf32> to vector<4x4x96xf32>
    %39 = vector.extract_strided_slice %2 {offsets = [5, 0, 0, 0], sizes = [1, 1, 1, 96], strides = [1, 1, 1, 1]} : vector<9x1x1x96xf32> to vector<1x1x1x96xf32>
    %40 = vector.shape_cast %39 : vector<1x1x1x96xf32> to vector<1x1x96xf32>
    %41 = vector.broadcast %40 : vector<1x1x96xf32> to vector<4x4x96xf32>
    %42 = arith.mulf %38, %41 : vector<4x4x96xf32>
    %43 = arith.addf %36, %42 : vector<4x4x96xf32>
    %44 = vector.extract_strided_slice %0 {offsets = [0, 2, 0, 0], sizes = [1, 4, 4, 96], strides = [1, 1, 1, 1]} : vector<1x6x6x96xf32> to vector<1x4x4x96xf32>
    %45 = vector.shape_cast %44 : vector<1x4x4x96xf32> to vector<4x4x96xf32>
    %46 = vector.extract_strided_slice %2 {offsets = [6, 0, 0, 0], sizes = [1, 1, 1, 96], strides = [1, 1, 1, 1]} : vector<9x1x1x96xf32> to vector<1x1x1x96xf32>
    %47 = vector.shape_cast %46 : vector<1x1x1x96xf32> to vector<1x1x96xf32>
    %48 = vector.broadcast %47 : vector<1x1x96xf32> to vector<4x4x96xf32>
    %49 = arith.mulf %45, %48 : vector<4x4x96xf32>
    %50 = arith.addf %43, %49 : vector<4x4x96xf32>
    %51 = vector.extract_strided_slice %0 {offsets = [0, 2, 1, 0], sizes = [1, 4, 4, 96], strides = [1, 1, 1, 1]} : vector<1x6x6x96xf32> to vector<1x4x4x96xf32>
    %52 = vector.shape_cast %51 : vector<1x4x4x96xf32> to vector<4x4x96xf32>
    %53 = vector.extract_strided_slice %2 {offsets = [7, 0, 0, 0], sizes = [1, 1, 1, 96], strides = [1, 1, 1, 1]} : vector<9x1x1x96xf32> to vector<1x1x1x96xf32>
    %54 = vector.shape_cast %53 : vector<1x1x1x96xf32> to vector<1x1x96xf32>
    %55 = vector.broadcast %54 : vector<1x1x96xf32> to vector<4x4x96xf32>
    %56 = arith.mulf %52, %55 : vector<4x4x96xf32>
    %57 = arith.addf %50, %56 : vector<4x4x96xf32>
    %58 = vector.extract_strided_slice %0 {offsets = [0, 2, 2, 0], sizes = [1, 4, 4, 96], strides = [1, 1, 1, 1]} : vector<1x6x6x96xf32> to vector<1x4x4x96xf32>
    %59 = vector.shape_cast %58 : vector<1x4x4x96xf32> to vector<4x4x96xf32>
    %60 = vector.extract_strided_slice %2 {offsets = [8, 0, 0, 0], sizes = [1, 1, 1, 96], strides = [1, 1, 1, 1]} : vector<9x1x1x96xf32> to vector<1x1x1x96xf32>
    %61 = vector.shape_cast %60 : vector<1x1x1x96xf32> to vector<1x1x96xf32>
    %62 = vector.broadcast %61 : vector<1x1x96xf32> to vector<4x4x96xf32>
    %63 = arith.mulf %59, %62 : vector<4x4x96xf32>
    %64 = arith.addf %57, %63 : vector<4x4x96xf32>
    %c0_5 = arith.constant 0 : index
    %c0_6 = arith.constant 0 : index
    %65 = vector.load %arg3[%c0_5, %c0_6] : memref<1x96xf32, #tpu.memory_space<vmem>>, vector<1x96xf32>
    %66 = vector.shape_cast %65 : vector<1x96xf32> to vector<1x1x96xf32>
    %67 = vector.broadcast %66 : vector<1x1x96xf32> to vector<4x4x96xf32>
    %68 = arith.addf %64, %67 : vector<4x4x96xf32>
    %69 = arith.negf %68 : vector<4x4x96xf32>
    %70 = math.exp %69 : vector<4x4x96xf32>
    %cst = arith.constant 1.000000e+00 : f32
    %71 = vector.broadcast %cst : f32 to vector<4x4x96xf32>
    %72 = arith.addf %71, %70 : vector<4x4x96xf32>
    %73 = arith.divf %71, %72 : vector<4x4x96xf32>
    %74 = arith.mulf %68, %73 : vector<4x4x96xf32>
    %75 = vector.shape_cast %74 : vector<4x4x96xf32> to vector<1x4x4x96xf32>
    %c0_7 = arith.constant 0 : index
    %c0_8 = arith.constant 0 : index
    %c0_9 = arith.constant 0 : index
    %c0_10 = arith.constant 0 : index
    %76 = vector.load %arg4[%c0_7, %c0_8, %c0_9, %c0_10] : memref<1x4x4x96xf32, #tpu.memory_space<vmem>>, vector<1x4x4x96xf32>
    tpu.vector_store %arg4[%c0_7, %c0_8, %c0_9, %c0_10], %75 {strides = array<i32>} : memref<1x4x4x96xf32, #tpu.memory_space<vmem>>, vector<1x4x4x96xf32>,
    %cst_11 = arith.constant dense<0.000000e+00> : vector<96xf32>
    %77 = vector.multi_reduction <add>, %74, %cst_11 [0, 1] : vector<4x4x96xf32> to vector<96xf32>
    %78 = vector.shape_cast %77 : vector<96xf32> to vector<1x1x96xf32>
    %cst_12 = arith.constant 1.600000e+01 : f32
    %79 = vector.broadcast %cst_12 : f32 to vector<1x1x96xf32>
    %80 = arith.divf %78, %79 : vector<1x1x96xf32>
    %c0_13 = arith.constant 0 : index
    %c0_14 = arith.constant 0 : index
    %c0_15 = arith.constant 0 : index
    %81 = vector.load %arg5[%c0_13, %c0_14, %c0_15] : memref<1x1x96xf32, #tpu.memory_space<vmem>>, vector<1x1x96xf32>
    tpu.vector_store %arg5[%c0_13, %c0_14, %c0_15], %80 {strides = array<i32>} : memref<1x1x96xf32, #tpu.memory_space<vmem>>, vector<1x1x96xf32>,
    return
  }
  func.func @transform_0(%arg0: i32) -> (i32, i32, i32, i32) {
    %c0_i32 = arith.constant 0 : i32
    %c0_i32_0 = arith.constant 0 : i32
    %c0_i32_1 = arith.constant 0 : i32
    %c0_i32_2 = arith.constant 0 : i32
    return %arg0, %c0_i32, %c0_i32_0, %c0_i32_1 : i32, i32, i32, i32
  }
  func.func @transform_1(%arg0: i32) -> (i32, i32) {
    %c0_i32 = arith.constant 0 : i32
    %c0_i32_0 = arith.constant 0 : i32
    %c0_i32_1 = arith.constant 0 : i32
    return %c0_i32, %c0_i32_0 : i32, i32
  }
  func.func @transform_2(%arg0: i32) -> (i32, i32) {
    %c0_i32 = arith.constant 0 : i32
    %c0_i32_0 = arith.constant 0 : i32
    %c0_i32_1 = arith.constant 0 : i32
    return %c0_i32, %c0_i32_0 : i32, i32
  }
  func.func @transform_3(%arg0: i32) -> (i32, i32, i32, i32) {
    %c0_i32 = arith.constant 0 : i32
    %c0_i32_0 = arith.constant 0 : i32
    %c0_i32_1 = arith.constant 0 : i32
    %c0_i32_2 = arith.constant 0 : i32
    return %arg0, %c0_i32, %c0_i32_0, %c0_i32_1 : i32, i32, i32, i32
  }
  func.func @transform_4(%arg0: i32) -> (i32, i32, i32) {
    %c0_i32 = arith.constant 0 : i32
    %c0_i32_0 = arith.constant 0 : i32
    %c0_i32_1 = arith.constant 0 : i32
    return %arg0, %c0_i32, %c0_i32_0 : i32, i32, i32
  }
}

module attributes {stable_mosaic.version = 11 : i64} {
  func.func @_se_scale_proj_kernel(%arg0: i32, %arg1: i32, %arg2: memref<1x16x96xf32, #tpu.memory_space<vmem>>, %arg3: memref<1x1x96xf32, #tpu.memory_space<vmem>>, %arg4: memref<96x6xf32, #tpu.memory_space<vmem>>, %arg5: memref<1x6xf32, #tpu.memory_space<vmem>>, %arg6: memref<6x96xf32, #tpu.memory_space<vmem>>, %arg7: memref<1x96xf32, #tpu.memory_space<vmem>>, %arg8: memref<96x24xf32, #tpu.memory_space<vmem>>, %arg9: memref<1x24xf32, #tpu.memory_space<vmem>>, %arg10: memref<1x16x24xf32, #tpu.memory_space<vmem>>, %arg11: memref<1x16x24xf32, #tpu.memory_space<vmem>>) attributes {dimension_semantics = [#tpu.dimension_semantics<parallel>, #tpu.dimension_semantics<parallel>], iteration_bounds = array<i64: 2, 1>, scalar_prefetch = 0 : i64, scratch_operands = 0 : i64, tpu.core_type = #tpu.core_type<tc>, window_params = [{transform_indices = @transform_0, window_bounds = array<i64: 1, 16, 96>}, {transform_indices = @transform_1, window_bounds = array<i64: 1, 1, 96>}, {pipeline_mode = #tpu.pipeline_mode<synchronous>, transform_indices = @transform_2, window_bounds = array<i64: 96, 6>}, {pipeline_mode = #tpu.pipeline_mode<synchronous>, transform_indices = @transform_3, window_bounds = array<i64: 1, 6>}, {pipeline_mode = #tpu.pipeline_mode<synchronous>, transform_indices = @transform_4, window_bounds = array<i64: 6, 96>}, {pipeline_mode = #tpu.pipeline_mode<synchronous>, transform_indices = @transform_5, window_bounds = array<i64: 1, 96>}, {pipeline_mode = #tpu.pipeline_mode<synchronous>, transform_indices = @transform_6, window_bounds = array<i64: 96, 24>}, {pipeline_mode = #tpu.pipeline_mode<synchronous>, transform_indices = @transform_7, window_bounds = array<i64: 1, 24>}, {transform_indices = @transform_8, window_bounds = array<i64: 1, 16, 24>}, {transform_indices = @transform_9, window_bounds = array<i64: 1, 16, 24>}]} {
    %c0 = arith.constant 0 : index
    %c0_0 = arith.constant 0 : index
    %c0_1 = arith.constant 0 : index
    %0 = vector.load %arg3[%c0, %c0_0, %c0_1] : memref<1x1x96xf32, #tpu.memory_space<vmem>>, vector<1x1x96xf32>
    %1 = vector.shape_cast %0 : vector<1x1x96xf32> to vector<1x96xf32>
    %c0_2 = arith.constant 0 : index
    %c0_3 = arith.constant 0 : index
    %2 = vector.load %arg4[%c0_2, %c0_3] : memref<96x6xf32, #tpu.memory_space<vmem>>, vector<96x6xf32>
    %cst = arith.constant dense<0.000000e+00> : vector<1x6xf32>
    %3 = tpu.matmul %1, %2, %cst {dimension_numbers = #tpu.dot_dimension_numbers<[1], [0], [0], [1], [0, 0, 1, 1], [], []>} : vector<1x96xf32>, vector<96x6xf32>, vector<1x6xf32> -> vector<1x6xf32>
    %c0_4 = arith.constant 0 : index
    %c0_5 = arith.constant 0 : index
    %4 = vector.load %arg5[%c0_4, %c0_5] : memref<1x6xf32, #tpu.memory_space<vmem>>, vector<1x6xf32>
    %5 = arith.addf %3, %4 : vector<1x6xf32>
    %6 = arith.negf %5 : vector<1x6xf32>
    %7 = math.exp %6 : vector<1x6xf32>
    %cst_6 = arith.constant 1.000000e+00 : f32
    %8 = vector.broadcast %cst_6 : f32 to vector<1x6xf32>
    %9 = arith.addf %8, %7 : vector<1x6xf32>
    %10 = arith.divf %8, %9 : vector<1x6xf32>
    %11 = arith.mulf %5, %10 : vector<1x6xf32>
    %c0_7 = arith.constant 0 : index
    %c0_8 = arith.constant 0 : index
    %12 = vector.load %arg6[%c0_7, %c0_8] : memref<6x96xf32, #tpu.memory_space<vmem>>, vector<6x96xf32>
    %cst_9 = arith.constant dense<0.000000e+00> : vector<1x96xf32>
    %13 = tpu.matmul %11, %12, %cst_9 {dimension_numbers = #tpu.dot_dimension_numbers<[1], [0], [0], [1], [0, 0, 1, 1], [], []>} : vector<1x6xf32>, vector<6x96xf32>, vector<1x96xf32> -> vector<1x96xf32>
    %c0_10 = arith.constant 0 : index
    %c0_11 = arith.constant 0 : index
    %14 = vector.load %arg7[%c0_10, %c0_11] : memref<1x96xf32, #tpu.memory_space<vmem>>, vector<1x96xf32>
    %15 = arith.addf %13, %14 : vector<1x96xf32>
    %16 = arith.negf %15 : vector<1x96xf32>
    %17 = math.exp %16 : vector<1x96xf32>
    %cst_12 = arith.constant 1.000000e+00 : f32
    %18 = vector.broadcast %cst_12 : f32 to vector<1x96xf32>
    %19 = arith.addf %18, %17 : vector<1x96xf32>
    %20 = arith.divf %18, %19 : vector<1x96xf32>
    %c0_13 = arith.constant 0 : index
    %c0_14 = arith.constant 0 : index
    %c0_15 = arith.constant 0 : index
    %21 = vector.load %arg2[%c0_13, %c0_14, %c0_15] : memref<1x16x96xf32, #tpu.memory_space<vmem>>, vector<1x16x96xf32>
    %22 = vector.shape_cast %21 : vector<1x16x96xf32> to vector<16x96xf32>
    %23 = vector.broadcast %20 : vector<1x96xf32> to vector<16x96xf32>
    %24 = arith.mulf %22, %23 : vector<16x96xf32>
    %25 = arith.truncf %24 : vector<16x96xf32> to vector<16x96xbf16>
    %c0_16 = arith.constant 0 : index
    %c0_17 = arith.constant 0 : index
    %26 = vector.load %arg8[%c0_16, %c0_17] : memref<96x24xf32, #tpu.memory_space<vmem>>, vector<96x24xf32>
    %27 = arith.truncf %26 : vector<96x24xf32> to vector<96x24xbf16>
    %cst_18 = arith.constant dense<0.000000e+00> : vector<16x24xf32>
    %28 = tpu.matmul %25, %27, %cst_18 {dimension_numbers = #tpu.dot_dimension_numbers<[1], [0], [0], [1], [0, 0, 1, 1], [], []>} : vector<16x96xbf16>, vector<96x24xbf16>, vector<16x24xf32> -> vector<16x24xf32>
    %c0_19 = arith.constant 0 : index
    %c0_20 = arith.constant 0 : index
    %29 = vector.load %arg9[%c0_19, %c0_20] : memref<1x24xf32, #tpu.memory_space<vmem>>, vector<1x24xf32>
    %30 = vector.broadcast %29 : vector<1x24xf32> to vector<16x24xf32>
    %31 = arith.addf %28, %30 : vector<16x24xf32>
    %c0_21 = arith.constant 0 : index
    %c0_22 = arith.constant 0 : index
    %c0_23 = arith.constant 0 : index
    %32 = vector.load %arg10[%c0_21, %c0_22, %c0_23] : memref<1x16x24xf32, #tpu.memory_space<vmem>>, vector<1x16x24xf32>
    %33 = vector.shape_cast %32 : vector<1x16x24xf32> to vector<16x24xf32>
    %34 = arith.addf %31, %33 : vector<16x24xf32>
    %35 = vector.shape_cast %34 : vector<16x24xf32> to vector<1x16x24xf32>
    %c0_24 = arith.constant 0 : index
    %c0_25 = arith.constant 0 : index
    %c0_26 = arith.constant 0 : index
    %36 = vector.load %arg11[%c0_24, %c0_25, %c0_26] : memref<1x16x24xf32, #tpu.memory_space<vmem>>, vector<1x16x24xf32>
    tpu.vector_store %arg11[%c0_24, %c0_25, %c0_26], %35 {strides = array<i32>} : memref<1x16x24xf32, #tpu.memory_space<vmem>>, vector<1x16x24xf32>,
    return
  }
  func.func @transform_0(%arg0: i32, %arg1: i32) -> (i32, i32, i32) {
    %c0_i32 = arith.constant 0 : i32
    %c0_i32_0 = arith.constant 0 : i32
    return %arg0, %arg1, %c0_i32 : i32, i32, i32
  }
  func.func @transform_1(%arg0: i32, %arg1: i32) -> (i32, i32, i32) {
    %c0_i32 = arith.constant 0 : i32
    %c0_i32_0 = arith.constant 0 : i32
    %c0_i32_1 = arith.constant 0 : i32
    return %arg0, %c0_i32, %c0_i32_0 : i32, i32, i32
  }
  func.func @transform_2(%arg0: i32, %arg1: i32) -> (i32, i32) {
    %c0_i32 = arith.constant 0 : i32
    %c0_i32_0 = arith.constant 0 : i32
    %c0_i32_1 = arith.constant 0 : i32
    return %c0_i32, %c0_i32_0 : i32, i32
  }
  func.func @transform_3(%arg0: i32, %arg1: i32) -> (i32, i32) {
    %c0_i32 = arith.constant 0 : i32
    %c0_i32_0 = arith.constant 0 : i32
    %c0_i32_1 = arith.constant 0 : i32
    return %c0_i32, %c0_i32_0 : i32, i32
  }
  func.func @transform_4(%arg0: i32, %arg1: i32) -> (i32, i32) {
    %c0_i32 = arith.constant 0 : i32
    %c0_i32_0 = arith.constant 0 : i32
    %c0_i32_1 = arith.constant 0 : i32
    return %c0_i32, %c0_i32_0 : i32, i32
  }
  func.func @transform_5(%arg0: i32, %arg1: i32) -> (i32, i32) {
    %c0_i32 = arith.constant 0 : i32
    %c0_i32_0 = arith.constant 0 : i32
    %c0_i32_1 = arith.constant 0 : i32
    return %c0_i32, %c0_i32_0 : i32, i32
  }
  func.func @transform_6(%arg0: i32, %arg1: i32) -> (i32, i32) {
    %c0_i32 = arith.constant 0 : i32
    %c0_i32_0 = arith.constant 0 : i32
    %c0_i32_1 = arith.constant 0 : i32
    return %c0_i32, %c0_i32_0 : i32, i32
  }
  func.func @transform_7(%arg0: i32, %arg1: i32) -> (i32, i32) {
    %c0_i32 = arith.constant 0 : i32
    %c0_i32_0 = arith.constant 0 : i32
    %c0_i32_1 = arith.constant 0 : i32
    return %c0_i32, %c0_i32_0 : i32, i32
  }
  func.func @transform_8(%arg0: i32, %arg1: i32) -> (i32, i32, i32) {
    %c0_i32 = arith.constant 0 : i32
    %c0_i32_0 = arith.constant 0 : i32
    return %arg0, %arg1, %c0_i32 : i32, i32, i32
  }
  func.func @transform_9(%arg0: i32, %arg1: i32) -> (i32, i32, i32) {
    %c0_i32 = arith.constant 0 : i32
    %c0_i32_0 = arith.constant 0 : i32
    return %arg0, %arg1, %c0_i32 : i32, i32, i32
  }
}

module attributes {stable_mosaic.version = 11 : i64} {
  func.func @_two_head_kernel(%arg0: i32, %arg1: memref<2x16x64xf32, #tpu.memory_space<vmem>>, %arg2: memref<64x128xf32, #tpu.memory_space<vmem>>, %arg3: memref<1x128xf32, #tpu.memory_space<vmem>>, %arg4: memref<2x128xf32, #tpu.memory_space<vmem>>) attributes {dimension_semantics = [#tpu.dimension_semantics<arbitrary>], iteration_bounds = array<i64: 1>, scalar_prefetch = 0 : i64, scratch_operands = 0 : i64, tpu.core_type = #tpu.core_type<tc>, window_params = [{pipeline_mode = #tpu.pipeline_mode<synchronous>, transform_indices = @transform_0, window_bounds = array<i64: 2, 16, 64>}, {pipeline_mode = #tpu.pipeline_mode<synchronous>, transform_indices = @transform_1, window_bounds = array<i64: 64, 128>}, {pipeline_mode = #tpu.pipeline_mode<synchronous>, transform_indices = @transform_2, window_bounds = array<i64: 1, 128>}, {pipeline_mode = #tpu.pipeline_mode<synchronous>, transform_indices = @transform_3, window_bounds = array<i64: 2, 128>}]} {
    %c0 = arith.constant 0 : index
    %c0_0 = arith.constant 0 : index
    %c0_1 = arith.constant 0 : index
    %0 = vector.load %arg1[%c0, %c0_0, %c0_1] : memref<2x16x64xf32, #tpu.memory_space<vmem>>, vector<2x16x64xf32>
    %cst = arith.constant dense<0.000000e+00> : vector<2x64xf32>
    %1 = vector.multi_reduction <add>, %0, %cst [1] : vector<2x16x64xf32> to vector<2x64xf32>
    %cst_2 = arith.constant 1.600000e+01 : f32
    %2 = vector.broadcast %cst_2 : f32 to vector<2x64xf32>
    %3 = arith.divf %1, %2 : vector<2x64xf32>
    %4 = arith.truncf %3 : vector<2x64xf32> to vector<2x64xbf16>
    %c0_3 = arith.constant 0 : index
    %c0_4 = arith.constant 0 : index
    %5 = vector.load %arg2[%c0_3, %c0_4] : memref<64x128xf32, #tpu.memory_space<vmem>>, vector<64x128xf32>
    %6 = arith.truncf %5 : vector<64x128xf32> to vector<64x128xbf16>
    %cst_5 = arith.constant dense<0.000000e+00> : vector<2x128xf32>
    %7 = tpu.matmul %4, %6, %cst_5 {dimension_numbers = #tpu.dot_dimension_numbers<[1], [0], [0], [1], [0, 0, 1, 1], [], []>} : vector<2x64xbf16>, vector<64x128xbf16>, vector<2x128xf32> -> vector<2x128xf32>
    %c0_6 = arith.constant 0 : index
    %c0_7 = arith.constant 0 : index
    %8 = vector.load %arg3[%c0_6, %c0_7] : memref<1x128xf32, #tpu.memory_space<vmem>>, vector<1x128xf32>
    %9 = vector.broadcast %8 : vector<1x128xf32> to vector<2x128xf32>
    %10 = arith.addf %7, %9 : vector<2x128xf32>
    %c0_8 = arith.constant 0 : index
    %c0_9 = arith.constant 0 : index
    %11 = vector.load %arg4[%c0_8, %c0_9] : memref<2x128xf32, #tpu.memory_space<vmem>>, vector<2x128xf32>
    tpu.vector_store %arg4[%c0_8, %c0_9], %10 {strides = array<i32>} : memref<2x128xf32, #tpu.memory_space<vmem>>, vector<2x128xf32>,
    return
  }
  func.func @transform_0(%arg0: i32) -> (i32, i32, i32) {
    %c0_i32 = arith.constant 0 : i32
    %c0_i32_0 = arith.constant 0 : i32
    %c0_i32_1 = arith.constant 0 : i32
    %c0_i32_2 = arith.constant 0 : i32
    return %c0_i32, %c0_i32_0, %c0_i32_1 : i32, i32, i32
  }
  func.func @transform_1(%arg0: i32) -> (i32, i32) {
    %c0_i32 = arith.constant 0 : i32
    %c0_i32_0 = arith.constant 0 : i32
    %c0_i32_1 = arith.constant 0 : i32
    return %c0_i32, %c0_i32_0 : i32, i32
  }
  func.func @transform_2(%arg0: i32) -> (i32, i32) {
    %c0_i32 = arith.constant 0 : i32
    %c0_i32_0 = arith.constant 0 : i32
    %c0_i32_1 = arith.constant 0 : i32
    return %c0_i32, %c0_i32_0 : i32, i32
  }
  func.func @transform_3(%arg0: i32) -> (i32, i32) {
    %c0_i32 = arith.constant 0 : i32
    %c0_i32_0 = arith.constant 0 : i32
    %c0_i32_1 = arith.constant 0 : i32
    return %c0_i32, %c0_i32_0 : i32, i32
  }
}

module attributes {stable_mosaic.version = 11 : i64} {
  func.func @_gemm_bias_act_kernel(%arg0: i32, %arg1: i32, %arg2: i32, %arg3: memref<32x24xf32, #tpu.memory_space<vmem>>, %arg4: memref<24x64xf32, #tpu.memory_space<vmem>>, %arg5: memref<1x64xf32, #tpu.memory_space<vmem>>, %arg6: memref<32x64xf32, #tpu.memory_space<vmem>>, %arg7: memref<32x64xf32, #tpu.memory_space<vmem>>) attributes {dimension_semantics = [#tpu.dimension_semantics<parallel>, #tpu.dimension_semantics<parallel>, #tpu.dimension_semantics<arbitrary>], iteration_bounds = array<i64: 1, 1, 1>, scalar_prefetch = 0 : i64, scratch_operands = 1 : i64, tpu.core_type = #tpu.core_type<tc>, window_params = [{transform_indices = @transform_0, window_bounds = array<i64: 32, 24>}, {transform_indices = @transform_1, window_bounds = array<i64: 24, 64>}, {transform_indices = @transform_2, window_bounds = array<i64: 1, 64>}, {transform_indices = @transform_3, window_bounds = array<i64: 32, 64>}]} {
    %c0_i32 = arith.constant 0 : i32
    %0 = arith.cmpi eq, %arg2, %c0_i32 : i32
    %1 = arith.extui %0 : i1 to i32
    %c0_i32_0 = arith.constant 0 : i32
    %2 = arith.cmpi ne, %1, %c0_i32_0 : i32
    scf.if %2 {
      %cst_10 = arith.constant 0.000000e+00 : f32
      %14 = vector.broadcast %cst_10 : f32 to vector<32x64xf32>
      %c0_11 = arith.constant 0 : index
      %c0_12 = arith.constant 0 : index
      %15 = vector.load %arg7[%c0_11, %c0_12] : memref<32x64xf32, #tpu.memory_space<vmem>>, vector<32x64xf32>
      tpu.vector_store %arg7[%c0_11, %c0_12], %14 {strides = array<i32>} : memref<32x64xf32, #tpu.memory_space<vmem>>, vector<32x64xf32>,
    } else {
    }
    %c0 = arith.constant 0 : index
    %c0_1 = arith.constant 0 : index
    %3 = vector.load %arg7[%c0, %c0_1] : memref<32x64xf32, #tpu.memory_space<vmem>>, vector<32x64xf32>
    %c0_2 = arith.constant 0 : index
    %c0_3 = arith.constant 0 : index
    %4 = vector.load %arg3[%c0_2, %c0_3] : memref<32x24xf32, #tpu.memory_space<vmem>>, vector<32x24xf32>
    %5 = arith.truncf %4 : vector<32x24xf32> to vector<32x24xbf16>
    %c0_4 = arith.constant 0 : index
    %c0_5 = arith.constant 0 : index
    %6 = vector.load %arg4[%c0_4, %c0_5] : memref<24x64xf32, #tpu.memory_space<vmem>>, vector<24x64xf32>
    %7 = arith.truncf %6 : vector<24x64xf32> to vector<24x64xbf16>
    %cst = arith.constant dense<0.000000e+00> : vector<32x64xf32>
    %8 = tpu.matmul %5, %7, %cst {dimension_numbers = #tpu.dot_dimension_numbers<[1], [0], [0], [1], [0, 0, 1, 1], [], []>} : vector<32x24xbf16>, vector<24x64xbf16>, vector<32x64xf32> -> vector<32x64xf32>
    %9 = arith.addf %3, %8 : vector<32x64xf32>
    %c0_6 = arith.constant 0 : index
    %c0_7 = arith.constant 0 : index
    %10 = vector.load %arg7[%c0_6, %c0_7] : memref<32x64xf32, #tpu.memory_space<vmem>>, vector<32x64xf32>
    tpu.vector_store %arg7[%c0_6, %c0_7], %9 {strides = array<i32>} : memref<32x64xf32, #tpu.memory_space<vmem>>, vector<32x64xf32>,
    %c0_i32_8 = arith.constant 0 : i32
    %11 = arith.cmpi eq, %arg2, %c0_i32_8 : i32
    %12 = arith.extui %11 : i1 to i32
    %c0_i32_9 = arith.constant 0 : i32
    %13 = arith.cmpi ne, %12, %c0_i32_9 : i32
    scf.if %13 {
      %c0_10 = arith.constant 0 : index
      %c0_11 = arith.constant 0 : index
      %14 = vector.load %arg7[%c0_10, %c0_11] : memref<32x64xf32, #tpu.memory_space<vmem>>, vector<32x64xf32>
      %c0_12 = arith.constant 0 : index
      %c0_13 = arith.constant 0 : index
      %15 = vector.load %arg5[%c0_12, %c0_13] : memref<1x64xf32, #tpu.memory_space<vmem>>, vector<1x64xf32>
      %16 = vector.broadcast %15 : vector<1x64xf32> to vector<32x64xf32>
      %17 = arith.addf %14, %16 : vector<32x64xf32>
      %18 = arith.negf %17 : vector<32x64xf32>
      %19 = math.exp %18 : vector<32x64xf32>
      %cst_14 = arith.constant 1.000000e+00 : f32
      %20 = vector.broadcast %cst_14 : f32 to vector<32x64xf32>
      %21 = arith.addf %20, %19 : vector<32x64xf32>
      %22 = arith.divf %20, %21 : vector<32x64xf32>
      %23 = arith.mulf %17, %22 : vector<32x64xf32>
      %c0_15 = arith.constant 0 : index
      %c0_16 = arith.constant 0 : index
      %24 = vector.load %arg6[%c0_15, %c0_16] : memref<32x64xf32, #tpu.memory_space<vmem>>, vector<32x64xf32>
      tpu.vector_store %arg6[%c0_15, %c0_16], %23 {strides = array<i32>} : memref<32x64xf32, #tpu.memory_space<vmem>>, vector<32x64xf32>,
    } else {
    }
    return
  }
  func.func @transform_0(%arg0: i32, %arg1: i32, %arg2: i32) -> (i32, i32) {
    %c0_i32 = arith.constant 0 : i32
    return %arg0, %arg2 : i32, i32
  }
  func.func @transform_1(%arg0: i32, %arg1: i32, %arg2: i32) -> (i32, i32) {
    %c0_i32 = arith.constant 0 : i32
    return %arg2, %arg1 : i32, i32
  }
  func.func @transform_2(%arg0: i32, %arg1: i32, %arg2: i32) -> (i32, i32) {
    %c0_i32 = arith.constant 0 : i32
    %c0_i32_0 = arith.constant 0 : i32
    return %c0_i32, %arg1 : i32, i32
  }
  func.func @transform_3(%arg0: i32, %arg1: i32, %arg2: i32) -> (i32, i32) {
    %c0_i32 = arith.constant 0 : i32
    return %arg0, %arg1 : i32, i32
  }
}

</mosaic_0001>

<bundles_post_ra>
// kernel: two_headed_efficientnet_forward.13
= control target key start
LH: loop header
LB: loop body
LE: loop exit
PB: predicated region body
PF: predicated region fallthrough
CT: control target
= control target key end

     0   :  { %s862_s30 = smov 0   ;;  %s864_s10 = smov 0   ;;  %s967_s0 = inlined_call_operand.vmem [shape: f32[2,64,16], index: 0, kind: input, shape index: {}]   ;;  %s968_s1 = inlined_call_operand.vmem [shape: f32[2,1,16], index: 1, kind: input, shape index: {}]   ;;  %s969_s2 = inlined_call_operand.vmem [shape: f32[16,4], index: 2, kind: input, shape index: {}]   ;;  %s970_s3 = inlined_call_operand.vmem [shape: f32[1,4], index: 3, kind: input, shape index: {}]   ;;  %s971_s4 = inlined_call_operand.vmem [shape: f32[4,16], index: 4, kind: input, shape index: {}]   ;;  %s972_s5 = inlined_call_operand.vmem [shape: f32[1,16], index: 5, kind: input, shape index: {}]   ;;  %s973_s6 = inlined_call_operand.vmem [shape: f32[16,16], index: 6, kind: input, shape index: {}]   ;;  %s974_s7 = inlined_call_operand.vmem [shape: f32[1,16], index: 7, kind: input, shape index: {}]   ;;  %s975_s8 = inlined_call_operand.vmem [shape: f32[2,64,16], index: 8, kind: input, shape index: {}]   ;;  %s976_s9 = inlined_call_operand.vmem [shape: f32[2,64,16], index: 9, kind: output, shape index: {}]  }
   0x1   :  { %s866_s11 = smov 0  }
   0x2 LB: > { %s31_s12 = sadd.s32 1, %s806_s10  ;;  %p731_p0 = scmp.ge.s32.totalorder %s810_s11, 1  ;;  %s810_s11 = sphi %s866_s11, %s19_s11   ;;  %s806_s10 = sphi %s864_s10, %s978_s10   ;;  %s802_s30 = sphi %s862_s30, %s977_s30  }
   0x3   : > { %p33_p1 = scmp.ge.s32.totalorder %s31_s12, 2  ;;  %p333_p2 = scmp.lt.s32.totalorder %s810_s11, 3 }
   0x5   : > { %s980_s12 = smov (%p33_p1, %s31_s12), 0  ;;  %p334_p3 = pnand %p731_p0, %p333_p2 }
   0x6   : > { %p390_p4 = scmp.lt.s32.totalorder (!%p334_p3), %s802_s30, 1 }
   0x7   : > { %337 = sbr.rel (%p334_p3) target bundleno = 483 (0x1e3), region = 56 }
   0xc   : > { %v425_v0 = vld [vmem:[%s969_s2 + $0x8] sm:$0xff]  ;;  %v424_v1 = vld [vmem:[%s969_s2] sm:$0xff]  ;;  %s982_s30 = smov (!%p390_p4, %s802_s30), 1  ;;  %vm427_vm0 = vcmask 130048   ;;  %vm477_vm1 = vcmask 1043456   ;;  %vm473_vm6 = vcmask 31744  }
   0xd   : > { %445 = vmatpush.msra.mxu0 %v425_v0  ;;  %s401_s19 = scalar_lea.vmem %s968_s1, %s982_s30  ;;  %v426_v3 = vld [vmem:[%s970_s3] sm:$0x1]  ;;  %v542_v23 = vld [vmem:[%s973_s6 + $0x8] sm:$0xff]  ;;  %s909_s13 = sshll.u32 %s982_s30, 6 }
   0xe   : > { %v423_v2 = vld [vmem:[%s401_s19] sm:$0x1]  ;;  %s397_s16 = scalar_lea.vmem %s967_s0, %s909_s13  ;;  %s923_s18 = scalar_lea.vmem %s975_s8, %s909_s13 }
   0xf   : > { %446 = vmatpush.msra.mxu0 %v424_v1  ;;  %v471_v4 = vld [vmem:[%s971_s4] sm:$0xf]  ;;  %v521_v40 = vld [vmem:[%s397_s16 + $0x8] sm:$0xff]  ;;  %v522_v42 = vld [vmem:[%s397_s16 + $0x10] sm:$0xff]  ;;  %s934_s23 = scalar_lea.vmem %s976_s9, %s909_s13 }
  0x10   : > { %738 = vmatmul.msk.f32.vlgmr.msra.gmra.mxu0 %vm427_vm0, %v423_v2  ;;  %740 = vmatpush.msk.msra.mxu1 %vm477_vm1, %v471_v4  ;;  %v472_v21 = vld [vmem:[%s972_s5] sm:$0x1]  ;;  %v523_v43 = vld [vmem:[%s397_s16 + $0x18] sm:$0xff]  ;;  %v525_v46 = vld [vmem:[%s397_s16 + $0x28] sm:$0xff] }
  0x11   : > { %v541_v22 = vld [vmem:[%s973_s6] sm:$0xff]  ;;  %v526_v47 = vld [vmem:[%s397_s16 + $0x30] sm:$0xff]  ;;  %v527_v48 = vld [vmem:[%s397_s16 + $0x38] sm:$0xff] }
  0x12   : > { %v543_v25 = vpack.c.bf16 %v542_v23, %v541_v22  ;;  %v520_v39 = vld [vmem:[%s397_s16] sm:$0xff]  ;;  %v591_v1 = vld [vmem:[%s923_s18 + $0x10] sm:$0xff]  ;;  %v594_v23 = vld [vmem:[%s923_s18 + $0x28] sm:$0xff] }
  0x13   : > { %v524_v44 = vld [vmem:[%s397_s16 + $0x20] sm:$0xff] }
  0x14   : > { %567 = vmatpush.bf16.msrb.mxu0 %v543_v25  ;;  %752 = vmatpush.bf16.msrb.mxu1 %v543_v25  ;;  %v779_v61 = vld [vmem:[%s974_s7] ss:$0 sm:$0xff] }
  0x15   : > { %753 = vmatpush.bf16.msra.mxu2 %v543_v25  ;;  %754 = vmatpush.bf16.msra.mxu3 %v543_v25  ;;  %v589_v63 = vld [vmem:[%s923_s18] sm:$0xff]  ;;  %v596_v25 = vld [vmem:[%s923_s18 + $0x38] sm:$0xff] }
  0x8d   : > { %v448_v5 = vpop.f32.mrf.mxu0 }
  0x8e   : > { %v449_v6 = vadd.f32 %v448_v5, %v426_v3 }
  0x90   : > { %v739_v7 = vmul.f32 -1.442695, %v449_v6 }
  0x92   : > { %780 = vpow2.f32 %v739_v7  ;;  %v593_v7 = vld [vmem:[%s923_s18 + $0x20] sm:$0xff] }
  0x98   : > { %v781_v8 = vpop.eup %780 }
  0x99   : > { %v454_v9 = vadd.f32 1.0, %v781_v8 }
  0x9b   : > { %782 = vrcp.f32 %v454_v9  ;;  %v466_v13 = vand.u32 2147483648, %v454_v9  ;;  %v464_v15 = vand.u32 2147483647, %v454_v9  ;;  %vm460_vm3 = vweird.f32 %v454_v9 }
  0x9d   : > { %v467_v17 = vor.u32 1.1754944e-38, %v466_v13  ;;  %vm465_vm5 = vcmp.eq.f32.partialorder %v464_v15, 8.507059e+37  ;;  %v590_v13 = vld [vmem:[%s923_s18 + $0x8] sm:$0xff]  ;;  %v592_v15 = vld [vmem:[%s923_s18 + $0x18] sm:$0xff] }
  0xa1   : > { %v783_v10 = vpop.eup %782 }
  0xa2   : > { %v456_v11 = vmul.f32 %v783_v10, %v454_v9  ;;  %vm461_vm2 = vweird.f32 %v783_v10  ;;  %v595_v9 = vld [vmem:[%s923_s18 + $0x30] sm:$0xff] }
  0xa3   : > { %vm462_vm4 = vmor %vm460_vm3, %vm461_vm2 }
  0xa4   : > { %v457_v12 = vsub.f32 1.0, %v456_v11 }
  0xa6   : > { %v458_v14 = vmul.f32 %v783_v10, %v457_v12 }
  0xa8   : > { %v459_v16 = vadd.f32 %v783_v10, %v458_v14 }
  0xaa   : > { %v463_v18 = vsel %vm462_vm4, %v783_v10, %v459_v16 }
  0xab   : > { %v468_v19 = vsel %vm465_vm5, %v467_v17, %v463_v18 }
  0xac   : > { %v470_v20 = vmul.f32 %v468_v19, %v449_v6 }
  0xae   : > { %741 = vmatmul.msk.f32.vlgmr.msra.gmra.mxu1 %vm473_vm6, %v470_v20 }
 0x12b   : > { %v498_v24 = vpop.f32.mrf.mxu1 }
 0x12c   : > { %v499_v26 = vadd.f32 %v498_v24, %v472_v21 }
 0x12e   : > { %v742_v27 = vmul.f32 -1.442695, %v499_v26 }
 0x130   : > { %784 = vpow2.f32 %v742_v27 }
 0x136   : > { %v785_v28 = vpop.eup %784 }
 0x137   : > { %v504_v29 = vadd.f32 1.0, %v785_v28 }
 0x139   : > { %786 = vrcp.f32 %v504_v29  ;;  %v516_v33 = vand.u32 2147483648, %v504_v29  ;;  %v514_v35 = vand.u32 2147483647, %v504_v29  ;;  %vm510_vm8 = vweird.f32 %v504_v29 }
 0x13b   : > { %v517_v37 = vor.u32 1.1754944e-38, %v516_v33  ;;  %vm515_vm10 = vcmp.eq.f32.partialorder %v514_v35, 8.507059e+37 }
 0x13f   : > { %v787_v30 = vpop.eup %786 }
 0x140   : > { %v506_v31 = vmul.f32 %v787_v30, %v504_v29  ;;  %vm511_vm7 = vweird.f32 %v787_v30 }
 0x141   : > { %vm512_vm9 = vmor %vm510_vm8, %vm511_vm7 }
 0x142   : > { %v507_v32 = vsub.f32 1.0, %v506_v31 }
 0x144   : > { %v508_v34 = vmul.f32 %v787_v30, %v507_v32 }
 0x146   : > { %v509_v36 = vadd.f32 %v787_v30, %v508_v34 }
 0x148   : > { %v513_v38 = vsel %vm512_vm9, %v787_v30, %v509_v36 }
 0x149   : > { %v518_v41 = vsel %vm515_vm10, %v517_v37, %v513_v38 }
 0x14a   : > { %v528_v45 = vperm.slane %v518_v41, 0 }
 0x14c   : > { %v529_v49 = vmul.f32 %v528_v45, %v520_v39  ;;  %v530_v50 = vmul.f32 %v528_v45, %v521_v40  ;;  %v531_v51 = vmul.f32 %v528_v45, %v522_v42  ;;  %v532_v52 = vmul.f32 %v528_v45, %v523_v43 }
 0x14d   : > { %v533_v53 = vmul.f32 %v528_v45, %v524_v44  ;;  %v534_v54 = vmul.f32 %v528_v45, %v525_v46  ;;  %v535_v55 = vmul.f32 %v528_v45, %v526_v47  ;;  %v536_v56 = vmul.f32 %v528_v45, %v527_v48 }
 0x14e   : > { %v537_v57 = vpack.c.bf16 %v530_v50, %v529_v49  ;;  %v538_v58 = vpack.c.bf16 %v532_v52, %v531_v51 }
 0x14f   : > { %v539_v59 = vpack.c.bf16 %v534_v54, %v533_v53  ;;  %v540_v60 = vpack.c.bf16 %v536_v56, %v535_v55 }
 0x150   : > { %743 = vmatmul.msk.bf16.vlgmr.msrb.gmra.mxu0 %vm427_vm0, %v537_v57  ;;  %744 = vmatmul.msk.bf16.vlgmr.msrb.gmra.mxu1 %vm427_vm0, %v538_v58 }
 0x151   : > { %745 = vmatmul.msk.bf16.vlgmr.msra.gmra.mxu2 %vm427_vm0, %v539_v59  ;;  %746 = vmatmul.msk.bf16.vlgmr.msra.gmra.mxu3 %vm427_vm0, %v540_v60 }
 0x1cd   : > { %v569_v62 = vpop.f32.mrf.mxu0  ;;  %v574_v0 = vpop.f32.mrf.mxu1 }
 0x1ce   : > { %v570_v2 = vadd.f32 %v779_v61, %v569_v62  ;;  %v575_v3 = vadd.f32 %v779_v61, %v574_v0 }
 0x1d0   : > { %v597_v4 = vadd.f32 %v589_v63, %v570_v2  ;;  %v599_v5 = vadd.f32 %v591_v1, %v575_v3 }
 0x1d2   : > { %605 = vst.msk [vmem:[%s934_s23] sm:$0xff] %vm427_vm0, %v597_v4 }
 0x1d3   : > { %607 = vst.msk [vmem:[%s934_s23 + $0x10] sm:$0xff] %vm427_vm0, %v599_v5 }
 0x1d4   : > { %v579_v6 = vpop.f32.mrf.mxu2  ;;  %v584_v8 = vpop.f32.mrf.mxu3 }
 0x1d5   : > { %v580_v10 = vadd.f32 %v779_v61, %v579_v6  ;;  %v585_v11 = vadd.f32 %v779_v61, %v584_v8  ;;  %v571_v12 = vpop.f32.mrf.mxu0  ;;  %v576_v14 = vpop.f32.mrf.mxu1 }
 0x1d6   : > { %v572_v16 = vadd.f32 %v779_v61, %v571_v12  ;;  %v577_v17 = vadd.f32 %v779_v61, %v576_v14 }
 0x1d7   : > { %v601_v18 = vadd.f32 %v593_v7, %v580_v10  ;;  %v603_v19 = vadd.f32 %v595_v9, %v585_v11 }
 0x1d8   : > { %v598_v20 = vadd.f32 %v590_v13, %v572_v16  ;;  %v600_v21 = vadd.f32 %v592_v15, %v577_v17 }
 0x1d9   : > { %609 = vst.msk [vmem:[%s934_s23 + $0x20] sm:$0xff] %vm427_vm0, %v601_v18 }
 0x1da   : > { %611 = vst.msk [vmem:[%s934_s23 + $0x30] sm:$0xff] %vm427_vm0, %v603_v19 }
 0x1db   : > { %606 = vst.msk [vmem:[%s934_s23 + $0x8] sm:$0xff] %vm427_vm0, %v598_v20 }
 0x1dc   : > { %608 = vst.msk [vmem:[%s934_s23 + $0x18] sm:$0xff] %vm427_vm0, %v600_v21  ;;  %v581_v22 = vpop.f32.mrf.mxu2  ;;  %v586_v24 = vpop.f32.mrf.mxu3 }
 0x1dd   : > { %v582_v26 = vadd.f32 %v779_v61, %v581_v22  ;;  %v587_v27 = vadd.f32 %v779_v61, %v586_v24 }
 0x1df   : > { %v602_v28 = vadd.f32 %v594_v23, %v582_v26  ;;  %v604_v29 = vadd.f32 %v596_v25, %v587_v27 }
 0x1e1   : > { %610 = vst.msk [vmem:[%s934_s23 + $0x28] sm:$0xff] %vm427_vm0, %v602_v28 }
 0x1e2   : > { %612 = vst.msk [vmem:[%s934_s23 + $0x38] sm:$0xff] %vm427_vm0, %v604_v29 }
 0x1e3 PF: > { %s19_s11 = sadd.s32 1, %s810_s11   ;;  %s977_s30 = smov %s806_s10 }
 0x1e4   : > { %p16_p5 = scmp.ge.s32.totalorder %s19_s11, 4   ;;  %s978_s10 = smov %s980_s12 }
 0x1e6   :  { %18 = sbr.rel (!%p16_p5) target bundleno = 2 (0x2), region = 92 }

// kernel: two_headed_efficientnet_forward.11
= control target key start
LH: loop header
LB: loop body
LE: loop exit
PB: predicated region body
PF: predicated region fallthrough
CT: control target
= control target key end

     0   :  { %vm107_vm0 = vcmask 1044480   ;;  %vm108_vm1 = vcmask 1045504   ;;  %v672_v2 = vmov 65535   ;;  %vm19_vm2 = vcmask 130048   ;;  %s1115_s1 = inlined_call_operand.vmem [shape: f32[27,16], index: 1, kind: input, shape index: {}]   ;;  %s1116_s0 = inlined_call_operand.vmem [shape: f32[128,27], index: 0, kind: input, shape index: {}]   ;;  %s1117_s2 = inlined_call_operand.vmem [shape: f32[1,16], index: 2, kind: input, shape index: {}]   ;;  %s1118_s3 = inlined_call_operand.vmem [shape: f32[128,16], index: 3, kind: output, shape index: {}]  }
   0x1   :  { %v78_v0 = vld [vmem:[%s1115_s1 + $0x10] sm:$0xff]  ;;  %v79_v1 = vld [vmem:[%s1115_s1 + $0x18] sm:$0x7]  ;;  %v109_v3 = vsel %vm107_vm0, 4294967295, %v672_v2  ;;  %v76_v6 = vld [vmem:[%s1115_s1] sm:$0xff]  ;;  %v673_v8 = vmov 0.0  }
   0x2   :  { %v81_v4 = vpack.c.bf16 %v79_v1, %v78_v0  ;;  %v110_v5 = vsel %vm108_vm1, %v109_v3, 0  ;;  %v77_v7 = vld [vmem:[%s1115_s1 + $0x8] sm:$0xff]  ;;  %20 = vst.msk [vmem:[#allocation2] sm:$0xff] %vm19_vm2, %v673_v8  ;;  %v52_v10 = vld [vmem:[%s1116_s0] sm:$0xff]  ;;  %vm82_vm3 = vcmask 220160   ;;  %v54_v23 = vld [vmem:[%s1116_s0 + $0x10] sm:$0xff] }
   0x3   :  { %21 = vst.msk [vmem:[#allocation2 + $0x8] sm:$0xff] %vm19_vm2, %v673_v8  ;;  %v53_v11 = vld [vmem:[%s1116_s0 + $0x8] sm:$0xff]  ;;  %v56_v12 = vld [vmem:[%s1116_s0 + $0x20] sm:$0xff]  ;;  %v80_v13 = vpack.c.bf16 %v77_v7, %v76_v6  ;;  %v55_v24 = vld [vmem:[%s1116_s0 + $0x18] sm:$0xff] }
   0x4   :  { %v112_v9 = vand.u32 %v110_v5, %v81_v4  ;;  %22 = vst.msk [vmem:[#allocation2 + $0x10] sm:$0xff] %vm19_vm2, %v673_v8  ;;  %v57_v14 = vld [vmem:[%s1116_s0 + $0x28] sm:$0xff]  ;;  %v60_v15 = vld [vmem:[%s1116_s0 + $0x40] sm:$0xff]  ;;  %v68_v19 = vpack.c.bf16 %v53_v11, %v52_v10  ;;  %v58_v25 = vld [vmem:[%s1116_s0 + $0x30] sm:$0xff]  ;;  %v69_v31 = vpack.c.bf16 %v55_v24, %v54_v23 }
   0x5   :  { %v61_v16 = vld [vmem:[%s1116_s0 + $0x48] sm:$0xff]  ;;  %23 = vst.msk [vmem:[#allocation2 + $0x18] sm:$0xff] %vm19_vm2, %v673_v8  ;;  %v64_v17 = vld [vmem:[%s1116_s0 + $0x60] sm:$0xff]  ;;  %v70_v20 = vpack.c.bf16 %v57_v14, %v56_v12  ;;  %v59_v26 = vld [vmem:[%s1116_s0 + $0x38] sm:$0xff] }
   0x6   :  { %120 = vmatpush.bf16.msra.mxu0 %v112_v9  ;;  %599 = vmatpush.bf16.msra.mxu1 %v112_v9  ;;  %v65_v18 = vld [vmem:[%s1116_s0 + $0x68] sm:$0xff]  ;;  %24 = vst.msk [vmem:[#allocation2 + $0x20] sm:$0xff] %vm19_vm2, %v673_v8  ;;  %v72_v21 = vpack.c.bf16 %v61_v16, %v60_v15  ;;  %v62_v27 = vld [vmem:[%s1116_s0 + $0x50] sm:$0xff]  ;;  %v63_v28 = vld [vmem:[%s1116_s0 + $0x58] sm:$0xff]  ;;  %v71_v32 = vpack.c.bf16 %v59_v26, %v58_v25 }
   0x7   :  { %600 = vmatpush.bf16.msra.mxu2 %v112_v9  ;;  %601 = vmatpush.bf16.msra.mxu3 %v112_v9  ;;  %25 = vst.msk [vmem:[#allocation2 + $0x28] sm:$0xff] %vm19_vm2, %v673_v8  ;;  %v74_v22 = vpack.c.bf16 %v65_v18, %v64_v17  ;;  %v66_v29 = vld [vmem:[%s1116_s0 + $0x70] sm:$0xff]  ;;  %v67_v30 = vld [vmem:[%s1116_s0 + $0x78] sm:$0xff]  ;;  %v73_v33 = vpack.c.bf16 %v63_v28, %v62_v27  ;;  %v783_v45 = vld [vmem:[%s1117_s2] ss:$0 sm:$0xff] }
   0x8   :  { %26 = vst.msk [vmem:[#allocation2 + $0x30] sm:$0xff] %vm19_vm2, %v673_v8  ;;  %v75_v34 = vpack.c.bf16 %v67_v30, %v66_v29 }
   0x9   :  { %27 = vst.msk [vmem:[#allocation2 + $0x38] sm:$0xff] %vm19_vm2, %v673_v8  ;;  %v36_v35 = vld [vmem:[#allocation2] sm:$0xff] }
   0xa   :  { %121 = vmatpush.bf16.msra.mxu0 %v80_v13  ;;  %602 = vmatpush.bf16.msra.mxu1 %v80_v13  ;;  %28 = vst.msk [vmem:[#allocation2 + $0x40] sm:$0xff] %vm19_vm2, %v673_v8  ;;  %v37_v43 = vld [vmem:[#allocation2 + $0x8] sm:$0xff] }
   0xb   :  { %603 = vmatpush.bf16.msra.mxu2 %v80_v13  ;;  %604 = vmatpush.bf16.msra.mxu3 %v80_v13  ;;  %29 = vst.msk [vmem:[#allocation2 + $0x48] sm:$0xff] %vm19_vm2, %v673_v8  ;;  %v38_v62 = vld [vmem:[#allocation2 + $0x10] sm:$0xff] }
   0xc   :  { %30 = vst.msk [vmem:[#allocation2 + $0x50] sm:$0xff] %vm19_vm2, %v673_v8 }
   0xd   :  { %575 = vmatmul.msk.bf16.vlgmr.msra.gmra.mxu0 %vm82_vm3, %v68_v19  ;;  %577 = vmatmul.msk.bf16.vlgmr.msra.gmra.mxu1 %vm82_vm3, %v70_v20  ;;  %31 = vst.msk [vmem:[#allocation2 + $0x58] sm:$0xff] %vm19_vm2, %v673_v8  ;;  %v40_v36 = vld [vmem:[#allocation2 + $0x20] sm:$0xff] }
   0xe   :  { %579 = vmatmul.msk.bf16.vlgmr.msra.gmra.mxu2 %vm82_vm3, %v72_v21  ;;  %581 = vmatmul.msk.bf16.vlgmr.msra.gmra.mxu3 %vm82_vm3, %v74_v22  ;;  %32 = vst.msk [vmem:[#allocation2 + $0x60] sm:$0xff] %vm19_vm2, %v673_v8  ;;  %v41_v44 = vld [vmem:[#allocation2 + $0x28] sm:$0xff] }
   0xf   :  { %33 = vst.msk [vmem:[#allocation2 + $0x68] sm:$0xff] %vm19_vm2, %v673_v8  ;;  %v42_v63 = vld [vmem:[#allocation2 + $0x30] sm:$0xff] }
  0x10   :  { %34 = vst.msk [vmem:[#allocation2 + $0x70] sm:$0xff] %vm19_vm2, %v673_v8 }
  0x11   :  { %35 = vst.msk [vmem:[#allocation2 + $0x78] sm:$0xff] %vm19_vm2, %v673_v8  ;;  %v44_v41 = vld [vmem:[#allocation2 + $0x40] sm:$0xff] }
  0x12   :  { %v45_v59 = vld [vmem:[#allocation2 + $0x48] sm:$0xff] }
  0x13   :  { %v46_v25 = vld [vmem:[#allocation2 + $0x50] sm:$0xff] }
  0x15   :  { %v48_v42 = vld [vmem:[#allocation2 + $0x60] sm:$0xff] }
  0x16   :  { %v49_v60 = vld [vmem:[#allocation2 + $0x68] sm:$0xff] }
  0x17   :  { %v50_v27 = vld [vmem:[#allocation2 + $0x70] sm:$0xff] }
  0x1d   :  { %576 = vmatmul.msk.bf16.gmra.mxu0 %vm82_vm3, %v69_v31  ;;  %578 = vmatmul.msk.bf16.gmra.mxu1 %vm82_vm3, %v71_v32  ;;  %v39_v32 = vld [vmem:[#allocation2 + $0x18] sm:$0xff] }
  0x1e   :  { %580 = vmatmul.msk.bf16.gmra.mxu2 %vm82_vm3, %v73_v33  ;;  %582 = vmatmul.msk.bf16.gmra.mxu3 %vm82_vm3, %v75_v34 }
  0x8a   :  { %v123_v37 = vpop.f32.mrf.mxu0  ;;  %v133_v38 = vpop.f32.mrf.mxu1 }
  0x8b   :  { %v163_v39 = vadd.f32 %v123_v37, %v36_v35  ;;  %v167_v40 = vadd.f32 %v133_v38, %v40_v36  ;;  %v43_v37 = vld [vmem:[#allocation2 + $0x38] sm:$0xff] }
  0x8d   :  { %180 = vst.msk [vmem:[#allocation2] sm:$0xff] %vm19_vm2, %v163_v39 }
  0x8e   :  { %184 = vst.msk [vmem:[#allocation2 + $0x20] sm:$0xff] %vm19_vm2, %v167_v40 }
  0x91   :  { %v143_v46 = vpop.f32.mrf.mxu2  ;;  %v153_v47 = vpop.f32.mrf.mxu3 }
  0x92   :  { %v171_v48 = vadd.f32 %v143_v46, %v44_v41  ;;  %v175_v49 = vadd.f32 %v153_v47, %v48_v42  ;;  %v125_v50 = vpop.f32.mrf.mxu0  ;;  %v135_v51 = vpop.f32.mrf.mxu1 }
  0x93   :  { %v164_v52 = vadd.f32 %v125_v50, %v37_v43  ;;  %v168_v53 = vadd.f32 %v135_v51, %v41_v44 }
  0x94   :  { %v199_v54 = vld [vmem:[#allocation2] sm:$0xff]  ;;  %188 = vst.msk [vmem:[#allocation2 + $0x40] sm:$0xff] %vm19_vm2, %v171_v48 }
  0x95   :  { %v787_v55 = vadd.f32 %v783_v45, %v199_v54  ;;  %v203_v56 = vld [vmem:[#allocation2 + $0x20] sm:$0xff]  ;;  %192 = vst.msk [vmem:[#allocation2 + $0x60] sm:$0xff] %vm19_vm2, %v175_v49 }
  0x96   :  { %v791_v57 = vadd.f32 %v783_v45, %v203_v56  ;;  %181 = vst.msk [vmem:[#allocation2 + $0x8] sm:$0xff] %vm19_vm2, %v164_v52 }
  0x97   :  { %v583_v58 = vmul.f32 -1.442695, %v787_v55  ;;  %185 = vst.msk [vmem:[#allocation2 + $0x28] sm:$0xff] %vm19_vm2, %v168_v53 }
  0x98   :  { %v587_v61 = vmul.f32 -1.442695, %v791_v57 }
  0x99   :  { %608 = vpow2.f32 %v583_v58  ;;  %v145_v0 = vpop.f32.mrf.mxu2  ;;  %v155_v1 = vpop.f32.mrf.mxu3 }
  0x9a   :  { %610 = vpow2.f32 %v587_v61  ;;  %v172_v2 = vadd.f32 %v145_v0, %v45_v59  ;;  %v176_v3 = vadd.f32 %v155_v1, %v49_v60  ;;  %v128_v4 = vpop.f32.mrf.mxu0  ;;  %v138_v5 = vpop.f32.mrf.mxu1 }
  0x9b   :  { %v207_v6 = vld [vmem:[#allocation2 + $0x40] sm:$0xff]  ;;  %v165_v7 = vadd.f32 %v128_v4, %v38_v62  ;;  %v169_v8 = vadd.f32 %v138_v5, %v42_v63 }
  0x9c   :  { %v798_v9 = vadd.f32 %v783_v45, %v207_v6  ;;  %v211_v10 = vld [vmem:[#allocation2 + $0x60] sm:$0xff]  ;;  %189 = vst.msk [vmem:[#allocation2 + $0x48] sm:$0xff] %vm19_vm2, %v172_v2 }
  0x9d   :  { %v802_v11 = vadd.f32 %v783_v45, %v211_v10  ;;  %v200_v12 = vld [vmem:[#allocation2 + $0x8] sm:$0xff]  ;;  %193 = vst.msk [vmem:[#allocation2 + $0x68] sm:$0xff] %vm19_vm2, %v176_v3 }
  0x9e   :  { %v591_v13 = vmul.f32 -1.442695, %v798_v9  ;;  %v807_v14 = vadd.f32 %v783_v45, %v200_v12  ;;  %v204_v15 = vld [vmem:[#allocation2 + $0x28] sm:$0xff]  ;;  %182 = vst.msk [vmem:[#allocation2 + $0x10] sm:$0xff] %vm19_vm2, %v165_v7 }
  0x9f   :  { %v609_v16 = vpop.eup %608  ;;  %v595_v17 = vmul.f32 -1.442695, %v802_v11  ;;  %v812_v18 = vadd.f32 %v783_v45, %v204_v15  ;;  %186 = vst.msk [vmem:[#allocation2 + $0x30] sm:$0xff] %vm19_vm2, %v169_v8 }
  0xa0   :  { %v611_v19 = vpop.eup %610  ;;  %v815_v20 = vadd.f32 1.0, %v609_v16  ;;  %612 = vpow2.f32 %v591_v13  ;;  %v584_v21 = vmul.f32 -1.442695, %v807_v14 }
  0xa1   :  { %v818_v22 = vadd.f32 1.0, %v611_v19  ;;  %614 = vpow2.f32 %v595_v17  ;;  %v588_v23 = vmul.f32 -1.442695, %v812_v18  ;;  %v148_v26 = vpop.f32.mrf.mxu2  ;;  %v158_v28 = vpop.f32.mrf.mxu3 }
  0xa2   :  { %616 = vrcp.f32 %v815_v20  ;;  %v308_v29 = vand.u32 2147483647, %v815_v20  ;;  %v130_v33 = vpop.f32.mrf.mxu0  ;;  %v310_v34 = vand.u32 2147483648, %v815_v20  ;;  %v140_v38 = vpop.f32.mrf.mxu1  ;;  %v173_v42 = vadd.f32 %v148_v26, %v46_v25 }
  0xa3   :  { %618 = vrcp.f32 %v818_v22  ;;  %v208_v24 = vld [vmem:[#allocation2 + $0x48] sm:$0xff]  ;;  %v368_v35 = vand.u32 2147483647, %v818_v22  ;;  %v370_v36 = vand.u32 2147483648, %v818_v22  ;;  %v177_v43 = vadd.f32 %v158_v28, %v50_v27 }
  0xa4   :  { %620 = vpow2.f32 %v584_v21  ;;  %v825_v30 = vadd.f32 %v783_v45, %v208_v24  ;;  %v212_v31 = vld [vmem:[#allocation2 + $0x68] sm:$0xff]  ;;  %v166_v47 = vadd.f32 %v130_v33, %v39_v32  ;;  %vm304_vm4 = vweird.f32 %v815_v20  ;;  %190 = vst.msk [vmem:[#allocation2 + $0x50] sm:$0xff] %vm19_vm2, %v173_v42 }
  0xa5   :  { %622 = vpow2.f32 %v588_v23  ;;  %v832_v41 = vadd.f32 %v783_v45, %v212_v31  ;;  %vm364_vm5 = vweird.f32 %v818_v22  ;;  %v201_v50 = vld [vmem:[#allocation2 + $0x10] sm:$0xff]  ;;  %v170_v52 = vadd.f32 %v140_v38, %v43_v37  ;;  %194 = vst.msk [vmem:[#allocation2 + $0x70] sm:$0xff] %vm19_vm2, %v177_v43 }
  0xa6   :  { %v613_v39 = vpop.eup %612  ;;  %v592_v40 = vmul.f32 -1.442695, %v825_v30  ;;  %v205_v51 = vld [vmem:[#allocation2 + $0x30] sm:$0xff]  ;;  %vm842_vm6 = vcmp.eq.f32.partialorder %v308_v29, 8.507059e+37  ;;  %v311_v58 = vor.u32 1.1754944e-38, %v310_v34  ;;  %vm849_vm7 = vcmp.eq.f32.partialorder %v368_v35, 8.507059e+37 }
  0xa7   :  { %v615_v44 = vpop.eup %614  ;;  %v834_v46 = vadd.f32 1.0, %v613_v39  ;;  %v371_v62 = vor.u32 1.1754944e-38, %v370_v36  ;;  %v596_v63 = vmul.f32 -1.442695, %v832_v41  ;;  %183 = vst.msk [vmem:[#allocation2 + $0x18] sm:$0xff] %vm19_vm2, %v166_v47  ;;  %v857_v2 = vadd.f32 %v783_v45, %v201_v50 }
  0xa8   :  { %v617_v48 = vpop.eup %616  ;;  %v838_v49 = vadd.f32 1.0, %v615_v44  ;;  %v860_v3 = vadd.f32 %v783_v45, %v205_v51  ;;  %187 = vst.msk [vmem:[#allocation2 + $0x38] sm:$0xff] %vm19_vm2, %v170_v52 }
  0xa9   :  { %v619_v53 = vpop.eup %618  ;;  %v300_v54 = vmul.f32 %v617_v48, %v815_v20  ;;  %624 = vrcp.f32 %v834_v46  ;;  %vm305_vm8 = vweird.f32 %v617_v48  ;;  %v428_v5 = vand.u32 2147483647, %v834_v46 }
  0xaa   :  { %v621_v59 = vpop.eup %620  ;;  %v360_v60 = vmul.f32 %v619_v53, %v818_v22  ;;  %626 = vpow2.f32 %v592_v40  ;;  %v430_v6 = vand.u32 2147483648, %v834_v46  ;;  %v490_v8 = vand.u32 2147483648, %v838_v49  ;;  %vm306_vm11 = vmor %vm304_vm4, %vm305_vm8 }
  0xab   :  { %v623_v0 = vpop.eup %622  ;;  %v301_v1 = vsub.f32 1.0, %v300_v54  ;;  %628 = vrcp.f32 %v838_v49  ;;  %v866_v10 = vadd.f32 1.0, %v621_v59  ;;  %vm365_vm9 = vweird.f32 %v619_v53 }
  0xac   :  { %v361_v4 = vsub.f32 1.0, %v360_v60  ;;  %v868_v12 = vadd.f32 1.0, %v623_v0  ;;  %v488_v15 = vand.u32 2147483647, %v838_v49  ;;  %630 = vpow2.f32 %v596_v63  ;;  %vm366_vm14 = vmor %vm364_vm5, %vm365_vm9 }
  0xad   :  { %v302_v7 = vmul.f32 %v617_v48, %v301_v1  ;;  %vm424_vm10 = vweird.f32 %v834_v46  ;;  %632 = vrcp.f32 %v866_v10  ;;  %v585_v19 = vmul.f32 -1.442695, %v857_v2 }
  0xae   :  { %v362_v13 = vmul.f32 %v619_v53, %v361_v4  ;;  %vm878_vm12 = vcmp.eq.f32.partialorder %v428_v5, 8.507059e+37  ;;  %vm484_vm13 = vweird.f32 %v838_v49  ;;  %v431_v28 = vor.u32 1.1754944e-38, %v430_v6 }
  0xaf   :  { %v625_v16 = vpop.eup %624  ;;  %v303_v17 = vadd.f32 %v617_v48, %v302_v7  ;;  %v491_v29 = vor.u32 1.1754944e-38, %v490_v8  ;;  %634 = vrcp.f32 %v868_v12  ;;  %vm890_vm15 = vcmp.eq.f32.partialorder %v488_v15, 8.507059e+37 }
  0xb0   :  { %v627_v21 = vpop.eup %626  ;;  %v363_v23 = vadd.f32 %v619_v53, %v362_v13  ;;  %v420_v24 = vmul.f32 %v625_v16, %v834_v46  ;;  %v323_v36 = vand.u32 2147483647, %v866_v10  ;;  %v589_v37 = vmul.f32 -1.442695, %v860_v3 }
  0xb1   :  { %v629_v26 = vpop.eup %628  ;;  %v307_v27 = vsel %vm306_vm11, %v617_v48, %v303_v17  ;;  %vm425_vm0 = vweird.f32 %v625_v16  ;;  %vm319_vm1 = vweird.f32 %v866_v10  ;;  %v906_v44 = vadd.f32 1.0, %v627_v21  ;;  %v209_v21 = vld [vmem:[#allocation2 + $0x50] sm:$0xff] }
  0xb2   :  { %v312_v20 = vsel %vm842_vm6, %v311_v58, %v307_v27  ;;  %v367_v31 = vsel %vm366_vm14, %v619_v53, %v363_v23  ;;  %v421_v32 = vsub.f32 1.0, %v420_v24  ;;  %v480_v33 = vmul.f32 %v629_v26, %v838_v49  ;;  %v631_v38 = vpop.eup %630  ;;  %vm426_vm4 = vmor %vm424_vm10, %vm425_vm0 }
  0xb3   :  { %v539_v35 = vmul.f32 %v312_v20, %v787_v55  ;;  %v372_v22 = vsel %vm849_vm7, %v371_v62, %v367_v31  ;;  %v633_v43 = vpop.eup %632  ;;  %v325_v55 = vand.u32 2147483648, %v866_v10  ;;  %636 = vpow2.f32 %v585_v19 }
  0xb4   :  { %v543_v39 = vmul.f32 %v372_v22, %v791_v57  ;;  %v422_v40 = vmul.f32 %v625_v16, %v421_v32  ;;  %v481_v42 = vsub.f32 1.0, %v480_v33  ;;  %vm485_vm3 = vweird.f32 %v629_v26  ;;  %v202_v33 = vld [vmem:[#allocation2 + $0x18] sm:$0xff] }
  0xb5   :  { %555 = vst.msk [vmem:[%s1118_s3] sm:$0xff] %vm19_vm2, %v539_v35  ;;  %v315_v48 = vmul.f32 %v633_v43, %v866_v10  ;;  %v635_v50 = vpop.eup %634  ;;  %vm915_vm5 = vcmp.eq.f32.partialorder %v323_v36, 8.507059e+37  ;;  %vm379_vm6 = vweird.f32 %v868_v12  ;;  %638 = vrcp.f32 %v906_v44  ;;  %vm486_vm7 = vmor %vm484_vm13, %vm485_vm3  ;;  %v206_v22 = vld [vmem:[#allocation2 + $0x38] sm:$0xff] }
  0xb6   :  { %559 = vst.msk [vmem:[%s1118_s3 + $0x20] sm:$0xff] %vm19_vm2, %v543_v39  ;;  %v423_v57 = vadd.f32 %v625_v16, %v422_v40  ;;  %v482_v47 = vmul.f32 %v629_v26, %v481_v42  ;;  %v921_v52 = vadd.f32 1.0, %v631_v38  ;;  %v375_v58 = vmul.f32 %v635_v50, %v868_v12  ;;  %v47_v36 = vld [vmem:[#allocation2 + $0x58] sm:$0xff] }
  0xb7   :  { %v316_v56 = vsub.f32 1.0, %v315_v48  ;;  %vm320_vm8 = vweird.f32 %v633_v43  ;;  %v383_v46 = vand.u32 2147483647, %v868_v12  ;;  %v385_v60 = vand.u32 2147483648, %v868_v12 }
  0xb8   :  { %v427_v53 = vsel %vm426_vm4, %v625_v16, %v423_v57  ;;  %v483_v54 = vadd.f32 %v629_v26, %v482_v47  ;;  %v376_v0 = vsub.f32 1.0, %v375_v58  ;;  %v326_v5 = vor.u32 1.1754944e-38, %v325_v55  ;;  %vm321_vm10 = vmor %vm319_vm1, %vm320_vm8 }
  0xb9   :  { %v432_v59 = vsel %vm878_vm12, %v431_v28, %v427_v53  ;;  %v317_v63 = vmul.f32 %v633_v43, %v316_v56  ;;  %v637_v1 = vpop.eup %636  ;;  %vm380_vm9 = vweird.f32 %v635_v50  ;;  %640 = vrcp.f32 %v921_v52 }
  0xba   :  { %v547_v61 = vmul.f32 %v432_v59, %v798_v9  ;;  %v487_v62 = vsel %vm486_vm7, %v629_v26, %v483_v54  ;;  %v377_v9 = vmul.f32 %v635_v50, %v376_v0  ;;  %v443_v7 = vand.u32 2147483647, %v906_v44  ;;  %vm381_vm12 = vmor %vm379_vm6, %vm380_vm9 }
  0xbb   :  { %v492_v4 = vsel %vm890_vm15, %v491_v29, %v487_v62  ;;  %v318_v6 = vadd.f32 %v633_v43, %v317_v63  ;;  %v639_v8 = vpop.eup %638  ;;  %vm943_vm11 = vcmp.eq.f32.partialorder %v383_v46, 8.507059e+37  ;;  %v445_v15 = vand.u32 2147483648, %v906_v44  ;;  %v213_v29 = vld [vmem:[#allocation2 + $0x70] sm:$0xff] }
  0xbc   :  { %563 = vst.msk [vmem:[%s1118_s3 + $0x40] sm:$0xff] %vm19_vm2, %v547_v61  ;;  %v551_v49 = vmul.f32 %v492_v4, %v802_v11  ;;  %v948_v16 = vadd.f32 1.0, %v637_v1  ;;  %642 = vpow2.f32 %v589_v37  ;;  %v378_v17 = vadd.f32 %v635_v50, %v377_v9  ;;  %v150_v37 = vpop.f32.mrf.mxu2 }
  0xbd   :  { %v322_v11 = vsel %vm321_vm10, %v633_v43, %v318_v6  ;;  %v386_v19 = vor.u32 1.1754944e-38, %v385_v60  ;;  %v435_v10 = vmul.f32 %v639_v8, %v906_v44  ;;  %vm439_vm13 = vweird.f32 %v906_v44  ;;  %v51_v44 = vld [vmem:[#allocation2 + $0x78] sm:$0xff]  ;;  %v160_v60 = vpop.f32.mrf.mxu3 }
  0xbe   :  { %567 = vst.msk [vmem:[%s1118_s3 + $0x60] sm:$0xff] %vm19_vm2, %v551_v49  ;;  %v327_v23 = vsel %vm915_vm5, %v326_v5, %v322_v11  ;;  %v503_v24 = vand.u32 2147483647, %v921_v52  ;;  %644 = vrcp.f32 %v948_v16  ;;  %v382_v26 = vsel %vm381_vm12, %v635_v50, %v378_v17 }
  0xbf   :  { %v540_v25 = vmul.f32 %v327_v23, %v807_v14  ;;  %v436_v27 = vsub.f32 1.0, %v435_v10  ;;  %vm964_vm14 = vcmp.eq.f32.partialorder %v443_v7, 8.507059e+37  ;;  %v641_v20 = vpop.eup %640  ;;  %v387_v12 = vsel %vm943_vm11, %v386_v19, %v382_v26 }
  0xc0   :  { %v446_v31 = vor.u32 1.1754944e-38, %v445_v15  ;;  %vm499_vm15 = vweird.f32 %v921_v52  ;;  %v972_v32 = vadd.f32 %v783_v45, %v209_v21  ;;  %v544_v14 = vmul.f32 %v387_v12, %v812_v18 }
  0xc1   :  { %556 = vst.msk [vmem:[%s1118_s3 + $0x8] sm:$0xff] %vm19_vm2, %v540_v25  ;;  %v437_v34 = vmul.f32 %v639_v8, %v436_v27  ;;  %vm440_vm0 = vweird.f32 %v639_v8  ;;  %v495_v35 = vmul.f32 %v641_v20, %v921_v52  ;;  %vm980_vm1 = vcmp.eq.f32.partialorder %v503_v24, 8.507059e+37 }
  0xc2   :  { %v643_v38 = vpop.eup %642  ;;  %v505_v40 = vand.u32 2147483648, %v921_v52  ;;  %v593_v42 = vmul.f32 -1.442695, %v972_v32  ;;  %v987_v43 = vadd.f32 %v783_v45, %v213_v29  ;;  %560 = vst.msk [vmem:[%s1118_s3 + $0x28] sm:$0xff] %vm19_vm2, %v544_v14  ;;  %v996_v47 = vadd.f32 %v783_v45, %v202_v33  ;;  %vm441_vm3 = vmor %vm439_vm13, %vm440_vm0 }
  0xc3   :  { %v438_v18 = vadd.f32 %v639_v8, %v437_v34  ;;  %v496_v55 = vsub.f32 1.0, %v495_v35  ;;  %v993_v57 = vadd.f32 1.0, %v643_v38  ;;  %v1003_v51 = vadd.f32 %v783_v45, %v206_v22 }
  0xc4   :  { %v645_v48 = vpop.eup %644  ;;  %646 = vpow2.f32 %v593_v42  ;;  %v597_v50 = vmul.f32 -1.442695, %v987_v43  ;;  %v174_v53 = vadd.f32 %v150_v37, %v47_v36  ;;  %vm500_vm4 = vweird.f32 %v641_v20 }
  0xc5   :  { %v442_v54 = vsel %vm441_vm3, %v639_v8, %v438_v18  ;;  %v497_v56 = vmul.f32 %v641_v20, %v496_v55  ;;  %v330_v58 = vmul.f32 %v645_v48, %v948_v16  ;;  %v506_v46 = vor.u32 1.1754944e-38, %v505_v40  ;;  %vm501_vm6 = vmor %vm499_vm15, %vm500_vm4 }
  0xc6   :  { %v447_v59 = vsel %vm964_vm14, %v446_v31, %v442_v54  ;;  %vm334_vm5 = vweird.f32 %v948_v16  ;;  %648 = vrcp.f32 %v993_v57  ;;  %191 = vst.msk [vmem:[#allocation2 + $0x58] sm:$0xff] %vm19_vm2, %v174_v53  ;;  %v338_v0 = vand.u32 2147483647, %v948_v16 }
  0xc7   :  { %v548_v61 = vmul.f32 %v447_v59, %v825_v30  ;;  %v498_v62 = vadd.f32 %v641_v20, %v497_v56  ;;  %v331_v63 = vsub.f32 1.0, %v330_v58  ;;  %v340_v1 = vand.u32 2147483648, %v948_v16 }
  0xc8   :  { %650 = vpow2.f32 %v597_v50  ;;  %v586_v4 = vmul.f32 -1.442695, %v996_v47  ;;  %v590_v5 = vmul.f32 -1.442695, %v1003_v51  ;;  %vm335_vm7 = vweird.f32 %v645_v48 }
  0xc9   :  { %564 = vst.msk [vmem:[%s1118_s3 + $0x48] sm:$0xff] %vm19_vm2, %v548_v61  ;;  %v502_v30 = vsel %vm501_vm6, %v641_v20, %v498_v62  ;;  %v332_v49 = vmul.f32 %v645_v48, %v331_v63  ;;  %v178_v6 = vadd.f32 %v160_v60, %v51_v44  ;;  %vm336_vm8 = vmor %vm334_vm5, %vm335_vm7  ;;  %v341_v11 = vor.u32 1.1754944e-38, %v340_v1 }
  0xca   :  { %v647_v9 = vpop.eup %646  ;;  %v507_v52 = vsel %vm980_vm1, %v506_v46, %v502_v30  ;;  %652 = vpow2.f32 %v586_v4  ;;  %vm339_vm9 = vcmp.eq.f32.partialorder %v338_v0, 8.507059e+37  ;;  %vm394_vm10 = vweird.f32 %v993_v57 }
  0xcb   :  { %v552_v7 = vmul.f32 %v507_v52, %v832_v41  ;;  %v333_v8 = vadd.f32 %v645_v48, %v332_v49  ;;  %v293_v13 = vadd.f32 1.0, %v647_v9  ;;  %654 = vpow2.f32 %v590_v5  ;;  %195 = vst.msk [vmem:[#allocation2 + $0x78] sm:$0xff] %vm19_vm2, %v178_v6 }
  0xcc   :  { %v649_v15 = vpop.eup %648  ;;  %v398_v26 = vand.u32 2147483647, %v993_v57  ;;  %v400_v27 = vand.u32 2147483648, %v993_v57 }
  0xcd   :  { %568 = vst.msk [vmem:[%s1118_s3 + $0x68] sm:$0xff] %vm19_vm2, %v552_v7  ;;  %v337_v17 = vsel %vm336_vm8, %v645_v48, %v333_v8  ;;  %v390_v19 = vmul.f32 %v649_v15, %v993_v57  ;;  %656 = vrcp.f32 %v293_v13  ;;  %v210_v21 = vld [vmem:[#allocation2 + $0x58] sm:$0xff]  ;;  %vm395_vm11 = vweird.f32 %v649_v15 }
  0xce   :  { %v651_v41 = vpop.eup %650  ;;  %v342_v10 = vsel %vm339_vm9, %v341_v11, %v337_v17  ;;  %vm396_vm12 = vmor %vm394_vm10, %vm395_vm11  ;;  %v401_v34 = vor.u32 1.1754944e-38, %v400_v27  ;;  %vm399_vm13 = vcmp.eq.f32.partialorder %v398_v26, 8.507059e+37  ;;  %v458_v40 = vand.u32 2147483647, %v293_v13 }
  0xcf   :  { %v541_v23 = vmul.f32 %v342_v10, %v857_v2  ;;  %v391_v24 = vsub.f32 1.0, %v390_v19  ;;  %v1034_v25 = vadd.f32 1.0, %v651_v41  ;;  %v1045_v2 = vadd.f32 %v783_v45, %v210_v21 }
  0xd0   :  { %v653_v16 = vpop.eup %652  ;;  %v460_v55 = vand.u32 2147483648, %v293_v13  ;;  %vm454_vm15 = vweird.f32 %v293_v13  ;;  %vm459_vm0 = vcmp.eq.f32.partialorder %v458_v40, 8.507059e+37 }
  0xd1   :  { %v655_v28 = vpop.eup %654  ;;  %557 = vst.msk [vmem:[%s1118_s3 + $0x10] sm:$0xff] %vm19_vm2, %v541_v23  ;;  %v392_v29 = vmul.f32 %v649_v15, %v391_v24  ;;  %658 = vrcp.f32 %v1034_v25  ;;  %v1047_v20 = vadd.f32 1.0, %v653_v16  ;;  %v594_v36 = vmul.f32 -1.442695, %v1045_v2 }
  0xd2   :  { %v1049_v12 = vadd.f32 1.0, %v655_v28  ;;  %v214_v31 = vld [vmem:[#allocation2 + $0x78] sm:$0xff]  ;;  %v518_v50 = vand.u32 2147483647, %v1034_v25  ;;  %v461_v58 = vor.u32 1.1754944e-38, %v460_v55  ;;  %vm514_vm3 = vweird.f32 %v1034_v25 }
  0xd3   :  { %v657_v33 = vpop.eup %656  ;;  %v393_v14 = vadd.f32 %v649_v15, %v392_v29  ;;  %660 = vrcp.f32 %v1047_v20  ;;  %v1054_v37 = vadd.f32 %v783_v45, %v214_v31  ;;  %v520_v45 = vand.u32 2147483648, %v1034_v25 }
  0xd4   :  { %v450_v35 = vmul.f32 %v657_v33, %v293_v13  ;;  %662 = vrcp.f32 %v1049_v12  ;;  %vm455_vm14 = vweird.f32 %v657_v33  ;;  %vm1068_vm5 = vcmp.eq.f32.partialorder %v518_v50, 8.507059e+37 }
  0xd5   :  { %v397_v22 = vsel %vm396_vm12, %v649_v15, %v393_v14  ;;  %664 = vpow2.f32 %v594_v36  ;;  %v598_v53 = vmul.f32 -1.442695, %v1054_v37  ;;  %vm456_vm1 = vmor %vm454_vm15, %vm455_vm14  ;;  %v521_v63 = vor.u32 1.1754944e-38, %v520_v45 }
  0xd6   :  { %v402_v38 = vsel %vm399_vm13, %v401_v34, %v397_v22  ;;  %v451_v39 = vsub.f32 1.0, %v450_v35  ;;  %vm349_vm6 = vweird.f32 %v1047_v20  ;;  %v355_v30 = vand.u32 2147483648, %v1047_v20 }
  0xd7   :  { %v659_v42 = vpop.eup %658  ;;  %v545_v18 = vmul.f32 %v402_v38, %v860_v3  ;;  %666 = vpow2.f32 %v598_v53  ;;  %v353_v9 = vand.u32 2147483647, %v1047_v20  ;;  %v413_v7 = vand.u32 2147483647, %v1049_v12 }
  0xd8   :  { %v452_v57 = vmul.f32 %v657_v33, %v451_v39  ;;  %v510_v48 = vmul.f32 %v659_v42, %v1034_v25  ;;  %vm515_vm4 = vweird.f32 %v659_v42  ;;  %v415_v8 = vand.u32 2147483648, %v1049_v12 }
  0xd9   :  { %561 = vst.msk [vmem:[%s1118_s3 + $0x30] sm:$0xff] %vm19_vm2, %v545_v18  ;;  %v661_v54 = vpop.eup %660  ;;  %vm516_vm7 = vmor %vm514_vm3, %vm515_vm4  ;;  %v356_v10 = vor.u32 1.1754944e-38, %v355_v30  ;;  %vm409_vm11 = vweird.f32 %v1049_v12  ;;  %vm354_vm12 = vcmp.eq.f32.partialorder %v353_v9, 8.507059e+37  ;;  %vm414_vm14 = vcmp.eq.f32.partialorder %v413_v7, 8.507059e+37 }
  0xda   :  { %v453_v56 = vadd.f32 %v657_v33, %v452_v57  ;;  %v511_v3 = vsub.f32 1.0, %v510_v48  ;;  %v345_v59 = vmul.f32 %v661_v54, %v1047_v20  ;;  %v663_v46 = vpop.eup %662  ;;  %vm350_vm8 = vweird.f32 %v661_v54 }
  0xdb   :  { %v405_v1 = vmul.f32 %v663_v46, %v1049_v12  ;;  %v665_v49 = vpop.eup %664  ;;  %vm410_vm9 = vweird.f32 %v663_v46  ;;  %vm351_vm10 = vmor %vm349_vm6, %vm350_vm8  ;;  %v416_v16 = vor.u32 1.1754944e-38, %v415_v8 }
  0xdc   :  { %v457_v44 = vsel %vm456_vm1, %v657_v33, %v453_v56  ;;  %v512_v60 = vmul.f32 %v659_v42, %v511_v3  ;;  %v346_v0 = vsub.f32 1.0, %v345_v59  ;;  %v294_v13 = vadd.f32 1.0, %v665_v49  ;;  %vm411_vm13 = vmor %vm409_vm11, %vm410_vm9 }
  0xdd   :  { %v462_v62 = vsel %vm459_vm0, %v461_v58, %v457_v44  ;;  %v406_v52 = vsub.f32 1.0, %v405_v1  ;;  %v667_v15 = vpop.eup %666 }
  0xde   :  { %v549_v4 = vmul.f32 %v462_v62, %v972_v32  ;;  %v513_v5 = vadd.f32 %v659_v42, %v512_v60  ;;  %v347_v6 = vmul.f32 %v661_v54, %v346_v0  ;;  %668 = vrcp.f32 %v294_v13 }
  0xdf   :  { %v407_v19 = vmul.f32 %v663_v46, %v406_v52  ;;  %v298_v24 = vadd.f32 1.0, %v667_v15  ;;  %v475_v31 = vand.u32 2147483648, %v294_v13  ;;  %v473_v34 = vand.u32 2147483647, %v294_v13 }
  0xe0   :  { %565 = vst.msk [vmem:[%s1118_s3 + $0x50] sm:$0xff] %vm19_vm2, %v549_v4  ;;  %v517_v32 = vsel %vm516_vm7, %v659_v42, %v513_v5  ;;  %v348_v17 = vadd.f32 %v661_v54, %v347_v6  ;;  %vm469_vm0 = vweird.f32 %v294_v13 }
  0xe1   :  { %v522_v11 = vsel %vm1068_vm5, %v521_v63, %v517_v32  ;;  %v408_v23 = vadd.f32 %v663_v46, %v407_v19  ;;  %670 = vrcp.f32 %v298_v24  ;;  %v535_v36 = vand.u32 2147483648, %v298_v24 }
  0xe2   :  { %v553_v41 = vmul.f32 %v522_v11, %v987_v43  ;;  %v352_v21 = vsel %vm351_vm10, %v661_v54, %v348_v17  ;;  %v533_v39 = vand.u32 2147483647, %v298_v24  ;;  %vm474_vm4 = vcmp.eq.f32.partialorder %v473_v34, 8.507059e+37 }
  0xe3   :  { %v357_v25 = vsel %vm354_vm12, %v356_v10, %v352_v21  ;;  %v412_v26 = vsel %vm411_vm13, %v663_v46, %v408_v23  ;;  %vm529_vm5 = vweird.f32 %v298_v24  ;;  %v536_v57 = vor.u32 1.1754944e-38, %v535_v36 }
  0xe4   :  { %569 = vst.msk [vmem:[%s1118_s3 + $0x70] sm:$0xff] %vm19_vm2, %v553_v41  ;;  %v542_v43 = vmul.f32 %v357_v25, %v996_v47  ;;  %v417_v27 = vsel %vm414_vm14, %v416_v16, %v412_v26  ;;  %v669_v29 = vpop.eup %668  ;;  %vm534_vm7 = vcmp.eq.f32.partialorder %v533_v39, 8.507059e+37 }
  0xe5   :  { %v546_v28 = vmul.f32 %v417_v27, %v1003_v51  ;;  %v465_v20 = vmul.f32 %v669_v29, %v294_v13  ;;  %vm470_vm15 = vweird.f32 %v669_v29  ;;  %v476_v51 = vor.u32 1.1754944e-38, %v475_v31 }
  0xe6   :  { %558 = vst.msk [vmem:[%s1118_s3 + $0x18] sm:$0xff] %vm19_vm2, %v542_v43  ;;  %vm471_vm1 = vmor %vm469_vm0, %vm470_vm15 }
  0xe7   :  { %562 = vst.msk [vmem:[%s1118_s3 + $0x38] sm:$0xff] %vm19_vm2, %v546_v28  ;;  %v671_v12 = vpop.eup %670  ;;  %v466_v47 = vsub.f32 1.0, %v465_v20 }
  0xe8   :  { %v525_v33 = vmul.f32 %v671_v12, %v298_v24  ;;  %vm530_vm3 = vweird.f32 %v671_v12 }
  0xe9   :  { %v467_v14 = vmul.f32 %v669_v29, %v466_v47  ;;  %vm531_vm6 = vmor %vm529_vm5, %vm530_vm3 }
  0xea   :  { %v526_v35 = vsub.f32 1.0, %v525_v33 }
  0xeb   :  { %v468_v22 = vadd.f32 %v669_v29, %v467_v14 }
  0xec   :  { %v527_v38 = vmul.f32 %v671_v12, %v526_v35 }
  0xed   :  { %v472_v40 = vsel %vm471_vm1, %v669_v29, %v468_v22 }
  0xee   :  { %v477_v42 = vsel %vm474_vm4, %v476_v51, %v472_v40  ;;  %v528_v18 = vadd.f32 %v671_v12, %v527_v38 }
  0xef   :  { %v550_v55 = vmul.f32 %v477_v42, %v1045_v2 }
  0xf0   :  { %v532_v48 = vsel %vm531_vm6, %v671_v12, %v528_v18 }
  0xf1   :  { %566 = vst.msk [vmem:[%s1118_s3 + $0x58] sm:$0xff] %vm19_vm2, %v550_v55  ;;  %v537_v50 = vsel %vm534_vm7, %v536_v57, %v532_v48 }
  0xf2   :  { %v554_v45 = vmul.f32 %v537_v50, %v1054_v37 }
  0xf4   :  { %570 = vst.msk [vmem:[%s1118_s3 + $0x78] sm:$0xff] %vm19_vm2, %v554_v45 }

// kernel: two_headed_efficientnet_forward.12
= control target key start
LH: loop header
LB: loop body
LE: loop exit
PB: predicated region body
PF: predicated region fallthrough
CT: control target
= control target key end

     0   :  { %s1103_s15 = smov 0   ;;  %s1614_s0 = inlined_call_operand.vmem [shape: f32[2,10,10,16], index: 0, kind: input, shape index: {}]   ;;  %s1615_s1 = inlined_call_operand.vmem [shape: f32[9,16], index: 1, kind: input, shape index: {}]   ;;  %s1616_s2 = inlined_call_operand.vmem [shape: f32[1,16], index: 2, kind: input, shape index: {}]   ;;  %s1617_s3 = inlined_call_operand.vmem [shape: f32[2,8,8,16], index: 3, kind: output, shape index: {0}]   ;;  %s1618_s4 = inlined_call_operand.vmem [shape: f32[2,1,16], index: 4, kind: output, shape index: {1}]  }
   0x1 LB: > { %s1004_s16 = sadd.s32 4294967295, %s1075_s15   ;;  %p1008_p0 = scmp.ge.s32.totalorder %s1075_s15, 1  ;;  %s1075_s15 = sphi %s1103_s15, %s15_s15  }
   0x2   : > { %p165_p1 = scmp.lt.s32.totalorder %s1075_s15, 3 }
   0x4   : > { %p166_p2 = pnand %p1008_p0, %p165_p1 }
   0x5   : > { %p194_p3 = scmp.lt.s32.totalorder (!%p166_p2), %s1004_s16, 1 }
   0x6   : > { %169 = sbr.rel (%p166_p2) target bundleno = 181 (0xb5), region = 32 }
   0xb   : > { %v227_v0 = vld [vmem:[%s1615_s1] sm:$0xff]  ;;  %s1640_s16 = smov (!%p194_p3, %s1004_s16), 1  ;;  %vm271_vm0 = vcmask 1046528   ;;  %vm345_vm1 = vcmask 1045504   ;;  %v1153_v24 = vld [vmem:[%s1615_s1 + $0x8] ss:$0 sm:$0xff] }
   0xc   : > { %s1023_s19 = smul.u32 160, %s1640_s16  ;;  %v1117_v1 = vperm.slane %v227_v0, 1  ;;  %v1119_v2 = vperm.slane %v227_v0, 2  ;;  %v1121_v3 = vperm.slane %v227_v0, 0  ;;  %v1123_v4 = vperm.slane %v227_v0, 4  ;;  %s1022_s27 = sshll.u32 %s1640_s16, 6 }
   0xd   : > { %v1130_v5 = vperm.slane %v227_v0, 5  ;;  %v1134_v8 = vperm.slane %v227_v0, 3  ;;  %v1136_v9 = vperm.slane %v227_v0, 6  ;;  %v1143_v15 = vperm.slane %v227_v0, 7  ;;  %s1349_s30 = scalar_lea.vmem %s1617_s3, %s1022_s27  ;;  %s206_s7 = scalar_lea.vmem %s1618_s4, %s1640_s16 }
   0xe   : > { %s1128_s22 = scalar_lea.vmem %s1614_s0, %s1023_s19  ;;  %vm884_vm8 = vcmask 130048  }
   0xf   : > { %v207_v6 = vld [vmem:[%s1128_s22] sm:$0xff]  ;;  %v208_v7 = vld [vmem:[%s1128_s22 + $0x8] sm:$0x3]  ;;  %v209_v10 = vld [vmem:[%s1128_s22 + $0x10] sm:$0xff] }
  0x10   : > { %v210_v11 = vld [vmem:[%s1128_s22 + $0x18] sm:$0x3]  ;;  %v239_v12 = vmul.f32 %v1117_v1, %v207_v6  ;;  %v240_v13 = vmul.f32 %v1117_v1, %v208_v7  ;;  %v313_v14 = vmul.f32 %v1119_v2, %v207_v6  ;;  %v230_v16 = vmul.f32 %v1121_v3, %v207_v6  ;;  %v1156_v25 = vld [vmem:[%s1128_s22 + $0x20] sm:$0xff]  ;;  %v1164_v34 = vld [vmem:[%s1128_s22 + $0x28] sm:$0x3] }
  0x11   : > { %v314_v17 = vmul.f32 %v1119_v2, %v208_v7  ;;  %v404_v18 = vmul.f32 %v1123_v4, %v209_v10  ;;  %v405_v19 = vmul.f32 %v1123_v4, %v210_v11  ;;  %v477_v23 = vmul.f32 %v1130_v5, %v209_v10 }
  0x12   : > { %v272_v20 = vrot.slane %v239_v12, 1  ;;  %v273_v21 = vrot.slane %v240_v13, 1  ;;  %v346_v22 = vrot.slane %v313_v14, 2  ;;  %v478_v29 = vmul.f32 %v1130_v5, %v210_v11 }
  0x13   : > { %v347_v26 = vrot.slane %v314_v17, 2  ;;  %v436_v27 = vrot.slane %v404_v18, 1  ;;  %v437_v28 = vrot.slane %v405_v19, 1  ;;  %v387_v31 = vmul.f32 %v1134_v8, %v209_v10  ;;  %v1200_v17 = vld [vmem:[%s1128_s22 + $0x38] sm:$0x3] }
  0x14   : > { %v274_v30 = vsel %vm271_vm0, %v272_v20, %v273_v21  ;;  %v509_v32 = vrot.slane %v477_v23, 2  ;;  %v567_v33 = vmul.f32 %v1143_v15, %v1156_v25  ;;  %v510_v37 = vrot.slane %v478_v29, 2 }
  0x15   : > { %v304_v35 = vadd.f32 %v274_v30, %v230_v16  ;;  %v348_v36 = vsel %vm345_vm1, %v346_v22, %v347_v26  ;;  %v550_v38 = vmul.f32 %v1136_v9, %v1156_v25  ;;  %v568_v39 = vmul.f32 %v1143_v15, %v1164_v34  ;;  %v1197_v16 = vld [vmem:[%s1128_s22 + $0x30] sm:$0xff] }
  0x16   : > { %v599_v40 = vrot.slane %v567_v33, 1  ;;  %v640_v41 = vmul.f32 %v1153_v24, %v1156_v25  ;;  %v641_v42 = vmul.f32 %v1153_v24, %v1164_v34  ;;  %v438_v44 = vsel %vm271_vm0, %v436_v27, %v437_v28 }
  0x17   : > { %v378_v43 = vadd.f32 %v348_v36, %v304_v35  ;;  %v511_v45 = vsel %vm345_vm1, %v509_v32, %v510_v37  ;;  %v241_v46 = vmul.f32 %v1117_v1, %v209_v10  ;;  %v600_v47 = vrot.slane %v568_v39, 1  ;;  %v1216_v32 = vld [vmem:[%s1616_s2] ss:$0 sm:$0xff] }
  0x18   : > { %v672_v48 = vrot.slane %v640_v41, 2  ;;  %v231_v49 = vmul.f32 %v1121_v3, %v209_v10  ;;  %v242_v50 = vmul.f32 %v1117_v1, %v210_v11  ;;  %v315_v53 = vmul.f32 %v1119_v2, %v209_v10 }
  0x19   : > { %v395_v51 = vadd.f32 %v387_v31, %v378_v43  ;;  %v275_v52 = vrot.slane %v241_v46, 1  ;;  %v316_v54 = vmul.f32 %v1119_v2, %v210_v11  ;;  %v601_v55 = vsel %vm271_vm0, %v599_v40, %v600_v47 }
  0x1a   : > { %v673_v56 = vrot.slane %v641_v42, 2  ;;  %v276_v57 = vrot.slane %v242_v50, 1  ;;  %v388_v58 = vmul.f32 %v1134_v8, %v1156_v25  ;;  %v349_v60 = vrot.slane %v315_v53, 2 }
  0x1b   : > { %v468_v59 = vadd.f32 %v438_v44, %v395_v51  ;;  %v350_v61 = vrot.slane %v316_v54, 2  ;;  %v406_v62 = vmul.f32 %v1123_v4, %v1156_v25  ;;  %v407_v0 = vmul.f32 %v1123_v4, %v1164_v34 }
  0x1c   : > { %v277_v63 = vsel %vm271_vm0, %v275_v52, %v276_v57  ;;  %v479_v6 = vmul.f32 %v1130_v5, %v1156_v25  ;;  %v480_v7 = vmul.f32 %v1130_v5, %v1164_v34  ;;  %v674_v14 = vsel %vm345_vm1, %v672_v48, %v673_v56 }
  0x1d   : > { %v541_v10 = vadd.f32 %v511_v45, %v468_v59  ;;  %v305_v11 = vadd.f32 %v277_v63, %v231_v49  ;;  %v351_v12 = vsel %vm345_vm1, %v349_v60, %v350_v61  ;;  %v439_v13 = vrot.slane %v406_v62, 1 }
  0x1e   : > { %v440_v18 = vrot.slane %v407_v0, 1  ;;  %v512_v19 = vrot.slane %v479_v6, 2  ;;  %v513_v20 = vrot.slane %v480_v7, 2  ;;  %v569_v23 = vmul.f32 %v1143_v15, %v1197_v16  ;;  %v1248_v7 = vld [vmem:[%s1128_s22 + $0x40] sm:$0xff] }
  0x1f   : > { %v558_v21 = vadd.f32 %v550_v38, %v541_v10  ;;  %v379_v22 = vadd.f32 %v351_v12, %v305_v11  ;;  %v570_v26 = vmul.f32 %v1143_v15, %v1200_v17  ;;  %v551_v28 = vmul.f32 %v1136_v9, %v1197_v16  ;;  %v1251_v10 = vld [vmem:[%s1128_s22 + $0x48] sm:$0x3] }
  0x20   : > { %v441_v27 = vsel %vm271_vm0, %v439_v13, %v440_v18  ;;  %v642_v29 = vmul.f32 %v1153_v24, %v1197_v16  ;;  %v643_v30 = vmul.f32 %v1153_v24, %v1200_v17  ;;  %v602_v35 = vrot.slane %v569_v23, 1 }
  0x21   : > { %v631_v31 = vadd.f32 %v601_v55, %v558_v21  ;;  %v396_v33 = vadd.f32 %v388_v58, %v379_v22  ;;  %v603_v36 = vrot.slane %v570_v26, 1  ;;  %v514_v37 = vsel %vm345_vm1, %v512_v19, %v513_v20 }
  0x22   : > { %v675_v38 = vrot.slane %v642_v29, 2  ;;  %v676_v39 = vrot.slane %v643_v30, 2  ;;  %v243_v40 = vmul.f32 %v1117_v1, %v1156_v25  ;;  %v232_v44 = vmul.f32 %v1121_v3, %v1156_v25 }
  0x23   : > { %v704_v41 = vadd.f32 %v674_v14, %v631_v31  ;;  %v469_v42 = vadd.f32 %v441_v27, %v396_v33  ;;  %v604_v43 = vsel %vm271_vm0, %v602_v35, %v603_v36  ;;  %v244_v46 = vmul.f32 %v1117_v1, %v1164_v34 }
  0x24   : > { %v677_v45 = vsel %vm345_vm1, %v675_v38, %v676_v39  ;;  %v278_v47 = vrot.slane %v243_v40, 1  ;;  %v317_v48 = vmul.f32 %v1119_v2, %v1156_v25  ;;  %v318_v51 = vmul.f32 %v1119_v2, %v1164_v34 }
  0x25   : > { %v1230_v49 = vadd.f32 %v1216_v32, %v704_v41  ;;  %v542_v50 = vadd.f32 %v514_v37, %v469_v42  ;;  %v389_v52 = vmul.f32 %v1134_v8, %v1197_v16  ;;  %v279_v53 = vrot.slane %v244_v46, 1 }
  0x26   : > { %v352_v54 = vrot.slane %v317_v48, 2  ;;  %v408_v55 = vmul.f32 %v1123_v4, %v1197_v16  ;;  %v409_v25 = vmul.f32 %v1123_v4, %v1200_v17  ;;  %v353_v58 = vrot.slane %v318_v51, 2 }
  0x27   : > { %v1012_v56 = vmul.f32 -1.442695, %v1230_v49  ;;  %v559_v57 = vadd.f32 %v551_v28, %v542_v50  ;;  %v481_v34 = vmul.f32 %v1130_v5, %v1197_v16  ;;  %v280_v59 = vsel %vm271_vm0, %v278_v47, %v279_v53 }
  0x28   : > { %v442_v60 = vrot.slane %v408_v55, 1  ;;  %v443_v61 = vrot.slane %v409_v25, 1  ;;  %v482_v62 = vmul.f32 %v1130_v5, %v1200_v17  ;;  %v306_v0 = vadd.f32 %v280_v59, %v232_v44  ;;  %v1292_v59 = vld [vmem:[%s1128_s22 + $0x50] sm:$0xff] }
  0x29   : > { %1035 = vpow2.f32 %v1012_v56  ;;  %v632_v63 = vadd.f32 %v604_v43, %v559_v57  ;;  %v354_v6 = vsel %vm345_vm1, %v352_v54, %v353_v58  ;;  %v515_v11 = vrot.slane %v481_v34, 2 }
  0x2a   : > { %v516_v12 = vrot.slane %v482_v62, 2  ;;  %v380_v14 = vadd.f32 %v354_v6, %v306_v0  ;;  %v571_v18 = vmul.f32 %v1143_v15, %v1248_v7  ;;  %v572_v19 = vmul.f32 %v1143_v15, %v1251_v10  ;;  %v1297_v6 = vld [vmem:[%s1128_s22 + $0x58] sm:$0x3] }
  0x2b   : > { %v705_v13 = vadd.f32 %v677_v45, %v632_v63  ;;  %v444_v20 = vsel %vm271_vm0, %v442_v60, %v443_v61  ;;  %v644_v22 = vmul.f32 %v1153_v24, %v1248_v7  ;;  %v645_v23 = vmul.f32 %v1153_v24, %v1251_v10 }
  0x2c   : > { %v517_v21 = vsel %vm345_vm1, %v515_v11, %v516_v12  ;;  %v397_v27 = vadd.f32 %v389_v52, %v380_v14  ;;  %v605_v28 = vrot.slane %v571_v18, 1  ;;  %v606_v29 = vrot.slane %v572_v19, 1 }
  0x2d   : > { %v1264_v26 = vadd.f32 %v1216_v32, %v705_v13  ;;  %v678_v30 = vrot.slane %v644_v22, 2  ;;  %v679_v31 = vrot.slane %v645_v23, 2  ;;  %v245_v33 = vmul.f32 %v1117_v1, %v1197_v16 }
  0x2e   : > { %v246_v35 = vmul.f32 %v1117_v1, %v1200_v17  ;;  %v470_v38 = vadd.f32 %v444_v20, %v397_v27  ;;  %v552_v39 = vmul.f32 %v1136_v9, %v1248_v7  ;;  %v319_v40 = vmul.f32 %v1119_v2, %v1197_v16 }
  0x2f   : > { %v1036_v36 = vpop.eup %1035  ;;  %v1013_v37 = vmul.f32 -1.442695, %v1264_v26  ;;  %v233_v42 = vmul.f32 %v1121_v3, %v1197_v16  ;;  %v281_v43 = vrot.slane %v245_v33, 1  ;;  %v320_v46 = vmul.f32 %v1119_v2, %v1200_v17 }
  0x30   : > { %v748_v41 = vadd.f32 1.0, %v1036_v36  ;;  %v282_v44 = vrot.slane %v246_v35, 1  ;;  %v543_v45 = vadd.f32 %v517_v21, %v470_v38  ;;  %v355_v47 = vrot.slane %v319_v40, 2 }
  0x31   : > { %1037 = vpow2.f32 %v1013_v37  ;;  %v607_v48 = vsel %vm271_vm0, %v605_v28, %v606_v29  ;;  %v680_v50 = vsel %vm345_vm1, %v678_v30, %v679_v31  ;;  %v356_v53 = vrot.slane %v320_v46, 2 }
  0x32   : > { %1039 = vrcp.f32 %v748_v41  ;;  %vm761_vm2 = vweird.f32 %v748_v41  ;;  %v560_v51 = vadd.f32 %v552_v39, %v543_v45  ;;  %v283_v52 = vsel %vm271_vm0, %v281_v43, %v282_v44 }
  0x33   : > { %v765_v16 = vand.u32 2147483647, %v748_v41  ;;  %v307_v54 = vadd.f32 %v283_v52, %v233_v42  ;;  %v390_v55 = vmul.f32 %v1134_v8, %v1248_v7  ;;  %v410_v17 = vmul.f32 %v1123_v4, %v1248_v7 }
  0x34   : > { %v633_v25 = vadd.f32 %v607_v48, %v560_v51  ;;  %v357_v56 = vsel %vm345_vm1, %v355_v47, %v356_v53  ;;  %v411_v57 = vmul.f32 %v1123_v4, %v1251_v10  ;;  %v483_v58 = vmul.f32 %v1130_v5, %v1248_v7 }
  0x35   : > { %v767_v34 = vand.u32 2147483648, %v748_v41  ;;  %v381_v60 = vadd.f32 %v357_v56, %v307_v54  ;;  %v445_v61 = vrot.slane %v410_v17, 1  ;;  %v484_v62 = vmul.f32 %v1130_v5, %v1251_v10 }
  0x36   : > { %v706_v0 = vadd.f32 %v680_v50, %v633_v25  ;;  %v446_v11 = vrot.slane %v411_v57, 1  ;;  %v518_v12 = vrot.slane %v483_v58, 2  ;;  %v573_v13 = vmul.f32 %v1143_v15, %v1292_v59 }
  0x37   : > { %v1038_v63 = vpop.eup %1037  ;;  %v398_v19 = vadd.f32 %v390_v55, %v381_v60  ;;  %v519_v20 = vrot.slane %v484_v62, 2  ;;  %v574_v21 = vmul.f32 %v1143_v15, %v1297_v6  ;;  %vm1305_vm3 = vcmp.eq.f32.partialorder %v765_v16, 8.507059e+37 }
  0x38   : > { %v1040_v14 = vpop.eup %1039  ;;  %v1301_v18 = vadd.f32 1.0, %v1038_v63  ;;  %v1310_v27 = vadd.f32 %v1216_v32, %v706_v0  ;;  %v447_v28 = vsel %vm271_vm0, %v445_v61, %v446_v11  ;;  %v768_v29 = vor.u32 1.1754944e-38, %v767_v34 }
  0x39   : > { %v757_v22 = vmul.f32 %v1040_v14, %v748_v41  ;;  %vm762_vm4 = vweird.f32 %v1040_v14  ;;  %v553_v30 = vmul.f32 %v1136_v9, %v1292_v59  ;;  %v471_v35 = vadd.f32 %v447_v28, %v398_v19 }
  0x3a   : > { %1041 = vrcp.f32 %v1301_v18  ;;  %vm776_vm5 = vweird.f32 %v1301_v18  ;;  %v1014_v33 = vmul.f32 -1.442695, %v1310_v27  ;;  %v520_v36 = vsel %vm345_vm1, %v518_v12, %v519_v20  ;;  %vm1325_vm6 = vmor %vm761_vm2, %vm762_vm4 }
  0x3b   : > { %v758_v31 = vsub.f32 1.0, %v757_v22  ;;  %v780_v37 = vand.u32 2147483647, %v1301_v18  ;;  %v782_v38 = vand.u32 2147483648, %v1301_v18  ;;  %v608_v39 = vrot.slane %v573_v13, 1 }
  0x3c   : > { %v609_v40 = vrot.slane %v574_v21, 1  ;;  %1043 = vpow2.f32 %v1014_v33  ;;  %v544_v43 = vadd.f32 %v520_v36, %v471_v35  ;;  %v646_v44 = vmul.f32 %v1153_v24, %v1292_v59 }
  0x3d   : > { %v759_v42 = vmul.f32 %v1040_v14, %v758_v31  ;;  %v647_v47 = vmul.f32 %v1153_v24, %v1297_v6  ;;  %v234_v48 = vmul.f32 %v1121_v3, %v1248_v7  ;;  %v247_v50 = vmul.f32 %v1117_v1, %v1248_v7 }
  0x3e   : > { %v610_v46 = vsel %vm271_vm0, %v608_v39, %v609_v40  ;;  %v561_v52 = vadd.f32 %v553_v30, %v544_v43  ;;  %v681_v53 = vrot.slane %v646_v44, 2  ;;  %v248_v41 = vmul.f32 %v1117_v1, %v1251_v10  ;;  %v1394_v44 = vld [vmem:[%s1128_s22 + $0x60] sm:$0xff] }
  0x3f   : > { %v760_v51 = vadd.f32 %v1040_v14, %v759_v42  ;;  %v682_v54 = vrot.slane %v647_v47, 2  ;;  %v284_v55 = vrot.slane %v247_v50, 1  ;;  %v321_v17 = vmul.f32 %v1119_v2, %v1248_v7  ;;  %v1404_v50 = vld [vmem:[%s1128_s22 + $0x68] sm:$0x3] }
  0x40   : > { %v1042_v16 = vpop.eup %1041  ;;  %v322_v25 = vmul.f32 %v1119_v2, %v1251_v10  ;;  %v634_v58 = vadd.f32 %v610_v46, %v561_v52  ;;  %v285_v60 = vrot.slane %v248_v41, 1  ;;  %vm1362_vm9 = vcmp.eq.f32.partialorder %v780_v37, 8.507059e+37 }
  0x41   : > { %v764_v56 = vsel %vm1325_vm6, %v1040_v14, %v760_v51  ;;  %v772_v57 = vmul.f32 %v1042_v16, %v1301_v18  ;;  %vm777_vm7 = vweird.f32 %v1042_v16  ;;  %v683_v7 = vsel %vm345_vm1, %v681_v53, %v682_v54 }
  0x42   : > { %v769_v34 = vsel %vm1305_vm3, %v768_v29, %v764_v56  ;;  %v358_v10 = vrot.slane %v321_v17, 2  ;;  %v1044_v61 = vpop.eup %1043  ;;  %v707_v0 = vadd.f32 %v683_v7, %v634_v58  ;;  %v359_v11 = vrot.slane %v322_v25, 2  ;;  %vm1372_vm10 = vmor %vm776_vm5, %vm777_vm7 }
  0x43   : > { %v876_v62 = vmul.f32 %v769_v34, %v1230_v49  ;;  %v773_v63 = vsub.f32 1.0, %v772_v57  ;;  %v1355_v12 = vadd.f32 1.0, %v1044_v61  ;;  %v286_v13 = vsel %vm271_vm0, %v284_v55, %v285_v60 }
  0x44   : > { %v412_v14 = vmul.f32 %v1123_v4, %v1292_v59  ;;  %v1367_v49 = vadd.f32 %v1216_v32, %v707_v0  ;;  %v308_v21 = vadd.f32 %v286_v13, %v234_v48  ;;  %v783_v23 = vor.u32 1.1754944e-38, %v782_v38 }
  0x45   : > { %885 = vst.msk [vmem:[%s1349_s30] sm:$0xff] %vm884_vm8, %v876_v62  ;;  %v774_v19 = vmul.f32 %v1042_v16, %v773_v63  ;;  %1045 = vrcp.f32 %v1355_v12  ;;  %v795_v28 = vand.u32 2147483647, %v1355_v12  ;;  %v391_v29 = vmul.f32 %v1134_v8, %v1292_v59 }
  0x46   : > { %v1015_v31 = vmul.f32 -1.442695, %v1367_v49  ;;  %v360_v33 = vsel %vm345_vm1, %v358_v10, %v359_v11  ;;  %v413_v18 = vmul.f32 %v1123_v4, %v1297_v6  ;;  %v893_v35 = vsel %vm884_vm8, %v876_v62, 0.0 }
  0x47   : > { %v775_v30 = vadd.f32 %v1042_v16, %v774_v19  ;;  %vm791_vm11 = vweird.f32 %v1355_v12  ;;  %v382_v36 = vadd.f32 %v360_v33, %v308_v21  ;;  %v448_v37 = vrot.slane %v412_v14, 1 }
  0x48   : > { %1047 = vpow2.f32 %v1015_v31  ;;  %v449_v39 = vrot.slane %v413_v18, 1  ;;  %v485_v40 = vmul.f32 %v1130_v5, %v1292_v59  ;;  %v797_v43 = vand.u32 2147483648, %v1355_v12 }
  0x49   : > { %v779_v38 = vsel %vm1372_vm10, %v1042_v16, %v775_v30  ;;  %v399_v45 = vadd.f32 %v391_v29, %v382_v36  ;;  %v486_v46 = vmul.f32 %v1130_v5, %v1297_v6  ;;  %vm1399_vm12 = vcmp.eq.f32.partialorder %v795_v28, 8.507059e+37 }
  0x4a   : > { %v784_v42 = vsel %vm1362_vm9, %v783_v23, %v779_v38  ;;  %v450_v51 = vsel %vm271_vm0, %v448_v37, %v449_v39  ;;  %v521_v52 = vrot.slane %v485_v40, 2  ;;  %v575_v53 = vmul.f32 %v1143_v15, %v1394_v44 }
  0x4b   : > { %v877_v47 = vmul.f32 %v784_v42, %v1264_v26  ;;  %v1046_v41 = vpop.eup %1045  ;;  %v472_v16 = vadd.f32 %v450_v51, %v399_v45  ;;  %v522_v54 = vrot.slane %v486_v46, 2  ;;  %v576_v55 = vmul.f32 %v1143_v15, %v1404_v50 }
  0x4c   : > { %v648_v26 = vmul.f32 %v1153_v24, %v1394_v44  ;;  %v787_v25 = vmul.f32 %v1046_v41, %v1355_v12  ;;  %v554_v56 = vmul.f32 %v1136_v9, %v1394_v44  ;;  %v611_v57 = vrot.slane %v575_v53, 1 }
  0x4d   : > { %886 = vst.msk [vmem:[%s1349_s30 + $0x8] sm:$0xff] %vm884_vm8, %v877_v47  ;;  %v894_v17 = vsel %vm884_vm8, %v877_v47, 0.0  ;;  %v523_v34 = vsel %vm345_vm1, %v521_v52, %v522_v54  ;;  %v612_v7 = vrot.slane %v576_v55, 1  ;;  %v649_v60 = vmul.f32 %v1153_v24, %v1404_v50 }
  0x4e   : > { %v895_v58 = vadd.f32 %v894_v17, %v893_v35  ;;  %v1048_v10 = vpop.eup %1047  ;;  %v788_v61 = vsub.f32 1.0, %v787_v25  ;;  %vm792_vm13 = vweird.f32 %v1046_v41  ;;  %v545_v62 = vadd.f32 %v523_v34, %v472_v16 }
  0x4f   : > { %v684_v63 = vrot.slane %v648_v26, 2  ;;  %v751_v0 = vadd.f32 1.0, %v1048_v10  ;;  %v613_v11 = vsel %vm271_vm0, %v611_v57, %v612_v7  ;;  %v685_v13 = vrot.slane %v649_v60, 2  ;;  %vm1431_vm14 = vmor %vm791_vm11, %vm792_vm13  ;;  %v1471_v10 = vld [vmem:[%s1128_s22 + $0x70] sm:$0xff] }
  0x50   : > { %v249_v14 = vmul.f32 %v1117_v1, %v1292_v59  ;;  %v789_v19 = vmul.f32 %v1046_v41, %v788_v61  ;;  %v562_v20 = vadd.f32 %v554_v56, %v545_v62  ;;  %v250_v21 = vmul.f32 %v1117_v1, %v1297_v6  ;;  %v1474_v61 = vld [vmem:[%s1128_s22 + $0x78] sm:$0x3] }
  0x51   : > { %v323_v22 = vmul.f32 %v1119_v2, %v1292_v59  ;;  %v798_v28 = vor.u32 1.1754944e-38, %v797_v43  ;;  %1049 = vrcp.f32 %v751_v0  ;;  %v810_v29 = vand.u32 2147483647, %v751_v0 }
  0x52   : > { %v235_v30 = vmul.f32 %v1121_v3, %v1292_v59  ;;  %v790_v31 = vadd.f32 %v1046_v41, %v789_v19  ;;  %v635_v33 = vadd.f32 %v613_v11, %v562_v20  ;;  %v686_v18 = vsel %vm345_vm1, %v684_v63, %v685_v13 }
  0x53   : > { %v287_v35 = vrot.slane %v249_v14, 1  ;;  %vm806_vm15 = vweird.f32 %v751_v0  ;;  %v812_v36 = vand.u32 2147483648, %v751_v0  ;;  %v288_v37 = vrot.slane %v250_v21, 1 }
  0x54   : > { %v324_v12 = vmul.f32 %v1119_v2, %v1297_v6  ;;  %v794_v38 = vsel %vm1431_vm14, %v1046_v41, %v790_v31  ;;  %v708_v39 = vadd.f32 %v686_v18, %v635_v33  ;;  %v361_v40 = vrot.slane %v323_v22, 2 }
  0x55   : > { %v392_v59 = vmul.f32 %v1134_v8, %v1394_v44  ;;  %v799_v42 = vsel %vm1399_vm12, %v798_v28, %v794_v38  ;;  %v289_v43 = vsel %vm271_vm0, %v287_v35, %v288_v37  ;;  %v414_v46 = vmul.f32 %v1123_v4, %v1394_v44 }
  0x56   : > { %v362_v45 = vrot.slane %v324_v12, 2  ;;  %v878_v6 = vmul.f32 %v799_v42, %v1310_v27  ;;  %vm1450_vm2 = vcmp.eq.f32.partialorder %v810_v29, 8.507059e+37  ;;  %v1455_v51 = vadd.f32 %v1216_v32, %v708_v39 }
  0x57   : > { %v309_v52 = vadd.f32 %v289_v43, %v235_v30  ;;  %v415_v48 = vmul.f32 %v1123_v4, %v1404_v50  ;;  %v1050_v53 = vpop.eup %1049  ;;  %v451_v16 = vrot.slane %v414_v46, 1  ;;  %v487_v27 = vmul.f32 %v1130_v5, %v1394_v44 }
  0x58   : > { %v363_v41 = vsel %vm345_vm1, %v361_v40, %v362_v45  ;;  %v488_v54 = vmul.f32 %v1130_v5, %v1404_v50  ;;  %887 = vst.msk [vmem:[%s1349_s30 + $0x10] sm:$0xff] %vm884_vm8, %v878_v6  ;;  %v896_v55 = vsel %vm884_vm8, %v878_v6, 0.0  ;;  %v802_v26 = vmul.f32 %v1050_v53, %v751_v0 }
  0x59   : > { %v813_v17 = vor.u32 1.1754944e-38, %v812_v36  ;;  %v1016_v25 = vmul.f32 -1.442695, %v1455_v51  ;;  %v1468_v56 = vadd.f32 %v896_v55, %v895_v58  ;;  %v383_v57 = vadd.f32 %v363_v41, %v309_v52 }
  0x5a   : > { %v452_v34 = vrot.slane %v415_v48, 1  ;;  %v524_v7 = vrot.slane %v487_v27, 2  ;;  %v803_v60 = vsub.f32 1.0, %v802_v26  ;;  %vm807_vm3 = vweird.f32 %v1050_v53 }
  0x5b   : > { %1051 = vpow2.f32 %v1016_v25  ;;  %v525_v62 = vrot.slane %v488_v54, 2  ;;  %v400_v63 = vadd.f32 %v392_v59, %v383_v57  ;;  %v577_v13 = vmul.f32 %v1143_v15, %v1471_v10  ;;  %vm1487_vm4 = vmor %vm806_vm15, %vm807_vm3 }
  0x5c   : > { %v453_v11 = vsel %vm271_vm0, %v451_v16, %v452_v34  ;;  %v578_v58 = vmul.f32 %v1143_v15, %v1474_v61  ;;  %v804_v14 = vmul.f32 %v1050_v53, %v803_v60  ;;  %v650_v20 = vmul.f32 %v1153_v24, %v1471_v10 }
  0x5d   : > { %v526_v19 = vsel %vm345_vm1, %v524_v7, %v525_v62  ;;  %v651_v21 = vmul.f32 %v1153_v24, %v1474_v61  ;;  %v473_v23 = vadd.f32 %v453_v11, %v400_v63  ;;  %v555_v28 = vmul.f32 %v1136_v9, %v1471_v10 }
  0x5e   : > { %v614_v29 = vrot.slane %v577_v13, 1  ;;  %v615_v30 = vrot.slane %v578_v58, 1  ;;  %v805_v31 = vadd.f32 %v1050_v53, %v804_v14  ;;  %v687_v33 = vrot.slane %v650_v20, 2  ;;  %v224_v58 = vld [vmem:[%s1128_s22 + $0x88] sm:$0x3] }
  0x5f   : > { %v236_v18 = vmul.f32 %v1121_v3, %v1394_v44  ;;  %v251_v35 = vmul.f32 %v1117_v1, %v1394_v44  ;;  %v546_v36 = vadd.f32 %v526_v19, %v473_v23  ;;  %v688_v0 = vrot.slane %v651_v21, 2 }
  0x60   : > { %v252_v37 = vmul.f32 %v1117_v1, %v1404_v50  ;;  %v325_v12 = vmul.f32 %v1119_v2, %v1394_v44  ;;  %v809_v39 = vsel %vm1487_vm4, %v1050_v53, %v805_v31  ;;  %v616_v40 = vsel %vm271_vm0, %v614_v29, %v615_v30 }
  0x61   : > { %v1052_v38 = vpop.eup %1051  ;;  %v290_v59 = vrot.slane %v251_v35, 1  ;;  %v326_v42 = vmul.f32 %v1119_v2, %v1404_v50  ;;  %v814_v43 = vsel %vm1450_vm2, %v813_v17, %v809_v39  ;;  %v563_v46 = vadd.f32 %v555_v28, %v546_v36  ;;  %v223_v17 = vld [vmem:[%s1128_s22 + $0x80] sm:$0xff] }
  0x62   : > { %v752_v45 = vadd.f32 1.0, %v1052_v38  ;;  %v291_v6 = vrot.slane %v252_v37, 1  ;;  %v1509_v52 = vmul.f32 %v814_v43, %v1367_v49  ;;  %v364_v44 = vrot.slane %v325_v12, 2 }
  0x63   : > { %v365_v48 = vrot.slane %v326_v42, 2  ;;  %v689_v41 = vsel %vm345_vm1, %v687_v33, %v688_v0  ;;  %v636_v16 = vadd.f32 %v616_v40, %v563_v46  ;;  %v393_v55 = vmul.f32 %v1134_v8, %v1471_v10 }
  0x64   : > { %1053 = vrcp.f32 %v752_v45  ;;  %v827_v53 = vand.u32 2147483648, %v752_v45  ;;  %888 = vst.msk [vmem:[%s1349_s30 + $0x18] sm:$0xff] %vm884_vm8, %v1509_v52  ;;  %v825_v50 = vand.u32 2147483647, %v752_v45  ;;  %v292_v47 = vsel %vm271_vm0, %v290_v59, %v291_v6 }
  0x65   : > { %v366_v27 = vsel %vm345_vm1, %v364_v44, %v365_v48  ;;  %vm821_vm5 = vweird.f32 %v752_v45  ;;  %v310_v54 = vadd.f32 %v292_v47, %v236_v18  ;;  %v709_v26 = vadd.f32 %v689_v41, %v636_v16 }
  0x66   : > { %v828_v49 = vor.u32 1.1754944e-38, %v827_v53  ;;  %v416_v25 = vmul.f32 %v1123_v4, %v1471_v10  ;;  %v417_v57 = vmul.f32 %v1123_v4, %v1474_v61  ;;  %v489_v34 = vmul.f32 %v1130_v5, %v1471_v10 }
  0x67   : > { %v384_v7 = vadd.f32 %v366_v27, %v310_v54  ;;  %v490_v60 = vmul.f32 %v1130_v5, %v1474_v61  ;;  %v556_v62 = vmul.f32 %v1136_v9, %v223_v17  ;;  %v579_v63 = vmul.f32 %v1143_v15, %v223_v17 }
  0x68   : > { %vm1530_vm6 = vcmp.eq.f32.partialorder %v825_v50, 8.507059e+37  ;;  %v1535_v13 = vadd.f32 %v1216_v32, %v709_v26  ;;  %v454_v14 = vrot.slane %v416_v25, 1  ;;  %v455_v19 = vrot.slane %v417_v57, 1 }
  0x69   : > { %v527_v20 = vrot.slane %v489_v34, 2  ;;  %v401_v22 = vadd.f32 %v393_v55, %v384_v7  ;;  %v528_v23 = vrot.slane %v490_v60, 2  ;;  %v580_v28 = vmul.f32 %v1143_v15, %v224_v58 }
  0x6a   : > { %v1054_v21 = vpop.eup %1053  ;;  %v617_v29 = vrot.slane %v579_v63, 1  ;;  %v1017_v31 = vmul.f32 -1.442695, %v1535_v13  ;;  %v456_v33 = vsel %vm271_vm0, %v454_v14, %v455_v19  ;;  %v652_v0 = vmul.f32 %v1153_v24, %v223_v17 }
  0x6b   : > { %v817_v30 = vmul.f32 %v1054_v21, %v752_v45  ;;  %vm822_vm7 = vweird.f32 %v1054_v21  ;;  %v474_v18 = vadd.f32 %v456_v33, %v401_v22  ;;  %v529_v35 = vsel %vm345_vm1, %v527_v20, %v528_v23 }
  0x6c   : > { %v618_v36 = vrot.slane %v580_v28, 1  ;;  %1055 = vpow2.f32 %v1017_v31  ;;  %v653_v12 = vmul.f32 %v1153_v24, %v224_v58  ;;  %v237_v38 = vmul.f32 %v1121_v3, %v1471_v10  ;;  %vm1555_vm9 = vmor %vm821_vm5, %vm822_vm7 }
  0x6d   : > { %v818_v37 = vsub.f32 1.0, %v817_v30  ;;  %v547_v39 = vadd.f32 %v529_v35, %v474_v18  ;;  %v690_v59 = vrot.slane %v652_v0, 2  ;;  %v253_v42 = vmul.f32 %v1117_v1, %v1471_v10 }
  0x6e   : > { %v619_v40 = vsel %vm271_vm0, %v617_v29, %v618_v36  ;;  %v691_v46 = vrot.slane %v653_v12, 2  ;;  %v254_v6 = vmul.f32 %v1117_v1, %v1474_v61  ;;  %v327_v44 = vmul.f32 %v1119_v2, %v1471_v10 }
  0x6f   : > { %v819_v43 = vmul.f32 %v1054_v21, %v818_v37  ;;  %v564_v3 = vadd.f32 %v556_v62, %v547_v39  ;;  %v293_v53 = vrot.slane %v253_v42, 1  ;;  %v328_v41 = vmul.f32 %v1119_v2, %v1474_v61 }
  0x70   : > { %v394_v50 = vmul.f32 %v1134_v8, %v223_v17  ;;  %v692_v47 = vsel %vm345_vm1, %v690_v59, %v691_v46  ;;  %v294_v1 = vrot.slane %v254_v6, 1  ;;  %v367_v27 = vrot.slane %v327_v44, 2 }
  0x71   : > { %v820_v16 = vadd.f32 %v1054_v21, %v819_v43  ;;  %v637_v54 = vadd.f32 %v619_v40, %v564_v3  ;;  %v368_v10 = vrot.slane %v328_v41, 2  ;;  %v418_v45 = vmul.f32 %v1123_v4, %v223_v17 }
  0x72   : > { %v419_v55 = vmul.f32 %v1123_v4, %v224_v58  ;;  %v1056_v26 = vpop.eup %1055  ;;  %v295_v2 = vsel %vm271_vm0, %v293_v53, %v294_v1  ;;  %v491_v8 = vmul.f32 %v1130_v5, %v223_v17  ;;  %v492_v61 = vmul.f32 %v1130_v5, %v224_v58  ;;  %v225_v17 = vld [vmem:[%s1128_s22 + $0x90] sm:$0xff]  ;;  %v226_v5 = vld [vmem:[%s1128_s22 + $0x98] sm:$0x3] }
  0x73   : > { %v824_v25 = vsel %vm1555_vm9, %v1054_v21, %v820_v16  ;;  %v753_v34 = vadd.f32 1.0, %v1056_v26  ;;  %v710_v7 = vadd.f32 %v692_v47, %v637_v54  ;;  %v311_v60 = vadd.f32 %v295_v2, %v237_v38 }
  0x74   : > { %v829_v57 = vsel %vm1530_vm6, %v828_v49, %v824_v25  ;;  %v369_v62 = vsel %vm345_vm1, %v367_v27, %v368_v10  ;;  %v457_v63 = vrot.slane %v418_v45, 1  ;;  %v458_v14 = vrot.slane %v419_v55, 1 }
  0x75   : > { %v880_v4 = vmul.f32 %v829_v57, %v1455_v51  ;;  %1057 = vrcp.f32 %v753_v34  ;;  %v1577_v19 = vadd.f32 %v1216_v32, %v710_v7  ;;  %v385_v58 = vadd.f32 %v369_v62, %v311_v60 }
  0x76   : > { %v459_v49 = vsel %vm271_vm0, %v457_v63, %v458_v14  ;;  %v530_v11 = vrot.slane %v491_v8, 2  ;;  %v531_v51 = vrot.slane %v492_v61, 2  ;;  %v581_v22 = vmul.f32 %v1143_v15, %v225_v17 }
  0x77   : > { %889 = vst.msk [vmem:[%s1349_s30 + $0x20] sm:$0xff] %vm884_vm8, %v880_v4  ;;  %v1018_v20 = vmul.f32 -1.442695, %v1577_v19  ;;  %v402_v21 = vadd.f32 %v394_v50, %v385_v58  ;;  %v582_v23 = vmul.f32 %v1143_v15, %v226_v5  ;;  %v654_v28 = vmul.f32 %v1153_v24, %v225_v17 }
  0x78   : > { %v655_v29 = vmul.f32 %v1153_v24, %v226_v5  ;;  %v532_v31 = vsel %vm345_vm1, %v530_v11, %v531_v51  ;;  %v557_v33 = vmul.f32 %v1136_v9, %v225_v17  ;;  %v620_v35 = vrot.slane %v581_v22, 1 }
  0x79   : > { %1059 = vpow2.f32 %v1018_v20  ;;  %v475_v30 = vadd.f32 %v459_v49, %v402_v21  ;;  %v621_v36 = vrot.slane %v582_v23, 1  ;;  %v693_v0 = vrot.slane %v654_v28, 2 }
  0x7a   : > { %v694_v37 = vrot.slane %v655_v29, 2  ;;  %v898_v15 = vsel %vm884_vm8, %v1509_v52, 0.0  ;;  %vm836_vm10 = vweird.f32 %v753_v34  ;;  %v842_v39 = vand.u32 2147483648, %v753_v34 }
  0x7b   : > { %v1058_v18 = vpop.eup %1057  ;;  %v548_v38 = vadd.f32 %v532_v31, %v475_v30  ;;  %v622_v24 = vsel %vm271_vm0, %v620_v35, %v621_v36  ;;  %v840_v59 = vand.u32 2147483647, %v753_v34  ;;  %v899_v44 = vadd.f32 %v898_v15, %v1468_v56 }
  0x7c   : > { %v832_v12 = vmul.f32 %v1058_v18, %v753_v34  ;;  %vm837_vm11 = vweird.f32 %v1058_v18  ;;  %v695_v9 = vsel %vm345_vm1, %v693_v0, %v694_v37  ;;  %v843_v48 = vor.u32 1.1754944e-38, %v842_v39 }
  0x7d   : > { %v565_v42 = vadd.f32 %v557_v33, %v548_v38  ;;  %vm838_vm12 = vmor %vm836_vm10, %vm837_vm11  ;;  %v900_v52 = vsel %vm884_vm8, %v880_v4, 0.0  ;;  %vm841_vm13 = vcmp.eq.f32.partialorder %v840_v59, 8.507059e+37  ;;  %v1077_v14 = vmov 64.0  }
  0x7e   : > { %v833_v40 = vsub.f32 1.0, %v832_v12  ;;  %v901_v47 = vadd.f32 %v900_v52, %v899_v44  ;;  %vm922_vm7 = vcmask 122880  }
  0x7f   : > { %v1060_v43 = vpop.eup %1059  ;;  %v638_v6 = vadd.f32 %v622_v24, %v565_v42 }
  0x80   : > { %v834_v46 = vmul.f32 %v1058_v18, %v833_v40  ;;  %v754_v3 = vadd.f32 1.0, %v1060_v43 }
  0x81   : > { %v711_v41 = vadd.f32 %v695_v9, %v638_v6 }
  0x82   : > { %v835_v53 = vadd.f32 %v1058_v18, %v834_v46  ;;  %1061 = vrcp.f32 %v754_v3  ;;  %v857_v26 = vand.u32 2147483648, %v754_v3  ;;  %vm851_vm0 = vweird.f32 %v754_v3 }
  0x83   : > { %v723_v16 = vadd.f32 %v1216_v32, %v711_v41  ;;  %v855_v2 = vand.u32 2147483647, %v754_v3 }
  0x84   : > { %v839_v50 = vsel %vm838_vm12, %v1058_v18, %v835_v53  ;;  %v858_v61 = vor.u32 1.1754944e-38, %v857_v26 }
  0x85   : > { %v844_v1 = vsel %vm841_vm13, %v843_v48, %v839_v50  ;;  %v1019_v54 = vmul.f32 -1.442695, %v723_v16  ;;  %vm856_vm15 = vcmp.eq.f32.partialorder %v855_v2, 8.507059e+37 }
  0x86   : > { %v881_v27 = vmul.f32 %v844_v1, %v1535_v13 }
  0x87   : > { %1063 = vpow2.f32 %v1019_v54 }
  0x88   : > { %890 = vst.msk [vmem:[%s1349_s30 + $0x28] sm:$0xff] %vm884_vm8, %v881_v27  ;;  %v902_v56 = vsel %vm884_vm8, %v881_v27, 0.0  ;;  %v1062_v10 = vpop.eup %1061 }
  0x89   : > { %v903_v45 = vadd.f32 %v902_v56, %v901_v47  ;;  %v847_v55 = vmul.f32 %v1062_v10, %v754_v3  ;;  %vm852_vm1 = vweird.f32 %v1062_v10 }
  0x8a   : > { %vm853_vm14 = vmor %vm851_vm0, %vm852_vm1 }
  0x8b   : > { %v848_v25 = vsub.f32 1.0, %v847_v55 }
  0x8d   : > { %v1064_v32 = vpop.eup %1063  ;;  %v849_v8 = vmul.f32 %v1062_v10, %v848_v25 }
  0x8e   : > { %v755_v13 = vadd.f32 1.0, %v1064_v32 }
  0x8f   : > { %v850_v57 = vadd.f32 %v1062_v10, %v849_v8 }
  0x90   : > { %1065 = vrcp.f32 %v755_v13  ;;  %v872_v5 = vand.u32 2147483648, %v755_v13  ;;  %vm866_vm2 = vweird.f32 %v755_v13  ;;  %v870_v49 = vand.u32 2147483647, %v755_v13 }
  0x91   : > { %v854_v34 = vsel %vm853_vm14, %v1062_v10, %v850_v57  ;;  %1067 = vrcp.f32 %v1077_v14 }
  0x92   : > { %v859_v7 = vsel %vm856_vm15, %v858_v61, %v854_v34  ;;  %v873_v21 = vor.u32 1.1754944e-38, %v872_v5  ;;  %vm871_vm5 = vcmp.eq.f32.partialorder %v870_v49, 8.507059e+37 }
  0x93   : > { %v882_v60 = vmul.f32 %v859_v7, %v1577_v19 }
  0x95   : > { %891 = vst.msk [vmem:[%s1349_s30 + $0x30] sm:$0xff] %vm884_vm8, %v882_v60  ;;  %v904_v4 = vsel %vm884_vm8, %v882_v60, 0.0 }
  0x96   : > { %v1066_v62 = vpop.eup %1065  ;;  %v905_v63 = vadd.f32 %v904_v4, %v903_v45 }
  0x97   : > { %v862_v17 = vmul.f32 %v1066_v62, %v755_v13  ;;  %vm867_vm3 = vweird.f32 %v1066_v62  ;;  %v1068_v20 = vpop.eup %1067 }
  0x98   : > { %vm868_vm4 = vmor %vm866_vm2, %vm867_vm3  ;;  %v915_v22 = vmul.f32 64.0, %v1068_v20  ;;  %vm919_vm6 = vweird.f32 %v1068_v20 }
  0x99   : > { %v863_v58 = vsub.f32 1.0, %v862_v17 }
  0x9a   : > { %v916_v30 = vsub.f32 1.0, %v915_v22 }
  0x9b   : > { %v864_v11 = vmul.f32 %v1066_v62, %v863_v58 }
  0x9c   : > { %v917_v18 = vmul.f32 %v1068_v20, %v916_v30 }
  0x9d   : > { %v865_v19 = vadd.f32 %v1066_v62, %v864_v11 }
  0x9e   : > { %v918_v0 = vadd.f32 %v1068_v20, %v917_v18 }
  0x9f   : > { %v869_v51 = vsel %vm868_vm4, %v1066_v62, %v865_v19 }
  0xa0   : > { %v874_v23 = vsel %vm871_vm5, %v873_v21, %v869_v51  ;;  %v920_v38 = vsel %vm919_vm6, %v1068_v20, %v918_v0 }
  0xa1   : > { %v883_v28 = vmul.f32 %v874_v23, %v723_v16 }
  0xa3   : > { %892 = vst.msk [vmem:[%s1349_s30 + $0x38] sm:$0xff] %vm884_vm8, %v883_v28  ;;  %v906_v29 = vsel %vm884_vm8, %v883_v28, 0.0 }
  0xa4   : > { %v907_v31 = vadd.f32 %v906_v29, %v905_v63 }
  0xa6   : > { %v908_v33 = vrot.slane %v907_v31, 4 }
  0xa8   : > { %v909_v35 = vadd.f32 %v908_v33, %v907_v31 }
  0xaa   : > { %v910_v36 = vrot.slane %v909_v35, 2 }
  0xac   : > { %v911_v37 = vadd.f32 %v910_v36, %v909_v35 }
  0xae   : > { %v912_v12 = vrot.slane %v911_v37, 1 }
  0xb0   : > { %v913_v15 = vadd.f32 %v912_v12, %v911_v37 }
  0xb2   : > { %v921_v39 = vmul.f32 %v920_v38, %v913_v15 }
  0xb4   : > { %923 = vst.msk [vmem:[%s206_s7] sm:$0x1] %vm922_vm7, %v921_v39 }
  0xb5 PF: > { %s15_s15 = sadd.s32 1, %s1075_s15  }
  0xb6   : > { %p12_p4 = scmp.ge.s32.totalorder %s15_s15, 4  }
  0xb8   :  { %14 = sbr.rel (!%p12_p4) target bundleno = 1 (0x1), region = 74 }

// kernel: two_headed_efficientnet_forward.14
= control target key start
LH: loop header
LB: loop body
LE: loop exit
PB: predicated region body
PF: predicated region fallthrough
CT: control target
= control target key end

     0   :  { %vm19_vm0 = vcmask 523264   ;;  %v658_v3 = vmov 0.0   ;;  %vm79_vm1 = vcmask 130048   ;;  %s1094_s1 = inlined_call_operand.vmem [shape: f32[16,64], index: 1, kind: input, shape index: {}]   ;;  %s1095_s0 = inlined_call_operand.vmem [shape: f32[128,16], index: 0, kind: input, shape index: {}]   ;;  %s1096_s2 = inlined_call_operand.vmem [shape: f32[1,64], index: 2, kind: input, shape index: {}]   ;;  %s1097_s3 = inlined_call_operand.vmem [shape: f32[128,64], index: 3, kind: output, shape index: {}]  }
   0x1   :  { %v76_v0 = vld [vmem:[%s1094_s1] sm:$0xff]  ;;  %v77_v1 = vld [vmem:[%s1094_s1 + $0x8] sm:$0xff]  ;;  %20 = vst.msk [vmem:[#allocation2] sm:$0xff] %vm19_vm0, %v658_v3  ;;  %v54_v16 = vld [vmem:[%s1095_s0 + $0x10] sm:$0xff] }
   0x2   :  { %v52_v2 = vld [vmem:[%s1095_s0] sm:$0xff]  ;;  %v78_v4 = vpack.c.bf16 %v77_v1, %v76_v0  ;;  %v53_v5 = vld [vmem:[%s1095_s0 + $0x8] sm:$0xff]  ;;  %21 = vst.msk [vmem:[#allocation2 + $0x8] sm:$0xff] %vm19_vm0, %v658_v3  ;;  %v55_v17 = vld [vmem:[%s1095_s0 + $0x18] sm:$0xff] }
   0x3   :  { %v56_v6 = vld [vmem:[%s1095_s0 + $0x20] sm:$0xff]  ;;  %v57_v7 = vld [vmem:[%s1095_s0 + $0x28] sm:$0xff]  ;;  %v68_v8 = vpack.c.bf16 %v53_v5, %v52_v2  ;;  %22 = vst.msk [vmem:[#allocation2 + $0x10] sm:$0xff] %vm19_vm0, %v658_v3  ;;  %v58_v18 = vld [vmem:[%s1095_s0 + $0x30] sm:$0xff]  ;;  %v69_v24 = vpack.c.bf16 %v55_v17, %v54_v16 }
   0x4   :  { %v70_v9 = vpack.c.bf16 %v57_v7, %v56_v6  ;;  %v60_v10 = vld [vmem:[%s1095_s0 + $0x40] sm:$0xff]  ;;  %v61_v11 = vld [vmem:[%s1095_s0 + $0x48] sm:$0xff]  ;;  %111 = vmatpush.bf16.msra.mxu0 %v78_v4  ;;  %589 = vmatpush.bf16.msra.mxu1 %v78_v4  ;;  %23 = vst.msk [vmem:[#allocation2 + $0x18] sm:$0xff] %vm19_vm0, %v658_v3  ;;  %v59_v19 = vld [vmem:[%s1095_s0 + $0x38] sm:$0xff] }
   0x5   :  { %v64_v12 = vld [vmem:[%s1095_s0 + $0x60] sm:$0xff]  ;;  %v72_v13 = vpack.c.bf16 %v61_v11, %v60_v10  ;;  %v65_v14 = vld [vmem:[%s1095_s0 + $0x68] sm:$0xff]  ;;  %590 = vmatpush.bf16.msra.mxu2 %v78_v4  ;;  %591 = vmatpush.bf16.msra.mxu3 %v78_v4  ;;  %24 = vst.msk [vmem:[#allocation2 + $0x20] sm:$0xff] %vm19_vm0, %v658_v3  ;;  %v62_v20 = vld [vmem:[%s1095_s0 + $0x50] sm:$0xff]  ;;  %v71_v25 = vpack.c.bf16 %v59_v19, %v58_v18 }
   0x6   :  { %v74_v15 = vpack.c.bf16 %v65_v14, %v64_v12  ;;  %25 = vst.msk [vmem:[#allocation2 + $0x28] sm:$0xff] %vm19_vm0, %v658_v3  ;;  %v63_v21 = vld [vmem:[%s1095_s0 + $0x58] sm:$0xff]  ;;  %v66_v22 = vld [vmem:[%s1095_s0 + $0x70] sm:$0xff]  ;;  %v762_v38 = vld [vmem:[%s1096_s2] ss:$0 sm:$0xff] }
   0x7   :  { %565 = vmatmul.msk.bf16.vlgmr.msra.gmra.mxu0 %vm79_vm1, %v68_v8  ;;  %567 = vmatmul.msk.bf16.vlgmr.msra.gmra.mxu1 %vm79_vm1, %v70_v9  ;;  %26 = vst.msk [vmem:[#allocation2 + $0x30] sm:$0xff] %vm19_vm0, %v658_v3  ;;  %v67_v23 = vld [vmem:[%s1095_s0 + $0x78] sm:$0xff]  ;;  %v73_v26 = vpack.c.bf16 %v63_v21, %v62_v20 }
   0x8   :  { %569 = vmatmul.msk.bf16.vlgmr.msra.gmra.mxu2 %vm79_vm1, %v72_v13  ;;  %571 = vmatmul.msk.bf16.vlgmr.msra.gmra.mxu3 %vm79_vm1, %v74_v15  ;;  %27 = vst.msk [vmem:[#allocation2 + $0x38] sm:$0xff] %vm19_vm0, %v658_v3  ;;  %v75_v27 = vpack.c.bf16 %v67_v23, %v66_v22  ;;  %v36_v28 = vld [vmem:[#allocation2] sm:$0xff] }
   0x9   :  { %28 = vst.msk [vmem:[#allocation2 + $0x40] sm:$0xff] %vm19_vm0, %v658_v3  ;;  %v37_v36 = vld [vmem:[#allocation2 + $0x8] sm:$0xff] }
   0xa   :  { %29 = vst.msk [vmem:[#allocation2 + $0x48] sm:$0xff] %vm19_vm0, %v658_v3  ;;  %v38_v55 = vld [vmem:[#allocation2 + $0x10] sm:$0xff] }
   0xb   :  { %30 = vst.msk [vmem:[#allocation2 + $0x50] sm:$0xff] %vm19_vm0, %v658_v3 }
   0xc   :  { %31 = vst.msk [vmem:[#allocation2 + $0x58] sm:$0xff] %vm19_vm0, %v658_v3  ;;  %v40_v29 = vld [vmem:[#allocation2 + $0x20] sm:$0xff] }
   0xd   :  { %32 = vst.msk [vmem:[#allocation2 + $0x60] sm:$0xff] %vm19_vm0, %v658_v3  ;;  %v41_v37 = vld [vmem:[#allocation2 + $0x28] sm:$0xff] }
   0xe   :  { %33 = vst.msk [vmem:[#allocation2 + $0x68] sm:$0xff] %vm19_vm0, %v658_v3  ;;  %v42_v56 = vld [vmem:[#allocation2 + $0x30] sm:$0xff] }
   0xf   :  { %34 = vst.msk [vmem:[#allocation2 + $0x70] sm:$0xff] %vm19_vm0, %v658_v3 }
  0x10   :  { %35 = vst.msk [vmem:[#allocation2 + $0x78] sm:$0xff] %vm19_vm0, %v658_v3  ;;  %v44_v34 = vld [vmem:[#allocation2 + $0x40] sm:$0xff] }
  0x11   :  { %v45_v52 = vld [vmem:[#allocation2 + $0x48] sm:$0xff] }
  0x12   :  { %v46_v18 = vld [vmem:[#allocation2 + $0x50] sm:$0xff] }
  0x14   :  { %v48_v35 = vld [vmem:[#allocation2 + $0x60] sm:$0xff] }
  0x15   :  { %v49_v53 = vld [vmem:[#allocation2 + $0x68] sm:$0xff] }
  0x16   :  { %v50_v20 = vld [vmem:[#allocation2 + $0x70] sm:$0xff] }
  0x17   :  { %566 = vmatmul.msk.bf16.gmra.mxu0 %vm79_vm1, %v69_v24  ;;  %568 = vmatmul.msk.bf16.gmra.mxu1 %vm79_vm1, %v71_v25  ;;  %v39_v25 = vld [vmem:[#allocation2 + $0x18] sm:$0xff] }
  0x18   :  { %570 = vmatmul.msk.bf16.gmra.mxu2 %vm79_vm1, %v73_v26  ;;  %572 = vmatmul.msk.bf16.gmra.mxu3 %vm79_vm1, %v75_v27 }
  0x84   :  { %v113_v30 = vpop.f32.mrf.mxu0  ;;  %v123_v31 = vpop.f32.mrf.mxu1 }
  0x85   :  { %v153_v32 = vadd.f32 %v113_v30, %v36_v28  ;;  %v157_v33 = vadd.f32 %v123_v31, %v40_v29  ;;  %v43_v30 = vld [vmem:[#allocation2 + $0x38] sm:$0xff] }
  0x87   :  { %170 = vst.msk [vmem:[#allocation2] sm:$0xff] %vm19_vm0, %v153_v32 }
  0x88   :  { %174 = vst.msk [vmem:[#allocation2 + $0x20] sm:$0xff] %vm19_vm0, %v157_v33 }
  0x8b   :  { %v133_v39 = vpop.f32.mrf.mxu2  ;;  %v143_v40 = vpop.f32.mrf.mxu3 }
  0x8c   :  { %v161_v41 = vadd.f32 %v133_v39, %v44_v34  ;;  %v165_v42 = vadd.f32 %v143_v40, %v48_v35  ;;  %v115_v43 = vpop.f32.mrf.mxu0  ;;  %v125_v44 = vpop.f32.mrf.mxu1 }
  0x8d   :  { %v154_v45 = vadd.f32 %v115_v43, %v37_v36  ;;  %v158_v46 = vadd.f32 %v125_v44, %v41_v37 }
  0x8e   :  { %v189_v47 = vld [vmem:[#allocation2] sm:$0xff]  ;;  %178 = vst.msk [vmem:[#allocation2 + $0x40] sm:$0xff] %vm19_vm0, %v161_v41 }
  0x8f   :  { %v766_v48 = vadd.f32 %v762_v38, %v189_v47  ;;  %v193_v49 = vld [vmem:[#allocation2 + $0x20] sm:$0xff]  ;;  %182 = vst.msk [vmem:[#allocation2 + $0x60] sm:$0xff] %vm19_vm0, %v165_v42 }
  0x90   :  { %v770_v50 = vadd.f32 %v762_v38, %v193_v49  ;;  %171 = vst.msk [vmem:[#allocation2 + $0x8] sm:$0xff] %vm19_vm0, %v154_v45 }
  0x91   :  { %v573_v51 = vmul.f32 -1.442695, %v766_v48  ;;  %175 = vst.msk [vmem:[#allocation2 + $0x28] sm:$0xff] %vm19_vm0, %v158_v46 }
  0x92   :  { %v577_v54 = vmul.f32 -1.442695, %v770_v50 }
  0x93   :  { %594 = vpow2.f32 %v573_v51  ;;  %v135_v57 = vpop.f32.mrf.mxu2  ;;  %v145_v58 = vpop.f32.mrf.mxu3 }
  0x94   :  { %596 = vpow2.f32 %v577_v54  ;;  %v162_v59 = vadd.f32 %v135_v57, %v45_v52  ;;  %v166_v60 = vadd.f32 %v145_v58, %v49_v53  ;;  %v118_v61 = vpop.f32.mrf.mxu0  ;;  %v128_v62 = vpop.f32.mrf.mxu1 }
  0x95   :  { %v197_v63 = vld [vmem:[#allocation2 + $0x40] sm:$0xff]  ;;  %v155_v0 = vadd.f32 %v118_v61, %v38_v55  ;;  %v159_v1 = vadd.f32 %v128_v62, %v42_v56 }
  0x96   :  { %v777_v2 = vadd.f32 %v762_v38, %v197_v63  ;;  %v201_v3 = vld [vmem:[#allocation2 + $0x60] sm:$0xff]  ;;  %179 = vst.msk [vmem:[#allocation2 + $0x48] sm:$0xff] %vm19_vm0, %v162_v59 }
  0x97   :  { %v781_v4 = vadd.f32 %v762_v38, %v201_v3  ;;  %v190_v5 = vld [vmem:[#allocation2 + $0x8] sm:$0xff]  ;;  %183 = vst.msk [vmem:[#allocation2 + $0x68] sm:$0xff] %vm19_vm0, %v166_v60 }
  0x98   :  { %v581_v6 = vmul.f32 -1.442695, %v777_v2  ;;  %v786_v7 = vadd.f32 %v762_v38, %v190_v5  ;;  %v194_v8 = vld [vmem:[#allocation2 + $0x28] sm:$0xff]  ;;  %172 = vst.msk [vmem:[#allocation2 + $0x10] sm:$0xff] %vm19_vm0, %v155_v0 }
  0x99   :  { %v595_v9 = vpop.eup %594  ;;  %v585_v10 = vmul.f32 -1.442695, %v781_v4  ;;  %v791_v11 = vadd.f32 %v762_v38, %v194_v8  ;;  %176 = vst.msk [vmem:[#allocation2 + $0x30] sm:$0xff] %vm19_vm0, %v159_v1 }
  0x9a   :  { %v597_v12 = vpop.eup %596  ;;  %v794_v13 = vadd.f32 1.0, %v595_v9  ;;  %598 = vpow2.f32 %v581_v6  ;;  %v574_v14 = vmul.f32 -1.442695, %v786_v7 }
  0x9b   :  { %v797_v15 = vadd.f32 1.0, %v597_v12  ;;  %600 = vpow2.f32 %v585_v10  ;;  %v578_v16 = vmul.f32 -1.442695, %v791_v11  ;;  %v138_v19 = vpop.f32.mrf.mxu2  ;;  %v148_v21 = vpop.f32.mrf.mxu3 }
  0x9c   :  { %602 = vrcp.f32 %v794_v13  ;;  %v298_v22 = vand.u32 2147483647, %v794_v13  ;;  %v120_v26 = vpop.f32.mrf.mxu0  ;;  %v300_v27 = vand.u32 2147483648, %v794_v13  ;;  %v130_v31 = vpop.f32.mrf.mxu1  ;;  %v163_v35 = vadd.f32 %v138_v19, %v46_v18 }
  0x9d   :  { %604 = vrcp.f32 %v797_v15  ;;  %v198_v17 = vld [vmem:[#allocation2 + $0x48] sm:$0xff]  ;;  %v358_v28 = vand.u32 2147483647, %v797_v15  ;;  %v360_v29 = vand.u32 2147483648, %v797_v15  ;;  %v167_v36 = vadd.f32 %v148_v21, %v50_v20 }
  0x9e   :  { %606 = vpow2.f32 %v574_v14  ;;  %v804_v23 = vadd.f32 %v762_v38, %v198_v17  ;;  %v202_v24 = vld [vmem:[#allocation2 + $0x68] sm:$0xff]  ;;  %v156_v40 = vadd.f32 %v120_v26, %v39_v25  ;;  %vm294_vm2 = vweird.f32 %v794_v13  ;;  %180 = vst.msk [vmem:[#allocation2 + $0x50] sm:$0xff] %vm19_vm0, %v163_v35 }
  0x9f   :  { %608 = vpow2.f32 %v578_v16  ;;  %v811_v34 = vadd.f32 %v762_v38, %v202_v24  ;;  %vm354_vm3 = vweird.f32 %v797_v15  ;;  %v191_v43 = vld [vmem:[#allocation2 + $0x10] sm:$0xff]  ;;  %v160_v45 = vadd.f32 %v130_v31, %v43_v30  ;;  %184 = vst.msk [vmem:[#allocation2 + $0x70] sm:$0xff] %vm19_vm0, %v167_v36 }
  0xa0   :  { %v599_v32 = vpop.eup %598  ;;  %v582_v33 = vmul.f32 -1.442695, %v804_v23  ;;  %v195_v44 = vld [vmem:[#allocation2 + $0x30] sm:$0xff]  ;;  %vm821_vm4 = vcmp.eq.f32.partialorder %v298_v22, 8.507059e+37  ;;  %v301_v51 = vor.u32 1.1754944e-38, %v300_v27  ;;  %vm828_vm5 = vcmp.eq.f32.partialorder %v358_v28, 8.507059e+37 }
  0xa1   :  { %v601_v37 = vpop.eup %600  ;;  %v813_v39 = vadd.f32 1.0, %v599_v32  ;;  %v361_v55 = vor.u32 1.1754944e-38, %v360_v29  ;;  %v586_v56 = vmul.f32 -1.442695, %v811_v34  ;;  %173 = vst.msk [vmem:[#allocation2 + $0x18] sm:$0xff] %vm19_vm0, %v156_v40  ;;  %v836_v59 = vadd.f32 %v762_v38, %v191_v43 }
  0xa2   :  { %v603_v41 = vpop.eup %602  ;;  %v817_v42 = vadd.f32 1.0, %v601_v37  ;;  %v839_v60 = vadd.f32 %v762_v38, %v195_v44  ;;  %177 = vst.msk [vmem:[#allocation2 + $0x38] sm:$0xff] %vm19_vm0, %v160_v45 }
  0xa3   :  { %v605_v46 = vpop.eup %604  ;;  %v290_v47 = vmul.f32 %v603_v41, %v794_v13  ;;  %610 = vrcp.f32 %v813_v39  ;;  %vm295_vm6 = vweird.f32 %v603_v41  ;;  %v418_v62 = vand.u32 2147483647, %v813_v39 }
  0xa4   :  { %v607_v52 = vpop.eup %606  ;;  %v350_v53 = vmul.f32 %v605_v46, %v797_v15  ;;  %612 = vpow2.f32 %v582_v33  ;;  %v420_v63 = vand.u32 2147483648, %v813_v39  ;;  %v480_v1 = vand.u32 2147483648, %v817_v42  ;;  %vm296_vm9 = vmor %vm294_vm2, %vm295_vm6 }
  0xa5   :  { %v609_v57 = vpop.eup %608  ;;  %v291_v58 = vsub.f32 1.0, %v290_v47  ;;  %614 = vrcp.f32 %v817_v42  ;;  %v845_v3 = vadd.f32 1.0, %v607_v52  ;;  %vm355_vm7 = vweird.f32 %v605_v46 }
  0xa6   :  { %v351_v61 = vsub.f32 1.0, %v350_v53  ;;  %v847_v5 = vadd.f32 1.0, %v609_v57  ;;  %v478_v8 = vand.u32 2147483647, %v817_v42  ;;  %616 = vpow2.f32 %v586_v56  ;;  %vm356_vm12 = vmor %vm354_vm3, %vm355_vm7 }
  0xa7   :  { %v292_v0 = vmul.f32 %v603_v41, %v291_v58  ;;  %vm414_vm8 = vweird.f32 %v813_v39  ;;  %618 = vrcp.f32 %v845_v3  ;;  %v575_v12 = vmul.f32 -1.442695, %v836_v59 }
  0xa8   :  { %v352_v6 = vmul.f32 %v605_v46, %v351_v61  ;;  %vm857_vm10 = vcmp.eq.f32.partialorder %v418_v62, 8.507059e+37  ;;  %vm474_vm11 = vweird.f32 %v817_v42  ;;  %v421_v21 = vor.u32 1.1754944e-38, %v420_v63 }
  0xa9   :  { %v611_v9 = vpop.eup %610  ;;  %v293_v10 = vadd.f32 %v603_v41, %v292_v0  ;;  %v481_v22 = vor.u32 1.1754944e-38, %v480_v1  ;;  %620 = vrcp.f32 %v847_v5  ;;  %vm869_vm13 = vcmp.eq.f32.partialorder %v478_v8, 8.507059e+37 }
  0xaa   :  { %v613_v14 = vpop.eup %612  ;;  %v353_v16 = vadd.f32 %v605_v46, %v352_v6  ;;  %v410_v17 = vmul.f32 %v611_v9, %v813_v39  ;;  %v313_v29 = vand.u32 2147483647, %v845_v3  ;;  %v579_v30 = vmul.f32 -1.442695, %v839_v60 }
  0xab   :  { %v615_v19 = vpop.eup %614  ;;  %v297_v20 = vsel %vm296_vm9, %v603_v41, %v293_v10  ;;  %vm415_vm14 = vweird.f32 %v611_v9  ;;  %vm309_vm15 = vweird.f32 %v845_v3  ;;  %v885_v37 = vadd.f32 1.0, %v613_v14  ;;  %v199_v14 = vld [vmem:[#allocation2 + $0x50] sm:$0xff] }
  0xac   :  { %v302_v13 = vsel %vm821_vm4, %v301_v51, %v297_v20  ;;  %v357_v24 = vsel %vm356_vm12, %v605_v46, %v353_v16  ;;  %v411_v25 = vsub.f32 1.0, %v410_v17  ;;  %v470_v26 = vmul.f32 %v615_v19, %v817_v42  ;;  %v617_v31 = vpop.eup %616  ;;  %vm416_vm2 = vmor %vm414_vm8, %vm415_vm14 }
  0xad   :  { %v529_v28 = vmul.f32 %v302_v13, %v766_v48  ;;  %v362_v15 = vsel %vm828_vm5, %v361_v55, %v357_v24  ;;  %v619_v36 = vpop.eup %618  ;;  %v315_v48 = vand.u32 2147483648, %v845_v3  ;;  %622 = vpow2.f32 %v575_v12 }
  0xae   :  { %v533_v32 = vmul.f32 %v362_v15, %v770_v50  ;;  %v412_v33 = vmul.f32 %v611_v9, %v411_v25  ;;  %v471_v35 = vsub.f32 1.0, %v470_v26  ;;  %vm475_vm1 = vweird.f32 %v615_v19  ;;  %v192_v26 = vld [vmem:[#allocation2 + $0x18] sm:$0xff] }
  0xaf   :  { %545 = vst.msk [vmem:[%s1097_s3] sm:$0xff] %vm19_vm0, %v529_v28  ;;  %v305_v41 = vmul.f32 %v619_v36, %v845_v3  ;;  %v621_v43 = vpop.eup %620  ;;  %vm894_vm3 = vcmp.eq.f32.partialorder %v313_v29, 8.507059e+37  ;;  %vm369_vm4 = vweird.f32 %v847_v5  ;;  %624 = vrcp.f32 %v885_v37  ;;  %vm476_vm5 = vmor %vm474_vm11, %vm475_vm1  ;;  %v196_v15 = vld [vmem:[#allocation2 + $0x38] sm:$0xff] }
  0xb0   :  { %549 = vst.msk [vmem:[%s1097_s3 + $0x20] sm:$0xff] %vm19_vm0, %v533_v32  ;;  %v413_v50 = vadd.f32 %v611_v9, %v412_v33  ;;  %v472_v40 = vmul.f32 %v615_v19, %v471_v35  ;;  %v900_v45 = vadd.f32 1.0, %v617_v31  ;;  %v365_v51 = vmul.f32 %v621_v43, %v847_v5  ;;  %v47_v29 = vld [vmem:[#allocation2 + $0x58] sm:$0xff] }
  0xb1   :  { %v306_v49 = vsub.f32 1.0, %v305_v41  ;;  %vm310_vm6 = vweird.f32 %v619_v36  ;;  %v373_v39 = vand.u32 2147483647, %v847_v5  ;;  %v375_v53 = vand.u32 2147483648, %v847_v5 }
  0xb2   :  { %v417_v46 = vsel %vm416_vm2, %v611_v9, %v413_v50  ;;  %v473_v47 = vadd.f32 %v615_v19, %v472_v40  ;;  %v366_v57 = vsub.f32 1.0, %v365_v51  ;;  %v316_v62 = vor.u32 1.1754944e-38, %v315_v48  ;;  %vm311_vm8 = vmor %vm309_vm15, %vm310_vm6 }
  0xb3   :  { %v422_v52 = vsel %vm857_vm10, %v421_v21, %v417_v46  ;;  %v307_v56 = vmul.f32 %v619_v36, %v306_v49  ;;  %v623_v58 = vpop.eup %622  ;;  %vm370_vm7 = vweird.f32 %v621_v43  ;;  %626 = vrcp.f32 %v900_v45 }
  0xb4   :  { %v537_v54 = vmul.f32 %v422_v52, %v777_v2  ;;  %v477_v55 = vsel %vm476_vm5, %v615_v19, %v473_v47  ;;  %v367_v2 = vmul.f32 %v621_v43, %v366_v57  ;;  %v433_v0 = vand.u32 2147483647, %v885_v37  ;;  %vm371_vm10 = vmor %vm369_vm4, %vm370_vm7 }
  0xb5   :  { %v482_v61 = vsel %vm869_vm13, %v481_v22, %v477_v55  ;;  %v308_v63 = vadd.f32 %v619_v36, %v307_v56  ;;  %v625_v1 = vpop.eup %624  ;;  %vm922_vm9 = vcmp.eq.f32.partialorder %v373_v39, 8.507059e+37  ;;  %v435_v8 = vand.u32 2147483648, %v885_v37  ;;  %v203_v22 = vld [vmem:[#allocation2 + $0x70] sm:$0xff] }
  0xb6   :  { %553 = vst.msk [vmem:[%s1097_s3 + $0x40] sm:$0xff] %vm19_vm0, %v537_v54  ;;  %v541_v42 = vmul.f32 %v482_v61, %v781_v4  ;;  %v927_v9 = vadd.f32 1.0, %v623_v58  ;;  %628 = vpow2.f32 %v579_v30  ;;  %v368_v10 = vadd.f32 %v621_v43, %v367_v2  ;;  %v140_v30 = vpop.f32.mrf.mxu2 }
  0xb7   :  { %v312_v4 = vsel %vm311_vm8, %v619_v36, %v308_v63  ;;  %v376_v12 = vor.u32 1.1754944e-38, %v375_v53  ;;  %v425_v3 = vmul.f32 %v625_v1, %v885_v37  ;;  %vm429_vm11 = vweird.f32 %v885_v37  ;;  %v51_v37 = vld [vmem:[#allocation2 + $0x78] sm:$0xff]  ;;  %v150_v53 = vpop.f32.mrf.mxu3 }
  0xb8   :  { %557 = vst.msk [vmem:[%s1097_s3 + $0x60] sm:$0xff] %vm19_vm0, %v541_v42  ;;  %v317_v16 = vsel %vm894_vm3, %v316_v62, %v312_v4  ;;  %v493_v17 = vand.u32 2147483647, %v900_v45  ;;  %630 = vrcp.f32 %v927_v9  ;;  %v372_v19 = vsel %vm371_vm10, %v621_v43, %v368_v10 }
  0xb9   :  { %v530_v18 = vmul.f32 %v317_v16, %v786_v7  ;;  %v426_v20 = vsub.f32 1.0, %v425_v3  ;;  %vm943_vm12 = vcmp.eq.f32.partialorder %v433_v0, 8.507059e+37  ;;  %v627_v13 = vpop.eup %626  ;;  %v377_v5 = vsel %vm922_vm9, %v376_v12, %v372_v19 }
  0xba   :  { %v436_v24 = vor.u32 1.1754944e-38, %v435_v8  ;;  %vm489_vm13 = vweird.f32 %v900_v45  ;;  %v951_v25 = vadd.f32 %v762_v38, %v199_v14  ;;  %v534_v7 = vmul.f32 %v377_v5, %v791_v11 }
  0xbb   :  { %546 = vst.msk [vmem:[%s1097_s3 + $0x8] sm:$0xff] %vm19_vm0, %v530_v18  ;;  %v427_v27 = vmul.f32 %v625_v1, %v426_v20  ;;  %vm430_vm14 = vweird.f32 %v625_v1  ;;  %v485_v28 = vmul.f32 %v627_v13, %v900_v45  ;;  %vm959_vm15 = vcmp.eq.f32.partialorder %v493_v17, 8.507059e+37 }
  0xbc   :  { %v629_v31 = vpop.eup %628  ;;  %v495_v33 = vand.u32 2147483648, %v900_v45  ;;  %v583_v35 = vmul.f32 -1.442695, %v951_v25  ;;  %v966_v36 = vadd.f32 %v762_v38, %v203_v22  ;;  %550 = vst.msk [vmem:[%s1097_s3 + $0x28] sm:$0xff] %vm19_vm0, %v534_v7  ;;  %v975_v40 = vadd.f32 %v762_v38, %v192_v26  ;;  %vm431_vm1 = vmor %vm429_vm11, %vm430_vm14 }
  0xbd   :  { %v428_v11 = vadd.f32 %v625_v1, %v427_v27  ;;  %v486_v48 = vsub.f32 1.0, %v485_v28  ;;  %v972_v50 = vadd.f32 1.0, %v629_v31  ;;  %v982_v44 = vadd.f32 %v762_v38, %v196_v15 }
  0xbe   :  { %v631_v41 = vpop.eup %630  ;;  %632 = vpow2.f32 %v583_v35  ;;  %v587_v43 = vmul.f32 -1.442695, %v966_v36  ;;  %v164_v46 = vadd.f32 %v140_v30, %v47_v29  ;;  %vm490_vm2 = vweird.f32 %v627_v13 }
  0xbf   :  { %v432_v47 = vsel %vm431_vm1, %v625_v1, %v428_v11  ;;  %v487_v49 = vmul.f32 %v627_v13, %v486_v48  ;;  %v320_v51 = vmul.f32 %v631_v41, %v927_v9  ;;  %v496_v39 = vor.u32 1.1754944e-38, %v495_v33  ;;  %vm491_vm4 = vmor %vm489_vm13, %vm490_vm2 }
  0xc0   :  { %v437_v52 = vsel %vm943_vm12, %v436_v24, %v432_v47  ;;  %vm324_vm3 = vweird.f32 %v927_v9  ;;  %634 = vrcp.f32 %v972_v50  ;;  %181 = vst.msk [vmem:[#allocation2 + $0x58] sm:$0xff] %vm19_vm0, %v164_v46  ;;  %v328_v57 = vand.u32 2147483647, %v927_v9 }
  0xc1   :  { %v538_v54 = vmul.f32 %v437_v52, %v804_v23  ;;  %v488_v55 = vadd.f32 %v627_v13, %v487_v49  ;;  %v321_v56 = vsub.f32 1.0, %v320_v51  ;;  %v330_v58 = vand.u32 2147483648, %v927_v9 }
  0xc2   :  { %636 = vpow2.f32 %v587_v43  ;;  %v576_v61 = vmul.f32 -1.442695, %v975_v40  ;;  %v580_v62 = vmul.f32 -1.442695, %v982_v44  ;;  %vm325_vm5 = vweird.f32 %v631_v41 }
  0xc3   :  { %554 = vst.msk [vmem:[%s1097_s3 + $0x48] sm:$0xff] %vm19_vm0, %v538_v54  ;;  %v492_v23 = vsel %vm491_vm4, %v627_v13, %v488_v55  ;;  %v322_v42 = vmul.f32 %v631_v41, %v321_v56  ;;  %v168_v63 = vadd.f32 %v150_v53, %v51_v37  ;;  %vm326_vm6 = vmor %vm324_vm3, %vm325_vm5  ;;  %v331_v4 = vor.u32 1.1754944e-38, %v330_v58 }
  0xc4   :  { %v633_v2 = vpop.eup %632  ;;  %v497_v45 = vsel %vm959_vm15, %v496_v39, %v492_v23  ;;  %638 = vpow2.f32 %v576_v61  ;;  %vm329_vm7 = vcmp.eq.f32.partialorder %v328_v57, 8.507059e+37  ;;  %vm384_vm8 = vweird.f32 %v972_v50 }
  0xc5   :  { %v542_v0 = vmul.f32 %v497_v45, %v811_v34  ;;  %v323_v1 = vadd.f32 %v631_v41, %v322_v42  ;;  %v283_v6 = vadd.f32 1.0, %v633_v2  ;;  %640 = vpow2.f32 %v580_v62  ;;  %185 = vst.msk [vmem:[#allocation2 + $0x78] sm:$0xff] %vm19_vm0, %v168_v63 }
  0xc6   :  { %v635_v8 = vpop.eup %634  ;;  %v388_v19 = vand.u32 2147483647, %v972_v50  ;;  %v390_v20 = vand.u32 2147483648, %v972_v50 }
  0xc7   :  { %558 = vst.msk [vmem:[%s1097_s3 + $0x68] sm:$0xff] %vm19_vm0, %v542_v0  ;;  %v327_v10 = vsel %vm326_vm6, %v631_v41, %v323_v1  ;;  %v380_v12 = vmul.f32 %v635_v8, %v972_v50  ;;  %642 = vrcp.f32 %v283_v6  ;;  %v200_v14 = vld [vmem:[#allocation2 + $0x58] sm:$0xff]  ;;  %vm385_vm9 = vweird.f32 %v635_v8 }
  0xc8   :  { %v637_v34 = vpop.eup %636  ;;  %v332_v3 = vsel %vm329_vm7, %v331_v4, %v327_v10  ;;  %vm386_vm10 = vmor %vm384_vm8, %vm385_vm9  ;;  %v391_v27 = vor.u32 1.1754944e-38, %v390_v20  ;;  %vm389_vm11 = vcmp.eq.f32.partialorder %v388_v19, 8.507059e+37  ;;  %v448_v33 = vand.u32 2147483647, %v283_v6 }
  0xc9   :  { %v531_v16 = vmul.f32 %v332_v3, %v836_v59  ;;  %v381_v17 = vsub.f32 1.0, %v380_v12  ;;  %v1013_v18 = vadd.f32 1.0, %v637_v34  ;;  %v1024_v59 = vadd.f32 %v762_v38, %v200_v14 }
  0xca   :  { %v639_v9 = vpop.eup %638  ;;  %v450_v48 = vand.u32 2147483648, %v283_v6  ;;  %vm444_vm13 = vweird.f32 %v283_v6  ;;  %vm449_vm14 = vcmp.eq.f32.partialorder %v448_v33, 8.507059e+37 }
  0xcb   :  { %v641_v21 = vpop.eup %640  ;;  %547 = vst.msk [vmem:[%s1097_s3 + $0x10] sm:$0xff] %vm19_vm0, %v531_v16  ;;  %v382_v22 = vmul.f32 %v635_v8, %v381_v17  ;;  %644 = vrcp.f32 %v1013_v18  ;;  %v1026_v13 = vadd.f32 1.0, %v639_v9  ;;  %v584_v29 = vmul.f32 -1.442695, %v1024_v59 }
  0xcc   :  { %v1028_v5 = vadd.f32 1.0, %v641_v21  ;;  %v204_v24 = vld [vmem:[#allocation2 + $0x78] sm:$0xff]  ;;  %v508_v43 = vand.u32 2147483647, %v1013_v18  ;;  %v451_v51 = vor.u32 1.1754944e-38, %v450_v48  ;;  %vm504_vm1 = vweird.f32 %v1013_v18 }
  0xcd   :  { %v643_v26 = vpop.eup %642  ;;  %v383_v7 = vadd.f32 %v635_v8, %v382_v22  ;;  %646 = vrcp.f32 %v1026_v13  ;;  %v1033_v30 = vadd.f32 %v762_v38, %v204_v24  ;;  %v510_v38 = vand.u32 2147483648, %v1013_v18 }
  0xce   :  { %v440_v28 = vmul.f32 %v643_v26, %v283_v6  ;;  %648 = vrcp.f32 %v1028_v5  ;;  %vm445_vm12 = vweird.f32 %v643_v26  ;;  %vm1047_vm3 = vcmp.eq.f32.partialorder %v508_v43, 8.507059e+37 }
  0xcf   :  { %v387_v15 = vsel %vm386_vm10, %v635_v8, %v383_v7  ;;  %650 = vpow2.f32 %v584_v29  ;;  %v588_v46 = vmul.f32 -1.442695, %v1033_v30  ;;  %vm446_vm15 = vmor %vm444_vm13, %vm445_vm12  ;;  %v511_v56 = vor.u32 1.1754944e-38, %v510_v38 }
  0xd0   :  { %v392_v31 = vsel %vm389_vm11, %v391_v27, %v387_v15  ;;  %v441_v32 = vsub.f32 1.0, %v440_v28  ;;  %vm339_vm4 = vweird.f32 %v1026_v13  ;;  %v345_v23 = vand.u32 2147483648, %v1026_v13 }
  0xd1   :  { %v645_v35 = vpop.eup %644  ;;  %v535_v11 = vmul.f32 %v392_v31, %v839_v60  ;;  %652 = vpow2.f32 %v588_v46  ;;  %v343_v2 = vand.u32 2147483647, %v1026_v13  ;;  %v403_v0 = vand.u32 2147483647, %v1028_v5 }
  0xd2   :  { %v442_v50 = vmul.f32 %v643_v26, %v441_v32  ;;  %v500_v41 = vmul.f32 %v645_v35, %v1013_v18  ;;  %vm505_vm2 = vweird.f32 %v645_v35  ;;  %v405_v1 = vand.u32 2147483648, %v1028_v5 }
  0xd3   :  { %551 = vst.msk [vmem:[%s1097_s3 + $0x30] sm:$0xff] %vm19_vm0, %v535_v11  ;;  %v647_v47 = vpop.eup %646  ;;  %vm506_vm5 = vmor %vm504_vm1, %vm505_vm2  ;;  %v346_v3 = vor.u32 1.1754944e-38, %v345_v23  ;;  %vm399_vm9 = vweird.f32 %v1028_v5  ;;  %vm344_vm10 = vcmp.eq.f32.partialorder %v343_v2, 8.507059e+37  ;;  %vm404_vm12 = vcmp.eq.f32.partialorder %v403_v0, 8.507059e+37 }
  0xd4   :  { %v443_v49 = vadd.f32 %v643_v26, %v442_v50  ;;  %v501_v60 = vsub.f32 1.0, %v500_v41  ;;  %v335_v52 = vmul.f32 %v647_v47, %v1026_v13  ;;  %v649_v39 = vpop.eup %648  ;;  %vm340_vm6 = vweird.f32 %v647_v47 }
  0xd5   :  { %v395_v58 = vmul.f32 %v649_v39, %v1028_v5  ;;  %v651_v42 = vpop.eup %650  ;;  %vm400_vm7 = vweird.f32 %v649_v39  ;;  %vm341_vm8 = vmor %vm339_vm4, %vm340_vm6  ;;  %v406_v9 = vor.u32 1.1754944e-38, %v405_v1 }
  0xd6   :  { %v447_v37 = vsel %vm446_vm15, %v643_v26, %v443_v49  ;;  %v502_v53 = vmul.f32 %v645_v35, %v501_v60  ;;  %v336_v57 = vsub.f32 1.0, %v335_v52  ;;  %v284_v6 = vadd.f32 1.0, %v651_v42  ;;  %vm401_vm11 = vmor %vm399_vm9, %vm400_vm7 }
  0xd7   :  { %v452_v55 = vsel %vm449_vm14, %v451_v51, %v447_v37  ;;  %v396_v45 = vsub.f32 1.0, %v395_v58  ;;  %v653_v8 = vpop.eup %652 }
  0xd8   :  { %v539_v61 = vmul.f32 %v452_v55, %v951_v25  ;;  %v503_v62 = vadd.f32 %v645_v35, %v502_v53  ;;  %v337_v63 = vmul.f32 %v647_v47, %v336_v57  ;;  %654 = vrcp.f32 %v284_v6 }
  0xd9   :  { %v397_v12 = vmul.f32 %v649_v39, %v396_v45  ;;  %v288_v17 = vadd.f32 1.0, %v653_v8  ;;  %v465_v24 = vand.u32 2147483648, %v284_v6  ;;  %v463_v27 = vand.u32 2147483647, %v284_v6 }
  0xda   :  { %555 = vst.msk [vmem:[%s1097_s3 + $0x50] sm:$0xff] %vm19_vm0, %v539_v61  ;;  %v507_v25 = vsel %vm506_vm5, %v645_v35, %v503_v62  ;;  %v338_v10 = vadd.f32 %v647_v47, %v337_v63  ;;  %vm459_vm14 = vweird.f32 %v284_v6 }
  0xdb   :  { %v512_v4 = vsel %vm1047_vm3, %v511_v56, %v507_v25  ;;  %v398_v16 = vadd.f32 %v649_v39, %v397_v12  ;;  %656 = vrcp.f32 %v288_v17  ;;  %v525_v29 = vand.u32 2147483648, %v288_v17 }
  0xdc   :  { %v543_v34 = vmul.f32 %v512_v4, %v966_v36  ;;  %v342_v14 = vsel %vm341_vm8, %v647_v47, %v338_v10  ;;  %v523_v32 = vand.u32 2147483647, %v288_v17  ;;  %vm464_vm2 = vcmp.eq.f32.partialorder %v463_v27, 8.507059e+37 }
  0xdd   :  { %v347_v18 = vsel %vm344_vm10, %v346_v3, %v342_v14  ;;  %v402_v19 = vsel %vm401_vm11, %v649_v39, %v398_v16  ;;  %vm519_vm3 = vweird.f32 %v288_v17  ;;  %v526_v50 = vor.u32 1.1754944e-38, %v525_v29 }
  0xde   :  { %559 = vst.msk [vmem:[%s1097_s3 + $0x70] sm:$0xff] %vm19_vm0, %v543_v34  ;;  %v532_v36 = vmul.f32 %v347_v18, %v975_v40  ;;  %v407_v20 = vsel %vm404_vm12, %v406_v9, %v402_v19  ;;  %v655_v22 = vpop.eup %654  ;;  %vm524_vm5 = vcmp.eq.f32.partialorder %v523_v32, 8.507059e+37 }
  0xdf   :  { %v536_v21 = vmul.f32 %v407_v20, %v982_v44  ;;  %v455_v13 = vmul.f32 %v655_v22, %v284_v6  ;;  %vm460_vm13 = vweird.f32 %v655_v22  ;;  %v466_v44 = vor.u32 1.1754944e-38, %v465_v24 }
  0xe0   :  { %548 = vst.msk [vmem:[%s1097_s3 + $0x18] sm:$0xff] %vm19_vm0, %v532_v36  ;;  %vm461_vm15 = vmor %vm459_vm14, %vm460_vm13 }
  0xe1   :  { %552 = vst.msk [vmem:[%s1097_s3 + $0x38] sm:$0xff] %vm19_vm0, %v536_v21  ;;  %v657_v5 = vpop.eup %656  ;;  %v456_v40 = vsub.f32 1.0, %v455_v13 }
  0xe2   :  { %v515_v26 = vmul.f32 %v657_v5, %v288_v17  ;;  %vm520_vm1 = vweird.f32 %v657_v5 }
  0xe3   :  { %v457_v7 = vmul.f32 %v655_v22, %v456_v40  ;;  %vm521_vm4 = vmor %vm519_vm3, %vm520_vm1 }
  0xe4   :  { %v516_v28 = vsub.f32 1.0, %v515_v26 }
  0xe5   :  { %v458_v15 = vadd.f32 %v655_v22, %v457_v7 }
  0xe6   :  { %v517_v31 = vmul.f32 %v657_v5, %v516_v28 }
  0xe7   :  { %v462_v33 = vsel %vm461_vm15, %v655_v22, %v458_v15 }
  0xe8   :  { %v467_v35 = vsel %vm464_vm2, %v466_v44, %v462_v33  ;;  %v518_v11 = vadd.f32 %v657_v5, %v517_v31 }
  0xe9   :  { %v540_v48 = vmul.f32 %v467_v35, %v1024_v59 }
  0xea   :  { %v522_v41 = vsel %vm521_vm4, %v657_v5, %v518_v11 }
  0xeb   :  { %556 = vst.msk [vmem:[%s1097_s3 + $0x58] sm:$0xff] %vm19_vm0, %v540_v48  ;;  %v527_v43 = vsel %vm524_vm5, %v526_v50, %v522_v41 }
  0xec   :  { %v544_v38 = vmul.f32 %v527_v43, %v1033_v30 }
  0xee   :  { %560 = vst.msk [vmem:[%s1097_s3 + $0x78] sm:$0xff] %vm19_vm0, %v544_v38 }

// kernel: two_headed_efficientnet_forward.16
= control target key start
LH: loop header
LB: loop body
LE: loop exit
PB: predicated region body
PF: predicated region fallthrough
CT: control target
= control target key end

     0   :  { %s722_s27 = smov 0   ;;  %s724_s28 = smov 0   ;;  %s824_s0 = inlined_call_operand.vmem [shape: f32[2,16,64], index: 0, kind: input, shape index: {}]   ;;  %s825_s1 = inlined_call_operand.vmem [shape: f32[2,1,64], index: 1, kind: input, shape index: {}]   ;;  %s826_s2 = inlined_call_operand.vmem [shape: f32[64,4], index: 2, kind: input, shape index: {}]   ;;  %s827_s3 = inlined_call_operand.vmem [shape: f32[1,4], index: 3, kind: input, shape index: {}]   ;;  %s828_s4 = inlined_call_operand.vmem [shape: f32[4,64], index: 4, kind: input, shape index: {}]   ;;  %s829_s5 = inlined_call_operand.vmem [shape: f32[1,64], index: 5, kind: input, shape index: {}]   ;;  %s830_s6 = inlined_call_operand.vmem [shape: f32[64,24], index: 6, kind: input, shape index: {}]   ;;  %s831_s7 = inlined_call_operand.vmem [shape: f32[1,24], index: 7, kind: input, shape index: {}]   ;;  %s832_s8 = inlined_call_operand.vmem [shape: f32[2,16,24], index: 8, kind: output, shape index: {}]  }
   0x1   :  { %s726_s29 = smov 0  }
   0x2 LB: > { %s30_s30 = sadd.s32 1, %s671_s28  ;;  %p605_p0 = scmp.ge.s32.totalorder %s675_s29, 1  ;;  %s675_s29 = sphi %s726_s29, %s18_s29   ;;  %s671_s28 = sphi %s724_s28, %s834_s28   ;;  %s667_s27 = sphi %s722_s27, %s833_s27  }
   0x3   : > { %p32_p1 = scmp.ge.s32.totalorder %s30_s30, 2  ;;  %p291_p2 = scmp.lt.s32.totalorder %s675_s29, 3 }
   0x5   : > { %s836_s30 = smov (%p32_p1, %s30_s30), 0  ;;  %p292_p3 = pnand %p605_p0, %p291_p2 }
   0x6   : > { %p337_p4 = scmp.lt.s32.totalorder (!%p292_p3), %s667_s27, 1 }
   0x7   : > { %295 = sbr.rel (%p292_p3) target bundleno = 491 (0x1eb), region = 52 }
   0xc   : > { %v368_v0 = vld [vmem:[%s826_s2 + $0x38] sm:$0xff]  ;;  %v367_v1 = vld [vmem:[%s826_s2 + $0x30] sm:$0xff]  ;;  %v366_v2 = vld [vmem:[%s826_s2 + $0x28] sm:$0xff]  ;;  %s838_s27 = smov (!%p337_p4, %s667_s27), 1  ;;  %vm370_vm0 = vcmask 523264   ;;  %vm420_vm1 = vcmask 1043456  }
   0xd   : > { %382 = vmatpush.msra.mxu0 %v368_v0  ;;  %v365_v3 = vld [vmem:[%s826_s2 + $0x20] sm:$0xff]  ;;  %v364_v4 = vld [vmem:[%s826_s2 + $0x18] sm:$0xff]  ;;  %v363_v5 = vld [vmem:[%s826_s2 + $0x10] sm:$0xff]  ;;  %s348_s25 = scalar_lea.vmem %s825_s1, %s838_s27  ;;  %vm416_vm6 = vcmask 31744   ;;  %s618_s14 = sshll.u32 %s838_s27, 4  ;;  %vm502_vm11 = vcmask 195584  }
   0xe   : > { %v362_v6 = vld [vmem:[%s826_s2 + $0x8] sm:$0xff]  ;;  %v361_v7 = vld [vmem:[%s826_s2] sm:$0xff]  ;;  %v475_v27 = vld [vmem:[%s830_s6 + $0x30] sm:$0xff]  ;;  %s344_s17 = scalar_lea.vmem %s824_s0, %s618_s14  ;;  %s357_s21 = scalar_lea.vmem %s832_s8, %s618_s14 }
   0xf   : > { %383 = vmatpush.msra.mxu0 %v367_v1  ;;  %v360_v8 = vld [vmem:[%s348_s25] sm:$0x1]  ;;  %v476_v28 = vld [vmem:[%s830_s6 + $0x38] sm:$0xff]  ;;  %v474_v31 = vld [vmem:[%s830_s6 + $0x28] sm:$0xff] }
  0x10   : > { %v369_v9 = vld [vmem:[%s827_s3] sm:$0x1]  ;;  %v480_v29 = vpack.c.bf16 %v476_v28, %v475_v27  ;;  %v471_v32 = vld [vmem:[%s830_s6 + $0x10] sm:$0xff]  ;;  %v472_v34 = vld [vmem:[%s830_s6 + $0x18] sm:$0xff] }
  0x11   : > { %384 = vmatpush.msra.mxu0 %v366_v2  ;;  %v414_v10 = vld [vmem:[%s828_s4] sm:$0xf]  ;;  %v478_v35 = vpack.c.bf16 %v472_v34, %v471_v32  ;;  %v470_v37 = vld [vmem:[%s830_s6 + $0x8] sm:$0xff] }
  0x12   : > { %612 = vmatpush.msk.msra.mxu1 %vm420_vm1, %v414_v10  ;;  %492 = vmatpush.bf16.msra.mxu2 %v480_v29  ;;  %v473_v30 = vld [vmem:[%s830_s6 + $0x20] sm:$0xff]  ;;  %v464_v56 = vld [vmem:[%s344_s17 + $0x8] sm:$0xff] }
  0x13   : > { %385 = vmatpush.msra.mxu0 %v365_v3  ;;  %v479_v33 = vpack.c.bf16 %v474_v31, %v473_v30  ;;  %v469_v36 = vld [vmem:[%s830_s6] sm:$0xff] }
  0x14   : > { %v415_v38 = vld [vmem:[%s829_s5] sm:$0x1]  ;;  %v477_v39 = vpack.c.bf16 %v470_v37, %v469_v36 }
  0x15   : > { %386 = vmatpush.msra.mxu0 %v364_v4  ;;  %v463_v55 = vld [vmem:[%s344_s17] sm:$0xff] }
  0x16   : > { %493 = vmatpush.bf16.msra.mxu2 %v479_v33  ;;  %v644_v61 = vld [vmem:[%s831_s7] ss:$0 sm:$0xff] }
  0x17   : > { %387 = vmatpush.msra.mxu0 %v363_v5 }
  0x19   : > { %388 = vmatpush.msra.mxu0 %v362_v6 }
  0x1a   : > { %494 = vmatpush.bf16.msra.mxu2 %v478_v35 }
  0x1b   : > { %389 = vmatpush.msra.mxu0 %v361_v7 }
  0x1c   : > { %610 = vmatmul.msk.f32.vlgmr.msra.gmra.mxu0 %vm370_vm0, %v360_v8 }
  0x1e   : > { %495 = vmatpush.bf16.msra.mxu2 %v477_v39 }
  0x99   : > { %v391_v11 = vpop.f32.mrf.mxu0 }
  0x9a   : > { %v392_v12 = vadd.f32 %v391_v11, %v369_v9 }
  0x9c   : > { %v611_v13 = vmul.f32 -1.442695, %v392_v12 }
  0x9e   : > { %645 = vpow2.f32 %v611_v13 }
  0xa4   : > { %v646_v14 = vpop.eup %645 }
  0xa5   : > { %v397_v15 = vadd.f32 1.0, %v646_v14 }
  0xa7   : > { %647 = vrcp.f32 %v397_v15  ;;  %v409_v19 = vand.u32 2147483648, %v397_v15  ;;  %v407_v21 = vand.u32 2147483647, %v397_v15  ;;  %vm403_vm3 = vweird.f32 %v397_v15 }
  0xa9   : > { %v410_v23 = vor.u32 1.1754944e-38, %v409_v19  ;;  %vm408_vm5 = vcmp.eq.f32.partialorder %v407_v21, 8.507059e+37 }
  0xad   : > { %v648_v16 = vpop.eup %647 }
  0xae   : > { %v399_v17 = vmul.f32 %v648_v16, %v397_v15  ;;  %vm404_vm2 = vweird.f32 %v648_v16 }
  0xaf   : > { %vm405_vm4 = vmor %vm403_vm3, %vm404_vm2 }
  0xb0   : > { %v400_v18 = vsub.f32 1.0, %v399_v17 }
  0xb2   : > { %v401_v20 = vmul.f32 %v648_v16, %v400_v18 }
  0xb4   : > { %v402_v22 = vadd.f32 %v648_v16, %v401_v20 }
  0xb6   : > { %v406_v24 = vsel %vm405_vm4, %v648_v16, %v402_v22 }
  0xb7   : > { %v411_v25 = vsel %vm408_vm5, %v410_v23, %v406_v24 }
  0xb8   : > { %v413_v26 = vmul.f32 %v411_v25, %v392_v12 }
  0xba   : > { %613 = vmatmul.msk.f32.vlgmr.msra.gmra.mxu1 %vm416_vm6, %v413_v26 }
 0x137   : > { %v441_v40 = vpop.f32.mrf.mxu1 }
 0x138   : > { %v442_v41 = vadd.f32 %v441_v40, %v415_v38 }
 0x13a   : > { %v614_v42 = vmul.f32 -1.442695, %v442_v41 }
 0x13c   : > { %649 = vpow2.f32 %v614_v42 }
 0x142   : > { %v650_v43 = vpop.eup %649 }
 0x143   : > { %v447_v44 = vadd.f32 1.0, %v650_v43 }
 0x145   : > { %651 = vrcp.f32 %v447_v44  ;;  %v459_v48 = vand.u32 2147483648, %v447_v44  ;;  %v457_v50 = vand.u32 2147483647, %v447_v44  ;;  %vm453_vm8 = vweird.f32 %v447_v44 }
 0x147   : > { %v460_v52 = vor.u32 1.1754944e-38, %v459_v48  ;;  %vm458_vm10 = vcmp.eq.f32.partialorder %v457_v50, 8.507059e+37 }
 0x14b   : > { %v652_v45 = vpop.eup %651 }
 0x14c   : > { %v449_v46 = vmul.f32 %v652_v45, %v447_v44  ;;  %vm454_vm7 = vweird.f32 %v652_v45 }
 0x14d   : > { %vm455_vm9 = vmor %vm453_vm8, %vm454_vm7 }
 0x14e   : > { %v450_v47 = vsub.f32 1.0, %v449_v46 }
 0x150   : > { %v451_v49 = vmul.f32 %v652_v45, %v450_v47 }
 0x152   : > { %v452_v51 = vadd.f32 %v652_v45, %v451_v49 }
 0x154   : > { %v456_v53 = vsel %vm455_vm9, %v652_v45, %v452_v51 }
 0x155   : > { %v461_v54 = vsel %vm458_vm10, %v460_v52, %v456_v53 }
 0x156   : > { %v465_v57 = vperm.slane %v461_v54, 0 }
 0x158   : > { %v466_v58 = vmul.f32 %v465_v57, %v463_v55  ;;  %v467_v59 = vmul.f32 %v465_v57, %v464_v56 }
 0x15a   : > { %v468_v60 = vpack.c.bf16 %v467_v59, %v466_v58 }
 0x15c   : > { %615 = vmatmul.msk.bf16.vlgmr.msra.gmra.mxu2 %vm370_vm0, %v468_v60 }
 0x1df   : > { %v497_v62 = vpop.f32.mrf.mxu2 }
 0x1e0   : > { %v498_v63 = vadd.f32 %v644_v61, %v497_v62 }
 0x1e2   : > { %503 = vst.msk [vmem:[%s357_s21] sm:$0xff] %vm502_vm11, %v498_v63 }
 0x1e7   : > { %v499_v0 = vpop.f32.mrf.mxu2 }
 0x1e8   : > { %v500_v1 = vadd.f32 %v644_v61, %v499_v0 }
 0x1ea   : > { %504 = vst.msk [vmem:[%s357_s21 + $0x8] sm:$0xff] %vm502_vm11, %v500_v1 }
 0x1eb PF: > { %s18_s29 = sadd.s32 1, %s675_s29   ;;  %s833_s27 = smov %s671_s28 }
 0x1ec   : > { %p15_p5 = scmp.ge.s32.totalorder %s18_s29, 4   ;;  %s834_s28 = smov %s836_s30 }
 0x1ee   :  { %17 = sbr.rel (!%p15_p5) target bundleno = 2 (0x2), region = 85 }

// kernel: two_headed_efficientnet_forward.17
= control target key start
LH: loop header
LB: loop body
LE: loop exit
PB: predicated region body
PF: predicated region fallthrough
CT: control target
= control target key end

     0   :  { %vm19_vm0 = vcmask 785408   ;;  %vm46_vm1 = vcmask 1043456   ;;  %v207_v1 = vmov 0.0   ;;  %vm39_vm2 = vcmask 195584   ;;  %s284_s1 = inlined_call_operand.vmem [shape: f32[24,96], index: 1, kind: input, shape index: {}]   ;;  %s285_s0 = inlined_call_operand.vmem [shape: f32[32,24], index: 0, kind: input, shape index: {}]   ;;  %s286_s2 = inlined_call_operand.vmem [shape: f32[1,96], index: 2, kind: input, shape index: {}]   ;;  %s287_s3 = inlined_call_operand.vmem [shape: f32[32,96], index: 3, kind: output, shape index: {}]  }
   0x1   :  { %v36_v0 = vld [vmem:[%s284_s1 + $0x10] sm:$0xff]  ;;  %20 = vst.msk [vmem:[#allocation2] sm:$0xff] %vm19_vm0, %v207_v1  ;;  %v34_v3 = vld [vmem:[%s284_s1] sm:$0xff]  ;;  %v35_v4 = vld [vmem:[%s284_s1 + $0x8] sm:$0xff] }
   0x2   :  { %v38_v2 = vpack.c.bf16 %v36_v0, %v36_v0  ;;  %21 = vst.msk [vmem:[#allocation2 + $0x8] sm:$0xff] %vm19_vm0, %v207_v1  ;;  %v28_v6 = vld [vmem:[%s285_s0] sm:$0xff]  ;;  %v37_v7 = vpack.c.bf16 %v35_v4, %v34_v3  ;;  %v29_v8 = vld [vmem:[%s285_s0 + $0x8] sm:$0xff]  ;;  %v30_v9 = vld [vmem:[%s285_s0 + $0x10] sm:$0xff] }
   0x3   :  { %22 = vst.msk [vmem:[#allocation2 + $0x10] sm:$0xff] %vm19_vm0, %v207_v1  ;;  %v31_v10 = vld [vmem:[%s285_s0 + $0x18] sm:$0xff]  ;;  %v32_v11 = vpack.c.bf16 %v29_v8, %v28_v6  ;;  %v190_v21 = vld [vmem:[%s286_s2] ss:$0 sm:$0xff] }
   0x4   :  { %v48_v5 = vsel %vm46_vm1, %v38_v2, 0  ;;  %23 = vst.msk [vmem:[#allocation2 + $0x18] sm:$0xff] %vm19_vm0, %v207_v1  ;;  %v33_v12 = vpack.c.bf16 %v31_v10, %v30_v9 }
   0x5   :  { %56 = vmatpush.bf16.msra.mxu0 %v48_v5  ;;  %187 = vmatpush.bf16.msra.mxu1 %v48_v5 }
   0x8   :  { %v24_v13 = vld [vmem:[#allocation2] sm:$0xff] }
   0x9   :  { %57 = vmatpush.bf16.msra.mxu0 %v37_v7  ;;  %188 = vmatpush.bf16.msra.mxu1 %v37_v7  ;;  %v25_v19 = vld [vmem:[#allocation2 + $0x8] sm:$0xff] }
   0xa   :  { %v26_v14 = vld [vmem:[#allocation2 + $0x10] sm:$0xff] }
   0xb   :  { %v27_v20 = vld [vmem:[#allocation2 + $0x18] sm:$0xff] }
   0xc   :  { %181 = vmatmul.msk.bf16.vlgmr.msra.gmra.mxu0 %vm39_vm2, %v32_v11  ;;  %182 = vmatmul.msk.bf16.vlgmr.msra.gmra.mxu1 %vm39_vm2, %v33_v12 }
  0x89   :  { %v59_v15 = vpop.f32.mrf.mxu0  ;;  %v64_v16 = vpop.f32.mrf.mxu1 }
  0x8a   :  { %v69_v17 = vadd.f32 %v59_v15, %v24_v13  ;;  %v71_v18 = vadd.f32 %v64_v16, %v26_v14 }
  0x8c   :  { %74 = vst.msk [vmem:[#allocation2] sm:$0xff] %vm19_vm0, %v69_v17 }
  0x8d   :  { %76 = vst.msk [vmem:[#allocation2 + $0x10] sm:$0xff] %vm19_vm0, %v71_v18 }
  0x91   :  { %v61_v22 = vpop.f32.mrf.mxu0  ;;  %v66_v23 = vpop.f32.mrf.mxu1 }
  0x92   :  { %v70_v24 = vadd.f32 %v61_v22, %v25_v19  ;;  %v72_v25 = vadd.f32 %v66_v23, %v27_v20 }
  0x93   :  { %v81_v26 = vld [vmem:[#allocation2] sm:$0xff] }
  0x94   :  { %v89_v27 = vadd.f32 %v190_v21, %v81_v26  ;;  %v83_v28 = vld [vmem:[#allocation2 + $0x10] sm:$0xff]  ;;  %75 = vst.msk [vmem:[#allocation2 + $0x8] sm:$0xff] %vm19_vm0, %v70_v24 }
  0x95   :  { %v91_v29 = vadd.f32 %v190_v21, %v83_v28  ;;  %77 = vst.msk [vmem:[#allocation2 + $0x18] sm:$0xff] %vm19_vm0, %v72_v25 }
  0x96   :  { %v183_v30 = vmul.f32 -1.442695, %v89_v27 }
  0x97   :  { %v185_v31 = vmul.f32 -1.442695, %v91_v29 }
  0x98   :  { %191 = vpow2.f32 %v183_v30 }
  0x99   :  { %193 = vpow2.f32 %v185_v31 }
  0x9b   :  { %v82_v32 = vld [vmem:[#allocation2 + $0x8] sm:$0xff] }
  0x9c   :  { %v260_v33 = vadd.f32 %v190_v21, %v82_v32  ;;  %v84_v34 = vld [vmem:[#allocation2 + $0x18] sm:$0xff] }
  0x9d   :  { %v262_v35 = vadd.f32 %v190_v21, %v84_v34 }
  0x9e   :  { %v192_v36 = vpop.eup %191  ;;  %v184_v37 = vmul.f32 -1.442695, %v260_v33 }
  0x9f   :  { %v194_v38 = vpop.eup %193  ;;  %v105_v39 = vadd.f32 1.0, %v192_v36  ;;  %v186_v40 = vmul.f32 -1.442695, %v262_v35 }
  0xa0   :  { %v107_v41 = vadd.f32 1.0, %v194_v38  ;;  %195 = vpow2.f32 %v184_v37 }
  0xa1   :  { %197 = vrcp.f32 %v105_v39  ;;  %v118_v51 = vand.u32 2147483647, %v105_v39  ;;  %v120_v52 = vand.u32 2147483648, %v105_v39  ;;  %vm114_vm5 = vweird.f32 %v105_v39 }
  0xa2   :  { %199 = vrcp.f32 %v107_v41  ;;  %v150_v55 = vand.u32 2147483648, %v107_v41  ;;  %v148_v57 = vand.u32 2147483647, %v107_v41  ;;  %vm144_vm7 = vweird.f32 %v107_v41 }
  0xa3   :  { %201 = vpow2.f32 %v186_v40  ;;  %v121_v60 = vor.u32 1.1754944e-38, %v120_v52  ;;  %vm119_vm8 = vcmp.eq.f32.partialorder %v118_v51, 8.507059e+37 }
  0xa4   :  { %v151_v63 = vor.u32 1.1754944e-38, %v150_v55  ;;  %vm149_vm10 = vcmp.eq.f32.partialorder %v148_v57, 8.507059e+37 }
  0xa6   :  { %v196_v42 = vpop.eup %195 }
  0xa7   :  { %v198_v43 = vpop.eup %197  ;;  %v106_v44 = vadd.f32 1.0, %v196_v42 }
  0xa8   :  { %v200_v45 = vpop.eup %199  ;;  %v110_v46 = vmul.f32 %v198_v43, %v105_v39  ;;  %vm115_vm3 = vweird.f32 %v198_v43 }
  0xa9   :  { %v202_v47 = vpop.eup %201  ;;  %v140_v48 = vmul.f32 %v200_v45, %v107_v41  ;;  %203 = vrcp.f32 %v106_v44  ;;  %vm145_vm4 = vweird.f32 %v200_v45  ;;  %vm116_vm6 = vmor %vm114_vm5, %vm115_vm3  ;;  %v135_v8 = vand.u32 2147483648, %v106_v44 }
  0xaa   :  { %v111_v49 = vsub.f32 1.0, %v110_v46  ;;  %v108_v50 = vadd.f32 1.0, %v202_v47  ;;  %vm146_vm9 = vmor %vm144_vm7, %vm145_vm4  ;;  %v133_v11 = vand.u32 2147483647, %v106_v44  ;;  %vm129_vm12 = vweird.f32 %v106_v44 }
  0xab   :  { %v141_v53 = vsub.f32 1.0, %v140_v48  ;;  %v136_v15 = vor.u32 1.1754944e-38, %v135_v8 }
  0xac   :  { %v112_v54 = vmul.f32 %v198_v43, %v111_v49  ;;  %205 = vrcp.f32 %v108_v50  ;;  %v165_v14 = vand.u32 2147483648, %v108_v50  ;;  %v163_v17 = vand.u32 2147483647, %v108_v50 }
  0xad   :  { %v142_v56 = vmul.f32 %v200_v45, %v141_v53  ;;  %vm134_vm15 = vcmp.eq.f32.partialorder %v133_v11, 8.507059e+37  ;;  %vm159_vm1 = vweird.f32 %v108_v50 }
  0xae   :  { %v113_v58 = vadd.f32 %v198_v43, %v112_v54  ;;  %v166_v22 = vor.u32 1.1754944e-38, %v165_v14  ;;  %vm164_vm3 = vcmp.eq.f32.partialorder %v163_v17, 8.507059e+37 }
  0xaf   :  { %v204_v59 = vpop.eup %203  ;;  %v143_v61 = vadd.f32 %v200_v45, %v142_v56 }
  0xb0   :  { %v117_v62 = vsel %vm116_vm6, %v198_v43, %v113_v58  ;;  %v125_v0 = vmul.f32 %v204_v59, %v106_v44  ;;  %vm130_vm11 = vweird.f32 %v204_v59 }
  0xb1   :  { %v122_v1 = vsel %vm119_vm8, %v121_v60, %v117_v62  ;;  %v147_v2 = vsel %vm146_vm9, %v200_v45, %v143_v61  ;;  %vm131_vm13 = vmor %vm129_vm12, %vm130_vm11 }
  0xb2   :  { %v206_v3 = vpop.eup %205  ;;  %v169_v4 = vmul.f32 %v122_v1, %v89_v27  ;;  %v152_v5 = vsel %vm149_vm10, %v151_v63, %v147_v2  ;;  %v126_v6 = vsub.f32 1.0, %v125_v0 }
  0xb3   :  { %v171_v7 = vmul.f32 %v152_v5, %v91_v29  ;;  %v155_v9 = vmul.f32 %v206_v3, %v108_v50  ;;  %vm160_vm14 = vweird.f32 %v206_v3 }
  0xb4   :  { %173 = vst.msk [vmem:[%s287_s3] sm:$0xff] %vm19_vm0, %v169_v4  ;;  %v127_v10 = vmul.f32 %v204_v59, %v126_v6  ;;  %vm161_vm2 = vmor %vm159_vm1, %vm160_vm14 }
  0xb5   :  { %175 = vst.msk [vmem:[%s287_s3 + $0x10] sm:$0xff] %vm19_vm0, %v171_v7  ;;  %v156_v12 = vsub.f32 1.0, %v155_v9 }
  0xb6   :  { %v128_v13 = vadd.f32 %v204_v59, %v127_v10 }
  0xb7   :  { %v157_v16 = vmul.f32 %v206_v3, %v156_v12 }
  0xb8   :  { %v132_v18 = vsel %vm131_vm13, %v204_v59, %v128_v13 }
  0xb9   :  { %v137_v19 = vsel %vm134_vm15, %v136_v15, %v132_v18  ;;  %v158_v20 = vadd.f32 %v206_v3, %v157_v16 }
  0xba   :  { %v170_v21 = vmul.f32 %v137_v19, %v260_v33 }
  0xbb   :  { %v162_v23 = vsel %vm161_vm2, %v206_v3, %v158_v20 }
  0xbc   :  { %174 = vst.msk [vmem:[%s287_s3 + $0x8] sm:$0xff] %vm19_vm0, %v170_v21  ;;  %v167_v24 = vsel %vm164_vm3, %v166_v22, %v162_v23 }
  0xbd   :  { %v172_v25 = vmul.f32 %v167_v24, %v262_v35 }
  0xbf   :  { %176 = vst.msk [vmem:[%s287_s3 + $0x18] sm:$0xff] %vm19_vm0, %v172_v25 }

// kernel: two_headed_efficientnet_forward.15
= control target key start
LH: loop header
LB: loop body
LE: loop exit
PB: predicated region body
PF: predicated region fallthrough
CT: control target
= control target key end

     0   :  { %10 = vsyncpa [#allocation3], 0  ;;  %s1868_s0 = inlined_call_operand.vmem [shape: f32[2,10,10,64], index: 0, kind: input, shape index: {}]   ;;  %s1869_s1 = inlined_call_operand.vmem [shape: f32[9,64], index: 1, kind: input, shape index: {}]   ;;  %s1870_s2 = inlined_call_operand.vmem [shape: f32[1,64], index: 2, kind: input, shape index: {}]   ;;  %s1871_s3 = inlined_call_operand.vmem [shape: f32[2,8,8,64], index: 3, kind: output, shape index: {0}]   ;;  %s1872_s4 = inlined_call_operand.hbm [shape: f32[2,1,64], index: 4, kind: output, shape index: {1}]  }
   0x1   :  { %12 = vsyncpa [#allocation3 + $0x1], 0  ;;  %s1211_s15 = smov 0   ;;  %s1213_s16 = smov 0  }
   0x2   :  { %s1215_s17 = smov 0   ;;  %s1217_s18 = smov 0  }
   0x3 LB: > { %s1232_s19 = sadd.s32 4294967295, %s1183_s18   ;;  %s1026_s20 = sadd.s32 4294967294, %s1183_s18   ;;  %s1183_s18 = sphi %s1217_s18, %s1908_s18   ;;  %s1179_s17 = sphi %s1215_s17, %s1907_s17   ;;  %s1175_s16 = sphi %s1213_s16, %s1906_s16   ;;  %s1171_s15 = sphi %s1211_s15, %s1905_s15  }
   0x4   : > { %s1236_s21 = sadd.s32 1, %s1183_s18   ;;  %s119_s22 = sadd.s32 1, %s1179_s17 }
   0x5   : > { %s116_s23 = ssub.s32 %s1183_s18, %s1236_s21  ;;  %p129_p0 = scmp.ne.s32.totalorder %s1179_s17, %s1175_s16 }
   0x6   : > { %p117_p1 = scmp.eq.s32.totalorder %s116_s23, 0  ;;  %p130_p2 = scmp.eq.s32.totalorder %s1232_s19, 1 }
   0x7   : > { %p135_p3 = scmp.ne.s32.totalorder %s1175_s16, %s1171_s15  ;;  %p136_p4 = scmp.eq.s32.totalorder %s1026_s20, 1 }
   0x8   : > { %s1247_s24 = scalar_select %p117_p1, %s1179_s17, %s119_s22  }
   0x9   : > { %p1249_p5 = por %p130_p2, %p129_p0  ;;  %p1253_p6 = por %p136_p4, %p135_p3 }
   0xa   : > { %p1029_p7 = scmp.ge.s32.totalorder %s1183_s18, 1  ;;  %p168_p8 = scmp.lt.s32.totalorder %s1183_s18, 3 }
   0xc   : > { %p169_p9 = pnand %p1029_p7, %p168_p8 }
   0xd   : > { %p198_p10 = scmp.lt.s32.totalorder (!%p169_p9), %s1232_s19, 1  ;;  %s196_s22 = sand.u32 (!%p169_p9), 1, %s1175_s16  }
   0xe   : > { %172 = sbr.rel (%p169_p9) target bundleno = 178 (0xb2), region = 32  ;;  %s942_s28 = scalar_lea.hbm (!%p169_p9), %s1872_s4, %s1232_s19 }
   0xf   : > { %s946_s5 = sshll.u32 (!%p169_p9), %s942_s28, 4  ;;  %s931_s6 = scalar_lea.sflag (!%p169_p9), [#allocation3], %s196_s22  ;;  %s947_s5 = int_to_ptr.hbm [resolvable:$true] %s946_s5 }
  0x10   : > { %s1141_s10 = scalar_lea.hbm (!%p169_p9), %s1872_s4, 2 }
  0x13   : > { %v1263_v0 = vld [vmem:[%s1869_s1] sm:$0xff]  ;;  %s1266_s29 = scalar_select %p198_p10, %s1232_s19, 1  ;;  %vm272_vm0 = vcmask 1046528   ;;  %vm346_vm1 = vcmask 1045504  }
  0x14   : > { %v230_v1 = vperm.slane %v1263_v0, 0  ;;  %v239_v2 = vperm.slane %v1263_v0, 1  ;;  %v1277_v3 = vperm.slane %v1263_v0, 2  ;;  %v1289_v7 = vperm.slane %v1263_v0, 3 }
  0x15   : > { %s1044_s30 = smul.u32 160, %s1266_s29  ;;  %v1292_v8 = vperm.slane %v1263_v0, 4  ;;  %s1043_s12 = sshll.u32 %s1266_s29, 6 }
  0x16   : > { %s1782_s20 = scalar_lea.vmem %s1871_s3, %s1043_s12  ;;  %s197_s29 = scalar_lea.vmem [#allocation2], %s196_s22 }
  0x17   : > { %s1274_s7 = scalar_lea.vmem %s1868_s0, %s1044_s30  ;;  %s944_s30 = sshll.u32 %s197_s29, 4  ;;  %s945_s30 = int_to_ptr.vmem [resolvable:$true] %s944_s30 }
  0x18   : > { %v1280_v4 = vld [vmem:[%s1274_s7] sm:$0xff]  ;;  %v1283_v5 = vld [vmem:[%s1274_s7 + $0x8] sm:$0x3]  ;;  %v1286_v6 = vld [vmem:[%s1274_s7 + $0x10] sm:$0xff] }
  0x19   : > { %v1295_v9 = vld [vmem:[%s1274_s7 + $0x18] sm:$0x3]  ;;  %v1298_v10 = vld [vmem:[%s1274_s7 + $0x20] sm:$0xff]  ;;  %v1301_v11 = vld [vmem:[%s1274_s7 + $0x28] sm:$0x3]  ;;  %v231_v12 = vmul.f32 %v230_v1, %v1280_v4  ;;  %v232_v13 = vmul.f32 %v230_v1, %v1286_v6  ;;  %v240_v14 = vmul.f32 %v239_v2, %v1280_v4  ;;  %v241_v15 = vmul.f32 %v239_v2, %v1283_v5 }
  0x1a   : > { %v1308_v16 = vld [vmem:[%s1274_s7 + $0x30] sm:$0xff]  ;;  %v1311_v17 = vld [vmem:[%s1274_s7 + $0x38] sm:$0x3]  ;;  %v1314_v18 = vld [vmem:[%s1274_s7 + $0x40] sm:$0xff]  ;;  %v233_v19 = vmul.f32 %v230_v1, %v1298_v10  ;;  %v242_v20 = vmul.f32 %v239_v2, %v1286_v6  ;;  %v243_v21 = vmul.f32 %v239_v2, %v1295_v9  ;;  %v244_v22 = vmul.f32 %v239_v2, %v1298_v10 }
  0x1b   : > { %v1321_v23 = vld [vmem:[%s1274_s7 + $0x48] sm:$0x3]  ;;  %v1324_v24 = vld [vmem:[%s1274_s7 + $0x50] sm:$0xff]  ;;  %v1327_v25 = vld [vmem:[%s1274_s7 + $0x58] sm:$0x3]  ;;  %v234_v26 = vmul.f32 %v230_v1, %v1308_v16  ;;  %v235_v27 = vmul.f32 %v230_v1, %v1314_v18  ;;  %v245_v28 = vmul.f32 %v239_v2, %v1301_v11  ;;  %v246_v29 = vmul.f32 %v239_v2, %v1308_v16 }
  0x1c   : > { %v1334_v30 = vld [vmem:[%s1274_s7 + $0x60] sm:$0xff]  ;;  %v1337_v31 = vld [vmem:[%s1274_s7 + $0x68] sm:$0x3]  ;;  %v1340_v32 = vld [vmem:[%s1274_s7 + $0x70] sm:$0xff]  ;;  %v236_v33 = vmul.f32 %v230_v1, %v1324_v24  ;;  %v247_v34 = vmul.f32 %v239_v2, %v1311_v17  ;;  %v248_v35 = vmul.f32 %v239_v2, %v1314_v18  ;;  %v249_v36 = vmul.f32 %v239_v2, %v1321_v23 }
  0x1d   : > { %v1347_v37 = vld [vmem:[%s1274_s7 + $0x78] sm:$0x3]  ;;  %v237_v38 = vmul.f32 %v230_v1, %v1334_v30  ;;  %v238_v39 = vmul.f32 %v230_v1, %v1340_v32  ;;  %v250_v40 = vmul.f32 %v239_v2, %v1324_v24  ;;  %v251_v41 = vmul.f32 %v239_v2, %v1327_v25 }
  0x1e   : > { %v252_v42 = vmul.f32 %v239_v2, %v1334_v30  ;;  %v253_v43 = vmul.f32 %v239_v2, %v1337_v31  ;;  %v254_v44 = vmul.f32 %v239_v2, %v1340_v32  ;;  %v255_v45 = vmul.f32 %v239_v2, %v1347_v37 }
  0x1f   : > { %v273_v46 = vrot.slane %v240_v14, 1  ;;  %v274_v47 = vrot.slane %v241_v15, 1  ;;  %v276_v48 = vrot.slane %v242_v20, 1  ;;  %v277_v49 = vrot.slane %v243_v21, 1 }
  0x20   : > { %v279_v50 = vrot.slane %v244_v22, 1  ;;  %v280_v51 = vrot.slane %v245_v28, 1  ;;  %v282_v52 = vrot.slane %v246_v29, 1  ;;  %v283_v53 = vrot.slane %v247_v34, 1 }
  0x21   : > { %v275_v54 = vsel %vm272_vm0, %v273_v46, %v274_v47  ;;  %v278_v55 = vsel %vm272_vm0, %v276_v48, %v277_v49  ;;  %v285_v56 = vrot.slane %v248_v35, 1  ;;  %v286_v57 = vrot.slane %v249_v36, 1 }
  0x22   : > { %v281_v58 = vsel %vm272_vm0, %v279_v50, %v280_v51  ;;  %v284_v59 = vsel %vm272_vm0, %v282_v52, %v283_v53  ;;  %v288_v60 = vrot.slane %v250_v40, 1  ;;  %v289_v61 = vrot.slane %v251_v41, 1 }
  0x23   : > { %v287_v62 = vsel %vm272_vm0, %v285_v56, %v286_v57  ;;  %v291_v63 = vrot.slane %v252_v42, 1  ;;  %v292_v1 = vrot.slane %v253_v43, 1  ;;  %v294_v2 = vrot.slane %v254_v44, 1 }
  0x24   : > { %v290_v14 = vsel %vm272_vm0, %v288_v60, %v289_v61  ;;  %v295_v15 = vrot.slane %v255_v45, 1  ;;  %v305_v20 = vadd.f32 %v275_v54, %v231_v12  ;;  %v306_v21 = vadd.f32 %v278_v55, %v232_v13 }
  0x25   : > { %v293_v22 = vsel %vm272_vm0, %v291_v63, %v292_v1  ;;  %v307_v28 = vadd.f32 %v281_v58, %v233_v19  ;;  %v308_v29 = vadd.f32 %v284_v59, %v234_v26  ;;  %v309_v34 = vadd.f32 %v287_v62, %v235_v27 }
  0x26   : > { %v296_v35 = vsel %vm272_vm0, %v294_v2, %v295_v15  ;;  %v310_v36 = vadd.f32 %v290_v14, %v236_v33  ;;  %v311_v40 = vadd.f32 %v293_v22, %v237_v38  ;;  %v314_v41 = vmul.f32 %v1277_v3, %v1280_v4 }
  0x27   : > { %v312_v42 = vadd.f32 %v296_v35, %v238_v39  ;;  %v315_v43 = vmul.f32 %v1277_v3, %v1283_v5  ;;  %v316_v12 = vmul.f32 %v1277_v3, %v1286_v6  ;;  %v317_v13 = vmul.f32 %v1277_v3, %v1295_v9 }
  0x28   : > { %v318_v19 = vmul.f32 %v1277_v3, %v1298_v10  ;;  %v319_v26 = vmul.f32 %v1277_v3, %v1301_v11  ;;  %v320_v27 = vmul.f32 %v1277_v3, %v1308_v16  ;;  %v321_v4 = vmul.f32 %v1277_v3, %v1311_v17 }
  0x29   : > { %v322_v5 = vmul.f32 %v1277_v3, %v1314_v18  ;;  %v323_v33 = vmul.f32 %v1277_v3, %v1321_v23  ;;  %v324_v38 = vmul.f32 %v1277_v3, %v1324_v24  ;;  %v325_v39 = vmul.f32 %v1277_v3, %v1327_v25 }
  0x2a   : > { %v326_v44 = vmul.f32 %v1277_v3, %v1334_v30  ;;  %v327_v45 = vmul.f32 %v1277_v3, %v1337_v31  ;;  %v328_v46 = vmul.f32 %v1277_v3, %v1340_v32  ;;  %v329_v47 = vmul.f32 %v1277_v3, %v1347_v37 }
  0x2b   : > { %v347_v48 = vrot.slane %v314_v41, 2  ;;  %v348_v49 = vrot.slane %v315_v43, 2  ;;  %v350_v50 = vrot.slane %v316_v12, 2  ;;  %v351_v51 = vrot.slane %v317_v13, 2  ;;  %v1404_v43 = vld [vmem:[%s1274_s7 + $0x80] sm:$0xff] }
  0x2c   : > { %v353_v52 = vrot.slane %v318_v19, 2  ;;  %v354_v53 = vrot.slane %v319_v26, 2  ;;  %v356_v54 = vrot.slane %v320_v27, 2  ;;  %v357_v55 = vrot.slane %v321_v4, 2 }
  0x2d   : > { %v349_v56 = vsel %vm346_vm1, %v347_v48, %v348_v49  ;;  %v352_v57 = vsel %vm346_vm1, %v350_v50, %v351_v51  ;;  %v359_v58 = vrot.slane %v322_v5, 2  ;;  %v360_v59 = vrot.slane %v323_v33, 2  ;;  %v1425_v50 = vld [vmem:[%s1274_s7 + $0x88] sm:$0x3] }
  0x2e   : > { %v355_v60 = vsel %vm346_vm1, %v353_v52, %v354_v53  ;;  %v358_v61 = vsel %vm346_vm1, %v356_v54, %v357_v55  ;;  %v362_v3 = vrot.slane %v324_v38, 2  ;;  %v363_v62 = vrot.slane %v325_v39, 2 }
  0x2f   : > { %v361_v63 = vsel %vm346_vm1, %v359_v58, %v360_v59  ;;  %v365_v1 = vrot.slane %v326_v44, 2  ;;  %v366_v2 = vrot.slane %v327_v45, 2  ;;  %v368_v14 = vrot.slane %v328_v46, 2 }
  0x30   : > { %v364_v15 = vsel %vm346_vm1, %v362_v3, %v363_v62  ;;  %v369_v22 = vrot.slane %v329_v47, 2  ;;  %v379_v35 = vadd.f32 %v349_v56, %v305_v20  ;;  %v380_v41 = vadd.f32 %v352_v57, %v306_v21 }
  0x31   : > { %v367_v12 = vsel %vm346_vm1, %v365_v1, %v366_v2  ;;  %v381_v13 = vadd.f32 %v355_v60, %v307_v28  ;;  %v382_v19 = vadd.f32 %v358_v61, %v308_v29  ;;  %v383_v26 = vadd.f32 %v361_v63, %v309_v34 }
  0x32   : > { %v370_v27 = vsel %vm346_vm1, %v368_v14, %v369_v22  ;;  %v384_v4 = vadd.f32 %v364_v15, %v310_v36  ;;  %v385_v5 = vadd.f32 %v367_v12, %v311_v40  ;;  %v388_v33 = vmul.f32 %v1289_v7, %v1286_v6 }
  0x33   : > { %v386_v38 = vadd.f32 %v370_v27, %v312_v42  ;;  %v389_v20 = vmul.f32 %v1289_v7, %v1298_v10  ;;  %v390_v21 = vmul.f32 %v1289_v7, %v1308_v16  ;;  %v391_v28 = vmul.f32 %v1289_v7, %v1314_v18 }
  0x34   : > { %v392_v29 = vmul.f32 %v1289_v7, %v1324_v24  ;;  %v393_v34 = vmul.f32 %v1289_v7, %v1334_v30  ;;  %v394_v36 = vmul.f32 %v1289_v7, %v1340_v32  ;;  %v395_v40 = vmul.f32 %v1289_v7, %v1404_v43 }
  0x35   : > { %v396_v42 = vadd.f32 %v388_v33, %v379_v35  ;;  %v397_v39 = vadd.f32 %v389_v20, %v380_v41  ;;  %v398_v44 = vadd.f32 %v390_v21, %v381_v13  ;;  %v399_v45 = vadd.f32 %v391_v28, %v382_v19 }
  0x36   : > { %v400_v46 = vadd.f32 %v392_v29, %v383_v26  ;;  %v401_v47 = vadd.f32 %v393_v34, %v384_v4  ;;  %v402_v48 = vadd.f32 %v394_v36, %v385_v5  ;;  %v403_v49 = vadd.f32 %v395_v40, %v386_v38  ;;  %v1467_v34 = vld [vmem:[%s1869_s1 + $0x8] ss:$0 sm:$0xff] }
  0x37   : > { %v405_v51 = vmul.f32 %v1292_v8, %v1286_v6  ;;  %v406_v52 = vmul.f32 %v1292_v8, %v1295_v9  ;;  %v407_v53 = vmul.f32 %v1292_v8, %v1298_v10  ;;  %v408_v7 = vmul.f32 %v1292_v8, %v1301_v11 }
  0x38   : > { %v409_v54 = vmul.f32 %v1292_v8, %v1308_v16  ;;  %v410_v55 = vmul.f32 %v1292_v8, %v1311_v17  ;;  %v411_v56 = vmul.f32 %v1292_v8, %v1314_v18  ;;  %v412_v57 = vmul.f32 %v1292_v8, %v1321_v23 }
  0x39   : > { %v413_v58 = vmul.f32 %v1292_v8, %v1324_v24  ;;  %v414_v59 = vmul.f32 %v1292_v8, %v1327_v25  ;;  %v415_v60 = vmul.f32 %v1292_v8, %v1334_v30  ;;  %v416_v61 = vmul.f32 %v1292_v8, %v1337_v31 }
  0x3a   : > { %v417_v3 = vmul.f32 %v1292_v8, %v1340_v32  ;;  %v418_v62 = vmul.f32 %v1292_v8, %v1347_v37  ;;  %v419_v63 = vmul.f32 %v1292_v8, %v1404_v43  ;;  %v420_v1 = vmul.f32 %v1292_v8, %v1425_v50 }
  0x3b   : > { %v437_v2 = vrot.slane %v405_v51, 1  ;;  %v438_v14 = vrot.slane %v406_v52, 1  ;;  %v440_v15 = vrot.slane %v407_v53, 1  ;;  %v441_v22 = vrot.slane %v408_v7, 1 }
  0x3c   : > { %v443_v35 = vrot.slane %v409_v54, 1  ;;  %v444_v41 = vrot.slane %v410_v55, 1  ;;  %v446_v12 = vrot.slane %v411_v56, 1  ;;  %v447_v13 = vrot.slane %v412_v57, 1 }
  0x3d   : > { %v439_v19 = vsel %vm272_vm0, %v437_v2, %v438_v14  ;;  %v442_v26 = vsel %vm272_vm0, %v440_v15, %v441_v22  ;;  %v449_v27 = vrot.slane %v413_v58, 1  ;;  %v450_v4 = vrot.slane %v414_v59, 1 }
  0x3e   : > { %v445_v5 = vsel %vm272_vm0, %v443_v35, %v444_v41  ;;  %v448_v33 = vsel %vm272_vm0, %v446_v12, %v447_v13  ;;  %v452_v38 = vrot.slane %v415_v60, 1  ;;  %v453_v8 = vrot.slane %v416_v61, 1 }
  0x3f   : > { %v451_v20 = vsel %vm272_vm0, %v449_v27, %v450_v4  ;;  %v455_v21 = vrot.slane %v417_v3, 1  ;;  %v456_v28 = vrot.slane %v418_v62, 1  ;;  %v458_v29 = vrot.slane %v419_v63, 1 }
  0x40   : > { %v454_v36 = vsel %vm272_vm0, %v452_v38, %v453_v8  ;;  %v459_v40 = vrot.slane %v420_v1, 1  ;;  %v469_v51 = vadd.f32 %v439_v19, %v396_v42  ;;  %v470_v52 = vadd.f32 %v442_v26, %v397_v39 }
  0x41   : > { %v457_v53 = vsel %vm272_vm0, %v455_v21, %v456_v28  ;;  %v471_v7 = vadd.f32 %v445_v5, %v398_v44  ;;  %v472_v54 = vadd.f32 %v448_v33, %v399_v45  ;;  %v473_v55 = vadd.f32 %v451_v20, %v400_v46 }
  0x42   : > { %v460_v56 = vsel %vm272_vm0, %v458_v29, %v459_v40  ;;  %v474_v57 = vadd.f32 %v454_v36, %v401_v47  ;;  %v475_v58 = vadd.f32 %v457_v53, %v402_v48  ;;  %v477_v59 = vperm.slane %v1263_v0, 5 }
  0x43   : > { %v476_v60 = vadd.f32 %v460_v56, %v403_v49  ;;  %v550_v61 = vperm.slane %v1263_v0, 6  ;;  %v1475_v3 = vperm.slane %v1263_v0, 7  ;;  %v1479_v42 = vmul.f32 %v1467_v34, %v1298_v10 }
  0x44   : > { %v478_v39 = vmul.f32 %v477_v59, %v1286_v6  ;;  %v479_v44 = vmul.f32 %v477_v59, %v1295_v9  ;;  %v480_v45 = vmul.f32 %v477_v59, %v1298_v10  ;;  %v481_v46 = vmul.f32 %v477_v59, %v1301_v11 }
  0x45   : > { %v482_v47 = vmul.f32 %v477_v59, %v1308_v16  ;;  %v483_v48 = vmul.f32 %v477_v59, %v1311_v17  ;;  %v484_v49 = vmul.f32 %v477_v59, %v1314_v18  ;;  %v485_v0 = vmul.f32 %v477_v59, %v1321_v23 }
  0x46   : > { %v486_v62 = vmul.f32 %v477_v59, %v1324_v24  ;;  %v487_v63 = vmul.f32 %v477_v59, %v1327_v25  ;;  %v488_v6 = vmul.f32 %v477_v59, %v1334_v30  ;;  %v489_v9 = vmul.f32 %v477_v59, %v1337_v31 }
  0x47   : > { %v490_v1 = vmul.f32 %v477_v59, %v1340_v32  ;;  %v491_v2 = vmul.f32 %v477_v59, %v1347_v37  ;;  %v492_v14 = vmul.f32 %v477_v59, %v1404_v43  ;;  %v493_v15 = vmul.f32 %v477_v59, %v1425_v50 }
  0x48   : > { %v510_v22 = vrot.slane %v478_v39, 2  ;;  %v511_v35 = vrot.slane %v479_v44, 2  ;;  %v513_v41 = vrot.slane %v480_v45, 2  ;;  %v514_v12 = vrot.slane %v481_v46, 2  ;;  %v1504_v45 = vld [vmem:[%s1274_s7 + $0x90] sm:$0xff] }
  0x49   : > { %v516_v13 = vrot.slane %v482_v47, 2  ;;  %v517_v19 = vrot.slane %v483_v48, 2  ;;  %v519_v26 = vrot.slane %v484_v49, 2  ;;  %v520_v27 = vrot.slane %v485_v0, 2 }
  0x4a   : > { %v512_v4 = vsel %vm346_vm1, %v510_v22, %v511_v35  ;;  %v515_v5 = vsel %vm346_vm1, %v513_v41, %v514_v12  ;;  %v522_v33 = vrot.slane %v486_v62, 2  ;;  %v523_v38 = vrot.slane %v487_v63, 2  ;;  %v1517_v12 = vld [vmem:[%s1274_s7 + $0x98] sm:$0x3]  ;;  %s1135_s7 = sshra.s32 %s947_s5, 4  ;;  %s1136_s7 = int_to_ptr.hbm [resolvable:$true] %s1135_s7 }
  0x4b   : > { %v518_v8 = vsel %vm346_vm1, %v516_v13, %v517_v19  ;;  %v521_v20 = vsel %vm346_vm1, %v519_v26, %v520_v27  ;;  %v525_v21 = vrot.slane %v488_v6, 2  ;;  %v526_v28 = vrot.slane %v489_v9, 2  ;;  %s1137_s8 = scalar_lea.hbm %s1136_s7, 1  ;;  %p1142_p0 = scmp.lt.s32.totalorder %s1136_s7, %s1872_s4 }
  0x4c   : > { %v524_v29 = vsel %vm346_vm1, %v522_v33, %v523_v38  ;;  %v528_v36 = vrot.slane %v490_v1, 2  ;;  %v529_v40 = vrot.slane %v491_v2, 2  ;;  %v531_v53 = vrot.slane %v492_v14, 2  ;;  %p1138_p11 = scmp.ne.s32.totalorder %s1136_s7, %s1137_s8  ;;  %p1143_p1 = scmp.lt.s32.totalorder %s1141_s10, %s1137_s8 }
  0x4d   : > { %v527_v56 = vsel %vm346_vm1, %v525_v21, %v526_v28  ;;  %v532_v59 = vrot.slane %v493_v15, 2  ;;  %v542_v39 = vadd.f32 %v512_v4, %v469_v51  ;;  %v543_v44 = vadd.f32 %v515_v5, %v470_v52 }
  0x4e   : > { %v530_v46 = vsel %vm346_vm1, %v528_v36, %v529_v40  ;;  %v544_v47 = vadd.f32 %v518_v8, %v471_v7  ;;  %v545_v48 = vadd.f32 %v521_v20, %v472_v54  ;;  %v546_v49 = vadd.f32 %v524_v29, %v473_v55  ;;  %p1139_p12 = pnand %p1138_p11, %p1249_p5  ;;  %p1144_p2 = por %p1143_p1, %p1142_p0 }
  0x4f   : > { %v533_v0 = vsel %vm346_vm1, %v531_v53, %v532_v59  ;;  %v547_v62 = vadd.f32 %v527_v56, %v474_v57  ;;  %v548_v63 = vadd.f32 %v530_v46, %v475_v58  ;;  %v551_v6 = vmul.f32 %v550_v61, %v1298_v10 }
  0x50   : > { %v549_v9 = vadd.f32 %v533_v0, %v476_v60  ;;  %v552_v1 = vmul.f32 %v550_v61, %v1308_v16  ;;  %v553_v51 = vmul.f32 %v550_v61, %v1314_v18  ;;  %v554_v52 = vmul.f32 %v550_v61, %v1324_v24  ;;  %p1140_p13 = pneg %p1139_p12 }
  0x51   : > { %v555_v2 = vmul.f32 %v550_v61, %v1334_v30  ;;  %v556_v7 = vmul.f32 %v550_v61, %v1340_v32  ;;  %v557_v54 = vmul.f32 %v550_v61, %v1404_v43  ;;  %v558_v55 = vmul.f32 %v550_v61, %v1504_v45 }
  0x52   : > { %v559_v57 = vadd.f32 %v551_v6, %v542_v39  ;;  %v560_v58 = vadd.f32 %v552_v1, %v543_v44  ;;  %v561_v14 = vadd.f32 %v553_v51, %v544_v47  ;;  %v562_v15 = vadd.f32 %v554_v52, %v545_v48  ;;  %p1145_p3 = pnand %p1144_p2, %p1140_p13 }
  0x53   : > { %v563_v60 = vadd.f32 %v555_v2, %v546_v49  ;;  %v564_v22 = vadd.f32 %v556_v7, %v547_v62  ;;  %v565_v35 = vadd.f32 %v557_v54, %v548_v63  ;;  %v566_v41 = vadd.f32 %v558_v55, %v549_v9 }
  0x54   : > { %v568_v13 = vmul.f32 %v1475_v3, %v1298_v10  ;;  %v569_v19 = vmul.f32 %v1475_v3, %v1301_v11  ;;  %v570_v26 = vmul.f32 %v1475_v3, %v1308_v16  ;;  %v571_v61 = vmul.f32 %v1475_v3, %v1311_v17 }
  0x55   : > { %v572_v27 = vmul.f32 %v1475_v3, %v1314_v18  ;;  %v573_v4 = vmul.f32 %v1475_v3, %v1321_v23  ;;  %v574_v5 = vmul.f32 %v1475_v3, %v1324_v24  ;;  %v575_v10 = vmul.f32 %v1475_v3, %v1327_v25 }
  0x56   : > { %v576_v33 = vmul.f32 %v1475_v3, %v1334_v30  ;;  %v577_v38 = vmul.f32 %v1475_v3, %v1337_v31  ;;  %v578_v8 = vmul.f32 %v1475_v3, %v1340_v32  ;;  %v579_v20 = vmul.f32 %v1475_v3, %v1347_v37 }
  0x57   : > { %v580_v21 = vmul.f32 %v1475_v3, %v1404_v43  ;;  %v581_v28 = vmul.f32 %v1475_v3, %v1425_v50  ;;  %v582_v29 = vmul.f32 %v1475_v3, %v1504_v45  ;;  %v583_v36 = vmul.f32 %v1475_v3, %v1517_v12 }
  0x58   : > { %v600_v40 = vrot.slane %v568_v13, 1  ;;  %v601_v53 = vrot.slane %v569_v19, 1  ;;  %v603_v56 = vrot.slane %v570_v26, 1  ;;  %v604_v59 = vrot.slane %v571_v61, 1 }
  0x59   : > { %v606_v39 = vrot.slane %v572_v27, 1  ;;  %v607_v44 = vrot.slane %v573_v4, 1  ;;  %v609_v46 = vrot.slane %v574_v5, 1  ;;  %v610_v47 = vrot.slane %v575_v10, 1 }
  0x5a   : > { %v602_v48 = vsel %vm272_vm0, %v600_v40, %v601_v53  ;;  %v605_v49 = vsel %vm272_vm0, %v603_v56, %v604_v59  ;;  %v612_v0 = vrot.slane %v576_v33, 1  ;;  %v613_v62 = vrot.slane %v577_v38, 1  ;;  %v1086_v40 = vld [vmem:[%s1870_s2] ss:$0 sm:$0xff] }
  0x5b   : > { %v608_v63 = vsel %vm272_vm0, %v606_v39, %v607_v44  ;;  %v611_v6 = vsel %vm272_vm0, %v609_v46, %v610_v47  ;;  %v615_v9 = vrot.slane %v578_v8, 1  ;;  %v616_v3 = vrot.slane %v579_v20, 1 }
  0x5c   : > { %v614_v1 = vsel %vm272_vm0, %v612_v0, %v613_v62  ;;  %v618_v51 = vrot.slane %v580_v21, 1  ;;  %v619_v52 = vrot.slane %v581_v28, 1  ;;  %v621_v2 = vrot.slane %v582_v29, 1 }
  0x5d   : > { %v617_v7 = vsel %vm272_vm0, %v615_v9, %v616_v3  ;;  %v622_v54 = vrot.slane %v583_v36, 1  ;;  %v632_v55 = vadd.f32 %v602_v48, %v559_v57  ;;  %v633_v13 = vadd.f32 %v605_v49, %v560_v58 }
  0x5e   : > { %v620_v19 = vsel %vm272_vm0, %v618_v51, %v619_v52  ;;  %v634_v26 = vadd.f32 %v608_v63, %v561_v14  ;;  %v635_v61 = vadd.f32 %v611_v6, %v562_v15  ;;  %v636_v27 = vadd.f32 %v614_v1, %v563_v60 }
  0x5f   : > { %v623_v4 = vsel %vm272_vm0, %v621_v2, %v622_v54  ;;  %v637_v5 = vadd.f32 %v617_v7, %v564_v22  ;;  %v638_v10 = vadd.f32 %v620_v19, %v565_v35  ;;  %v642_v33 = vmul.f32 %v1467_v34, %v1301_v11 }
  0x60   : > { %v639_v38 = vadd.f32 %v623_v4, %v566_v41  ;;  %v643_v8 = vmul.f32 %v1467_v34, %v1308_v16  ;;  %v644_v57 = vmul.f32 %v1467_v34, %v1311_v17  ;;  %v645_v58 = vmul.f32 %v1467_v34, %v1314_v18 }
  0x61   : > { %v646_v14 = vmul.f32 %v1467_v34, %v1321_v23  ;;  %v647_v15 = vmul.f32 %v1467_v34, %v1324_v24  ;;  %v648_v60 = vmul.f32 %v1467_v34, %v1327_v25  ;;  %v649_v11 = vmul.f32 %v1467_v34, %v1334_v30 }
  0x62   : > { %v650_v16 = vmul.f32 %v1467_v34, %v1337_v31  ;;  %v651_v17 = vmul.f32 %v1467_v34, %v1340_v32  ;;  %v652_v18 = vmul.f32 %v1467_v34, %v1347_v37  ;;  %v653_v23 = vmul.f32 %v1467_v34, %v1404_v43 }
  0x63   : > { %v654_v24 = vmul.f32 %v1467_v34, %v1425_v50  ;;  %v655_v25 = vmul.f32 %v1467_v34, %v1504_v45  ;;  %v656_v30 = vmul.f32 %v1467_v34, %v1517_v12  ;;  %v673_v31 = vrot.slane %v1479_v42, 2 }
  0x64   : > { %v674_v22 = vrot.slane %v642_v33, 2  ;;  %v676_v35 = vrot.slane %v643_v8, 2  ;;  %v677_v32 = vrot.slane %v644_v57, 2  ;;  %v679_v41 = vrot.slane %v645_v58, 2 }
  0x65   : > { %v680_v20 = vrot.slane %v646_v14, 2  ;;  %v682_v37 = vrot.slane %v647_v15, 2  ;;  %v683_v21 = vrot.slane %v648_v60, 2  ;;  %v685_v28 = vrot.slane %v649_v11, 2 }
  0x66   : > { %v675_v43 = vsel %vm346_vm1, %v673_v31, %v674_v22  ;;  %v678_v50 = vsel %vm346_vm1, %v676_v35, %v677_v32  ;;  %v686_v29 = vrot.slane %v650_v16, 2  ;;  %v688_v36 = vrot.slane %v651_v17, 2 }
  0x67   : > { %v681_v45 = vsel %vm346_vm1, %v679_v41, %v680_v20  ;;  %v684_v34 = vsel %vm346_vm1, %v682_v37, %v683_v21  ;;  %v689_v12 = vrot.slane %v652_v18, 2  ;;  %v691_v42 = vrot.slane %v653_v23, 2 }
  0x68   : > { %v687_v53 = vsel %vm346_vm1, %v685_v28, %v686_v29  ;;  %v692_v56 = vrot.slane %v654_v24, 2  ;;  %v694_v59 = vrot.slane %v655_v25, 2  ;;  %v695_v39 = vrot.slane %v656_v30, 2 }
  0x69   : > { %v690_v44 = vsel %vm346_vm1, %v688_v36, %v689_v12  ;;  %v705_v46 = vadd.f32 %v675_v43, %v632_v55  ;;  %v706_v47 = vadd.f32 %v678_v50, %v633_v13  ;;  %v707_v48 = vadd.f32 %v681_v45, %v634_v26 }
  0x6a   : > { %v693_v49 = vsel %vm346_vm1, %v691_v42, %v692_v56  ;;  %v696_v0 = vsel %vm346_vm1, %v694_v59, %v695_v39  ;;  %v708_v62 = vadd.f32 %v684_v34, %v635_v61  ;;  %v709_v63 = vadd.f32 %v687_v53, %v636_v27 }
  0x6b   : > { %v710_v6 = vadd.f32 %v690_v44, %v637_v5  ;;  %v711_v9 = vadd.f32 %v693_v49, %v638_v10  ;;  %v712_v3 = vadd.f32 %v696_v0, %v639_v38  ;;  %v1601_v1 = vadd.f32 %v1086_v40, %v705_v46 }
  0x6c   : > { %v1603_v51 = vadd.f32 %v1086_v40, %v706_v47  ;;  %v1605_v52 = vadd.f32 %v1086_v40, %v707_v48  ;;  %v1607_v2 = vadd.f32 %v1086_v40, %v708_v62  ;;  %v1609_v7 = vadd.f32 %v1086_v40, %v709_v63 }
  0x6d   : > { %v1611_v54 = vadd.f32 %v1086_v40, %v710_v6  ;;  %v1613_v55 = vadd.f32 %v1086_v40, %v711_v9  ;;  %v1033_v13 = vmul.f32 -1.442695, %v1601_v1  ;;  %v1616_v19 = vadd.f32 %v1086_v40, %v712_v3 }
  0x6e   : > { %v1034_v26 = vmul.f32 -1.442695, %v1603_v51  ;;  %v1035_v61 = vmul.f32 -1.442695, %v1605_v52  ;;  %v1036_v27 = vmul.f32 -1.442695, %v1607_v2 }
  0x6f   : > { %1087 = vpow2.f32 %v1033_v13  ;;  %v1037_v4 = vmul.f32 -1.442695, %v1609_v7  ;;  %v1038_v5 = vmul.f32 -1.442695, %v1611_v54  ;;  %v1039_v10 = vmul.f32 -1.442695, %v1613_v55 }
  0x70   : > { %1089 = vpow2.f32 %v1034_v26  ;;  %v1040_v33 = vmul.f32 -1.442695, %v1616_v19 }
  0x71   : > { %1091 = vpow2.f32 %v1035_v61 }
  0x72   : > { %1093 = vpow2.f32 %v1036_v27 }
  0x73   : > { %1095 = vpow2.f32 %v1037_v4 }
  0x74   : > { %1097 = vpow2.f32 %v1038_v5 }
  0x75   : > { %v1088_v38 = vpop.eup %1087  ;;  %1099 = vpow2.f32 %v1039_v10 }
  0x76   : > { %v1090_v8 = vpop.eup %1089  ;;  %1101 = vpow2.f32 %v1040_v33  ;;  %v749_v57 = vadd.f32 1.0, %v1088_v38 }
  0x77   : > { %v1092_v58 = vpop.eup %1091  ;;  %v1625_v14 = vadd.f32 1.0, %v1090_v8 }
  0x78   : > { %v1094_v15 = vpop.eup %1093  ;;  %v1627_v60 = vadd.f32 1.0, %v1092_v58  ;;  %1103 = vrcp.f32 %v749_v57  ;;  %v768_v17 = vand.u32 2147483648, %v749_v57  ;;  %vm762_vm2 = vweird.f32 %v749_v57 }
  0x79   : > { %v1096_v11 = vpop.eup %1095  ;;  %v1629_v16 = vadd.f32 1.0, %v1094_v15  ;;  %1105 = vrcp.f32 %v1625_v14  ;;  %v783_v25 = vand.u32 2147483648, %v1625_v14  ;;  %v766_v22 = vand.u32 2147483647, %v749_v57 }
  0x7a   : > { %v1098_v18 = vpop.eup %1097  ;;  %v1632_v23 = vadd.f32 1.0, %v1096_v11  ;;  %1107 = vrcp.f32 %v1627_v60  ;;  %vm777_vm3 = vweird.f32 %v1625_v14  ;;  %v781_v35 = vand.u32 2147483647, %v1625_v14 }
  0x7b   : > { %v1100_v24 = vpop.eup %1099  ;;  %v1636_v31 = vadd.f32 1.0, %v1098_v18  ;;  %v1640_v32 = vor.u32 1.1754944e-38, %v768_v17  ;;  %v796_v41 = vand.u32 2147483647, %v1627_v60  ;;  %v798_v20 = vand.u32 2147483648, %v1627_v60 }
  0x7c   : > { %v1102_v30 = vpop.eup %1101  ;;  %1109 = vrcp.f32 %v1629_v16  ;;  %v1647_v21 = vadd.f32 1.0, %v1100_v24  ;;  %vm792_vm4 = vweird.f32 %v1627_v60  ;;  %v811_v28 = vand.u32 2147483647, %v1629_v16 }
  0x7d   : > { %1111 = vrcp.f32 %v1632_v23  ;;  %v1654_v50 = vadd.f32 1.0, %v1102_v30  ;;  %v1657_v36 = vor.u32 1.1754944e-38, %v783_v25  ;;  %v813_v45 = vand.u32 2147483648, %v1629_v16 }
  0x7e   : > { %v1645_v37 = vpop.eup %1103  ;;  %vm1661_vm6 = vcmp.eq.f32.partialorder %v766_v22, 8.507059e+37  ;;  %v799_v42 = vor.u32 1.1754944e-38, %v798_v20  ;;  %vm807_vm7 = vweird.f32 %v1629_v16  ;;  %vm1668_vm8 = vcmp.eq.f32.partialorder %v781_v35, 8.507059e+37 }
  0x7f   : > { %v1652_v43 = vpop.eup %1105  ;;  %v758_v29 = vmul.f32 %v1645_v37, %v749_v57  ;;  %vm763_vm5 = vweird.f32 %v1645_v37  ;;  %vm1672_vm9 = vcmp.eq.f32.partialorder %v796_v41, 8.507059e+37  ;;  %v826_v39 = vand.u32 2147483647, %v1632_v23 }
  0x80   : > { %v773_v12 = vmul.f32 %v1652_v43, %v1625_v14  ;;  %v1108_v40 = vpop.eup %1107  ;;  %1113 = vrcp.f32 %v1636_v31  ;;  %vm778_vm11 = vweird.f32 %v1652_v43  ;;  %vm1681_vm12 = vcmp.eq.f32.partialorder %v811_v28, 8.507059e+37  ;;  %vm1694_vm14 = vmor %vm762_vm2, %vm763_vm5 }
  0x81   : > { %v759_v53 = vsub.f32 1.0, %v758_v29  ;;  %v788_v46 = vmul.f32 %v1108_v40, %v1627_v60  ;;  %vm793_vm13 = vweird.f32 %v1108_v40  ;;  %v814_v0 = vor.u32 1.1754944e-38, %v813_v45  ;;  %vm1709_vm1 = vmor %vm777_vm3, %vm778_vm11 }
  0x82   : > { %v774_v44 = vsub.f32 1.0, %v773_v12  ;;  %v1110_v48 = vpop.eup %1109  ;;  %v828_v62 = vand.u32 2147483648, %v1632_v23  ;;  %v841_v13 = vand.u32 2147483647, %v1636_v31  ;;  %vm1699_vm15 = vcmp.eq.f32.partialorder %v826_v39, 8.507059e+37  ;;  %vm1716_vm10 = vmor %vm792_vm4, %vm793_vm13 }
  0x83   : > { %v760_v49 = vmul.f32 %v1645_v37, %v759_v53  ;;  %v1112_v63 = vpop.eup %1111  ;;  %v789_v9 = vsub.f32 1.0, %v788_v46  ;;  %v803_v3 = vmul.f32 %v1110_v48, %v1629_v16  ;;  %vm808_vm2 = vweird.f32 %v1110_v48 }
  0x84   : > { %v775_v6 = vmul.f32 %v1652_v43, %v774_v44  ;;  %v818_v27 = vmul.f32 %v1112_v63, %v1632_v23  ;;  %vm885_vm5 = vcmask 523264   ;;  %vm823_vm0 = vweird.f32 %v1112_v63  ;;  %vm1733_vm4 = vmor %vm807_vm7, %vm808_vm2 }
  0x85   : > { %v761_v26 = vadd.f32 %v1645_v37, %v760_v49  ;;  %v790_v33 = vmul.f32 %v1108_v40, %v789_v9  ;;  %v804_v38 = vsub.f32 1.0, %v803_v3  ;;  %v829_v15 = vor.u32 1.1754944e-38, %v828_v62 }
  0x86   : > { %v776_v5 = vadd.f32 %v1652_v43, %v775_v6  ;;  %v1114_v8 = vpop.eup %1113  ;;  %v819_v58 = vsub.f32 1.0, %v818_v27  ;;  %1115 = vrcp.f32 %v1647_v21  ;;  %vm1724_vm3 = vcmp.eq.f32.partialorder %v841_v13, 8.507059e+37 }
  0x87   : > { %v765_v14 = vsel %vm1694_vm14, %v1645_v37, %v761_v26  ;;  %v791_v11 = vadd.f32 %v1108_v40, %v790_v33  ;;  %v805_v17 = vmul.f32 %v1110_v48, %v804_v38  ;;  %v833_v30 = vmul.f32 %v1114_v8, %v1636_v31 }
  0x88   : > { %v780_v60 = vsel %vm1709_vm1, %v1652_v43, %v776_v5  ;;  %v820_v25 = vmul.f32 %v1112_v63, %v819_v58  ;;  %v843_v22 = vand.u32 2147483648, %v1636_v31  ;;  %vm1895_vm11 = vweird.f32 %v1632_v23 }
  0x89   : > { %v795_v35 = vsel %vm1716_vm10, %v1108_v40, %v791_v11  ;;  %v806_v41 = vadd.f32 %v1110_v48, %v805_v17  ;;  %vm1743_vm13 = vmor %vm1895_vm11, %vm823_vm0  ;;  %vm852_vm7 = vweird.f32 %v1647_v21  ;;  %v856_v16 = vand.u32 2147483647, %v1647_v21 }
  0x8a   : > { %v770_v37 = vsel %vm1661_vm6, %v1640_v32, %v765_v14  ;;  %v821_v28 = vadd.f32 %v1112_v63, %v820_v25  ;;  %v834_v43 = vsub.f32 1.0, %v833_v30  ;;  %vm838_vm14 = vweird.f32 %v1114_v8 }
  0x8b   : > { %v785_v23 = vsel %vm1668_vm8, %v1657_v36, %v780_v60  ;;  %v800_v29 = vsel %vm1672_vm9, %v799_v42, %v795_v35  ;;  %v810_v45 = vsel %vm1733_vm4, %v1110_v48, %v806_v41  ;;  %1117 = vrcp.f32 %v1654_v50 }
  0x8c   : > { %v1116_v12 = vpop.eup %1115  ;;  %v815_v32 = vsel %vm1681_vm12, %v814_v0, %v810_v45  ;;  %v825_v34 = vsel %vm1743_vm13, %v1112_v63, %v821_v28  ;;  %v835_v40 = vmul.f32 %v1114_v8, %v834_v43  ;;  %v858_v53 = vand.u32 2147483648, %v1647_v21 }
  0x8d   : > { %v830_v36 = vsel %vm1699_vm15, %v829_v15, %v825_v34  ;;  %vm1898_vm6 = vweird.f32 %v1636_v31  ;;  %v844_v56 = vor.u32 1.1754944e-38, %v843_v22  ;;  %v848_v59 = vmul.f32 %v1116_v12, %v1647_v21 }
  0x8e   : > { %vm1770_vm8 = vmor %vm1898_vm6, %vm838_vm14  ;;  %vm1775_vm9 = vcmp.eq.f32.partialorder %v856_v16, 8.507059e+37  ;;  %v836_v44 = vadd.f32 %v1114_v8, %v835_v40  ;;  %vm867_vm10 = vweird.f32 %v1654_v50  ;;  %v877_v31 = vmul.f32 %v770_v37, %v1601_v1 }
  0x8f   : > { %v878_v46 = vmul.f32 %v785_v23, %v1603_v51  ;;  %v849_v47 = vsub.f32 1.0, %v848_v59  ;;  %vm853_vm12 = vweird.f32 %v1116_v12  ;;  %v879_v48 = vmul.f32 %v800_v29, %v1605_v52 }
  0x90   : > { %v880_v49 = vmul.f32 %v815_v32, %v1607_v2  ;;  %v840_v0 = vsel %vm1770_vm8, %v1114_v8, %v836_v44  ;;  %v859_v62 = vor.u32 1.1754944e-38, %v858_v53  ;;  %v881_v63 = vmul.f32 %v830_v36, %v1609_v7  ;;  %886 = vst.msk [vmem:[%s1782_s20] sm:$0xff] %vm885_vm5, %v877_v31  ;;  %vm1803_vm15 = vmor %vm852_vm7, %vm853_vm12 }
  0x91   : > { %v894_v6 = vsel %vm885_vm5, %v877_v31, 0.0  ;;  %v1118_v1 = vpop.eup %1117  ;;  %v845_v51 = vsel %vm1724_vm3, %v844_v56, %v840_v0  ;;  %v850_v9 = vmul.f32 %v1116_v12, %v849_v47  ;;  %v895_v52 = vsel %vm885_vm5, %v878_v46, 0.0  ;;  %887 = vst.msk [vmem:[%s1782_s20 + $0x8] sm:$0xff] %vm885_vm5, %v878_v46 }
  0x92   : > { %v897_v2 = vsel %vm885_vm5, %v879_v48, 0.0  ;;  %v863_v3 = vmul.f32 %v1118_v1, %v1654_v50  ;;  %v871_v13 = vand.u32 2147483647, %v1654_v50  ;;  %v873_v26 = vand.u32 2147483648, %v1654_v50  ;;  %888 = vst.msk [vmem:[%s1782_s20 + $0x10] sm:$0xff] %vm885_vm5, %v879_v48 }
  0x93   : > { %v896_v61 = vadd.f32 %v895_v52, %v894_v6  ;;  %v851_v27 = vadd.f32 %v1116_v12, %v850_v9  ;;  %v882_v4 = vmul.f32 %v845_v51, %v1611_v54  ;;  %v899_v21 = vsel %vm885_vm5, %v880_v49, 0.0  ;;  %889 = vst.msk [vmem:[%s1782_s20 + $0x18] sm:$0xff] %vm885_vm5, %v880_v49 }
  0x94   : > { %v864_v5 = vsub.f32 1.0, %v863_v3  ;;  %vm868_vm0 = vweird.f32 %v1118_v1  ;;  %v1185_v33 = vmov 64.0   ;;  %890 = vst.msk [vmem:[%s1782_s20 + $0x20] sm:$0xff] %vm885_vm5, %v881_v63  ;;  %v901_v8 = vsel %vm885_vm5, %v881_v63, 0.0 }
  0x95   : > { %v898_v10 = vadd.f32 %v897_v2, %v896_v61  ;;  %1119 = vrcp.f32 %v1185_v33  ;;  %v855_v38 = vsel %vm1803_vm15, %v1116_v12, %v851_v27  ;;  %891 = vst.msk [vmem:[%s1782_s20 + $0x28] sm:$0xff] %vm885_vm5, %v882_v4  ;;  %vm869_vm1 = vmor %vm867_vm10, %vm868_vm0  ;;  %v874_v15 = vor.u32 1.1754944e-38, %v873_v26 }
  0x96   : > { %v860_v54 = vsel %vm1775_vm9, %v859_v62, %v855_v38  ;;  %v865_v57 = vmul.f32 %v1118_v1, %v864_v5  ;;  %v903_v11 = vsel %vm885_vm5, %v882_v4, 0.0  ;;  %vm872_vm2 = vcmp.eq.f32.partialorder %v871_v13, 8.507059e+37 }
  0x97   : > { %v900_v58 = vadd.f32 %v899_v21, %v898_v10  ;;  %v883_v14 = vmul.f32 %v860_v54, %v1613_v55 }
  0x98   : > { %v866_v17 = vadd.f32 %v1118_v1, %v865_v57 }
  0x99   : > { %v902_v18 = vadd.f32 %v901_v8, %v900_v58  ;;  %v905_v60 = vsel %vm885_vm5, %v883_v14, 0.0  ;;  %892 = vst.msk [vmem:[%s1782_s20 + $0x30] sm:$0xff] %vm885_vm5, %v883_v14 }
  0x9a   : > { %v870_v25 = vsel %vm869_vm1, %v1118_v1, %v866_v17 }
  0x9b   : > { %v1120_v24 = vpop.eup %1119  ;;  %v904_v30 = vadd.f32 %v903_v11, %v902_v18  ;;  %v875_v22 = vsel %vm872_vm2, %v874_v15, %v870_v25 }
  0x9c   : > { %v916_v50 = vmul.f32 64.0, %v1120_v24  ;;  %v884_v35 = vmul.f32 %v875_v22, %v1616_v19  ;;  %vm920_vm3 = vweird.f32 %v1120_v24 }
  0x9d   : > { %v906_v55 = vadd.f32 %v905_v60, %v904_v30 }
  0x9e   : > { %v907_v41 = vsel %vm885_vm5, %v884_v35, 0.0  ;;  %v917_v20 = vsub.f32 1.0, %v916_v50  ;;  %893 = vst.msk [vmem:[%s1782_s20 + $0x38] sm:$0xff] %vm885_vm5, %v884_v35  ;;  %vm923_vm5 = vcmask 516096  }
  0x9f   : > { %v908_v16 = vadd.f32 %v907_v41, %v906_v55 }
  0xa0   : > { %v918_v28 = vmul.f32 %v1120_v24, %v917_v20 }
  0xa1   : > { %v909_v37 = vrot.slane %v908_v16, 4 }
  0xa2   : > { %v919_v29 = vadd.f32 %v1120_v24, %v918_v28 }
  0xa3   : > { %v910_v43 = vadd.f32 %v909_v37, %v908_v16 }
  0xa4   : > { %v921_v12 = vsel %vm920_vm3, %v1120_v24, %v919_v29 }
  0xa5   : > { %v911_v23 = vrot.slane %v910_v43, 2 }
  0xa7   : > { %v912_v45 = vadd.f32 %v911_v23, %v910_v43 }
  0xa9   : > { %v913_v19 = vrot.slane %v912_v45, 1 }
  0xab   : > { %v914_v32 = vadd.f32 %v913_v19, %v912_v45 }
  0xad   : > { %v922_v34 = vmul.f32 %v921_v12, %v914_v32 }
  0xaf   : > { %924 = vst.msk [vmem:[%s197_s29] sm:$0x1] %vm923_vm5, %v922_v34 }
  0xb0   : > { %1148 = shalt.err (!%p1145_p3)
}
  0xb1   : > { %1045 = dma.vmem_to_hbm [thread:$0]  (%p1249_p5), %s945_s30, 16, %s947_s5, %s931_s6  }
  0xb2 PF: > { %p1051_p4 = scmp.ge.s32.totalorder %s1183_s18, 2  ;;  %s966_s13 = sand.u32 1, %s1171_s15  }
  0xb3   : > { %s967_s14 = scalar_lea.sflag [#allocation3], %s966_s13 }
  0xb4   : > { %p1048_p7 = pnand %p1051_p4, %p1253_p6 }
  0xb6   : > { %p1049_p8 = pneg %p1048_p7 }
  0xb8   : > { %1166 = dma.done.wait (%p1049_p8), %s967_s14, 16  }
  0xb9   : > { %1168 = vsyncadd (%p1049_p8), %s967_s14, 4294967280  ;;  %p15_p9 = scmp.ge.s32.totalorder %s1236_s21, 4   ;;  %s1905_s15 = smov %s1175_s16 }
  0xba   : > { %s1906_s16 = smov %s1179_s17  ;;  %s1907_s17 = smov %s1247_s24 }
  0xbb   : > { %s1908_s18 = smov %s1236_s21  ;;  %17 = sbr.rel (!%p15_p9) target bundleno = 3 (0x3), region = 79 }
  0xc0   :  { %972 = vsyncpa [#allocation3], 1 }
  0xc1   :  { %974 = vsyncpa [#allocation3 + $0x1], 1 }

// kernel: two_headed_efficientnet_forward.18
= control target key start
LH: loop header
LB: loop body
LE: loop exit
PB: predicated region body
PF: predicated region fallthrough
CT: control target
= control target key end

     0   :  { %s639_s15 = smov 0   ;;  %s789_s0 = inlined_call_operand.vmem [shape: f32[2,6,6,96], index: 0, kind: input, shape index: {}]   ;;  %s790_s1 = inlined_call_operand.vmem [shape: f32[9,96], index: 1, kind: input, shape index: {}]   ;;  %s791_s2 = inlined_call_operand.vmem [shape: f32[1,96], index: 2, kind: input, shape index: {}]   ;;  %s792_s3 = inlined_call_operand.vmem [shape: f32[2,4,4,96], index: 3, kind: output, shape index: {0}]   ;;  %s793_s4 = inlined_call_operand.vmem [shape: f32[2,1,96], index: 4, kind: output, shape index: {1}]  }
   0x1 LB: > { %s560_s16 = sadd.s32 4294967295, %s611_s15   ;;  %p564_p0 = scmp.ge.s32.totalorder %s611_s15, 1  ;;  %s611_s15 = sphi %s639_s15, %s15_s15  }
   0x2   : > { %p165_p1 = scmp.lt.s32.totalorder %s611_s15, 3 }
   0x4   : > { %p166_p2 = pnand %p564_p0, %p165_p1 }
   0x5   : > { %p194_p3 = scmp.lt.s32.totalorder (!%p166_p2), %s560_s16, 1 }
   0x6   : > { %169 = sbr.rel (%p166_p2) target bundleno = 98 (0x62), region = 32 }
   0xb   : > { %v213_v0 = vld [vmem:[%s790_s1] sm:$0xff]  ;;  %s803_s16 = smov (!%p194_p3, %s560_s16), 1  ;;  %v680_v13 = vld [vmem:[%s790_s1 + $0x8] ss:$0 sm:$0xff]  ;;  %vm452_vm10 = vcmask 781312  }
   0xc   : > { %s575_s19 = smul.u32 48, %s803_s16  ;;  %v653_v1 = vperm.slane %v213_v0, 0  ;;  %v655_v2 = vperm.slane %v213_v0, 1  ;;  %v657_v3 = vperm.slane %v213_v0, 2  ;;  %v659_v4 = vperm.slane %v213_v0, 4  ;;  %s574_s27 = sshll.u32 %s803_s16, 4 }
   0xd   : > { %v666_v5 = vperm.slane %v213_v0, 5  ;;  %v668_v6 = vperm.slane %v213_v0, 7  ;;  %v675_v12 = vperm.slane %v213_v0, 3  ;;  %v684_v16 = vperm.slane %v213_v0, 6  ;;  %s754_s30 = scalar_lea.vmem %s792_s3, %s574_s27  ;;  %s206_s7 = scalar_lea.vmem %s793_s4, %s803_s16 }
   0xe   : > { %s664_s22 = scalar_lea.vmem %s789_s0, %s575_s19 }
   0xf   : > { %v207_v7 = vld [vmem:[%s664_s22] sm:$0x3f]  ;;  %v208_v8 = vld [vmem:[%s664_s22 + $0x8] sm:$0x3f]  ;;  %v209_v14 = vld [vmem:[%s664_s22 + $0x10] sm:$0x3f] }
  0x10   : > { %v216_v9 = vmul.f32 %v653_v1, %v207_v7  ;;  %v221_v10 = vmul.f32 %v655_v2, %v207_v7  ;;  %v242_v11 = vmul.f32 %v657_v3, %v207_v7  ;;  %v272_v15 = vmul.f32 %v659_v4, %v208_v8  ;;  %v210_v31 = vld [vmem:[%s664_s22 + $0x18] sm:$0x3f]  ;;  %v211_v57 = vld [vmem:[%s664_s22 + $0x20] sm:$0x3f] }
  0x11   : > { %v293_v19 = vmul.f32 %v666_v5, %v208_v8  ;;  %v323_v20 = vmul.f32 %v668_v6, %v209_v14  ;;  %v217_v21 = vmul.f32 %v653_v1, %v208_v8  ;;  %v222_v22 = vmul.f32 %v655_v2, %v208_v8 }
  0x12   : > { %v229_v17 = vrot.slane %v221_v10, 1  ;;  %v250_v18 = vrot.slane %v242_v11, 2  ;;  %v263_v24 = vmul.f32 %v675_v12, %v208_v8  ;;  %v344_v25 = vmul.f32 %v680_v13, %v209_v14 }
  0x13   : > { %v243_v26 = vmul.f32 %v657_v3, %v208_v8  ;;  %v280_v27 = vrot.slane %v272_v15, 1  ;;  %v314_v28 = vmul.f32 %v684_v16, %v209_v14  ;;  %v230_v29 = vrot.slane %v222_v22, 1 }
  0x14   : > { %v237_v23 = vadd.f32 %v229_v17, %v216_v9  ;;  %v273_v30 = vmul.f32 %v659_v4, %v209_v14  ;;  %v301_v33 = vrot.slane %v293_v19, 2  ;;  %v331_v34 = vrot.slane %v323_v20, 1  ;;  %v586_v19 = vld [vmem:[%s791_s2] ss:$0 sm:$0xff] }
  0x15   : > { %v251_v35 = vrot.slane %v243_v26, 2  ;;  %v238_v36 = vadd.f32 %v230_v29, %v217_v21  ;;  %v264_v37 = vmul.f32 %v675_v12, %v209_v14  ;;  %v294_v38 = vmul.f32 %v666_v5, %v209_v14 }
  0x16   : > { %v258_v32 = vadd.f32 %v250_v18, %v237_v23  ;;  %v324_v39 = vmul.f32 %v668_v6, %v210_v31  ;;  %v352_v41 = vrot.slane %v344_v25, 2  ;;  %v218_v42 = vmul.f32 %v653_v1, %v209_v14 }
  0x17   : > { %v223_v43 = vmul.f32 %v655_v2, %v209_v14  ;;  %v259_v44 = vadd.f32 %v251_v35, %v238_v36  ;;  %v281_v45 = vrot.slane %v273_v30, 1  ;;  %v345_v46 = vmul.f32 %v680_v13, %v210_v31 }
  0x18   : > { %v267_v40 = vadd.f32 %v263_v24, %v258_v32  ;;  %v244_v47 = vmul.f32 %v657_v3, %v209_v14  ;;  %v315_v49 = vmul.f32 %v684_v16, %v210_v31  ;;  %v274_v51 = vmul.f32 %v659_v4, %v210_v31 }
  0x19   : > { %v231_v50 = vrot.slane %v223_v43, 1  ;;  %v268_v52 = vadd.f32 %v264_v37, %v259_v44  ;;  %v302_v53 = vrot.slane %v294_v38, 2  ;;  %v332_v54 = vrot.slane %v324_v39, 1 }
  0x1a   : > { %v288_v48 = vadd.f32 %v280_v27, %v267_v40  ;;  %v252_v55 = vrot.slane %v244_v47, 2  ;;  %v265_v59 = vmul.f32 %v675_v12, %v210_v31  ;;  %v295_v60 = vmul.f32 %v666_v5, %v210_v31  ;;  %v212_v27 = vld [vmem:[%s664_s22 + $0x28] sm:$0x3f] }
  0x1b   : > { %v239_v58 = vadd.f32 %v231_v50, %v218_v42  ;;  %v289_v61 = vadd.f32 %v281_v45, %v268_v52  ;;  %v353_v62 = vrot.slane %v345_v46, 2  ;;  %v219_v63 = vmul.f32 %v653_v1, %v210_v31 }
  0x1c   : > { %v309_v56 = vadd.f32 %v301_v33, %v288_v48  ;;  %v224_v0 = vmul.f32 %v655_v2, %v210_v31  ;;  %v282_v9 = vrot.slane %v274_v51, 1  ;;  %v245_v10 = vmul.f32 %v657_v3, %v210_v31 }
  0x1d   : > { %v260_v8 = vadd.f32 %v252_v55, %v239_v58  ;;  %v310_v11 = vadd.f32 %v302_v53, %v289_v61  ;;  %v325_v14 = vmul.f32 %v668_v6, %v211_v57  ;;  %v275_v17 = vmul.f32 %v659_v4, %v211_v57 }
  0x1e   : > { %v318_v7 = vadd.f32 %v314_v28, %v309_v56  ;;  %v232_v15 = vrot.slane %v224_v0, 1  ;;  %v303_v20 = vrot.slane %v295_v60, 2  ;;  %v253_v2 = vrot.slane %v245_v10, 2 }
  0x1f   : > { %v269_v1 = vadd.f32 %v265_v59, %v260_v8  ;;  %v319_v21 = vadd.f32 %v315_v49, %v310_v11  ;;  %v266_v23 = vmul.f32 %v675_v12, %v211_v57  ;;  %v296_v3 = vmul.f32 %v666_v5, %v211_v57 }
  0x20   : > { %v339_v18 = vadd.f32 %v331_v34, %v318_v7  ;;  %v240_v22 = vadd.f32 %v232_v15, %v219_v63  ;;  %v316_v26 = vmul.f32 %v684_v16, %v211_v57  ;;  %v346_v4 = vmul.f32 %v680_v13, %v211_v57 }
  0x21   : > { %v290_v25 = vadd.f32 %v282_v9, %v269_v1  ;;  %v340_v28 = vadd.f32 %v332_v54, %v319_v21  ;;  %v283_v30 = vrot.slane %v275_v17, 1  ;;  %v333_v33 = vrot.slane %v325_v14, 1 }
  0x22   : > { %v360_v24 = vadd.f32 %v352_v41, %v339_v18  ;;  %v261_v29 = vadd.f32 %v253_v2, %v240_v22  ;;  %v304_v36 = vrot.slane %v296_v3, 2  ;;  %v326_v12 = vmul.f32 %v668_v6, %v212_v27 }
  0x23   : > { %v311_v32 = vadd.f32 %v303_v20, %v290_v25  ;;  %v361_v34 = vadd.f32 %v353_v62, %v340_v28  ;;  %v354_v38 = vrot.slane %v346_v4, 2  ;;  %v317_v41 = vmul.f32 %v684_v16, %v212_v27 }
  0x24   : > { %v721_v31 = vadd.f32 %v586_v19, %v360_v24  ;;  %v270_v35 = vadd.f32 %v266_v23, %v261_v29  ;;  %v347_v42 = vmul.f32 %v680_v13, %v212_v27  ;;  %v334_v46 = vrot.slane %v326_v12, 1 }
  0x25   : > { %v320_v37 = vadd.f32 %v316_v26, %v311_v32  ;;  %v725_v39 = vadd.f32 %v586_v19, %v361_v34  ;;  %v613_v12 = vmov 16.0  }
  0x26   : > { %v568_v5 = vmul.f32 -1.442695, %v721_v31  ;;  %v291_v40 = vadd.f32 %v283_v30, %v270_v35  ;;  %v355_v48 = vrot.slane %v347_v42, 2 }
  0x27   : > { %v341_v43 = vadd.f32 %v333_v33, %v320_v37  ;;  %v569_v44 = vmul.f32 -1.442695, %v725_v39 }
  0x28   : > { %587 = vpow2.f32 %v568_v5  ;;  %v312_v45 = vadd.f32 %v304_v36, %v291_v40 }
  0x29   : > { %v362_v47 = vadd.f32 %v354_v38, %v341_v43  ;;  %589 = vpow2.f32 %v569_v44 }
  0x2a   : > { %v321_v6 = vadd.f32 %v317_v41, %v312_v45 }
  0x2b   : > { %v730_v49 = vadd.f32 %v586_v19, %v362_v47 }
  0x2c   : > { %v342_v50 = vadd.f32 %v334_v46, %v321_v6 }
  0x2d   : > { %v570_v52 = vmul.f32 -1.442695, %v730_v49 }
  0x2e   : > { %v588_v51 = vpop.eup %587  ;;  %v363_v16 = vadd.f32 %v355_v48, %v342_v50 }
  0x2f   : > { %v384_v53 = vadd.f32 1.0, %v588_v51  ;;  %591 = vpow2.f32 %v570_v52  ;;  %v590_v13 = vpop.eup %589 }
  0x30   : > { %v385_v54 = vadd.f32 1.0, %v590_v13  ;;  %v733_v55 = vadd.f32 %v586_v19, %v363_v16 }
  0x31   : > { %593 = vrcp.f32 %v384_v53  ;;  %v399_v61 = vand.u32 2147483648, %v384_v53  ;;  %vm393_vm0 = vweird.f32 %v384_v53  ;;  %v397_v0 = vand.u32 2147483647, %v384_v53 }
  0x32   : > { %595 = vrcp.f32 %v385_v54  ;;  %v571_v56 = vmul.f32 -1.442695, %v733_v55  ;;  %v412_v8 = vand.u32 2147483647, %v385_v54  ;;  %v414_v10 = vand.u32 2147483648, %v385_v54 }
  0x33   : > { %v400_v15 = vor.u32 1.1754944e-38, %v399_v61  ;;  %vm408_vm3 = vweird.f32 %v385_v54  ;;  %vm398_vm5 = vcmp.eq.f32.partialorder %v397_v0, 8.507059e+37 }
  0x34   : > { %597 = vpow2.f32 %v571_v56  ;;  %vm741_vm6 = vcmp.eq.f32.partialorder %v412_v8, 8.507059e+37  ;;  %v415_v23 = vor.u32 1.1754944e-38, %v414_v10 }
  0x35   : > { %v592_v57 = vpop.eup %591 }
  0x36   : > { %v386_v59 = vadd.f32 1.0, %v592_v57 }
  0x37   : > { %v594_v58 = vpop.eup %593 }
  0x38   : > { %v389_v60 = vmul.f32 %v594_v58, %v384_v53  ;;  %599 = vrcp.f32 %v386_v59  ;;  %v596_v62 = vpop.eup %595  ;;  %vm394_vm1 = vweird.f32 %v594_v58  ;;  %vm423_vm8 = vweird.f32 %v386_v59 }
  0x39   : > { %v404_v7 = vmul.f32 %v596_v62, %v385_v54  ;;  %vm736_vm2 = vmor %vm393_vm0, %vm394_vm1  ;;  %vm409_vm4 = vweird.f32 %v596_v62  ;;  %v429_v26 = vand.u32 2147483648, %v386_v59  ;;  %v427_v28 = vand.u32 2147483647, %v386_v59 }
  0x3a   : > { %v390_v63 = vsub.f32 1.0, %v389_v60  ;;  %v598_v11 = vpop.eup %597  ;;  %vm747_vm7 = vmor %vm408_vm3, %vm409_vm4 }
  0x3b   : > { %v405_v17 = vsub.f32 1.0, %v404_v7  ;;  %v387_v19 = vadd.f32 1.0, %v598_v11  ;;  %vm428_vm12 = vcmp.eq.f32.partialorder %v427_v28, 8.507059e+37 }
  0x3c   : > { %v391_v9 = vmul.f32 %v594_v58, %v390_v63 }
  0x3d   : > { %v406_v20 = vmul.f32 %v596_v62, %v405_v17  ;;  %601 = vrcp.f32 %v387_v19  ;;  %vm438_vm13 = vweird.f32 %v387_v19  ;;  %v444_v40 = vand.u32 2147483648, %v387_v19 }
  0x3e   : > { %v392_v18 = vadd.f32 %v594_v58, %v391_v9  ;;  %v600_v1 = vpop.eup %599  ;;  %603 = vrcp.f32 %v613_v12 }
  0x3f   : > { %v419_v3 = vmul.f32 %v600_v1, %v386_v59  ;;  %v407_v25 = vadd.f32 %v596_v62, %v406_v20  ;;  %vm424_vm9 = vweird.f32 %v600_v1  ;;  %v445_v6 = vor.u32 1.1754944e-38, %v444_v40 }
  0x40   : > { %v396_v21 = vsel %vm736_vm2, %v594_v58, %v392_v18  ;;  %vm764_vm11 = vmor %vm423_vm8, %vm424_vm9  ;;  %vm478_vm2 = vcmask 778240  }
  0x41   : > { %v401_v24 = vsel %vm398_vm5, %v400_v15, %v396_v21  ;;  %v420_v27 = vsub.f32 1.0, %v419_v3  ;;  %v411_v29 = vsel %vm747_vm7, %v596_v62, %v407_v25 }
  0x42   : > { %v448_v4 = vmul.f32 %v401_v24, %v721_v31  ;;  %v416_v30 = vsel %vm741_vm6, %v415_v23, %v411_v29  ;;  %v430_v31 = vor.u32 1.1754944e-38, %v429_v26 }
  0x43   : > { %v421_v32 = vmul.f32 %v600_v1, %v420_v27  ;;  %v449_v33 = vmul.f32 %v416_v30, %v725_v39  ;;  %v602_v35 = vpop.eup %601  ;;  %v442_v39 = vand.u32 2147483647, %v387_v19 }
  0x44   : > { %453 = vst.msk [vmem:[%s754_s30] sm:$0xf] %vm452_vm10, %v448_v4  ;;  %v434_v5 = vmul.f32 %v602_v35, %v387_v19  ;;  %v457_v37 = vsel %vm452_vm10, %v448_v4, 0.0  ;;  %vm439_vm14 = vweird.f32 %v602_v35  ;;  %v604_v46 = vpop.eup %603 }
  0x45   : > { %v422_v36 = vadd.f32 %v600_v1, %v421_v32  ;;  %454 = vst.msk [vmem:[%s754_s30 + $0x4] sm:$0xf] %vm452_vm10, %v449_v33  ;;  %v458_v41 = vsel %vm452_vm10, %v449_v33, 0.0  ;;  %vm440_vm15 = vmor %vm438_vm13, %vm439_vm14  ;;  %vm443_vm0 = vcmp.eq.f32.partialorder %v442_v39, 8.507059e+37  ;;  %v471_v52 = vmul.f32 16.0, %v604_v46 }
  0x46   : > { %v435_v43 = vsub.f32 1.0, %v434_v5  ;;  %v459_v47 = vadd.f32 %v458_v41, %v457_v37  ;;  %vm475_vm1 = vweird.f32 %v604_v46 }
  0x47   : > { %v426_v38 = vsel %vm764_vm11, %v600_v1, %v422_v36  ;;  %v472_v54 = vsub.f32 1.0, %v471_v52 }
  0x48   : > { %v431_v42 = vsel %vm428_vm12, %v430_v31, %v426_v38  ;;  %v436_v45 = vmul.f32 %v602_v35, %v435_v43 }
  0x49   : > { %v450_v44 = vmul.f32 %v431_v42, %v730_v49  ;;  %v473_v58 = vmul.f32 %v604_v46, %v472_v54 }
  0x4a   : > { %v437_v50 = vadd.f32 %v602_v35, %v436_v45 }
  0x4b   : > { %455 = vst.msk [vmem:[%s754_s30 + $0x8] sm:$0xf] %vm452_vm10, %v450_v44  ;;  %v460_v48 = vsel %vm452_vm10, %v450_v44, 0.0  ;;  %v474_v61 = vadd.f32 %v604_v46, %v473_v58 }
  0x4c   : > { %v441_v51 = vsel %vm440_vm15, %v602_v35, %v437_v50  ;;  %v461_v53 = vadd.f32 %v460_v48, %v459_v47 }
  0x4d   : > { %v446_v16 = vsel %vm443_vm0, %v445_v6, %v441_v51  ;;  %v476_v0 = vsel %vm475_vm1, %v604_v46, %v474_v61 }
  0x4e   : > { %v451_v13 = vmul.f32 %v446_v16, %v733_v55 }
  0x50   : > { %456 = vst.msk [vmem:[%s754_s30 + $0xc] sm:$0xf] %vm452_vm10, %v451_v13  ;;  %v462_v49 = vsel %vm452_vm10, %v451_v13, 0.0 }
  0x51   : > { %v463_v56 = vadd.f32 %v462_v49, %v461_v53 }
  0x53   : > { %v464_v57 = vrot.slane %v463_v56, 4 }
  0x55   : > { %v465_v59 = vadd.f32 %v464_v57, %v463_v56 }
  0x57   : > { %v466_v60 = vrot.slane %v465_v59, 2 }
  0x59   : > { %v467_v62 = vadd.f32 %v466_v60, %v465_v59 }
  0x5b   : > { %v468_v63 = vrot.slane %v467_v62, 1 }
  0x5d   : > { %v469_v7 = vadd.f32 %v468_v63, %v467_v62 }
  0x5f   : > { %v477_v55 = vmul.f32 %v476_v0, %v469_v7 }
  0x61   : > { %479 = vst.msk [vmem:[%s206_s7] sm:$0x1] %vm478_vm2, %v477_v55 }
  0x62 PF: > { %s15_s15 = sadd.s32 1, %s611_s15  }
  0x63   : > { %p12_p4 = scmp.ge.s32.totalorder %s15_s15, 4  }
  0x65   :  { %14 = sbr.rel (!%p12_p4) target bundleno = 1 (0x1), region = 74 }

// kernel: two_headed_efficientnet_forward.19
= control target key start
LH: loop header
LB: loop body
LE: loop exit
PB: predicated region body
PF: predicated region fallthrough
CT: control target
= control target key end

     0   :  { %s825_s30 = smov 0   ;;  %s827_s10 = smov 0   ;;  %s954_s0 = inlined_call_operand.vmem [shape: f32[2,16,96], index: 0, kind: input, shape index: {}]   ;;  %s955_s1 = inlined_call_operand.vmem [shape: f32[2,1,96], index: 1, kind: input, shape index: {}]   ;;  %s956_s2 = inlined_call_operand.vmem [shape: f32[96,6], index: 2, kind: input, shape index: {}]   ;;  %s957_s3 = inlined_call_operand.vmem [shape: f32[1,6], index: 3, kind: input, shape index: {}]   ;;  %s958_s4 = inlined_call_operand.vmem [shape: f32[6,96], index: 4, kind: input, shape index: {}]   ;;  %s959_s5 = inlined_call_operand.vmem [shape: f32[1,96], index: 5, kind: input, shape index: {}]   ;;  %s960_s6 = inlined_call_operand.vmem [shape: f32[96,24], index: 6, kind: input, shape index: {}]   ;;  %s961_s7 = inlined_call_operand.vmem [shape: f32[1,24], index: 7, kind: input, shape index: {}]   ;;  %s962_s8 = inlined_call_operand.vmem [shape: f32[2,16,24], index: 8, kind: input, shape index: {}]   ;;  %s963_s9 = inlined_call_operand.vmem [shape: f32[2,16,24], index: 9, kind: output, shape index: {}]  }
   0x1   :  { %s829_s11 = smov 0  }
   0x2 LB: > { %s31_s12 = sadd.s32 1, %s769_s10  ;;  %p700_p0 = scmp.ge.s32.totalorder %s773_s11, 1  ;;  %s773_s11 = sphi %s829_s11, %s19_s11   ;;  %s769_s10 = sphi %s827_s10, %s965_s10   ;;  %s765_s30 = sphi %s825_s30, %s964_s30  }
   0x3   : > { %p33_p1 = scmp.ge.s32.totalorder %s31_s12, 2  ;;  %p333_p2 = scmp.lt.s32.totalorder %s773_s11, 3 }
   0x5   : > { %s967_s12 = smov (%p33_p1, %s31_s12), 0  ;;  %p334_p3 = pnand %p700_p0, %p333_p2 }
   0x6   : > { %p390_p4 = scmp.lt.s32.totalorder (!%p334_p3), %s765_s30, 1 }
   0x7   : > { %337 = sbr.rel (%p334_p3) target bundleno = 501 (0x1f5), region = 56 }
   0xc   : > { %v435_v0 = vld [vmem:[%s956_s2 + $0x58] sm:$0xff]  ;;  %v434_v1 = vld [vmem:[%s956_s2 + $0x50] sm:$0xff]  ;;  %v433_v2 = vld [vmem:[%s956_s2 + $0x48] sm:$0xff]  ;;  %s969_s30 = smov (!%p390_p4, %s765_s30), 1  ;;  %vm437_vm0 = vcmask 785408   ;;  %vm487_vm1 = vcmask 1045504  }
   0xd   : > { %445 = vmatpush.msra.mxu0 %v435_v0  ;;  %v432_v3 = vld [vmem:[%s956_s2 + $0x40] sm:$0xff]  ;;  %v431_v4 = vld [vmem:[%s956_s2 + $0x38] sm:$0xff]  ;;  %v430_v5 = vld [vmem:[%s956_s2 + $0x30] sm:$0xff]  ;;  %s401_s20 = scalar_lea.vmem %s955_s1, %s969_s30  ;;  %vm483_vm6 = vcmask 48128   ;;  %s715_s19 = sshll.u32 %s969_s30, 4  ;;  %vm579_vm11 = vcmask 195584  }
   0xe   : > { %v429_v6 = vld [vmem:[%s956_s2 + $0x28] sm:$0xff]  ;;  %v428_v7 = vld [vmem:[%s956_s2 + $0x20] sm:$0xff]  ;;  %v427_v8 = vld [vmem:[%s956_s2 + $0x18] sm:$0xff]  ;;  %s397_s22 = scalar_lea.vmem %s954_s0, %s715_s19  ;;  %s410_s24 = scalar_lea.vmem %s962_s8, %s715_s19 }
   0xf   : > { %446 = vmatpush.msra.mxu0 %v434_v1  ;;  %v426_v9 = vld [vmem:[%s956_s2 + $0x10] sm:$0xff]  ;;  %v425_v10 = vld [vmem:[%s956_s2 + $0x8] sm:$0xff]  ;;  %v424_v11 = vld [vmem:[%s956_s2] sm:$0xff]  ;;  %s420_s29 = scalar_lea.vmem %s963_s9, %s715_s19 }
  0x10   : > { %v423_v12 = vld [vmem:[%s401_s20] sm:$0x1]  ;;  %v546_v31 = vld [vmem:[%s960_s6 + $0x50] sm:$0xff]  ;;  %v547_v32 = vld [vmem:[%s960_s6 + $0x58] sm:$0xff] }
  0x11   : > { %447 = vmatpush.msra.mxu0 %v433_v2  ;;  %v436_v13 = vld [vmem:[%s957_s3] sm:$0x1]  ;;  %v553_v33 = vpack.c.bf16 %v547_v32, %v546_v31  ;;  %v545_v35 = vld [vmem:[%s960_s6 + $0x48] sm:$0xff]  ;;  %v542_v37 = vld [vmem:[%s960_s6 + $0x30] sm:$0xff] }
  0x12   : > { %v481_v14 = vld [vmem:[%s958_s4] sm:$0x3f]  ;;  %v543_v38 = vld [vmem:[%s960_s6 + $0x38] sm:$0xff]  ;;  %v541_v41 = vld [vmem:[%s960_s6 + $0x28] sm:$0xff] }
  0x13   : > { %448 = vmatpush.msra.mxu0 %v432_v3  ;;  %709 = vmatpush.msk.msra.mxu1 %vm487_vm1, %v481_v14  ;;  %v544_v34 = vld [vmem:[%s960_s6 + $0x40] sm:$0xff]  ;;  %v551_v39 = vpack.c.bf16 %v543_v38, %v542_v37  ;;  %v538_v42 = vld [vmem:[%s960_s6 + $0x10] sm:$0xff]  ;;  %v539_v44 = vld [vmem:[%s960_s6 + $0x18] sm:$0xff] }
  0x14   : > { %563 = vmatpush.bf16.msra.mxu2 %v553_v33  ;;  %v552_v36 = vpack.c.bf16 %v545_v35, %v544_v34  ;;  %v540_v40 = vld [vmem:[%s960_s6 + $0x20] sm:$0xff]  ;;  %v549_v45 = vpack.c.bf16 %v539_v44, %v538_v42  ;;  %v537_v47 = vld [vmem:[%s960_s6 + $0x8] sm:$0xff] }
  0x15   : > { %449 = vmatpush.msra.mxu0 %v431_v4  ;;  %v550_v43 = vpack.c.bf16 %v541_v41, %v540_v40  ;;  %v536_v46 = vld [vmem:[%s960_s6] sm:$0xff]  ;;  %v531_v2 = vld [vmem:[%s397_s22 + $0x8] sm:$0xff] }
  0x16   : > { %v482_v48 = vld [vmem:[%s959_s5] sm:$0x1]  ;;  %v548_v49 = vpack.c.bf16 %v537_v47, %v536_v46 }
  0x17   : > { %450 = vmatpush.msra.mxu0 %v430_v5  ;;  %v530_v1 = vld [vmem:[%s397_s22] sm:$0xff] }
  0x18   : > { %564 = vmatpush.bf16.msra.mxu2 %v552_v36 }
  0x19   : > { %451 = vmatpush.msra.mxu0 %v429_v6 }
  0x1b   : > { %452 = vmatpush.msra.mxu0 %v428_v7  ;;  %v742_v7 = vld [vmem:[%s961_s7] ss:$0 sm:$0xff] }
  0x1c   : > { %565 = vmatpush.bf16.msra.mxu2 %v551_v39 }
  0x1d   : > { %453 = vmatpush.msra.mxu0 %v427_v8 }
  0x1f   : > { %454 = vmatpush.msra.mxu0 %v426_v9  ;;  %v575_v9 = vld [vmem:[%s410_s24] sm:$0xff] }
  0x20   : > { %566 = vmatpush.bf16.msra.mxu2 %v550_v43 }
  0x21   : > { %455 = vmatpush.msra.mxu0 %v425_v10 }
  0x23   : > { %456 = vmatpush.msra.mxu0 %v424_v11 }
  0x24   : > { %707 = vmatmul.msk.f32.vlgmr.msra.gmra.mxu0 %vm437_vm0, %v423_v12  ;;  %567 = vmatpush.bf16.msra.mxu2 %v549_v45 }
  0x28   : > { %568 = vmatpush.bf16.msra.mxu2 %v548_v49 }
  0xa1   : > { %v458_v15 = vpop.f32.mrf.mxu0 }
  0xa2   : > { %v459_v16 = vadd.f32 %v458_v15, %v436_v13  ;;  %v576_v13 = vld [vmem:[%s410_s24 + $0x8] sm:$0xff] }
  0xa4   : > { %v708_v17 = vmul.f32 -1.442695, %v459_v16 }
  0xa6   : > { %743 = vpow2.f32 %v708_v17 }
  0xac   : > { %v744_v18 = vpop.eup %743 }
  0xad   : > { %v464_v19 = vadd.f32 1.0, %v744_v18 }
  0xaf   : > { %745 = vrcp.f32 %v464_v19  ;;  %v476_v23 = vand.u32 2147483648, %v464_v19  ;;  %v474_v25 = vand.u32 2147483647, %v464_v19  ;;  %vm470_vm3 = vweird.f32 %v464_v19 }
  0xb1   : > { %v477_v27 = vor.u32 1.1754944e-38, %v476_v23  ;;  %vm475_vm5 = vcmp.eq.f32.partialorder %v474_v25, 8.507059e+37 }
  0xb5   : > { %v746_v20 = vpop.eup %745 }
  0xb6   : > { %v466_v21 = vmul.f32 %v746_v20, %v464_v19  ;;  %vm471_vm2 = vweird.f32 %v746_v20 }
  0xb7   : > { %vm472_vm4 = vmor %vm470_vm3, %vm471_vm2 }
  0xb8   : > { %v467_v22 = vsub.f32 1.0, %v466_v21 }
  0xba   : > { %v468_v24 = vmul.f32 %v746_v20, %v467_v22 }
  0xbc   : > { %v469_v26 = vadd.f32 %v746_v20, %v468_v24 }
  0xbe   : > { %v473_v28 = vsel %vm472_vm4, %v746_v20, %v469_v26 }
  0xbf   : > { %v478_v29 = vsel %vm475_vm5, %v477_v27, %v473_v28 }
  0xc0   : > { %v480_v30 = vmul.f32 %v478_v29, %v459_v16 }
  0xc2   : > { %710 = vmatmul.msk.f32.vlgmr.msra.gmra.mxu1 %vm483_vm6, %v480_v30 }
 0x13f   : > { %v508_v50 = vpop.f32.mrf.mxu1 }
 0x140   : > { %v509_v51 = vadd.f32 %v508_v50, %v482_v48 }
 0x142   : > { %v711_v52 = vmul.f32 -1.442695, %v509_v51 }
 0x144   : > { %747 = vpow2.f32 %v711_v52 }
 0x14a   : > { %v748_v53 = vpop.eup %747 }
 0x14b   : > { %v514_v54 = vadd.f32 1.0, %v748_v53 }
 0x14d   : > { %749 = vrcp.f32 %v514_v54  ;;  %v526_v58 = vand.u32 2147483648, %v514_v54  ;;  %v524_v60 = vand.u32 2147483647, %v514_v54  ;;  %vm520_vm8 = vweird.f32 %v514_v54 }
 0x14f   : > { %v527_v62 = vor.u32 1.1754944e-38, %v526_v58  ;;  %vm525_vm10 = vcmp.eq.f32.partialorder %v524_v60, 8.507059e+37 }
 0x153   : > { %v750_v55 = vpop.eup %749 }
 0x154   : > { %v516_v56 = vmul.f32 %v750_v55, %v514_v54  ;;  %vm521_vm7 = vweird.f32 %v750_v55 }
 0x155   : > { %vm522_vm9 = vmor %vm520_vm8, %vm521_vm7 }
 0x156   : > { %v517_v57 = vsub.f32 1.0, %v516_v56 }
 0x158   : > { %v518_v59 = vmul.f32 %v750_v55, %v517_v57 }
 0x15a   : > { %v519_v61 = vadd.f32 %v750_v55, %v518_v59 }
 0x15c   : > { %v523_v63 = vsel %vm522_vm9, %v750_v55, %v519_v61 }
 0x15d   : > { %v528_v0 = vsel %vm525_vm10, %v527_v62, %v523_v63 }
 0x15e   : > { %v532_v3 = vperm.slane %v528_v0, 0 }
 0x160   : > { %v533_v4 = vmul.f32 %v532_v3, %v530_v1  ;;  %v534_v5 = vmul.f32 %v532_v3, %v531_v2 }
 0x162   : > { %v535_v6 = vpack.c.bf16 %v534_v5, %v533_v4 }
 0x164   : > { %712 = vmatmul.msk.bf16.vlgmr.msra.gmra.mxu2 %vm437_vm0, %v535_v6 }
 0x1e7   : > { %v570_v8 = vpop.f32.mrf.mxu2 }
 0x1e8   : > { %v571_v10 = vadd.f32 %v742_v7, %v570_v8 }
 0x1ea   : > { %v577_v11 = vadd.f32 %v575_v9, %v571_v10 }
 0x1ec   : > { %580 = vst.msk [vmem:[%s420_s29] sm:$0xff] %vm579_vm11, %v577_v11 }
 0x1ef   : > { %v572_v12 = vpop.f32.mrf.mxu2 }
 0x1f0   : > { %v573_v14 = vadd.f32 %v742_v7, %v572_v12 }
 0x1f2   : > { %v578_v15 = vadd.f32 %v576_v13, %v573_v14 }
 0x1f4   : > { %581 = vst.msk [vmem:[%s420_s29 + $0x8] sm:$0xff] %vm579_vm11, %v578_v15 }
 0x1f5 PF: > { %s19_s11 = sadd.s32 1, %s773_s11   ;;  %s964_s30 = smov %s769_s10 }
 0x1f6   : > { %p16_p5 = scmp.ge.s32.totalorder %s19_s11, 4   ;;  %s965_s10 = smov %s967_s12 }
 0x1f8   :  { %18 = sbr.rel (!%p16_p5) target bundleno = 2 (0x2), region = 92 }

// kernel: two_headed_efficientnet_forward.21
= control target key start
LH: loop header
LB: loop body
LE: loop exit
PB: predicated region body
PF: predicated region fallthrough
CT: control target
= control target key end

     0   :  { %vm19_vm0 = vcmask 523264   ;;  %v98_v3 = vmov 16.0   ;;  %vm69_vm2 = vcmask 1041409   ;;  %s166_s1 = inlined_call_operand.vmem [shape: f32[64,128], index: 1, kind: input, shape index: {}]   ;;  %s167_s0 = inlined_call_operand.vmem [shape: f32[2,16,64], index: 0, kind: input, shape index: {}]   ;;  %s168_s2 = inlined_call_operand.vmem [shape: f32[1,128], index: 2, kind: input, shape index: {}]   ;;  %s169_s3 = inlined_call_operand.vmem [shape: f32[2,128], index: 3, kind: output, shape index: {}]  }
   0x1   :  { %v55_v0 = vld [vmem:[%s166_s1 + $0x30] sm:$0xff]  ;;  %v56_v1 = vld [vmem:[%s166_s1 + $0x38] sm:$0xff]  ;;  %v53_v2 = vld [vmem:[%s166_s1 + $0x20] sm:$0xff]  ;;  %96 = vrcp.f32 %v98_v3 }
   0x2   :  { %v60_v4 = vpack.c.bf16 %v56_v1, %v55_v0  ;;  %v54_v5 = vld [vmem:[%s166_s1 + $0x28] sm:$0xff]  ;;  %v51_v6 = vld [vmem:[%s166_s1 + $0x10] sm:$0xff]  ;;  %v15_v7 = vld [vmem:[%s167_s0] sm:$0xff] }
   0x3   :  { %v59_v8 = vpack.c.bf16 %v54_v5, %v53_v2  ;;  %v16_v9 = vld [vmem:[%s167_s0 + $0x8] sm:$0xff]  ;;  %v17_v10 = vld [vmem:[%s167_s0 + $0x10] sm:$0xff]  ;;  %v18_v11 = vld [vmem:[%s167_s0 + $0x18] sm:$0xff]  ;;  %v20_v12 = vsel %vm19_vm0, %v15_v7, 0.0 }
   0x4   :  { %79 = vmatpush.bf16.msra.mxu0 %v60_v4  ;;  %v52_v13 = vld [vmem:[%s166_s1 + $0x18] sm:$0xff]  ;;  %v21_v14 = vsel %vm19_vm0, %v16_v9, 0.0  ;;  %v29_v15 = vsel %vm19_vm0, %v17_v10, 0.0  ;;  %v30_v16 = vsel %vm19_vm0, %v18_v11, 0.0  ;;  %v49_v24 = vld [vmem:[%s166_s1] sm:$0xff]  ;;  %v50_v25 = vld [vmem:[%s166_s1 + $0x8] sm:$0xff] }
   0x5   :  { %v22_v17 = vadd.f32 %v21_v14, %v20_v12  ;;  %v31_v18 = vadd.f32 %v30_v16, %v29_v15  ;;  %v58_v20 = vpack.c.bf16 %v52_v13, %v51_v6  ;;  %v57_v29 = vpack.c.bf16 %v50_v25, %v49_v24  ;;  %v95_v49 = vld [vmem:[%s168_s2] ss:$0 sm:$0xff] }
   0x7   :  { %v97_v19 = vpop.eup %96  ;;  %v23_v21 = vrot.slane %v22_v17, 4  ;;  %v32_v22 = vrot.slane %v31_v18, 4 }
   0x8   :  { %80 = vmatpush.bf16.msra.mxu0 %v59_v8  ;;  %v39_v23 = vmul.f32 16.0, %v97_v19  ;;  %vm43_vm1 = vweird.f32 %v97_v19 }
   0x9   :  { %v24_v26 = vadd.f32 %v23_v21, %v22_v17  ;;  %v33_v27 = vadd.f32 %v32_v22, %v31_v18 }
   0xa   :  { %v40_v28 = vsub.f32 1.0, %v39_v23 }
   0xb   :  { %v25_v30 = vrot.slane %v24_v26, 2  ;;  %v34_v31 = vrot.slane %v33_v27, 2 }
   0xc   :  { %81 = vmatpush.bf16.msra.mxu0 %v58_v20  ;;  %v41_v32 = vmul.f32 %v97_v19, %v40_v28 }
   0xd   :  { %v26_v33 = vadd.f32 %v25_v30, %v24_v26  ;;  %v35_v34 = vadd.f32 %v34_v31, %v33_v27 }
   0xe   :  { %v42_v35 = vadd.f32 %v97_v19, %v41_v32 }
   0xf   :  { %v27_v36 = vrot.slane %v26_v33, 1  ;;  %v36_v37 = vrot.slane %v35_v34, 1 }
  0x10   :  { %82 = vmatpush.bf16.msra.mxu0 %v57_v29  ;;  %v44_v38 = vsel %vm43_vm1, %v97_v19, %v42_v35 }
  0x11   :  { %v28_v39 = vadd.f32 %v27_v36, %v26_v33  ;;  %v37_v40 = vadd.f32 %v36_v37, %v35_v34 }
  0x13   :  { %v45_v41 = vmul.f32 %v44_v38, %v28_v39  ;;  %v46_v42 = vmul.f32 %v44_v38, %v37_v40 }
  0x15   :  { %v47_v43 = vpack.c.bf16 %v45_v41, %v45_v41  ;;  %v48_v44 = vpack.c.bf16 %v46_v42, %v46_v42 }
  0x17   :  { %v67_v45 = vunpack.c.l.b16 %v47_v43  ;;  %v68_v46 = vunpack.c.l.b16 %v48_v44 }
  0x19   :  { %v70_v47 = vsel %vm69_vm2, %v68_v46, %v67_v45 }
  0x1a   :  { %v71_v48 = vpack.c.b16 %v70_v47, %v70_v47 }
  0x1c   :  { %93 = vmatmul.msk.bf16.vlgmr.msra.gmra.mxu0 %vm19_vm0, %v71_v48 }
  0x99   :  { %v84_v50 = vpop.f32.mrf.mxu0 }
  0x9a   :  { %v85_v51 = vadd.f32 %v95_v49, %v84_v50 }
  0x9c   :  { %88 = vst [vmem:[%s169_s3] sm:$0x3] %v85_v51 }
  0xa1   :  { %v86_v52 = vpop.f32.mrf.mxu0 }

// kernel: two_headed_efficientnet_forward.20
= control target key start
LH: loop header
LB: loop body
LE: loop exit
PB: predicated region body
PF: predicated region fallthrough
CT: control target
= control target key end

     0   :  { %vm19_vm0 = vcmask 523264   ;;  %vm46_vm1 = vcmask 1043456   ;;  %v207_v1 = vmov 0.0   ;;  %vm39_vm2 = vcmask 195584   ;;  %s284_s1 = inlined_call_operand.vmem [shape: f32[24,64], index: 1, kind: input, shape index: {}]   ;;  %s285_s0 = inlined_call_operand.vmem [shape: f32[32,24], index: 0, kind: input, shape index: {}]   ;;  %s286_s2 = inlined_call_operand.vmem [shape: f32[1,64], index: 2, kind: input, shape index: {}]   ;;  %s287_s3 = inlined_call_operand.vmem [shape: f32[32,64], index: 3, kind: output, shape index: {}]  }
   0x1   :  { %v36_v0 = vld [vmem:[%s284_s1 + $0x10] sm:$0xff]  ;;  %20 = vst.msk [vmem:[#allocation2] sm:$0xff] %vm19_vm0, %v207_v1  ;;  %v34_v3 = vld [vmem:[%s284_s1] sm:$0xff]  ;;  %v35_v4 = vld [vmem:[%s284_s1 + $0x8] sm:$0xff] }
   0x2   :  { %v38_v2 = vpack.c.bf16 %v36_v0, %v36_v0  ;;  %21 = vst.msk [vmem:[#allocation2 + $0x8] sm:$0xff] %vm19_vm0, %v207_v1  ;;  %v28_v6 = vld [vmem:[%s285_s0] sm:$0xff]  ;;  %v37_v7 = vpack.c.bf16 %v35_v4, %v34_v3  ;;  %v29_v8 = vld [vmem:[%s285_s0 + $0x8] sm:$0xff]  ;;  %v30_v9 = vld [vmem:[%s285_s0 + $0x10] sm:$0xff] }
   0x3   :  { %22 = vst.msk [vmem:[#allocation2 + $0x10] sm:$0xff] %vm19_vm0, %v207_v1  ;;  %v31_v10 = vld [vmem:[%s285_s0 + $0x18] sm:$0xff]  ;;  %v32_v11 = vpack.c.bf16 %v29_v8, %v28_v6  ;;  %v190_v21 = vld [vmem:[%s286_s2] ss:$0 sm:$0xff] }
   0x4   :  { %v48_v5 = vsel %vm46_vm1, %v38_v2, 0  ;;  %23 = vst.msk [vmem:[#allocation2 + $0x18] sm:$0xff] %vm19_vm0, %v207_v1  ;;  %v33_v12 = vpack.c.bf16 %v31_v10, %v30_v9 }
   0x5   :  { %56 = vmatpush.bf16.msra.mxu0 %v48_v5  ;;  %187 = vmatpush.bf16.msra.mxu1 %v48_v5 }
   0x8   :  { %v24_v13 = vld [vmem:[#allocation2] sm:$0xff] }
   0x9   :  { %57 = vmatpush.bf16.msra.mxu0 %v37_v7  ;;  %188 = vmatpush.bf16.msra.mxu1 %v37_v7  ;;  %v25_v19 = vld [vmem:[#allocation2 + $0x8] sm:$0xff] }
   0xa   :  { %v26_v14 = vld [vmem:[#allocation2 + $0x10] sm:$0xff] }
   0xb   :  { %v27_v20 = vld [vmem:[#allocation2 + $0x18] sm:$0xff] }
   0xc   :  { %181 = vmatmul.msk.bf16.vlgmr.msra.gmra.mxu0 %vm39_vm2, %v32_v11  ;;  %182 = vmatmul.msk.bf16.vlgmr.msra.gmra.mxu1 %vm39_vm2, %v33_v12 }
  0x89   :  { %v59_v15 = vpop.f32.mrf.mxu0  ;;  %v64_v16 = vpop.f32.mrf.mxu1 }
  0x8a   :  { %v69_v17 = vadd.f32 %v59_v15, %v24_v13  ;;  %v71_v18 = vadd.f32 %v64_v16, %v26_v14 }
  0x8c   :  { %74 = vst.msk [vmem:[#allocation2] sm:$0xff] %vm19_vm0, %v69_v17 }
  0x8d   :  { %76 = vst.msk [vmem:[#allocation2 + $0x10] sm:$0xff] %vm19_vm0, %v71_v18 }
  0x91   :  { %v61_v22 = vpop.f32.mrf.mxu0  ;;  %v66_v23 = vpop.f32.mrf.mxu1 }
  0x92   :  { %v70_v24 = vadd.f32 %v61_v22, %v25_v19  ;;  %v72_v25 = vadd.f32 %v66_v23, %v27_v20 }
  0x93   :  { %v81_v26 = vld [vmem:[#allocation2] sm:$0xff] }
  0x94   :  { %v89_v27 = vadd.f32 %v190_v21, %v81_v26  ;;  %v83_v28 = vld [vmem:[#allocation2 + $0x10] sm:$0xff]  ;;  %75 = vst.msk [vmem:[#allocation2 + $0x8] sm:$0xff] %vm19_vm0, %v70_v24 }
  0x95   :  { %v91_v29 = vadd.f32 %v190_v21, %v83_v28  ;;  %77 = vst.msk [vmem:[#allocation2 + $0x18] sm:$0xff] %vm19_vm0, %v72_v25 }
  0x96   :  { %v183_v30 = vmul.f32 -1.442695, %v89_v27 }
  0x97   :  { %v185_v31 = vmul.f32 -1.442695, %v91_v29 }
  0x98   :  { %191 = vpow2.f32 %v183_v30 }
  0x99   :  { %193 = vpow2.f32 %v185_v31 }
  0x9b   :  { %v82_v32 = vld [vmem:[#allocation2 + $0x8] sm:$0xff] }
  0x9c   :  { %v260_v33 = vadd.f32 %v190_v21, %v82_v32  ;;  %v84_v34 = vld [vmem:[#allocation2 + $0x18] sm:$0xff] }
  0x9d   :  { %v262_v35 = vadd.f32 %v190_v21, %v84_v34 }
  0x9e   :  { %v192_v36 = vpop.eup %191  ;;  %v184_v37 = vmul.f32 -1.442695, %v260_v33 }
  0x9f   :  { %v194_v38 = vpop.eup %193  ;;  %v105_v39 = vadd.f32 1.0, %v192_v36  ;;  %v186_v40 = vmul.f32 -1.442695, %v262_v35 }
  0xa0   :  { %v107_v41 = vadd.f32 1.0, %v194_v38  ;;  %195 = vpow2.f32 %v184_v37 }
  0xa1   :  { %197 = vrcp.f32 %v105_v39  ;;  %v118_v51 = vand.u32 2147483647, %v105_v39  ;;  %v120_v52 = vand.u32 2147483648, %v105_v39  ;;  %vm114_vm5 = vweird.f32 %v105_v39 }
  0xa2   :  { %199 = vrcp.f32 %v107_v41  ;;  %v150_v55 = vand.u32 2147483648, %v107_v41  ;;  %v148_v57 = vand.u32 2147483647, %v107_v41  ;;  %vm144_vm7 = vweird.f32 %v107_v41 }
  0xa3   :  { %201 = vpow2.f32 %v186_v40  ;;  %v121_v60 = vor.u32 1.1754944e-38, %v120_v52  ;;  %vm119_vm8 = vcmp.eq.f32.partialorder %v118_v51, 8.507059e+37 }
  0xa4   :  { %v151_v63 = vor.u32 1.1754944e-38, %v150_v55  ;;  %vm149_vm10 = vcmp.eq.f32.partialorder %v148_v57, 8.507059e+37 }
  0xa6   :  { %v196_v42 = vpop.eup %195 }
  0xa7   :  { %v198_v43 = vpop.eup %197  ;;  %v106_v44 = vadd.f32 1.0, %v196_v42 }
  0xa8   :  { %v200_v45 = vpop.eup %199  ;;  %v110_v46 = vmul.f32 %v198_v43, %v105_v39  ;;  %vm115_vm3 = vweird.f32 %v198_v43 }
  0xa9   :  { %v202_v47 = vpop.eup %201  ;;  %v140_v48 = vmul.f32 %v200_v45, %v107_v41  ;;  %203 = vrcp.f32 %v106_v44  ;;  %vm145_vm4 = vweird.f32 %v200_v45  ;;  %vm116_vm6 = vmor %vm114_vm5, %vm115_vm3  ;;  %v135_v8 = vand.u32 2147483648, %v106_v44 }
  0xaa   :  { %v111_v49 = vsub.f32 1.0, %v110_v46  ;;  %v108_v50 = vadd.f32 1.0, %v202_v47  ;;  %vm146_vm9 = vmor %vm144_vm7, %vm145_vm4  ;;  %v133_v11 = vand.u32 2147483647, %v106_v44  ;;  %vm129_vm12 = vweird.f32 %v106_v44 }
  0xab   :  { %v141_v53 = vsub.f32 1.0, %v140_v48  ;;  %v136_v15 = vor.u32 1.1754944e-38, %v135_v8 }
  0xac   :  { %v112_v54 = vmul.f32 %v198_v43, %v111_v49  ;;  %205 = vrcp.f32 %v108_v50  ;;  %v165_v14 = vand.u32 2147483648, %v108_v50  ;;  %v163_v17 = vand.u32 2147483647, %v108_v50 }
  0xad   :  { %v142_v56 = vmul.f32 %v200_v45, %v141_v53  ;;  %vm134_vm15 = vcmp.eq.f32.partialorder %v133_v11, 8.507059e+37  ;;  %vm159_vm1 = vweird.f32 %v108_v50 }
  0xae   :  { %v113_v58 = vadd.f32 %v198_v43, %v112_v54  ;;  %v166_v22 = vor.u32 1.1754944e-38, %v165_v14  ;;  %vm164_vm3 = vcmp.eq.f32.partialorder %v163_v17, 8.507059e+37 }
  0xaf   :  { %v204_v59 = vpop.eup %203  ;;  %v143_v61 = vadd.f32 %v200_v45, %v142_v56 }
  0xb0   :  { %v117_v62 = vsel %vm116_vm6, %v198_v43, %v113_v58  ;;  %v125_v0 = vmul.f32 %v204_v59, %v106_v44  ;;  %vm130_vm11 = vweird.f32 %v204_v59 }
  0xb1   :  { %v122_v1 = vsel %vm119_vm8, %v121_v60, %v117_v62  ;;  %v147_v2 = vsel %vm146_vm9, %v200_v45, %v143_v61  ;;  %vm131_vm13 = vmor %vm129_vm12, %vm130_vm11 }
  0xb2   :  { %v206_v3 = vpop.eup %205  ;;  %v169_v4 = vmul.f32 %v122_v1, %v89_v27  ;;  %v152_v5 = vsel %vm149_vm10, %v151_v63, %v147_v2  ;;  %v126_v6 = vsub.f32 1.0, %v125_v0 }
  0xb3   :  { %v171_v7 = vmul.f32 %v152_v5, %v91_v29  ;;  %v155_v9 = vmul.f32 %v206_v3, %v108_v50  ;;  %vm160_vm14 = vweird.f32 %v206_v3 }
  0xb4   :  { %173 = vst.msk [vmem:[%s287_s3] sm:$0xff] %vm19_vm0, %v169_v4  ;;  %v127_v10 = vmul.f32 %v204_v59, %v126_v6  ;;  %vm161_vm2 = vmor %vm159_vm1, %vm160_vm14 }
  0xb5   :  { %175 = vst.msk [vmem:[%s287_s3 + $0x10] sm:$0xff] %vm19_vm0, %v171_v7  ;;  %v156_v12 = vsub.f32 1.0, %v155_v9 }
  0xb6   :  { %v128_v13 = vadd.f32 %v204_v59, %v127_v10 }
  0xb7   :  { %v157_v16 = vmul.f32 %v206_v3, %v156_v12 }
  0xb8   :  { %v132_v18 = vsel %vm131_vm13, %v204_v59, %v128_v13 }
  0xb9   :  { %v137_v19 = vsel %vm134_vm15, %v136_v15, %v132_v18  ;;  %v158_v20 = vadd.f32 %v206_v3, %v157_v16 }
  0xba   :  { %v170_v21 = vmul.f32 %v137_v19, %v260_v33 }
  0xbb   :  { %v162_v23 = vsel %vm161_vm2, %v206_v3, %v158_v20 }
  0xbc   :  { %174 = vst.msk [vmem:[%s287_s3 + $0x8] sm:$0xff] %vm19_vm0, %v170_v21  ;;  %v167_v24 = vsel %vm164_vm3, %v166_v22, %v162_v23 }
  0xbd   :  { %v172_v25 = vmul.f32 %v167_v24, %v262_v35 }
  0xbf   :  { %176 = vst.msk [vmem:[%s287_s3 + $0x18] sm:$0xff] %vm19_vm0, %v172_v25 }

</bundles_post_ra>
